<compile_context>
chip_gen: v7x
topology: tpu7x:2x2x1
jax: 0.10.0
libtpu: 0.0.40
codegen_flags: <defaults>
</compile_context>

<pallas_src>
import jax
import jax.numpy as jnp
from jax.experimental import pallas as pl
from jax.experimental.pallas import tpu as pltpu


# ----------------------------------------------------------------------------- 
# Kernel
# -----------------------------------------------------------------------------
def temporal_attention_kernel(
    hidden_ref,   # [TB, H]      f32 VMEM
    mem_ref,      # [TB, TS, M]  bf16/f32 VMEM  (one seq tile per grid step)
    w_h_ref,      # [1, H]       f32 VMEM  (attention weight, hidden half)
    w_m_ref,      # [1, M]       f32 VMEM  (attention weight, memory half)
    b_att_ref,    # [1, 1]       f32 SMEM  (attention bias scalar)
    w_ctx_ref,    # [M, H]       f32 VMEM  (context weight, transposed)
    b_ctx_ref,    # [1, H]       f32 VMEM
    ctx_ref,      # [TB, H]      f32 out   (written on the last seq step)
    attn_ref,     # [NS, TB, TS] f32 out   (resident across seq steps)
    m_sc,         # [TB, 1]      f32 VMEM scratch: running max
    acc_sc,       # [TB, M]      f32 VMEM scratch: running exp-weighted memory sum
    sh_sc,        # [TB, 1]      f32 VMEM scratch: hidden-half score + bias
):
    si = pl.program_id(1)
    ns = pl.num_programs(1)

    @pl.when(si == 0)
    def _init():
        m_sc[...] = jnp.full_like(m_sc, -jnp.inf)
        acc_sc[...] = jnp.zeros_like(acc_sc)
        # Hoisted out of the per-seq-step path: a per-row constant over the
        # seq axis (hidden half of the attention linear + its bias).
        sh_sc[...] = (
            jnp.sum(hidden_ref[...] * w_h_ref[...], axis=-1, keepdims=True)
            + b_att_ref[0, 0]
        )

    mem = mem_ref[...]                                                # [TB, TS, M]

    # Attention scores for this seq tile — VPU multiply (f32) + XLU lane reduce,
    # no reshapes and no degenerate MXU matvecs on the score path.
    s_m = jnp.sum(
        mem.astype(jnp.float32) * w_m_ref[...][None, :, :], axis=-1
    )                                                                 # [TB, TS]
    scores = s_m + sh_sc[...]                                         # [TB, TS]

    # Raw scores go straight into the (VMEM-resident) attention output block;
    # the finalize step turns them into softmax weights in place.  No separate
    # scores scratch and no finalize copy loop.
    attn_ref[si] = scores

    # Online-softmax update of the running max and the exp-weighted memory sum.
    m_prev = m_sc[...]                                                # [TB, 1]
    m_new = jnp.maximum(m_prev, jnp.max(scores, axis=-1, keepdims=True))
    alpha = jnp.exp(m_prev - m_new)                                   # [TB, 1]
    p = jnp.exp(scores - m_new)                                       # [TB, TS]
    # Seq-tile contraction on the MXU in the streaming dtype (bf16), f32 acc.
    pw = jnp.einsum(
        "bqt,btm->bqm", p[:, None, :].astype(mem.dtype), mem,
        preferred_element_type=jnp.float32,
    )[:, 0, :]                                                        # [TB, M]
    acc_sc[...] = alpha * acc_sc[...] + pw
    m_sc[...] = m_new

    @pl.when(si == ns - 1)
    def _finalize():
        scores_all = attn_ref[...]                                    # [NS, TB, TS]
        p_all = jnp.exp(scores_all - m_sc[...])                       # [NS, TB, TS]
        l = jnp.sum(jnp.sum(p_all, axis=0), axis=-1, keepdims=True)   # [TB, 1]
        # EUP reciprocal + one Newton step: full f32 accuracy, no VPU divide.
        inv_l = pl.reciprocal(l, approx=True)
        inv_l = inv_l * (2.0 - l * inv_l)
        attn_ref[...] = p_all * inv_l                                 # normalize in place
        weighted = acc_sc[...] * inv_l                                # [TB, M]
        ctx_ref[...] = (
            jnp.dot(weighted, w_ctx_ref[...], preferred_element_type=jnp.float32)
            + b_ctx_ref[...]
        )


# ----------------------------------------------------------------------------- 
# Tile / VMEM budgeting
# -----------------------------------------------------------------------------
def _vmem_capacity_bytes():
    """Physical VMEM of the current chip; conservative (v7x) fallback."""
    try:
        info = pltpu.get_tpu_info()
        for name in ("vmem_capacity_bytes", "vmem_bytes", "vmem_size_bytes"):
            cap = getattr(info, name, None)
            if cap:
                return int(cap)
    except Exception:
        pass
    return 64 << 20


def _tile_candidates(n, align):
    """Divisors of n that are multiples of `align`, plus n itself (always legal)."""
    cands = {n}
    for d in range(align, n, align):
        if n % d == 0:
            cands.add(d)
    return sorted(cands)


def _pick_tiles(B, S, M, mem_itemsize, mem_budget_bytes):
    tb_cands = _tile_candidates(B, 8)
    ts_cands = _tile_candidates(S, 128)
    tb_min = tb_cands[0]

    def mem_bytes(tb, ts):
        # double-buffered memory tile — the dominant per-step VMEM consumer
        return 2 * tb * ts * M * mem_itemsize

    # Seq tile first: it is the streamed axis, so a big ts amortizes the
    # ~0.35 us per-grid-step overhead and keeps the HBM pipe full.
    ts = ts_cands[0]
    for c in ts_cands:
        if mem_bytes(tb_min, c) <= mem_budget_bytes:
            ts = max(ts, c)
    # Batch tile next (cap 64); then make sure at least 2 batch tiles remain so
    # the "parallel" batch axis can still be split across TensorCores on v7x.
    tb = tb_min
    for c in tb_cands:
        if c <= 64 and mem_bytes(c, ts) <= mem_budget_bytes:
            tb = max(tb, c)
    if B // tb < 2:
        smaller = [c for c in tb_cands
                   if B // c >= 2 and mem_bytes(c, ts) <= mem_budget_bytes]
        if smaller:
            tb = max(smaller)
    return tb, ts


# ----------------------------------------------------------------------------- 
# Wrapper
# -----------------------------------------------------------------------------
def temporal_attention(hidden_state, memory_vectors, params, *,
                       tb=None, ts=None, stream_dtype=jnp.bfloat16):
    """Gridded online-softmax attention: ctx [B,H], attn [B,S]."""
    B, H = hidden_state.shape
    _, S, M = memory_vectors.shape

    # Stream the big [B,S,M] operand at reduced precision; everything else f32.
    # TODO(synk): in the full LSTMMemoryNetwork pipeline memory_sequences should
    # be kept in bf16 upstream so this cast does not cost an extra HBM pass.
    mem_stream = memory_vectors.astype(stream_dtype)
    mem_itemsize = jnp.dtype(stream_dtype).itemsize

    vmem_cap = _vmem_capacity_bytes()
    mem_budget = int(0.35 * vmem_cap)
    if tb is None or ts is None:
        auto_tb, auto_ts = _pick_tiles(B, S, M, mem_itemsize, mem_budget)
        tb = auto_tb if tb is None else tb
        ts = auto_ts if ts is None else ts
    assert B % tb == 0 and S % ts == 0
    assert tb == B or tb % 8 == 0
    assert ts == S or ts % 128 == 0
    nb, ns = B // tb, S // ts
    grid = (nb, ns)

    # Estimated VMEM footprint -> raise the scoped limit above the 16/32 MiB
    # defaults so the larger tiles actually fit (clamped below physical VMEM).
    need = (
        2 * tb * ts * M * mem_itemsize        # double-buffered memory tile
        + tb * ts * M * 4                     # f32 temp headroom for score reduce
        + 2 * tb * H * 4                      # hidden block
        + 2 * 4 * (H + M + M * H + H)         # weights (double-buffered)
        + 2 * (tb * H + tb * S) * 4           # ctx + attn output blocks
        + (tb * M + 2 * tb) * 4               # scratch
    )
    vmem_limit = int(min(0.9 * vmem_cap, max(32 << 20, 1.5 * need)))

    # Advisory cost for XLA's scheduler around the kernel.
    flops = 2 * B * S * M + 2 * B * S * M + 2 * B * M * H + 4 * B * S
    transcendentals = 2 * B * S
    bytes_accessed = (
        B * S * M * mem_itemsize
        + 4 * (2 * B * H + 2 * B * S + M * H + 2 * H + M + 1)
    )
    cost = pl.CostEstimate(flops=int(flops), transcendentals=int(transcendentals),
                           bytes_accessed=int(bytes_accessed))

    const = lambda bi, si: (0, 0)

    ctx, attn_tiles = pl.pallas_call(
        temporal_attention_kernel,
        out_shape=(
            jax.ShapeDtypeStruct((B, H), jnp.float32),        # context_vector
            jax.ShapeDtypeStruct((ns, B, ts), jnp.float32),   # attention tiles
        ),
        grid=grid,
        in_specs=[
            pl.BlockSpec((tb, H), lambda bi, si: (bi, 0)),            # hidden_state
            pl.BlockSpec((tb, ts, M), lambda bi, si: (bi, si, 0)),    # memory tile
            pl.BlockSpec((1, H), const),                              # w_h
            pl.BlockSpec((1, M), const),                              # w_m
            pl.BlockSpec((1, 1), const,
                         memory_space=pltpu.MemorySpace.SMEM),        # b_att scalar
            pl.BlockSpec((M, H), const),                              # w_ctx
            pl.BlockSpec((1, H), const),                              # b_ctx
        ],
        out_specs=(
            pl.BlockSpec((tb, H), lambda bi, si: (bi, 0)),            # ctx
            pl.BlockSpec((ns, tb, ts), lambda bi, si: (0, bi, 0)),    # attn (resident)
        ),
        scratch_shapes=[
            pltpu.VMEM((tb, 1), jnp.float32),   # running max
            pltpu.VMEM((tb, M), jnp.float32),   # running exp-weighted memory sum
            pltpu.VMEM((tb, 1), jnp.float32),   # hidden-half score + bias
        ],
        compiler_params=pltpu.CompilerParams(
            dimension_semantics=("parallel", "arbitrary"),
            vmem_limit_bytes=vmem_limit,
        ),
        cost_estimate=cost,
    )(
        hidden_state,
        mem_stream,
        params["w_h"],
        params["w_m"],
        params["b_att"],
        params["w_ctx"],
        params["b_ctx"],
    )

    # [ns, B, ts] -> [B, S]; tiny (B*S*4 bytes) layout pass outside the kernel.
    attn = jnp.transpose(attn_tiles, (1, 0, 2)).reshape(B, S)
    return ctx, attn


# ----------------------------------------------------------------------------- 
# Params / reference
# -----------------------------------------------------------------------------
def init_params(key, hidden_dim, memory_dim):
    """nn.Linear-style init, stored in lane-dense / transposed layouts."""
    k1, k2, k3, k4 = jax.random.split(key, 4)
    fan_att = hidden_dim + memory_dim
    bound_att = 1.0 / jnp.sqrt(fan_att)
    # attention_linear.weight: [1, H+M], split into lane-dense rows.
    w_att = jax.random.uniform(k1, (1, fan_att), jnp.float32, -bound_att, bound_att)
    b_att = jax.random.uniform(k2, (1, 1), jnp.float32, -bound_att, bound_att)
    # context_linear.weight: [H, M] in torch, stored transposed [M, H].
    bound_ctx = 1.0 / jnp.sqrt(memory_dim)
    w_ctx = jax.random.uniform(k3, (memory_dim, hidden_dim), jnp.float32,
                               -bound_ctx, bound_ctx)
    b_ctx = jax.random.uniform(k4, (1, hidden_dim), jnp.float32,
                               -bound_ctx, bound_ctx)
    return {
        "w_h": w_att[:, :hidden_dim],   # [1, H]
        "w_m": w_att[:, hidden_dim:],   # [1, M]
        "b_att": b_att,                 # [1, 1]
        "w_ctx": w_ctx,                 # [M, H]
        "b_ctx": b_ctx,                 # [1, H]
    }


def reference_forward(hidden_state, memory_vectors, params):
    """Pure-JAX mirror of TemporalAttentionMechanism.forward (f32)."""
    B, S, M = memory_vectors.shape
    H = hidden_state.shape[-1]
    w_att = jnp.concatenate([params["w_h"], params["w_m"]], axis=-1)   # [1, H+M]
    hidden_expanded = jnp.broadcast_to(hidden_state[:, None, :], (B, S, H))
    combined = jnp.concatenate([hidden_expanded, memory_vectors], axis=-1)
    scores = jnp.einsum("bsk,k->bs", combined, w_att[0]) + params["b_att"][0, 0]
    attn = jax.nn.softmax(scores, axis=1)
    weighted = jnp.sum(memory_vectors * attn[:, :, None], axis=1)      # [B, M]
    ctx = weighted @ params["w_ctx"] + params["b_ctx"]                 # [B, H]
    return ctx, attn


def _check(ctx, attn, ctx_exp, attn_exp, *, ctx_atol, ctx_rtol, attn_atol):
    assert ctx.shape == ctx_exp.shape and attn.shape == attn_exp.shape
    assert jnp.allclose(jnp.sum(attn, axis=-1), 1.0, atol=1e-3)
    assert jnp.allclose(attn, attn_exp, atol=attn_atol, rtol=1e-2), \
        float(jnp.max(jnp.abs(attn - attn_exp)))
    assert jnp.allclose(ctx, ctx_exp, atol=ctx_atol, rtol=ctx_rtol), \
        float(jnp.max(jnp.abs(ctx - ctx_exp)))


if __name__ == "__main__":
    # Small but lane/sublane-friendly shapes (the module's real sizes are
    # H = 2*512 = 1024, M = 768; the same budgeted tiling generalizes).
    B, S, H, M = 16, 256, 128, 128

    key = jax.random.PRNGKey(0)
    k_h, k_m, k_p = jax.random.split(key, 3)
    hidden_state = jax.random.normal(k_h, (B, H), jnp.float32)
    memory_vectors = jax.random.normal(k_m, (B, S, M), jnp.float32)
    params = init_params(k_p, H, M)

    ctx_exp, attn_exp = reference_forward(hidden_state, memory_vectors, params)

    # 1) Default path: bf16 streaming, auto (VMEM-budgeted) tiles.
    ctx, attn = temporal_attention(hidden_state, memory_vectors, params)
    jax.block_until_ready((ctx, attn))
    _check(ctx, attn, ctx_exp, attn_exp,
           ctx_atol=1e-2, ctx_rtol=2e-2, attn_atol=2e-3)

    # 2) Force a multi-tile grid so the online-softmax / resident-output path
    #    across several seq steps is exercised (bf16 stream).
    ctx2, attn2 = temporal_attention(hidden_state, memory_vectors, params,
                                     tb=8, ts=128)
    jax.block_until_ready((ctx2, attn2))
    _check(ctx2, attn2, ctx_exp, attn_exp,
           ctx_atol=1e-2, ctx_rtol=2e-2, attn_atol=2e-3)

    # 3) f32 streaming at the same multi-tile grid: tight-tolerance parity with
    #    the reference (bf16 loosening is purely a streaming-precision choice).
    ctx3, attn3 = temporal_attention(hidden_state, memory_vectors, params,
                                     tb=8, ts=128, stream_dtype=jnp.float32)
    jax.block_until_ready((ctx3, attn3))
    _check(ctx3, attn3, ctx_exp, attn_exp,
           ctx_atol=1e-4, ctx_rtol=1e-4, attn_atol=1e-4)

    print("KERNEL_OK")
</pallas_src>

<mosaic_0001>
module attributes {stable_mosaic.version = 11 : i64} {
  func.func @temporal_attention_kernel(%arg0: i32, %arg1: i32, %arg2: memref<8x128xf32, #tpu.memory_space<vmem>>, %arg3: memref<8x256x128xbf16, #tpu.memory_space<vmem>>, %arg4: memref<1x128xf32, #tpu.memory_space<vmem>>, %arg5: memref<1x128xf32, #tpu.memory_space<vmem>>, %arg6: memref<1x1xf32, #tpu.memory_space<smem>>, %arg7: memref<128x128xf32, #tpu.memory_space<vmem>>, %arg8: memref<1x128xf32, #tpu.memory_space<vmem>>, %arg9: memref<8x128xf32, #tpu.memory_space<vmem>>, %arg10: memref<1x8x256xf32, #tpu.memory_space<vmem>>, %arg11: memref<8x1xf32, #tpu.memory_space<vmem>>, %arg12: memref<8x128xf32, #tpu.memory_space<vmem>>, %arg13: memref<8x1xf32, #tpu.memory_space<vmem>>) attributes {dimension_semantics = [#tpu.dimension_semantics<parallel>, #tpu.dimension_semantics<arbitrary>], iteration_bounds = array<i64: 2, 1>, scalar_prefetch = 0 : i64, scratch_operands = 3 : i64, tpu.core_type = #tpu.core_type<tc>, window_params = [{transform_indices = @transform_0, window_bounds = array<i64: 8, 128>}, {transform_indices = @transform_1, window_bounds = array<i64: 8, 256, 128>}, {pipeline_mode = #tpu.pipeline_mode<synchronous>, transform_indices = @transform_2, window_bounds = array<i64: 1, 128>}, {pipeline_mode = #tpu.pipeline_mode<synchronous>, transform_indices = @transform_3, window_bounds = array<i64: 1, 128>}, {transform_indices = @transform_4, window_bounds = array<i64: 1, 1>}, {pipeline_mode = #tpu.pipeline_mode<synchronous>, transform_indices = @transform_5, window_bounds = array<i64: 128, 128>}, {pipeline_mode = #tpu.pipeline_mode<synchronous>, transform_indices = @transform_6, window_bounds = array<i64: 1, 128>}, {transform_indices = @transform_7, window_bounds = array<i64: 8, 128>}, {transform_indices = @transform_8, window_bounds = array<i64: 1, 8, 256>}]} {
    %c0_i32 = arith.constant 0 : i32
    %0 = arith.cmpi eq, %arg1, %c0_i32 : i32
    %1 = arith.extui %0 : i1 to i32
    %c0_i32_0 = arith.constant 0 : i32
    %2 = arith.cmpi ne, %1, %c0_i32_0 : i32
    scf.if %2 {
      %cst_21 = arith.constant 0xFF800000 : f32
      %39 = vector.broadcast %cst_21 : f32 to vector<8x1xf32>
      %c0_22 = arith.constant 0 : index
      %c0_23 = arith.constant 0 : index
      %40 = vector.load %arg11[%c0_22, %c0_23] : memref<8x1xf32, #tpu.memory_space<vmem>>, vector<8x1xf32>
      tpu.vector_store %arg11[%c0_22, %c0_23], %39 {strides = array<i32>} : memref<8x1xf32, #tpu.memory_space<vmem>>, vector<8x1xf32>,
      %cst_24 = arith.constant 0.000000e+00 : f32
      %41 = vector.broadcast %cst_24 : f32 to vector<8x128xf32>
      %c0_25 = arith.constant 0 : index
      %c0_26 = arith.constant 0 : index
      %42 = vector.load %arg12[%c0_25, %c0_26] : memref<8x128xf32, #tpu.memory_space<vmem>>, vector<8x128xf32>
      tpu.vector_store %arg12[%c0_25, %c0_26], %41 {strides = array<i32>} : memref<8x128xf32, #tpu.memory_space<vmem>>, vector<8x128xf32>,
      %c0_27 = arith.constant 0 : index
      %c0_28 = arith.constant 0 : index
      %43 = vector.load %arg2[%c0_27, %c0_28] : memref<8x128xf32, #tpu.memory_space<vmem>>, vector<8x128xf32>
      %c0_29 = arith.constant 0 : index
      %c0_30 = arith.constant 0 : index
      %44 = vector.load %arg4[%c0_29, %c0_30] : memref<1x128xf32, #tpu.memory_space<vmem>>, vector<1x128xf32>
      %45 = vector.broadcast %44 : vector<1x128xf32> to vector<8x128xf32>
      %46 = arith.mulf %43, %45 : vector<8x128xf32>
      %cst_31 = arith.constant dense<0.000000e+00> : vector<8xf32>
      %47 = vector.multi_reduction <add>, %46, %cst_31 [1] : vector<8x128xf32> to vector<8xf32>
      %48 = vector.shape_cast %47 : vector<8xf32> to vector<8x1xf32>
      %c0_32 = arith.constant 0 : index
      %c0_33 = arith.constant 0 : index
      %49 = memref.load %arg6[%c0_32, %c0_33] : memref<1x1xf32, #tpu.memory_space<smem>>
      %50 = vector.broadcast %49 : f32 to vector<8x1xf32>
      %51 = arith.addf %48, %50 : vector<8x1xf32>
      %c0_34 = arith.constant 0 : index
      %c0_35 = arith.constant 0 : index
      %52 = vector.load %arg13[%c0_34, %c0_35] : memref<8x1xf32, #tpu.memory_space<vmem>>, vector<8x1xf32>
      tpu.vector_store %arg13[%c0_34, %c0_35], %51 {strides = array<i32>} : memref<8x1xf32, #tpu.memory_space<vmem>>, vector<8x1xf32>,
    } else {
    }
    %c0 = arith.constant 0 : index
    %c0_1 = arith.constant 0 : index
    %c0_2 = arith.constant 0 : index
    %3 = vector.load %arg3[%c0, %c0_1, %c0_2] : memref<8x256x128xbf16, #tpu.memory_space<vmem>>, vector<8x256x128xbf16>
    %4 = arith.extf %3 : vector<8x256x128xbf16> to vector<8x256x128xf32>
    %c0_3 = arith.constant 0 : index
    %c0_4 = arith.constant 0 : index
    %5 = vector.load %arg5[%c0_3, %c0_4] : memref<1x128xf32, #tpu.memory_space<vmem>>, vector<1x128xf32>
    %6 = vector.shape_cast %5 : vector<1x128xf32> to vector<1x1x128xf32>
    %7 = vector.broadcast %6 : vector<1x1x128xf32> to vector<8x256x128xf32>
    %8 = arith.mulf %4, %7 : vector<8x256x128xf32>
    %cst = arith.constant dense<0.000000e+00> : vector<8x256xf32>
    %9 = vector.multi_reduction <add>, %8, %cst [2] : vector<8x256x128xf32> to vector<8x256xf32>
    %c0_5 = arith.constant 0 : index
    %c0_6 = arith.constant 0 : index
    %10 = vector.load %arg13[%c0_5, %c0_6] : memref<8x1xf32, #tpu.memory_space<vmem>>, vector<8x1xf32>
    %11 = vector.broadcast %10 : vector<8x1xf32> to vector<8x256xf32>
    %12 = arith.addf %9, %11 : vector<8x256xf32>
    %13 = arith.index_cast %arg1 : i32 to index
    %c0_7 = arith.constant 0 : index
    %c0_8 = arith.constant 0 : index
    %14 = vector.load %arg10[%13, %c0_7, %c0_8] : memref<1x8x256xf32, #tpu.memory_space<vmem>>, vector<1x8x256xf32>
    %15 = vector.shape_cast %14 : vector<1x8x256xf32> to vector<8x256xf32>
    %16 = vector.shape_cast %12 : vector<8x256xf32> to vector<1x8x256xf32>
    tpu.vector_store %arg10[%13, %c0_7, %c0_8], %16 {strides = array<i32>} : memref<1x8x256xf32, #tpu.memory_space<vmem>>, vector<1x8x256xf32>,
    %c0_9 = arith.constant 0 : index
    %c0_10 = arith.constant 0 : index
    %17 = vector.load %arg11[%c0_9, %c0_10] : memref<8x1xf32, #tpu.memory_space<vmem>>, vector<8x1xf32>
    %cst_11 = arith.constant dense<0xFF800000> : vector<8xf32>
    %18 = vector.multi_reduction <maximumf>, %12, %cst_11 [1] : vector<8x256xf32> to vector<8xf32>
    %19 = vector.shape_cast %18 : vector<8xf32> to vector<8x1xf32>
    %20 = arith.maximumf %17, %19 : vector<8x1xf32>
    %21 = arith.subf %17, %20 : vector<8x1xf32>
    %22 = math.exp %21 : vector<8x1xf32>
    %23 = vector.broadcast %20 : vector<8x1xf32> to vector<8x256xf32>
    %24 = arith.subf %12, %23 : vector<8x256xf32>
    %25 = math.exp %24 : vector<8x256xf32>
    %26 = vector.shape_cast %25 : vector<8x256xf32> to vector<8x1x256xf32>
    %27 = arith.truncf %26 : vector<8x1x256xf32> to vector<8x1x256xbf16>
    "tpu.trace_start"() <{level = 10 : i32, message = "bqt,btm->bqm"}> : () -> ()
    %cst_12 = arith.constant dense<0.000000e+00> : vector<8x1x128xf32>
    %28 = tpu.matmul %27, %3, %cst_12 {dimension_numbers = #tpu.dot_dimension_numbers<[2], [1], [1], [2], [0, 0, 0, 1, 1, 2], [0], [0]>} : vector<8x1x256xbf16>, vector<8x256x128xbf16>, vector<8x1x128xf32> -> vector<8x1x128xf32>
    "tpu.trace_stop"() : () -> ()
    %29 = vector.shape_cast %28 : vector<8x1x128xf32> to vector<8x128xf32>
    %c0_13 = arith.constant 0 : index
    %c0_14 = arith.constant 0 : index
    %30 = vector.load %arg12[%c0_13, %c0_14] : memref<8x128xf32, #tpu.memory_space<vmem>>, vector<8x128xf32>
    %31 = vector.broadcast %22 : vector<8x1xf32> to vector<8x128xf32>
    %32 = arith.mulf %31, %30 : vector<8x128xf32>
    %33 = arith.addf %32, %29 : vector<8x128xf32>
    %c0_15 = arith.constant 0 : index
    %c0_16 = arith.constant 0 : index
    %34 = vector.load %arg12[%c0_15, %c0_16] : memref<8x128xf32, #tpu.memory_space<vmem>>, vector<8x128xf32>
    tpu.vector_store %arg12[%c0_15, %c0_16], %33 {strides = array<i32>} : memref<8x128xf32, #tpu.memory_space<vmem>>, vector<8x128xf32>,
    %c0_17 = arith.constant 0 : index
    %c0_18 = arith.constant 0 : index
    %35 = vector.load %arg11[%c0_17, %c0_18] : memref<8x1xf32, #tpu.memory_space<vmem>>, vector<8x1xf32>
    tpu.vector_store %arg11[%c0_17, %c0_18], %20 {strides = array<i32>} : memref<8x1xf32, #tpu.memory_space<vmem>>, vector<8x1xf32>,
    %c0_i32_19 = arith.constant 0 : i32
    %36 = arith.cmpi eq, %arg1, %c0_i32_19 : i32
    %37 = arith.extui %36 : i1 to i32
    %c0_i32_20 = arith.constant 0 : i32
    %38 = arith.cmpi ne, %37, %c0_i32_20 : i32
    scf.if %38 {
      %c0_21 = arith.constant 0 : index
      %c0_22 = arith.constant 0 : index
      %c0_23 = arith.constant 0 : index
      %39 = vector.load %arg10[%c0_21, %c0_22, %c0_23] : memref<1x8x256xf32, #tpu.memory_space<vmem>>, vector<1x8x256xf32>
      %c0_24 = arith.constant 0 : index
      %c0_25 = arith.constant 0 : index
      %40 = vector.load %arg11[%c0_24, %c0_25] : memref<8x1xf32, #tpu.memory_space<vmem>>, vector<8x1xf32>
      %41 = vector.shape_cast %40 : vector<8x1xf32> to vector<1x8x1xf32>
      %42 = vector.broadcast %41 : vector<1x8x1xf32> to vector<1x8x256xf32>
      %43 = arith.subf %39, %42 : vector<1x8x256xf32>
      %44 = math.exp %43 : vector<1x8x256xf32>
      %cst_26 = arith.constant dense<0.000000e+00> : vector<8x256xf32>
      %45 = vector.multi_reduction <add>, %44, %cst_26 [0] : vector<1x8x256xf32> to vector<8x256xf32>
      %cst_27 = arith.constant dense<0.000000e+00> : vector<8xf32>
      %46 = vector.multi_reduction <add>, %45, %cst_27 [1] : vector<8x256xf32> to vector<8xf32>
      %47 = vector.shape_cast %46 : vector<8xf32> to vector<8x1xf32>
      %48 = tpu.reciprocal %47 {approx = true} : vector<8x1xf32> -> vector<8x1xf32>
      %49 = arith.mulf %47, %48 : vector<8x1xf32>
      %cst_28 = arith.constant 2.000000e+00 : f32
      %50 = vector.broadcast %cst_28 : f32 to vector<8x1xf32>
      %51 = arith.subf %50, %49 : vector<8x1xf32>
      %52 = arith.mulf %48, %51 : vector<8x1xf32>
      %53 = vector.shape_cast %52 : vector<8x1xf32> to vector<1x8x1xf32>
      %54 = vector.broadcast %53 : vector<1x8x1xf32> to vector<1x8x256xf32>
      %55 = arith.mulf %44, %54 : vector<1x8x256xf32>
      %c0_29 = arith.constant 0 : index
      %c0_30 = arith.constant 0 : index
      %c0_31 = arith.constant 0 : index
      %56 = vector.load %arg10[%c0_29, %c0_30, %c0_31] : memref<1x8x256xf32, #tpu.memory_space<vmem>>, vector<1x8x256xf32>
      tpu.vector_store %arg10[%c0_29, %c0_30, %c0_31], %55 {strides = array<i32>} : memref<1x8x256xf32, #tpu.memory_space<vmem>>, vector<1x8x256xf32>,
      %c0_32 = arith.constant 0 : index
      %c0_33 = arith.constant 0 : index
      %57 = vector.load %arg12[%c0_32, %c0_33] : memref<8x128xf32, #tpu.memory_space<vmem>>, vector<8x128xf32>
      %58 = vector.broadcast %52 : vector<8x1xf32> to vector<8x128xf32>
      %59 = arith.mulf %57, %58 : vector<8x128xf32>
      %c0_34 = arith.constant 0 : index
      %c0_35 = arith.constant 0 : index
      %60 = vector.load %arg7[%c0_34, %c0_35] : memref<128x128xf32, #tpu.memory_space<vmem>>, vector<128x128xf32>
      %cst_36 = arith.constant dense<0.000000e+00> : vector<8x128xf32>
      %61 = tpu.matmul %59, %60, %cst_36 {dimension_numbers = #tpu.dot_dimension_numbers<[1], [0], [0], [1], [0, 0, 1, 1], [], []>} : vector<8x128xf32>, vector<128x128xf32>, vector<8x128xf32> -> vector<8x128xf32>
      %c0_37 = arith.constant 0 : index
      %c0_38 = arith.constant 0 : index
      %62 = vector.load %arg8[%c0_37, %c0_38] : memref<1x128xf32, #tpu.memory_space<vmem>>, vector<1x128xf32>
      %63 = vector.broadcast %62 : vector<1x128xf32> to vector<8x128xf32>
      %64 = arith.addf %61, %63 : vector<8x128xf32>
      %c0_39 = arith.constant 0 : index
      %c0_40 = arith.constant 0 : index
      %65 = vector.load %arg9[%c0_39, %c0_40] : memref<8x128xf32, #tpu.memory_space<vmem>>, vector<8x128xf32>
      tpu.vector_store %arg9[%c0_39, %c0_40], %64 {strides = array<i32>} : memref<8x128xf32, #tpu.memory_space<vmem>>, vector<8x128xf32>,
    } else {
    }
    return
  }
  func.func @transform_0(%arg0: i32, %arg1: i32) -> (i32, i32) {
    %c0_i32 = arith.constant 0 : i32
    %c0_i32_0 = arith.constant 0 : i32
    return %arg0, %c0_i32 : i32, i32
  }
  func.func @transform_1(%arg0: i32, %arg1: i32) -> (i32, i32, i32) {
    %c0_i32 = arith.constant 0 : i32
    %c0_i32_0 = arith.constant 0 : i32
    return %arg0, %arg1, %c0_i32 : i32, i32, i32
  }
  func.func @transform_2(%arg0: i32, %arg1: i32) -> (i32, i32) {
    %c0_i32 = arith.constant 0 : i32
    %c0_i32_0 = arith.constant 0 : i32
    %c0_i32_1 = arith.constant 0 : i32
    return %c0_i32, %c0_i32_0 : i32, i32
  }
  func.func @transform_3(%arg0: i32, %arg1: i32) -> (i32, i32) {
    %c0_i32 = arith.constant 0 : i32
    %c0_i32_0 = arith.constant 0 : i32
    %c0_i32_1 = arith.constant 0 : i32
    return %c0_i32, %c0_i32_0 : i32, i32
  }
  func.func @transform_4(%arg0: i32, %arg1: i32) -> (i32, i32) {
    %c0_i32 = arith.constant 0 : i32
    %c0_i32_0 = arith.constant 0 : i32
    %c0_i32_1 = arith.constant 0 : i32
    return %c0_i32, %c0_i32_0 : i32, i32
  }
  func.func @transform_5(%arg0: i32, %arg1: i32) -> (i32, i32) {
    %c0_i32 = arith.constant 0 : i32
    %c0_i32_0 = arith.constant 0 : i32
    %c0_i32_1 = arith.constant 0 : i32
    return %c0_i32, %c0_i32_0 : i32, i32
  }
  func.func @transform_6(%arg0: i32, %arg1: i32) -> (i32, i32) {
    %c0_i32 = arith.constant 0 : i32
    %c0_i32_0 = arith.constant 0 : i32
    %c0_i32_1 = arith.constant 0 : i32
    return %c0_i32, %c0_i32_0 : i32, i32
  }
  func.func @transform_7(%arg0: i32, %arg1: i32) -> (i32, i32) {
    %c0_i32 = arith.constant 0 : i32
    %c0_i32_0 = arith.constant 0 : i32
    return %arg0, %c0_i32 : i32, i32
  }
  func.func @transform_8(%arg0: i32, %arg1: i32) -> (i32, i32, i32) {
    %c0_i32 = arith.constant 0 : i32
    %c0_i32_0 = arith.constant 0 : i32
    %c0_i32_1 = arith.constant 0 : i32
    return %c0_i32, %arg0, %c0_i32_0 : i32, i32, i32
  }
}

</mosaic_0001>

<bundles_post_ra>
// kernel: tpu_custom_call.1
= control target key start
LH: loop header
LB: loop body
LE: loop exit
PB: predicated region body
PF: predicated region fallthrough
CT: control target
= control target key end

     0   :  { %s16848_s0 = inlined_call_operand.hbm [shape: f32[16,128], index: 0, kind: input, shape index: {}]   ;;  %s16849_s1 = inlined_call_operand.hbm [shape: bf16[16,256,128], index: 1, kind: input, shape index: {}]   ;;  %s16850_s2 = inlined_call_operand.vmem [shape: f32[1,128], index: 2, kind: input, shape index: {}]   ;;  %s16851_s3 = inlined_call_operand.vmem [shape: f32[1,128], index: 3, kind: input, shape index: {}]   ;;  %s16852_s4 = inlined_call_operand.<no memory space> [shape: f32[1,1], index: 4, kind: input, shape index: {}]   ;;  %s16853_s5 = inlined_call_operand.hbm [shape: f32[128,128], index: 5, kind: input, shape index: {}]   ;;  %s16854_s6 = inlined_call_operand.vmem [shape: f32[1,128], index: 6, kind: input, shape index: {}]   ;;  %s16855_s7 = inlined_call_operand.hbm [shape: f32[16,128], index: 7, kind: output, shape index: {0}]   ;;  %s16856_s8 = inlined_call_operand.hbm [shape: f32[1,16,256], index: 8, kind: output, shape index: {1}]  }
   0x1   :  { %17189 = sst [smem:[#allocation446_spill]] %s16848_s0 }
   0x2   :  { %17190 = sst [smem:[#allocation447_spill]] %s16853_s5 }
   0x3   :  { %14 = sst [smem:[#allocation5]] %s16852_s4 }
   0x4   :  { %15 = vsyncpa [#allocation7], 0 }
   0x5   :  { %17 = vsyncpa [#allocation7 + $0x1], 0 }
   0x6   :  { %18 = vsyncpa [#allocation10], 0 }
   0x7   :  { %20 = vsyncpa [#allocation10 + $0x1], 0 }
   0x8   :  { %21 = vsyncpa [#allocation8], 0 }
   0x9   :  { %23 = vsyncpa [#allocation8 + $0x1], 0 }
   0xa   :  { %24 = vsyncpa [#allocation14], 0 }
   0xb   :  { %26 = vsyncpa [#allocation14 + $0x1], 0  ;;  %s10753_s29 = smov 0   ;;  %s10755_s30 = smov 0  }
   0xc   :  { %s10757_s9 = smov 0   ;;  %s10759_s10 = smov 0  }
   0xd   :  { %s10761_s11 = smov 0   ;;  %s10763_s12 = smov 0  }
   0xe LB: > { %17191 = sst [smem:[#allocation20_spill]] %s10677_s9  ;;  %s10784_s4 = sadd.s32 4294967295, %s10689_s12   ;;  %s10689_s12 = sphi %s10763_s12, %s32_s12   ;;  %s10685_s11 = sphi %s10761_s11, %s18709_s11   ;;  %s10681_s10 = sphi %s10759_s10, %s18708_s10   ;;  %s10677_s9 = sphi %s10757_s9, %s18704_s9   ;;  %s10673_s30 = sphi %s10755_s30, %s18707_s30   ;;  %s10669_s29 = sphi %s10753_s29, %s18706_s29  }
   0xf   : > { %s9190_s13 = sadd.s32 4294967294, %s10689_s12   ;;  %p64_p0 = scmp.ne.s32.totalorder %s10673_s30, %s10669_s29 }
  0x10   : > { %p16857_p1 = scmp.eq.s32.totalorder %s10784_s4, 0  ;;  %p227_p3 = scmp.eq.s32.totalorder %s9190_s13, 1 }
  0x11   : > { %p9191_p5 = scmp.ge.s32.totalorder %s10689_s12, 1  ;;  %p260_p7 = scmp.lt.s32.totalorder %s10689_s12, 3 }
  0x12   : > { %p10793_p4 = por %p16857_p1, %p64_p0  ;;  %p10798_p6 = por %p227_p3, %p64_p0 }
  0x13   : > { %p10803_p8 = pnand %p9191_p5, %p260_p7  ;;  %s10691_s17 = smov [#allocation11]  }
  0x14   : > { %s17192_s14 = scalar_select %p10793_p4, 1, 0 }
  0x15   : > { %s17193_s15 = scalar_select %p10798_p6, 1, 0 }
  0x16   : > { %s17194_s16 = scalar_select %p10803_p8, 1, 0 }
  0x17   : > { %s281_s18 = sshll.u32 %s10691_s17, 4  ;;  %p9611_p9 = pneg %p10803_p8  ;;  %s282_s18 = int_to_ptr.vmem [resolvable:$true] %s281_s18 }
  0x18   : > { %s44_s20 = sadd.s32 1, %s10685_s11  ;;  %s17196_s5 = sld [smem:[#allocation447_spill]] }
  0x19   : > { %p10812_p11 = pnand %p9611_p9, %p16857_p1 }
  0x1b   : > { %p10481_p13 = pneg %p10812_p11 }
  0x1e   : > { %s10479_s23 = scalar_lea.hbm %s17196_s5, 2048 }
  0x1f   : > { %p10480_p12 = scmp.ne.s32.totalorder %s17196_s5, %s10479_s23  ;;  %p10486_p5 = scmp.lt.u32.totalorder %s10479_s23, %s17196_s5 }
  0x21   : > { %p10482_p0 = pnand %p10481_p13, %p10480_p12 }
  0x23   : > { %p10483_p3 = pneg %p10482_p0 }
  0x25   : > { %p10488_p7 = pnand %p10486_p5, %p10483_p3 }
  0x27   : > { %10491 = shalt.err (!%p10488_p7)
}
  0x28   : > { %s10492_s28 = scalar_lea.vmem %s282_s18, 2048  ;;  %p10500_p2 = scmp.lt.s32.totalorder %s282_s18, %s282_s18 }
  0x29   : > { %p10493_p9 = scmp.ne.s32.totalorder %s282_s18, %s10492_s28  ;;  %p10501_p6 = scmp.lt.s32.totalorder %s10492_s28, %s10492_s28 }
  0x2b   : > { %p10495_p10 = pnand %p10493_p9, %p10481_p13  ;;  %p10502_p4 = por %p10501_p6, %p10500_p2 }
  0x2d   : > { %p10496_p1 = pneg %p10495_p10 }
  0x2f   : > { %p10503_p8 = pnand %p10502_p4, %p10496_p1 }
  0x31   : > { %10506 = shalt.err (!%p10503_p8)
}
  0x32   : > { %s10692_s13 = smov 128   ;;  %s10693_s17 = smov 8  }
  0x33   : > { %9614 = dma.hbm_to_vmem [thread:$0]  (!%p10812_p11), %s17196_s5, 2048, %s282_s18, [#allocation10], %s10692_s13, %s10692_s13, %s10693_s17  }
  0x34   : > { %p46_p1 = scmp.ge.s32.totalorder %s44_s20, 2  ;;  %s51_s23 = sadd.s32 1, %s10677_s9 }
  0x35   : > { %p58_p2 = scmp.ne.s32.totalorder %s10677_s9, %s10673_s30  ;;  %p59_p4 = scmp.eq.s32.totalorder %s10689_s12, 0 }
  0x36   : > { %s18711_s20 = smov (%p46_p1, %s44_s20), 0  ;;  %p17199_p8 = scmp.eq.s32.totalorder %s10784_s4, 1 }
  0x37   : > { %17197 = sst [smem:[#allocation21_spill]] %s18711_s20  ;;  %p10839_p6 = por %p59_p4, %p58_p2 }
  0x38   : > { %p10845_p10 = por %p17199_p8, %p58_p2  ;;  %s48_s25 = ssub.s32 %s10685_s11, %s18711_s20 }
  0x39   : > { %p9630_p11 = scmp.lt.s32.totalorder %s10689_s12, 2  ;;  %p49_p12 = scmp.eq.s32.totalorder %s48_s25, 0 }
  0x3a   : > { %s10853_s18 = sand.u32 1, %s10677_s9   ;;  %s9195_s28 = sshll.u32 %s10685_s11, 7 }
  0x3b   : > { %s9194_s26 = sshll.u32 %s10853_s18, 3  ;;  %s17202_s0 = sld [smem:[#allocation446_spill]] }
  0x3c   : > { %s10857_s27 = scalar_select %p49_p12, %s10677_s9, %s51_s23  }
  0x3d   : > { %s302_s22 = scalar_lea.vmem [#allocation6], %s9194_s26  ;;  %p10869_p13 = pnand %p9630_p11, %p10839_p6 }
  0x3e   : > { %17201 = sst [smem:[#allocation22_spill]] %s10857_s27  ;;  %s309_s25 = sshll.u32 %s302_s22, 4  ;;  %s10865_s25 = int_to_ptr.vmem [resolvable:$true] %s309_s25 }
  0x3f   : > { %s9196_s23 = sshll.u32 %s10853_s18, 10  ;;  %s299_s13 = scalar_lea.sflag [#allocation7], %s10853_s18 }
  0x40   : > { %p10509_p3 = pneg %p10869_p13 }
  0x41   : > { %s10863_s21 = scalar_lea.hbm %s17202_s0, %s9195_s28  ;;  %s10512_s24 = scalar_lea.hbm %s17202_s0, 256 }
  0x42   : > { %s10507_s28 = scalar_lea.hbm %s10863_s21, 128  ;;  %p10513_p9 = scmp.lt.u32.totalorder %s10863_s21, %s17202_s0 }
  0x43   : > { %p10508_p0 = scmp.ne.s32.totalorder %s10863_s21, %s10507_s28  ;;  %p10514_p1 = scmp.lt.u32.totalorder %s10512_s24, %s10507_s28 }
  0x44   : > { %p10516_p4 = scmp.lt.u32.totalorder %s10507_s28, %s10863_s21 }
  0x45   : > { %p10510_p5 = pnand %p10509_p3, %p10508_p0  ;;  %p10515_p2 = por %p10514_p1, %p10513_p9 }
  0x47   : > { %p10511_p7 = pneg %p10510_p5  ;;  %p10517_p6 = por %p10516_p4, %p10515_p2 }
  0x49   : > { %p10518_p8 = pnand %p10517_p6, %p10511_p7 }
  0x4b   : > { %10521 = shalt.err (!%p10518_p8)
}
  0x4c   : > { %s10522_s20 = scalar_lea.vmem %s10865_s25, 128  ;;  %s10694_s26 = smov [#allocation6]  }
  0x4d   : > { %p10523_p11 = scmp.ne.s32.totalorder %s10865_s25, %s10522_s20  ;;  %s10527_s17 = sshll.u32 %s10694_s26, 4  ;;  %s10528_s17 = int_to_ptr.vmem [resolvable:$false] %s10527_s17 }
  0x4e   : > { %s10529_s27 = scalar_lea.vmem %s10528_s17, 256  ;;  %p10530_p5 = scmp.lt.s32.totalorder %s10865_s25, %s10528_s17 }
  0x4f   : > { %p10525_p12 = pnand %p10523_p11, %p10509_p3  ;;  %p10531_p9 = scmp.lt.s32.totalorder %s10529_s27, %s10522_s20 }
  0x51   : > { %p10526_p0 = pneg %p10525_p12  ;;  %p10532_p1 = por %p10531_p9, %p10530_p5 }
  0x53   : > { %p10533_p2 = pnand %p10532_p1, %p10526_p0 }
  0x55   : > { %10536 = shalt.err (!%p10533_p2)
}
  0x56   : > { %9618 = dma.hbm_to_vmem [thread:$0]  (!%p10869_p13), %s10863_s21, 128, %s10865_s25, %s299_s13  }
  0x57   : > { %s320_s28 = scalar_lea.vmem [#allocation9], %s9196_s23  ;;  %s316_s22 = sand.u32 1, %s10689_s12  }
  0x58   : > { %s330_s24 = sshll.u32 %s320_s28, 4  ;;  %s17204_s26 = sshll.u32 %s10685_s11, 14  ;;  %s10904_s24 = int_to_ptr.vmem [resolvable:$true] %s330_s24 }
  0x59   : > { %s10911_s27 = scalar_lea.hbm %s16849_s1, %s17204_s26  ;;  %s10913_s0 = scalar_lea.sflag [#allocation10], %s316_s22 }
  0x5a   : > { %s10537_s9 = scalar_lea.hbm %s10911_s27, 16384  ;;  %s10542_s25 = scalar_lea.hbm %s16849_s1, 32768 }
  0x5b   : > { %p10538_p7 = scmp.ne.s32.totalorder %s10911_s27, %s10537_s9  ;;  %p10543_p8 = scmp.lt.u32.totalorder %s10911_s27, %s16849_s1 }
  0x5c   : > { %p10544_p11 = scmp.lt.u32.totalorder %s10542_s25, %s10537_s9  ;;  %p10546_p0 = scmp.lt.u32.totalorder %s10537_s9, %s10911_s27 }
  0x5d   : > { %p10540_p4 = pnand %p10538_p7, %p10509_p3 }
  0x5e   : > { %p10545_p12 = por %p10544_p11, %p10543_p8 }
  0x5f   : > { %p10541_p6 = pneg %p10540_p4 }
  0x60   : > { %p10547_p5 = por %p10546_p0, %p10545_p12 }
  0x62   : > { %p10548_p9 = pnand %p10547_p5, %p10541_p6 }
  0x64   : > { %10551 = shalt.err (!%p10548_p9)
}
  0x65   : > { %s10552_s28 = scalar_lea.vmem %s10904_s24, 16384  ;;  %s10695_s22 = smov [#allocation9]  }
  0x66   : > { %p10553_p1 = scmp.ne.s32.totalorder %s10904_s24, %s10552_s28  ;;  %s10557_s26 = sshll.u32 %s10695_s22, 4  ;;  %s10558_s26 = int_to_ptr.vmem [resolvable:$false] %s10557_s26 }
  0x67   : > { %s10559_s20 = scalar_lea.vmem %s10558_s26, 32768  ;;  %p10560_p4 = scmp.lt.s32.totalorder %s10904_s24, %s10558_s26 }
  0x68   : > { %p10555_p2 = pnand %p10553_p1, %p10509_p3  ;;  %p10561_p8 = scmp.lt.s32.totalorder %s10559_s20, %s10552_s28 }
  0x6a   : > { %p10556_p7 = pneg %p10555_p2  ;;  %p10562_p11 = por %p10561_p8, %p10560_p4 }
  0x6c   : > { %p10563_p12 = pnand %p10562_p11, %p10556_p7 }
  0x6e   : > { %10566 = shalt.err (!%p10563_p12)
}
  0x6f   : > { %s10696_s9 = smov 64   ;;  %s10697_s17 = smov 4  }
  0x70   : > { %9621 = dma.hbm_to_vmem [thread:$0]  (!%p10869_p13), %s10911_s27, 16384, %s10904_s24, %s10913_s0, %s10696_s9, %s10696_s9, %s10697_s17  }
  0x71   : > { %p17205_p3 = scmp.ne.s32.totalorder %s17194_s16, 0 }
  0x73   : > { %342 = sbr.rel (%p17205_p3) target bundleno = 2859 (0xb2b), region = 48 }
  0x7a   : > { %s10942_s18 = sand.u32 1, %s10673_s30   ;;  %p17206_p6 = scmp.ne.s32.totalorder %s17192_s14, 0 }
  0x7b   : > { %s9201_s21 = sshll.u32 %s10942_s18, 3  ;;  %s345_s25 = scalar_lea.sflag [#allocation7], %s10942_s18 }
  0x7c   : > { %s348_s23 = scalar_lea.vmem [#allocation6], %s9201_s21 }
  0x7d   : > { %10648 = dma.done.wait (%p17206_p6), %s345_s25, 128  }
  0x7e   : > { %10650 = vsyncadd (%p17206_p6), %s345_s25, 4294967168  ;;  %s353_s0 = sand.u32 1, %s10784_s4   ;;  %s9202_s5 = sshll.u32 %s10942_s18, 10 }
  0x7f   : > { %s354_s16 = scalar_lea.sflag [#allocation10], %s353_s0  ;;  %s10954_s24 = scalar_lea.vmem [#allocation9], %s9202_s5 }
  0x80   : > { %10652 = dma.done.wait (%p17206_p6), %s354_s16, 16384  }
  0x81   : > { %10654 = vsyncadd (%p17206_p6), %s354_s16, 4294950912  ;;  %p17207_p13 = scmp.eq.s32.totalorder %s10784_s4, 0 }
  0x83   : > { %10656 = dma.done.wait (%p17207_p13), [#allocation10], 2048   ;;  %p17208_p0 = pmov %p17207_p13 }
  0x84   : > { %v430_v0 = vld [vmem:[%s10954_s24] sm:$0xff]   ;;  %v414_v2 = vld [vmem:[%s348_s23] sm:$0xff]  ;;  %v431_v5 = vld [vmem:[%s10954_s24 + $0x8] sm:$0xff]   ;;  %vm17146_vm0 = vcmask 7168   ;;  %v10698_v56 = vmov -inf   ;;  %s425_s4 = sld [smem:[#allocation5]] }
  0x85   : > { %10658 = vsyncadd (%p17208_p0), [#allocation10], 4294965248  ;;  %v10968_v1 = vld [vmem:[%s16851_s3] ss:$0 sm:$0xff]  ;;  %v686_v3 = vunpack.c.h.bf16 %v430_v0  ;;  %v685_v6 = vunpack.c.l.bf16 %v430_v0  ;;  %v687_v8 = vunpack.c.l.bf16 %v431_v5  ;;  %v433_v9 = vld [vmem:[%s10954_s24 + $0x10] sm:$0xff]   ;;  %v688_v12 = vunpack.c.h.bf16 %v431_v5  ;;  %412 = vst.msk [vmem:[#allocation2] sm:$0xff] %vm17146_vm0, %v10698_v56 }
  0x86   : > { %v9206_v4 = vld [vmem:[%s16850_s2] ss:$0 sm:$0xff]  ;;  %v689_v14 = vunpack.c.l.bf16 %v433_v9  ;;  %v435_v15 = vld [vmem:[%s10954_s24 + $0x18] sm:$0xff]   ;;  %v690_v17 = vunpack.c.h.bf16 %v433_v9  ;;  %v439_v25 = vld [vmem:[%s10954_s24 + $0x28] sm:$0xff]   ;;  %vm17154_vm1 = vcmask 130112   ;;  %vm3059_vm2 = vcmask 195712  }
  0x87   : > { %v422_v7 = vmul.f32 %v9206_v4, %v414_v2  ;;  %v949_v10 = vmul.f32 %v10968_v1, %v686_v3  ;;  %v948_v11 = vmul.f32 %v10968_v1, %v685_v6  ;;  %v950_v13 = vmul.f32 %v10968_v1, %v687_v8  ;;  %v437_v20 = vld [vmem:[%s10954_s24 + $0x20] sm:$0xff]   ;;  %v441_v30 = vld [vmem:[%s10954_s24 + $0x30] sm:$0xff]   ;;  %v443_v35 = vld [vmem:[%s10954_s24 + $0x38] sm:$0xff]   ;;  %s9205_s17 = sshll.u32 %s10942_s18, 4  ;;  %s9346_s23 = sshll.u32 %s10681_s10, 8 }
  0x88   : > { %v951_v16 = vmul.f32 %v10968_v1, %v688_v12  ;;  %v952_v18 = vmul.f32 %v10968_v1, %v689_v14  ;;  %v691_v19 = vunpack.c.l.bf16 %v435_v15  ;;  %v953_v21 = vmul.f32 %v10968_v1, %v690_v17  ;;  %v445_v40 = vld [vmem:[%s10954_s24 + $0x40] sm:$0xff]   ;;  %v447_v45 = vld [vmem:[%s10954_s24 + $0x48] sm:$0xff]   ;;  %v449_v50 = vld [vmem:[%s10954_s24 + $0x50] sm:$0xff]   ;;  %s14355_s25 = scalar_lea.vmem [#allocation13], %s9205_s17  ;;  %s9015_s27 = scalar_lea.sflag [#allocation14], %s10942_s18 }
  0x89   : > { %423 = vadd.xlane.f32.xlu0 %v422_v7  ;;  %1206 = vadd.xlane.f32.xlu1 %v949_v10  ;;  %v692_v22 = vunpack.c.h.bf16 %v435_v15  ;;  %v693_v24 = vunpack.c.l.bf16 %v437_v20  ;;  %v694_v27 = vunpack.c.h.bf16 %v437_v20  ;;  %v695_v29 = vunpack.c.l.bf16 %v439_v25  ;;  %v451_v55 = vld [vmem:[%s10954_s24 + $0x58] sm:$0xff]   ;;  %v453_v61 = vld [vmem:[%s10954_s24 + $0x60] sm:$0xff]   ;;  %v455_v3 = vld [vmem:[%s10954_s24 + $0x68] sm:$0xff]   ;;  %s9042_s0 = sshll.u32 %s14355_s25, 4  ;;  %s10703_s14 = smov [#allocation13]   ;;  %s9043_s0 = int_to_ptr.vmem [resolvable:$true] %s9042_s0 }
  0x8a   : > { %v954_v23 = vmul.f32 %v10968_v1, %v691_v19  ;;  %v696_v32 = vunpack.c.h.bf16 %v439_v25  ;;  %v697_v34 = vunpack.c.l.bf16 %v441_v30  ;;  %v698_v37 = vunpack.c.h.bf16 %v441_v30  ;;  %v457_v8 = vld [vmem:[%s10954_s24 + $0x70] sm:$0xff]   ;;  %s10567_s13 = scalar_lea.vmem %s9043_s0, 256  ;;  %s10571_s28 = sshll.u32 %s10703_s14, 4  ;;  %s10572_s28 = int_to_ptr.vmem [resolvable:$false] %s10571_s28 }
  0x8b   : > { %v955_v26 = vmul.f32 %v10968_v1, %v692_v22  ;;  %v956_v28 = vmul.f32 %v10968_v1, %v693_v24  ;;  %v957_v31 = vmul.f32 %v10968_v1, %v694_v27  ;;  %v958_v33 = vmul.f32 %v10968_v1, %v695_v29  ;;  %p10568_p5 = scmp.ne.s32.totalorder %s9043_s0, %s10567_s13  ;;  %p10574_p2 = scmp.lt.s32.totalorder %s9043_s0, %s10572_s28 }
  0x8c   : > { %v959_v36 = vmul.f32 %v10968_v1, %v696_v32  ;;  %v960_v38 = vmul.f32 %v10968_v1, %v697_v34  ;;  %v699_v39 = vunpack.c.l.bf16 %v443_v35  ;;  %v961_v41 = vmul.f32 %v10968_v1, %v698_v37 }
  0x8d   : > { %1204 = vadd.xlane.f32.xlu0 %v948_v11  ;;  %1208 = vadd.xlane.f32.xlu1 %v950_v13  ;;  %v700_v42 = vunpack.c.h.bf16 %v443_v35  ;;  %v701_v44 = vunpack.c.l.bf16 %v445_v40  ;;  %v702_v47 = vunpack.c.h.bf16 %v445_v40  ;;  %v703_v49 = vunpack.c.l.bf16 %v447_v45  ;;  %v459_v13 = vld [vmem:[%s10954_s24 + $0x78] sm:$0xff]   ;;  %p10569_p9 = pnand %p10568_p5, %p10845_p10 }
  0x8e   : > { %v962_v43 = vmul.f32 %v10968_v1, %v699_v39  ;;  %v704_v52 = vunpack.c.h.bf16 %v447_v45  ;;  %v705_v54 = vunpack.c.l.bf16 %v449_v50  ;;  %v706_v58 = vunpack.c.h.bf16 %v449_v50 }
  0x8f   : > { %v963_v46 = vmul.f32 %v10968_v1, %v700_v42  ;;  %v964_v48 = vmul.f32 %v10968_v1, %v701_v44  ;;  %v965_v51 = vmul.f32 %v10968_v1, %v702_v47  ;;  %v966_v53 = vmul.f32 %v10968_v1, %v703_v49  ;;  %p10570_p1 = pneg %p10569_p9 }
  0x90   : > { %v967_v57 = vmul.f32 %v10968_v1, %v704_v52  ;;  %v968_v59 = vmul.f32 %v10968_v1, %v705_v54  ;;  %v707_v60 = vunpack.c.l.bf16 %v451_v55  ;;  %v969_v62 = vmul.f32 %v10968_v1, %v706_v58  ;;  %v477_v58 = vld [vmem:[%s10954_s24 + $0xc0] sm:$0xff]  }
  0x91   : > { %1210 = vadd.xlane.f32.xlu0 %v951_v16  ;;  %1212 = vadd.xlane.f32.xlu1 %v952_v18  ;;  %v708_v63 = vunpack.c.h.bf16 %v451_v55  ;;  %v709_v2 = vunpack.c.l.bf16 %v453_v61  ;;  %v710_v5 = vunpack.c.h.bf16 %v453_v61  ;;  %v711_v7 = vunpack.c.l.bf16 %v455_v3  ;;  %v461_v18 = vld [vmem:[%s10954_s24 + $0x80] sm:$0xff]  }
  0x92   : > { %v970_v0 = vmul.f32 %v10968_v1, %v707_v60  ;;  %v712_v10 = vunpack.c.h.bf16 %v455_v3  ;;  %v713_v12 = vunpack.c.l.bf16 %v457_v8  ;;  %v714_v15 = vunpack.c.h.bf16 %v457_v8 }
  0x93   : > { %v971_v4 = vmul.f32 %v10968_v1, %v708_v63  ;;  %v972_v6 = vmul.f32 %v10968_v1, %v709_v2  ;;  %v973_v9 = vmul.f32 %v10968_v1, %v710_v5  ;;  %v974_v11 = vmul.f32 %v10968_v1, %v711_v7  ;;  %v479_v63 = vld [vmem:[%s10954_s24 + $0xc8] sm:$0xff]   ;;  %v481_v5 = vld [vmem:[%s10954_s24 + $0xd0] sm:$0xff]  }
  0x94   : > { %v975_v14 = vmul.f32 %v10968_v1, %v712_v10  ;;  %v976_v16 = vmul.f32 %v10968_v1, %v713_v12  ;;  %v715_v17 = vunpack.c.l.bf16 %v459_v13  ;;  %v977_v19 = vmul.f32 %v10968_v1, %v714_v15  ;;  %v483_v10 = vld [vmem:[%s10954_s24 + $0xd8] sm:$0xff]   ;;  %v485_v15 = vld [vmem:[%s10954_s24 + $0xe0] sm:$0xff]  }
  0x95   : > { %1214 = vadd.xlane.f32.xlu0 %v953_v21  ;;  %1216 = vadd.xlane.f32.xlu1 %v954_v23  ;;  %v716_v20 = vunpack.c.h.bf16 %v459_v13  ;;  %v717_v22 = vunpack.c.l.bf16 %v461_v18  ;;  %v463_v23 = vld [vmem:[%s10954_s24 + $0x88] sm:$0xff]   ;;  %v718_v25 = vunpack.c.h.bf16 %v461_v18  ;;  %v734_v2 = vunpack.c.h.bf16 %v477_v58 }
  0x96   : > { %v978_v21 = vmul.f32 %v10968_v1, %v715_v17  ;;  %v719_v27 = vunpack.c.l.bf16 %v463_v23  ;;  %v720_v30 = vunpack.c.h.bf16 %v463_v23  ;;  %v736_v7 = vunpack.c.h.bf16 %v479_v63 }
  0x97   : > { %v979_v24 = vmul.f32 %v10968_v1, %v716_v20  ;;  %v981_v29 = vmul.f32 %v10968_v1, %v718_v25  ;;  %v738_v12 = vunpack.c.h.bf16 %v481_v5  ;;  %v740_v17 = vunpack.c.h.bf16 %v483_v10  ;;  %v487_v20 = vld [vmem:[%s10954_s24 + $0xe8] sm:$0xff]   ;;  %v489_v25 = vld [vmem:[%s10954_s24 + $0xf0] sm:$0xff]  }
  0x98   : > { %v983_v34 = vmul.f32 %v10968_v1, %v720_v30  ;;  %v491_v30 = vld [vmem:[%s10954_s24 + $0xf8] sm:$0xff]   ;;  %vm3066_vm3 = vcmask 261312   ;;  %vm3073_vm4 = vcmask 326912   ;;  %vm17155_vm5 = vcmask 392512  }
  0x99   : > { %1218 = vadd.xlane.f32.xlu0 %v955_v26  ;;  %1220 = vadd.xlane.f32.xlu1 %v956_v28  ;;  %v980_v26 = vmul.f32 %v10968_v1, %v717_v22  ;;  %v465_v28 = vld [vmem:[%s10954_s24 + $0x90] sm:$0xff]   ;;  %v742_v22 = vunpack.c.h.bf16 %v485_v15  ;;  %vm17152_vm6 = vcmask 458112   ;;  %vm17147_vm7 = vcmask 523712  }
  0x9a   : > { %v721_v32 = vunpack.c.l.bf16 %v465_v28  ;;  %v722_v35 = vunpack.c.h.bf16 %v465_v28  ;;  %vm3101_vm8 = vcmask 589312   ;;  %vm3108_vm9 = vcmask 654912  }
  0x9b   : > { %vm17148_vm10 = vcmask 720512   ;;  %vm3122_vm11 = vcmask 786112   ;;  %vm3129_vm12 = vcmask 851712   ;;  %vm3136_vm13 = vcmask 917312  }
  0x9c   : > { %v985_v39 = vmul.f32 %v10968_v1, %v722_v35  ;;  %v493_v35 = vld [vmem:[%s10954_s24 + $0x100] sm:$0xff]   ;;  %vm3143_vm14 = vcmask 982912   ;;  %vm3150_vm15 = vcmask 1048512  }
  0x9d   : > { %1222 = vadd.xlane.f32.xlu0 %v957_v31  ;;  %1224 = vadd.xlane.f32.xlu1 %v958_v33  ;;  %v982_v31 = vmul.f32 %v10968_v1, %v719_v27  ;;  %v467_v33 = vld [vmem:[%s10954_s24 + $0x98] sm:$0xff]   ;;  %v744_v27 = vunpack.c.h.bf16 %v487_v20 }
  0x9e   : > { %v723_v37 = vunpack.c.l.bf16 %v467_v33  ;;  %v724_v40 = vunpack.c.h.bf16 %v467_v33 }
  0xa0   : > { %v987_v44 = vmul.f32 %v10968_v1, %v724_v40  ;;  %v495_v40 = vld [vmem:[%s10954_s24 + $0x108] sm:$0xff]  }
  0xa1   : > { %1226 = vadd.xlane.f32.xlu0 %v959_v36  ;;  %1228 = vadd.xlane.f32.xlu1 %v960_v38  ;;  %v984_v36 = vmul.f32 %v10968_v1, %v721_v32  ;;  %v469_v38 = vld [vmem:[%s10954_s24 + $0xa0] sm:$0xff]   ;;  %v746_v32 = vunpack.c.h.bf16 %v489_v25 }
  0xa2   : > { %v725_v42 = vunpack.c.l.bf16 %v469_v38  ;;  %v726_v45 = vunpack.c.h.bf16 %v469_v38 }
  0xa4   : > { %v989_v49 = vmul.f32 %v10968_v1, %v726_v45  ;;  %v497_v45 = vld [vmem:[%s10954_s24 + $0x110] sm:$0xff]  }
  0xa5   : > { %1230 = vadd.xlane.f32.xlu0 %v961_v41  ;;  %1232 = vadd.xlane.f32.xlu1 %v962_v43  ;;  %v986_v41 = vmul.f32 %v10968_v1, %v723_v37  ;;  %v471_v43 = vld [vmem:[%s10954_s24 + $0xa8] sm:$0xff]   ;;  %v748_v37 = vunpack.c.h.bf16 %v491_v30 }
  0xa6   : > { %v727_v47 = vunpack.c.l.bf16 %v471_v43  ;;  %v728_v50 = vunpack.c.h.bf16 %v471_v43 }
  0xa8   : > { %v991_v54 = vmul.f32 %v10968_v1, %v728_v50  ;;  %v499_v50 = vld [vmem:[%s10954_s24 + $0x118] sm:$0xff]  }
  0xa9   : > { %1234 = vadd.xlane.f32.xlu0 %v963_v46  ;;  %1236 = vadd.xlane.f32.xlu1 %v964_v48  ;;  %v988_v46 = vmul.f32 %v10968_v1, %v725_v42  ;;  %v473_v48 = vld [vmem:[%s10954_s24 + $0xb0] sm:$0xff]   ;;  %v750_v42 = vunpack.c.h.bf16 %v493_v35 }
  0xaa   : > { %v729_v52 = vunpack.c.l.bf16 %v473_v48  ;;  %v730_v55 = vunpack.c.h.bf16 %v473_v48 }
  0xac   : > { %v992_v56 = vmul.f32 %v10968_v1, %v729_v52  ;;  %v754_v52 = vunpack.c.h.bf16 %v497_v45 }
  0xad   : > { %1238 = vadd.xlane.f32.xlu0 %v965_v51  ;;  %1240 = vadd.xlane.f32.xlu1 %v966_v53  ;;  %v990_v51 = vmul.f32 %v10968_v1, %v727_v47  ;;  %v475_v53 = vld [vmem:[%s10954_s24 + $0xb8] sm:$0xff]   ;;  %v752_v47 = vunpack.c.h.bf16 %v495_v40 }
  0xae   : > { %v732_v60 = vunpack.c.h.bf16 %v475_v53 }
  0xb1   : > { %1242 = vadd.xlane.f32.xlu0 %v967_v57  ;;  %1244 = vadd.xlane.f32.xlu1 %v968_v59  ;;  %v731_v57 = vunpack.c.l.bf16 %v475_v53  ;;  %v993_v59 = vmul.f32 %v10968_v1, %v730_v55  ;;  %v501_v55 = vld [vmem:[%s10954_s24 + $0x120] sm:$0xff]  }
  0xb3   : > { %v994_v61 = vmul.f32 %v10968_v1, %v731_v57  ;;  %v756_v57 = vunpack.c.h.bf16 %v499_v50 }
  0xb5   : > { %1246 = vadd.xlane.f32.xlu0 %v969_v62  ;;  %1248 = vadd.xlane.f32.xlu1 %v970_v0  ;;  %v733_v62 = vunpack.c.l.bf16 %v477_v58  ;;  %v995_v0 = vmul.f32 %v10968_v1, %v732_v60  ;;  %v503_v60 = vld [vmem:[%s10954_s24 + $0x128] sm:$0xff]  }
  0xb7   : > { %v996_v3 = vmul.f32 %v10968_v1, %v733_v62  ;;  %v1019_v62 = vmul.f32 %v10968_v1, %v756_v57 }
  0xb9   : > { %1250 = vadd.xlane.f32.xlu0 %v971_v4  ;;  %1252 = vadd.xlane.f32.xlu1 %v972_v6  ;;  %v735_v4 = vunpack.c.l.bf16 %v479_v63  ;;  %v997_v6 = vmul.f32 %v10968_v1, %v734_v2  ;;  %v758_v63 = vunpack.c.h.bf16 %v501_v55 }
  0xbb   : > { %v998_v8 = vmul.f32 %v10968_v1, %v735_v4 }
  0xbd   : > { %1254 = vadd.xlane.f32.xlu0 %v973_v9  ;;  %1256 = vadd.xlane.f32.xlu1 %v974_v11  ;;  %v737_v9 = vunpack.c.l.bf16 %v481_v5  ;;  %v999_v11 = vmul.f32 %v10968_v1, %v736_v7  ;;  %v1021_v7 = vmul.f32 %v10968_v1, %v758_v63 }
  0xbf   : > { %v1000_v13 = vmul.f32 %v10968_v1, %v737_v9 }
  0xc1   : > { %1258 = vadd.xlane.f32.xlu0 %v975_v14  ;;  %1260 = vadd.xlane.f32.xlu1 %v976_v16  ;;  %v739_v14 = vunpack.c.l.bf16 %v483_v10  ;;  %v1001_v16 = vmul.f32 %v10968_v1, %v738_v12 }
  0xc3   : > { %v1002_v18 = vmul.f32 %v10968_v1, %v739_v14 }
  0xc5   : > { %1262 = vadd.xlane.f32.xlu0 %v977_v19  ;;  %1264 = vadd.xlane.f32.xlu1 %v978_v21  ;;  %v741_v19 = vunpack.c.l.bf16 %v485_v15  ;;  %v1003_v21 = vmul.f32 %v10968_v1, %v740_v17 }
  0xc7   : > { %v1004_v23 = vmul.f32 %v10968_v1, %v741_v19 }
  0xc9   : > { %1266 = vadd.xlane.f32.xlu0 %v979_v24  ;;  %1268 = vadd.xlane.f32.xlu1 %v980_v26  ;;  %v743_v24 = vunpack.c.l.bf16 %v487_v20  ;;  %v1005_v26 = vmul.f32 %v10968_v1, %v742_v22  ;;  %v509_v20 = vld [vmem:[%s10954_s24 + $0x140] sm:$0xff]  }
  0xcb   : > { %v1006_v28 = vmul.f32 %v10968_v1, %v743_v24 }
  0xcd   : > { %1270 = vadd.xlane.f32.xlu0 %v981_v29  ;;  %1272 = vadd.xlane.f32.xlu1 %v982_v31  ;;  %v745_v29 = vunpack.c.l.bf16 %v489_v25  ;;  %v1007_v31 = vmul.f32 %v10968_v1, %v744_v27  ;;  %v765_v25 = vunpack.c.l.bf16 %v509_v20  ;;  %v511_v27 = vld [vmem:[%s10954_s24 + $0x148] sm:$0xff]  }
  0xcf   : > { %v1008_v33 = vmul.f32 %v10968_v1, %v745_v29  ;;  %v766_v29 = vunpack.c.h.bf16 %v509_v20 }
  0xd1   : > { %1274 = vadd.xlane.f32.xlu0 %v983_v34  ;;  %1276 = vadd.xlane.f32.xlu1 %v984_v36  ;;  %v747_v34 = vunpack.c.l.bf16 %v491_v30  ;;  %v1009_v36 = vmul.f32 %v10968_v1, %v746_v32  ;;  %v767_v32 = vunpack.c.l.bf16 %v511_v27 }
  0xd3   : > { %v1010_v38 = vmul.f32 %v10968_v1, %v747_v34  ;;  %v513_v34 = vld [vmem:[%s10954_s24 + $0x150] sm:$0xff]  }
  0xd5   : > { %1278 = vadd.xlane.f32.xlu0 %v985_v39  ;;  %1280 = vadd.xlane.f32.xlu1 %v986_v41  ;;  %v749_v39 = vunpack.c.l.bf16 %v493_v35  ;;  %v1011_v41 = vmul.f32 %v10968_v1, %v748_v37  ;;  %v1029_v35 = vmul.f32 %v10968_v1, %v766_v29 }
  0xd7   : > { %v1012_v43 = vmul.f32 %v10968_v1, %v749_v39  ;;  %v769_v39 = vunpack.c.l.bf16 %v513_v34 }
  0xd9   : > { %1282 = vadd.xlane.f32.xlu0 %v987_v44  ;;  %1284 = vadd.xlane.f32.xlu1 %v988_v46  ;;  %v751_v44 = vunpack.c.l.bf16 %v495_v40  ;;  %v1013_v46 = vmul.f32 %v10968_v1, %v750_v42 }
  0xdb   : > { %v1014_v48 = vmul.f32 %v10968_v1, %v751_v44 }
  0xdd   : > { %1286 = vadd.xlane.f32.xlu0 %v989_v49  ;;  %1288 = vadd.xlane.f32.xlu1 %v990_v51  ;;  %v753_v49 = vunpack.c.l.bf16 %v497_v45  ;;  %v1015_v51 = vmul.f32 %v10968_v1, %v752_v47  ;;  %v1032_v45 = vmul.f32 %v10968_v1, %v769_v39 }
  0xdf   : > { %v1016_v53 = vmul.f32 %v10968_v1, %v753_v49 }
  0xe1   : > { %1290 = vadd.xlane.f32.xlu0 %v991_v54  ;;  %1292 = vadd.xlane.f32.xlu1 %v992_v56  ;;  %v755_v54 = vunpack.c.l.bf16 %v499_v50  ;;  %v1017_v56 = vmul.f32 %v10968_v1, %v754_v52 }
  0xe3   : > { %v1018_v58 = vmul.f32 %v10968_v1, %v755_v54 }
  0xe5   : > { %1294 = vadd.xlane.f32.xlu0 %v993_v59  ;;  %1296 = vadd.xlane.f32.xlu1 %v994_v61  ;;  %v757_v59 = vunpack.c.l.bf16 %v501_v55  ;;  %v426_v61 = vstv %s425_s4  ;;  %v519_v55 = vld [vmem:[%s10954_s24 + $0x168] sm:$0xff]   ;;  %s10573_s4 = scalar_lea.vmem %s10572_s28, 512 }
  0xe6   : > { %p10575_p7 = scmp.lt.s32.totalorder %s10573_s4, %s10567_s13 }
  0xe7   : > { %v1020_v2 = vmul.f32 %v10968_v1, %v757_v59 }
  0xe8   : > { %p10576_p4 = por %p10575_p7, %p10574_p2 }
  0xe9   : > { %1298 = vadd.xlane.f32.xlu0 %v995_v0  ;;  %1300 = vadd.xlane.f32.xlu1 %v996_v3  ;;  %v759_v3 = vunpack.c.l.bf16 %v503_v60 }
  0xea   : > { %p10577_p8 = pnand %p10576_p4, %p10570_p1 }
  0xeb   : > { %v1022_v10 = vmul.f32 %v10968_v1, %v759_v3 }
  0xed   : > { %1302 = vadd.xlane.f32.xlu0 %v997_v6  ;;  %1304 = vadd.xlane.f32.xlu1 %v998_v8  ;;  %v505_v6 = vld [vmem:[%s10954_s24 + $0x130] sm:$0xff]   ;;  %v760_v8 = vunpack.c.h.bf16 %v503_v60  ;;  %v775_v60 = vunpack.c.l.bf16 %v519_v55 }
  0xee   : > { %v762_v15 = vunpack.c.h.bf16 %v505_v6 }
  0xef   : > { %v1023_v14 = vmul.f32 %v10968_v1, %v760_v8  ;;  %v1038_v3 = vmul.f32 %v10968_v1, %v775_v60 }
  0xf1   : > { %1306 = vadd.xlane.f32.xlu0 %v999_v11  ;;  %1308 = vadd.xlane.f32.xlu1 %v1000_v13  ;;  %v761_v11 = vunpack.c.l.bf16 %v505_v6  ;;  %v507_v13 = vld [vmem:[%s10954_s24 + $0x138] sm:$0xff]  }
  0xf2   : > { %v764_v22 = vunpack.c.h.bf16 %v507_v13 }
  0xf3   : > { %v1024_v17 = vmul.f32 %v10968_v1, %v761_v11 }
  0xf5   : > { %1310 = vadd.xlane.f32.xlu0 %v1001_v16  ;;  %1312 = vadd.xlane.f32.xlu1 %v1002_v18  ;;  %v763_v18 = vunpack.c.l.bf16 %v507_v13 }
  0xf7   : > { %v1026_v24 = vmul.f32 %v10968_v1, %v763_v18 }
  0xf9   : > { %1314 = vadd.xlane.f32.xlu0 %v1003_v21  ;;  %1316 = vadd.xlane.f32.xlu1 %v1004_v23  ;;  %v1025_v21 = vmul.f32 %v10968_v1, %v762_v15 }
  0xfd   : > { %1318 = vadd.xlane.f32.xlu0 %v1005_v26  ;;  %1320 = vadd.xlane.f32.xlu1 %v1006_v28  ;;  %v1027_v28 = vmul.f32 %v10968_v1, %v764_v22 }
 0x101   : > { %1322 = vadd.xlane.f32.xlu0 %v1007_v31  ;;  %1324 = vadd.xlane.f32.xlu1 %v1008_v33  ;;  %v1028_v31 = vmul.f32 %v10968_v1, %v765_v25 }
 0x105   : > { %1326 = vadd.xlane.f32.xlu0 %v1009_v36  ;;  %1328 = vadd.xlane.f32.xlu1 %v1010_v38  ;;  %v768_v36 = vunpack.c.h.bf16 %v511_v27  ;;  %v1030_v38 = vmul.f32 %v10968_v1, %v767_v32  ;;  %v527_v27 = vld [vmem:[%s10954_s24 + $0x188] sm:$0xff]  }
 0x106   : > { %v784_v39 = vunpack.c.h.bf16 %v527_v27 }
 0x107   : > { %v1031_v42 = vmul.f32 %v10968_v1, %v768_v36  ;;  %v529_v36 = vld [vmem:[%s10954_s24 + $0x190] sm:$0xff]  }
 0x109   : > { %1330 = vadd.xlane.f32.xlu0 %v1011_v41  ;;  %1332 = vadd.xlane.f32.xlu1 %v1012_v43  ;;  %v515_v41 = vld [vmem:[%s10954_s24 + $0x158] sm:$0xff]   ;;  %v770_v43 = vunpack.c.h.bf16 %v513_v34  ;;  %v783_v34 = vunpack.c.l.bf16 %v527_v27 }
 0x10a   : > { %v772_v50 = vunpack.c.h.bf16 %v515_v41 }
 0x10b   : > { %v1033_v49 = vmul.f32 %v10968_v1, %v770_v43  ;;  %v785_v43 = vunpack.c.l.bf16 %v529_v36 }
 0x10d   : > { %1334 = vadd.xlane.f32.xlu0 %v1013_v46  ;;  %1336 = vadd.xlane.f32.xlu1 %v1014_v48  ;;  %v771_v46 = vunpack.c.l.bf16 %v515_v41  ;;  %v517_v48 = vld [vmem:[%s10954_s24 + $0x160] sm:$0xff]  }
 0x10e   : > { %v774_v57 = vunpack.c.h.bf16 %v517_v48 }
 0x10f   : > { %v1034_v52 = vmul.f32 %v10968_v1, %v771_v46  ;;  %v531_v46 = vld [vmem:[%s10954_s24 + $0x198] sm:$0xff]  }
 0x110   : > { %v1037_v63 = vmul.f32 %v10968_v1, %v774_v57 }
 0x111   : > { %1338 = vadd.xlane.f32.xlu0 %v1015_v51  ;;  %1340 = vadd.xlane.f32.xlu1 %v1016_v53  ;;  %v773_v53 = vunpack.c.l.bf16 %v517_v48  ;;  %v1047_v48 = vmul.f32 %v10968_v1, %v784_v39 }
 0x113   : > { %v1036_v59 = vmul.f32 %v10968_v1, %v773_v53  ;;  %v787_v53 = vunpack.c.l.bf16 %v531_v46 }
 0x115   : > { %1342 = vadd.xlane.f32.xlu0 %v1017_v56  ;;  %1344 = vadd.xlane.f32.xlu1 %v1018_v58  ;;  %v1035_v56 = vmul.f32 %v10968_v1, %v772_v50 }
 0x116   : > { %v424_v0 = vpop.xlane.xlu0 %423  ;;  %v11084_v4 = vpop.xlane.xlu1 %1206 }
 0x117   : > { %v427_v5 = vadd.f32 %v426_v61, %v424_v0  ;;  %v776_v0 = vunpack.c.h.bf16 %v519_v55 }
 0x119   : > { %428 = vst.msk [vmem:[#allocation4] sm:$0xff] %vm17146_vm0, %v427_v5  ;;  %1346 = vadd.xlane.f32.xlu0 %v1019_v62  ;;  %1348 = vadd.xlane.f32.xlu1 %v1020_v2  ;;  %v521_v62 = vld [vmem:[%s10954_s24 + $0x170] sm:$0xff]   ;;  %v1039_v8 = vmul.f32 %v10968_v1, %v776_v0  ;;  %vm17149_vm0 = vcmask 1041409  }
 0x11a   : > { %v11089_v9 = vpop.xlane.xlu0 %1204  ;;  %v11092_v12 = vpop.xlane.xlu1 %1208  ;;  %v777_v5 = vunpack.c.l.bf16 %v521_v62 }
 0x11c   : > { %v1040_v13 = vmul.f32 %v10968_v1, %v777_v5 }
 0x11d   : > { %1350 = vadd.xlane.f32.xlu0 %v1021_v7  ;;  %1352 = vadd.xlane.f32.xlu1 %v1022_v10  ;;  %v523_v7 = vld [vmem:[%s10954_s24 + $0x178] sm:$0xff]   ;;  %v778_v10 = vunpack.c.h.bf16 %v521_v62  ;;  %v1050_v62 = vmul.f32 %v10968_v1, %v787_v53 }
 0x11e   : > { %v11096_v16 = vpop.xlane.xlu0 %1210  ;;  %v11099_v19 = vpop.xlane.xlu1 %1212  ;;  %v780_v20 = vunpack.c.h.bf16 %v523_v7 }
 0x11f   : > { %v1041_v18 = vmul.f32 %v10968_v1, %v778_v10 }
 0x121   : > { %1354 = vadd.xlane.f32.xlu0 %v1023_v14  ;;  %1356 = vadd.xlane.f32.xlu1 %v1024_v17  ;;  %v779_v14 = vunpack.c.l.bf16 %v523_v7  ;;  %v525_v17 = vld [vmem:[%s10954_s24 + $0x180] sm:$0xff]  }
 0x122   : > { %v11103_v23 = vpop.xlane.xlu0 %1214  ;;  %v11106_v26 = vpop.xlane.xlu1 %1216  ;;  %v782_v29 = vunpack.c.h.bf16 %v525_v17 }
 0x123   : > { %v1042_v22 = vmul.f32 %v10968_v1, %v779_v14 }
 0x125   : > { %1358 = vadd.xlane.f32.xlu0 %v1025_v21  ;;  %1360 = vadd.xlane.f32.xlu1 %v1026_v24  ;;  %v781_v24 = vunpack.c.l.bf16 %v525_v17  ;;  %v537_v17 = vld [vmem:[%s10954_s24 + $0x1b0] sm:$0xff]  }
 0x126   : > { %v11110_v30 = vpop.xlane.xlu0 %1218  ;;  %v11113_v33 = vpop.xlane.xlu1 %1220  ;;  %v793_v27 = vunpack.c.l.bf16 %v537_v17 }
 0x127   : > { %v1044_v32 = vmul.f32 %v10968_v1, %v781_v24 }
 0x129   : > { %1362 = vadd.xlane.f32.xlu0 %v1027_v28  ;;  %1364 = vadd.xlane.f32.xlu1 %v1028_v31  ;;  %v1043_v28 = vmul.f32 %v10968_v1, %v780_v20 }
 0x12a   : > { %v11117_v37 = vpop.xlane.xlu0 %1222  ;;  %v11120_v40 = vpop.xlane.xlu1 %1224 }
 0x12d   : > { %1366 = vadd.xlane.f32.xlu0 %v1029_v35  ;;  %1368 = vadd.xlane.f32.xlu1 %v1030_v38  ;;  %v1045_v38 = vmul.f32 %v10968_v1, %v782_v29  ;;  %v539_v29 = vld [vmem:[%s10954_s24 + $0x1b8] sm:$0xff]  }
 0x12e   : > { %v11124_v44 = vpop.xlane.xlu0 %1226  ;;  %v11127_v47 = vpop.xlane.xlu1 %1228  ;;  %v795_v39 = vunpack.c.l.bf16 %v539_v29 }
 0x131   : > { %1370 = vadd.xlane.f32.xlu0 %v1031_v42  ;;  %1372 = vadd.xlane.f32.xlu1 %v1032_v45  ;;  %v1046_v42 = vmul.f32 %v10968_v1, %v783_v34  ;;  %v794_v34 = vunpack.c.h.bf16 %v537_v17 }
 0x132   : > { %v11131_v51 = vpop.xlane.xlu0 %1230  ;;  %v11134_v54 = vpop.xlane.xlu1 %1232 }
 0x135   : > { %1374 = vadd.xlane.f32.xlu0 %v1033_v49  ;;  %1376 = vadd.xlane.f32.xlu1 %v1034_v52  ;;  %v786_v49 = vunpack.c.h.bf16 %v529_v36  ;;  %v1048_v52 = vmul.f32 %v10968_v1, %v785_v43  ;;  %v541_v43 = vld [vmem:[%s10954_s24 + $0x1c0] sm:$0xff]  }
 0x136   : > { %v11138_v58 = vpop.xlane.xlu0 %1234  ;;  %v11141_v61 = vpop.xlane.xlu1 %1236  ;;  %v797_v53 = vunpack.c.l.bf16 %v541_v43 }
 0x137   : > { %v1049_v57 = vmul.f32 %v10968_v1, %v786_v49 }
 0x139   : > { %1378 = vadd.xlane.f32.xlu0 %v1035_v56  ;;  %1380 = vadd.xlane.f32.xlu1 %v1036_v59  ;;  %v533_v56 = vld [vmem:[%s10954_s24 + $0x1a0] sm:$0xff]   ;;  %v788_v59 = vunpack.c.h.bf16 %v531_v46  ;;  %v1057_v46 = vmul.f32 %v10968_v1, %v794_v34 }
 0x13a   : > { %v11145_v2 = vpop.xlane.xlu0 %1238  ;;  %v11148_v6 = vpop.xlane.xlu1 %1240  ;;  %v790_v7 = vunpack.c.h.bf16 %v533_v56 }
 0x13b   : > { %v1051_v5 = vmul.f32 %v10968_v1, %v788_v59 }
 0x13d   : > { %1382 = vadd.xlane.f32.xlu0 %v1037_v63  ;;  %1384 = vadd.xlane.f32.xlu1 %v1038_v3  ;;  %v789_v63 = vunpack.c.l.bf16 %v533_v56  ;;  %v535_v3 = vld [vmem:[%s10954_s24 + $0x1a8] sm:$0xff]  }
 0x13e   : > { %v11152_v11 = vpop.xlane.xlu0 %1242  ;;  %v11155_v15 = vpop.xlane.xlu1 %1244  ;;  %v792_v20 = vunpack.c.h.bf16 %v535_v3 }
 0x13f   : > { %v1052_v10 = vmul.f32 %v10968_v1, %v789_v63 }
 0x141   : > { %1386 = vadd.xlane.f32.xlu0 %v1039_v8  ;;  %1388 = vadd.xlane.f32.xlu1 %v1040_v13  ;;  %v791_v13 = vunpack.c.l.bf16 %v535_v3  ;;  %v1060_v3 = vmul.f32 %v10968_v1, %v797_v53 }
 0x142   : > { %v11159_v21 = vpop.xlane.xlu0 %1246  ;;  %v11162_v25 = vpop.xlane.xlu1 %1248 }
 0x143   : > { %v1054_v24 = vmul.f32 %v10968_v1, %v791_v13 }
 0x145   : > { %1390 = vadd.xlane.f32.xlu0 %v1041_v18  ;;  %1392 = vadd.xlane.f32.xlu1 %v1042_v22  ;;  %v1053_v18 = vmul.f32 %v10968_v1, %v790_v7 }
 0x146   : > { %v11166_v31 = vpop.xlane.xlu0 %1250  ;;  %v11169_v35 = vpop.xlane.xlu1 %1252 }
 0x149   : > { %1394 = vadd.xlane.f32.xlu0 %v1043_v28  ;;  %1396 = vadd.xlane.f32.xlu1 %v1044_v32  ;;  %v1055_v32 = vmul.f32 %v10968_v1, %v792_v20 }
 0x14a   : > { %v11173_v41 = vpop.xlane.xlu0 %1254  ;;  %v11176_v45 = vpop.xlane.xlu1 %1256 }
 0x14d   : > { %1398 = vadd.xlane.f32.xlu0 %v1045_v38  ;;  %1400 = vadd.xlane.f32.xlu1 %v1046_v42  ;;  %v1056_v38 = vmul.f32 %v10968_v1, %v793_v27 }
 0x14e   : > { %v11180_v50 = vpop.xlane.xlu0 %1258  ;;  %v11183_v55 = vpop.xlane.xlu1 %1260 }
 0x151   : > { %1402 = vadd.xlane.f32.xlu0 %v1047_v48  ;;  %1404 = vadd.xlane.f32.xlu1 %v1048_v52  ;;  %v796_v48 = vunpack.c.h.bf16 %v539_v29  ;;  %v1058_v52 = vmul.f32 %v10968_v1, %v795_v39  ;;  %v547_v29 = vld [vmem:[%s10954_s24 + $0x1d8] sm:$0xff]  }
 0x152   : > { %v11187_v60 = vpop.xlane.xlu0 %1262  ;;  %v11190_v0 = vpop.xlane.xlu1 %1264  ;;  %v804_v53 = vunpack.c.h.bf16 %v547_v29 }
 0x153   : > { %v1059_v59 = vmul.f32 %v10968_v1, %v796_v48  ;;  %v549_v48 = vld [vmem:[%s10954_s24 + $0x1e0] sm:$0xff]  }
 0x155   : > { %1406 = vadd.xlane.f32.xlu0 %v1049_v57  ;;  %1408 = vadd.xlane.f32.xlu1 %v1050_v62  ;;  %v543_v57 = vld [vmem:[%s10954_s24 + $0x1c8] sm:$0xff]   ;;  %v798_v62 = vunpack.c.h.bf16 %v541_v43  ;;  %v803_v43 = vunpack.c.l.bf16 %v547_v29 }
 0x156   : > { %v11194_v8 = vpop.xlane.xlu0 %1266  ;;  %v11197_v14 = vpop.xlane.xlu1 %1268  ;;  %v800_v17 = vunpack.c.h.bf16 %v543_v57 }
 0x157   : > { %v1061_v13 = vmul.f32 %v10968_v1, %v798_v62  ;;  %v805_v62 = vunpack.c.l.bf16 %v549_v48 }
 0x159   : > { %1410 = vadd.xlane.f32.xlu0 %v1051_v5  ;;  %1412 = vadd.xlane.f32.xlu1 %v1052_v10  ;;  %v799_v5 = vunpack.c.l.bf16 %v543_v57  ;;  %v545_v10 = vld [vmem:[%s10954_s24 + $0x1d0] sm:$0xff]  }
 0x15a   : > { %v11201_v22 = vpop.xlane.xlu0 %1270  ;;  %v11204_v28 = vpop.xlane.xlu1 %1272  ;;  %v802_v34 = vunpack.c.h.bf16 %v545_v10 }
 0x15b   : > { %v1062_v20 = vmul.f32 %v10968_v1, %v799_v5  ;;  %v551_v5 = vld [vmem:[%s10954_s24 + $0x1e8] sm:$0xff]  }
 0x15d   : > { %1414 = vadd.xlane.f32.xlu0 %v1053_v18  ;;  %1416 = vadd.xlane.f32.xlu1 %v1054_v24  ;;  %v801_v24 = vunpack.c.l.bf16 %v545_v10  ;;  %v1067_v10 = vmul.f32 %v10968_v1, %v804_v53 }
 0x15e   : > { %v11208_v36 = vpop.xlane.xlu0 %1274  ;;  %v11211_v42 = vpop.xlane.xlu1 %1276 }
 0x15f   : > { %v1064_v39 = vmul.f32 %v10968_v1, %v801_v24  ;;  %v807_v24 = vunpack.c.l.bf16 %v551_v5 }
 0x161   : > { %1418 = vadd.xlane.f32.xlu0 %v1055_v32  ;;  %1420 = vadd.xlane.f32.xlu1 %v1056_v38  ;;  %v1063_v32 = vmul.f32 %v10968_v1, %v800_v17 }
 0x162   : > { %v11215_v49 = vpop.xlane.xlu0 %1278  ;;  %v11218_v56 = vpop.xlane.xlu1 %1280 }
 0x163   : > { %17209 = vst [vmem:[#allocation23_spill] sm:$0xff] %v11218_v56 }
 0x165   : > { %1422 = vadd.xlane.f32.xlu0 %v1057_v46  ;;  %1424 = vadd.xlane.f32.xlu1 %v1058_v52  ;;  %v1065_v52 = vmul.f32 %v10968_v1, %v802_v34 }
 0x166   : > { %v11222_v63 = vpop.xlane.xlu0 %1282  ;;  %v11225_v7 = vpop.xlane.xlu1 %1284 }
 0x167   : > { %17210 = vst [vmem:[#allocation24_spill] sm:$0xff] %v11225_v7 }
 0x169   : > { %1426 = vadd.xlane.f32.xlu0 %v1059_v59  ;;  %1428 = vadd.xlane.f32.xlu1 %v1060_v3  ;;  %v1066_v59 = vmul.f32 %v10968_v1, %v803_v43 }
 0x16a   : > { %v11229_v18 = vpop.xlane.xlu0 %1286  ;;  %v11232_v27 = vpop.xlane.xlu1 %1288 }
 0x16b   : > { %17211 = vst [vmem:[#allocation25_spill] sm:$0xff] %v11232_v27 }
 0x16d   : > { %1430 = vadd.xlane.f32.xlu0 %v1061_v13  ;;  %1432 = vadd.xlane.f32.xlu1 %v1062_v20  ;;  %v806_v13 = vunpack.c.h.bf16 %v549_v48  ;;  %v1068_v20 = vmul.f32 %v10968_v1, %v805_v62 }
 0x16e   : > { %v11236_v38 = vpop.xlane.xlu0 %1290  ;;  %v11239_v46 = vpop.xlane.xlu1 %1292 }
 0x16f   : > { %17212 = vst [vmem:[#allocation26_spill] sm:$0xff] %v11239_v46  ;;  %v1069_v34 = vmul.f32 %v10968_v1, %v806_v13 }
 0x171   : > { %1434 = vadd.xlane.f32.xlu0 %v1063_v32  ;;  %1436 = vadd.xlane.f32.xlu1 %v1064_v39  ;;  %v553_v32 = vld [vmem:[%s10954_s24 + $0x1f0] sm:$0xff]   ;;  %v808_v39 = vunpack.c.h.bf16 %v551_v5 }
 0x172   : > { %v11243_v57 = vpop.xlane.xlu0 %1294  ;;  %v11246_v3 = vpop.xlane.xlu1 %1296  ;;  %v809_v48 = vunpack.c.l.bf16 %v553_v32 }
 0x173   : > { %17213 = vst [vmem:[#allocation27_spill] sm:$0xff] %v11246_v3  ;;  %v1071_v62 = vmul.f32 %v10968_v1, %v808_v39  ;;  %v557_v3 = vld [vmem:[%s10954_s24 + $0x200] sm:$0xff]  }
 0x174   : > { %v1072_v13 = vmul.f32 %v10968_v1, %v809_v48  ;;  %v11280_v48 = vld [vmem:[%s16851_s3] ss:$0 sm:$0xff] }
 0x175   : > { %1438 = vadd.xlane.f32.xlu0 %v1065_v52  ;;  %1440 = vadd.xlane.f32.xlu1 %v1066_v59  ;;  %v1070_v52 = vmul.f32 %v10968_v1, %v807_v24  ;;  %v555_v59 = vld [vmem:[%s10954_s24 + $0x1f8] sm:$0xff]  }
 0x176   : > { %v11250_v17 = vpop.xlane.xlu0 %1298  ;;  %v11253_v29 = vpop.xlane.xlu1 %1300  ;;  %v811_v5 = vunpack.c.l.bf16 %v555_v59  ;;  %v812_v46 = vunpack.c.h.bf16 %v555_v59 }
 0x177   : > { %17214 = vst [vmem:[#allocation28_spill] sm:$0xff] %v11253_v29  ;;  %v810_v29 = vunpack.c.h.bf16 %v553_v32  ;;  %v813_v32 = vunpack.c.l.bf16 %v557_v3 }
 0x178   : > { %v1074_v39 = vmul.f32 %v10968_v1, %v811_v5 }
 0x179   : > { %1442 = vadd.xlane.f32.xlu0 %v1067_v10  ;;  %1444 = vadd.xlane.f32.xlu1 %v1068_v20  ;;  %v1073_v24 = vmul.f32 %v10968_v1, %v810_v29  ;;  %v814_v29 = vunpack.c.h.bf16 %v557_v3 }
 0x17a   : > { %v11257_v43 = vpop.xlane.xlu0 %1302  ;;  %v11260_v53 = vpop.xlane.xlu1 %1304 }
 0x17b   : > { %17215 = vst [vmem:[#allocation29_spill] sm:$0xff] %v11260_v53  ;;  %v559_v53 = vld [vmem:[%s10954_s24 + $0x208] sm:$0xff]  }
 0x17c   : > { %v815_v1 = vunpack.c.l.bf16 %v559_v53 }
 0x17d   : > { %1446 = vadd.xlane.f32.xlu0 %v1069_v34  ;;  %1448 = vadd.xlane.f32.xlu1 %v1070_v52 }
 0x17e   : > { %v11264_v10 = vpop.xlane.xlu0 %1306  ;;  %v11267_v20 = vpop.xlane.xlu1 %1308 }
 0x17f   : > { %17216 = vst [vmem:[#allocation30_spill] sm:$0xff] %v11264_v10  ;;  %17217 = vst [vmem:[#allocation31_spill] sm:$0xff] %v11267_v20  ;;  %v816_v20 = vunpack.c.h.bf16 %v559_v53 }
 0x181   : > { %1450 = vadd.xlane.f32.xlu0 %v1071_v62  ;;  %1452 = vadd.xlane.f32.xlu1 %v1072_v13  ;;  %v1075_v62 = vmul.f32 %v11280_v48, %v812_v46  ;;  %v1076_v13 = vmul.f32 %v11280_v48, %v813_v32  ;;  %v1078_v46 = vmul.f32 %v11280_v48, %v815_v1 }
 0x182   : > { %v11271_v34 = vpop.xlane.xlu0 %1310  ;;  %v11274_v52 = vpop.xlane.xlu1 %1312  ;;  %v1079_v32 = vmul.f32 %v11280_v48, %v816_v20 }
 0x183   : > { %17218 = vst [vmem:[#allocation32_spill] sm:$0xff] %v11271_v34  ;;  %17219 = vst [vmem:[#allocation33_spill] sm:$0xff] %v11274_v52  ;;  %v561_v52 = vld [vmem:[%s10954_s24 + $0x210] sm:$0xff]  }
 0x184   : > { %v817_v3 = vunpack.c.l.bf16 %v561_v52 }
 0x185   : > { %1454 = vadd.xlane.f32.xlu0 %v1073_v24  ;;  %1456 = vadd.xlane.f32.xlu1 %v1074_v39  ;;  %v1077_v24 = vmul.f32 %v11280_v48, %v814_v29 }
 0x186   : > { %v11283_v59 = vpop.xlane.xlu0 %1314  ;;  %v11286_v5 = vpop.xlane.xlu1 %1316  ;;  %v1080_v29 = vmul.f32 %v11280_v48, %v817_v3 }
 0x187   : > { %17220 = vst [vmem:[#allocation34_spill] sm:$0xff] %v11283_v59  ;;  %17221 = vst [vmem:[#allocation35_spill] sm:$0xff] %v11286_v5  ;;  %v563_v59 = vld [vmem:[%s10954_s24 + $0x218] sm:$0xff]   ;;  %v818_v5 = vunpack.c.h.bf16 %v561_v52 }
 0x188   : > { %v819_v53 = vunpack.c.l.bf16 %v563_v59 }
 0x189   : > { %1458 = vadd.xlane.f32.xlu0 %v1075_v62  ;;  %1460 = vadd.xlane.f32.xlu1 %v1076_v13  ;;  %v1081_v1 = vmul.f32 %v11280_v48, %v818_v5 }
 0x18a   : > { %v11290_v27 = vpop.xlane.xlu0 %1318  ;;  %v11293_v39 = vpop.xlane.xlu1 %1320  ;;  %v1082_v20 = vmul.f32 %v11280_v48, %v819_v53 }
 0x18b   : > { %17222 = vst [vmem:[#allocation36_spill] sm:$0xff] %v11290_v27  ;;  %17223 = vst [vmem:[#allocation37_spill] sm:$0xff] %v11293_v39  ;;  %v565_v27 = vld [vmem:[%s10954_s24 + $0x220] sm:$0xff]   ;;  %v820_v39 = vunpack.c.h.bf16 %v563_v59 }
 0x18c   : > { %v821_v52 = vunpack.c.l.bf16 %v565_v27 }
 0x18d   : > { %1462 = vadd.xlane.f32.xlu0 %v1077_v24  ;;  %1464 = vadd.xlane.f32.xlu1 %v1078_v46  ;;  %v1083_v3 = vmul.f32 %v11280_v48, %v820_v39 }
 0x18e   : > { %v11297_v62 = vpop.xlane.xlu0 %1322  ;;  %v11300_v13 = vpop.xlane.xlu1 %1324  ;;  %v1084_v5 = vmul.f32 %v11280_v48, %v821_v52 }
 0x18f   : > { %17224 = vst [vmem:[#allocation38_spill] sm:$0xff] %v11297_v62  ;;  %17225 = vst [vmem:[#allocation39_spill] sm:$0xff] %v11300_v13  ;;  %v567_v62 = vld [vmem:[%s10954_s24 + $0x228] sm:$0xff]   ;;  %v822_v13 = vunpack.c.h.bf16 %v565_v27 }
 0x190   : > { %v823_v59 = vunpack.c.l.bf16 %v567_v62 }
 0x191   : > { %1466 = vadd.xlane.f32.xlu0 %v1079_v32  ;;  %1468 = vadd.xlane.f32.xlu1 %v1080_v29  ;;  %v1085_v53 = vmul.f32 %v11280_v48, %v822_v13 }
 0x192   : > { %v11304_v24 = vpop.xlane.xlu0 %1326  ;;  %v11307_v46 = vpop.xlane.xlu1 %1328  ;;  %v1086_v39 = vmul.f32 %v11280_v48, %v823_v59 }
 0x193   : > { %17226 = vst [vmem:[#allocation40_spill] sm:$0xff] %v11304_v24  ;;  %17227 = vst [vmem:[#allocation41_spill] sm:$0xff] %v11307_v46  ;;  %v569_v24 = vld [vmem:[%s10954_s24 + $0x230] sm:$0xff]   ;;  %v824_v46 = vunpack.c.h.bf16 %v567_v62 }
 0x194   : > { %v825_v27 = vunpack.c.l.bf16 %v569_v24 }
 0x195   : > { %1470 = vadd.xlane.f32.xlu0 %v1081_v1  ;;  %1472 = vadd.xlane.f32.xlu1 %v1082_v20  ;;  %v1087_v52 = vmul.f32 %v11280_v48, %v824_v46 }
 0x196   : > { %v11311_v32 = vpop.xlane.xlu0 %1330  ;;  %v11314_v29 = vpop.xlane.xlu1 %1332  ;;  %v1088_v13 = vmul.f32 %v11280_v48, %v825_v27 }
 0x197   : > { %17228 = vst [vmem:[#allocation42_spill] sm:$0xff] %v11311_v32  ;;  %17229 = vst [vmem:[#allocation43_spill] sm:$0xff] %v11314_v29  ;;  %v571_v32 = vld [vmem:[%s10954_s24 + $0x238] sm:$0xff]   ;;  %v826_v29 = vunpack.c.h.bf16 %v569_v24 }
 0x198   : > { %v827_v62 = vunpack.c.l.bf16 %v571_v32 }
 0x199   : > { %1474 = vadd.xlane.f32.xlu0 %v1083_v3  ;;  %1476 = vadd.xlane.f32.xlu1 %v1084_v5  ;;  %v1089_v59 = vmul.f32 %v11280_v48, %v826_v29 }
 0x19a   : > { %v11318_v1 = vpop.xlane.xlu0 %1334  ;;  %v11321_v20 = vpop.xlane.xlu1 %1336  ;;  %v1090_v46 = vmul.f32 %v11280_v48, %v827_v62 }
 0x19b   : > { %17230 = vst [vmem:[#allocation44_spill] sm:$0xff] %v11318_v1  ;;  %17231 = vst [vmem:[#allocation45_spill] sm:$0xff] %v11321_v20  ;;  %v573_v1 = vld [vmem:[%s10954_s24 + $0x240] sm:$0xff]   ;;  %v828_v20 = vunpack.c.h.bf16 %v571_v32 }
 0x19c   : > { %v829_v24 = vunpack.c.l.bf16 %v573_v1 }
 0x19d   : > { %1478 = vadd.xlane.f32.xlu0 %v1085_v53  ;;  %1480 = vadd.xlane.f32.xlu1 %v1086_v39  ;;  %v1091_v27 = vmul.f32 %v11280_v48, %v828_v20 }
 0x19e   : > { %v11325_v3 = vpop.xlane.xlu0 %1338  ;;  %v11328_v5 = vpop.xlane.xlu1 %1340  ;;  %v1092_v29 = vmul.f32 %v11280_v48, %v829_v24 }
 0x19f   : > { %17232 = vst [vmem:[#allocation46_spill] sm:$0xff] %v11325_v3  ;;  %17233 = vst [vmem:[#allocation47_spill] sm:$0xff] %v11328_v5  ;;  %v575_v3 = vld [vmem:[%s10954_s24 + $0x248] sm:$0xff]   ;;  %v830_v5 = vunpack.c.h.bf16 %v573_v1 }
 0x1a0   : > { %v831_v32 = vunpack.c.l.bf16 %v575_v3 }
 0x1a1   : > { %1482 = vadd.xlane.f32.xlu0 %v1087_v52  ;;  %1484 = vadd.xlane.f32.xlu1 %v1088_v13  ;;  %v1093_v62 = vmul.f32 %v11280_v48, %v830_v5 }
 0x1a2   : > { %v11332_v53 = vpop.xlane.xlu0 %1342  ;;  %v11335_v39 = vpop.xlane.xlu1 %1344  ;;  %v1094_v20 = vmul.f32 %v11280_v48, %v831_v32 }
 0x1a3   : > { %17234 = vst [vmem:[#allocation48_spill] sm:$0xff] %v11332_v53  ;;  %17235 = vst [vmem:[#allocation49_spill] sm:$0xff] %v11335_v39  ;;  %v577_v53 = vld [vmem:[%s10954_s24 + $0x250] sm:$0xff]   ;;  %v832_v39 = vunpack.c.h.bf16 %v575_v3 }
 0x1a4   : > { %v833_v1 = vunpack.c.l.bf16 %v577_v53 }
 0x1a5   : > { %1486 = vadd.xlane.f32.xlu0 %v1089_v59  ;;  %1488 = vadd.xlane.f32.xlu1 %v1090_v46  ;;  %v1095_v24 = vmul.f32 %v11280_v48, %v832_v39 }
 0x1a6   : > { %v11339_v52 = vpop.xlane.xlu0 %1346  ;;  %v11342_v13 = vpop.xlane.xlu1 %1348  ;;  %v1096_v5 = vmul.f32 %v11280_v48, %v833_v1 }
 0x1a7   : > { %17236 = vst [vmem:[#allocation50_spill] sm:$0xff] %v11339_v52  ;;  %17237 = vst [vmem:[#allocation51_spill] sm:$0xff] %v11342_v13  ;;  %v579_v52 = vld [vmem:[%s10954_s24 + $0x258] sm:$0xff]   ;;  %v834_v13 = vunpack.c.h.bf16 %v577_v53 }
 0x1a8   : > { %v835_v3 = vunpack.c.l.bf16 %v579_v52 }
 0x1a9   : > { %1490 = vadd.xlane.f32.xlu0 %v1091_v27  ;;  %1492 = vadd.xlane.f32.xlu1 %v1092_v29  ;;  %v1097_v32 = vmul.f32 %v11280_v48, %v834_v13 }
 0x1aa   : > { %v11346_v59 = vpop.xlane.xlu0 %1350  ;;  %v11349_v46 = vpop.xlane.xlu1 %1352  ;;  %v1098_v39 = vmul.f32 %v11280_v48, %v835_v3 }
 0x1ab   : > { %17238 = vst [vmem:[#allocation52_spill] sm:$0xff] %v11346_v59  ;;  %17239 = vst [vmem:[#allocation53_spill] sm:$0xff] %v11349_v46  ;;  %v581_v59 = vld [vmem:[%s10954_s24 + $0x260] sm:$0xff]   ;;  %v836_v46 = vunpack.c.h.bf16 %v579_v52 }
 0x1ac   : > { %v837_v53 = vunpack.c.l.bf16 %v581_v59 }
 0x1ad   : > { %1494 = vadd.xlane.f32.xlu0 %v1093_v62  ;;  %1496 = vadd.xlane.f32.xlu1 %v1094_v20  ;;  %v1099_v1 = vmul.f32 %v11280_v48, %v836_v46 }
 0x1ae   : > { %v11353_v27 = vpop.xlane.xlu0 %1354  ;;  %v11356_v29 = vpop.xlane.xlu1 %1356  ;;  %v1100_v13 = vmul.f32 %v11280_v48, %v837_v53 }
 0x1af   : > { %17240 = vst [vmem:[#allocation54_spill] sm:$0xff] %v11353_v27  ;;  %17241 = vst [vmem:[#allocation55_spill] sm:$0xff] %v11356_v29  ;;  %v583_v27 = vld [vmem:[%s10954_s24 + $0x268] sm:$0xff]   ;;  %v838_v29 = vunpack.c.h.bf16 %v581_v59 }
 0x1b0   : > { %v839_v52 = vunpack.c.l.bf16 %v583_v27 }
 0x1b1   : > { %1498 = vadd.xlane.f32.xlu0 %v1095_v24  ;;  %1500 = vadd.xlane.f32.xlu1 %v1096_v5  ;;  %v1101_v3 = vmul.f32 %v11280_v48, %v838_v29 }
 0x1b2   : > { %v11360_v62 = vpop.xlane.xlu0 %1358  ;;  %v11363_v20 = vpop.xlane.xlu1 %1360  ;;  %v1102_v46 = vmul.f32 %v11280_v48, %v839_v52 }
 0x1b3   : > { %17242 = vst [vmem:[#allocation56_spill] sm:$0xff] %v11360_v62  ;;  %17243 = vst [vmem:[#allocation57_spill] sm:$0xff] %v11363_v20  ;;  %v585_v62 = vld [vmem:[%s10954_s24 + $0x270] sm:$0xff]   ;;  %v840_v20 = vunpack.c.h.bf16 %v583_v27 }
 0x1b4   : > { %v841_v59 = vunpack.c.l.bf16 %v585_v62 }
 0x1b5   : > { %1502 = vadd.xlane.f32.xlu0 %v1097_v32  ;;  %1504 = vadd.xlane.f32.xlu1 %v1098_v39  ;;  %v1103_v53 = vmul.f32 %v11280_v48, %v840_v20 }
 0x1b6   : > { %v11367_v24 = vpop.xlane.xlu0 %1362  ;;  %v11370_v5 = vpop.xlane.xlu1 %1364  ;;  %v1104_v29 = vmul.f32 %v11280_v48, %v841_v59 }
 0x1b7   : > { %17244 = vst [vmem:[#allocation58_spill] sm:$0xff] %v11367_v24  ;;  %17245 = vst [vmem:[#allocation59_spill] sm:$0xff] %v11370_v5  ;;  %v587_v24 = vld [vmem:[%s10954_s24 + $0x278] sm:$0xff]   ;;  %v842_v5 = vunpack.c.h.bf16 %v585_v62 }
 0x1b8   : > { %v843_v27 = vunpack.c.l.bf16 %v587_v24 }
 0x1b9   : > { %1506 = vadd.xlane.f32.xlu0 %v1099_v1  ;;  %1508 = vadd.xlane.f32.xlu1 %v1100_v13  ;;  %v1105_v52 = vmul.f32 %v11280_v48, %v842_v5 }
 0x1ba   : > { %v11374_v32 = vpop.xlane.xlu0 %1366  ;;  %v11377_v39 = vpop.xlane.xlu1 %1368  ;;  %v1106_v20 = vmul.f32 %v11280_v48, %v843_v27 }
 0x1bb   : > { %17246 = vst [vmem:[#allocation60_spill] sm:$0xff] %v11374_v32  ;;  %17247 = vst [vmem:[#allocation61_spill] sm:$0xff] %v11377_v39  ;;  %v589_v32 = vld [vmem:[%s10954_s24 + $0x280] sm:$0xff]   ;;  %v844_v39 = vunpack.c.h.bf16 %v587_v24 }
 0x1bc   : > { %v845_v62 = vunpack.c.l.bf16 %v589_v32 }
 0x1bd   : > { %1510 = vadd.xlane.f32.xlu0 %v1101_v3  ;;  %1512 = vadd.xlane.f32.xlu1 %v1102_v46  ;;  %v1107_v59 = vmul.f32 %v11280_v48, %v844_v39 }
 0x1be   : > { %v11381_v1 = vpop.xlane.xlu0 %1370  ;;  %v11384_v13 = vpop.xlane.xlu1 %1372  ;;  %v1108_v5 = vmul.f32 %v11280_v48, %v845_v62 }
 0x1bf   : > { %17248 = vst [vmem:[#allocation62_spill] sm:$0xff] %v11381_v1  ;;  %17249 = vst [vmem:[#allocation63_spill] sm:$0xff] %v11384_v13  ;;  %v591_v1 = vld [vmem:[%s10954_s24 + $0x288] sm:$0xff]   ;;  %v846_v13 = vunpack.c.h.bf16 %v589_v32 }
 0x1c0   : > { %v847_v24 = vunpack.c.l.bf16 %v591_v1 }
 0x1c1   : > { %1514 = vadd.xlane.f32.xlu0 %v1103_v53  ;;  %1516 = vadd.xlane.f32.xlu1 %v1104_v29  ;;  %v1109_v27 = vmul.f32 %v11280_v48, %v846_v13 }
 0x1c2   : > { %v11388_v3 = vpop.xlane.xlu0 %1374  ;;  %v11391_v46 = vpop.xlane.xlu1 %1376  ;;  %v1110_v39 = vmul.f32 %v11280_v48, %v847_v24 }
 0x1c3   : > { %17250 = vst [vmem:[#allocation64_spill] sm:$0xff] %v11388_v3  ;;  %17251 = vst [vmem:[#allocation65_spill] sm:$0xff] %v11391_v46  ;;  %v593_v3 = vld [vmem:[%s10954_s24 + $0x290] sm:$0xff]   ;;  %v848_v46 = vunpack.c.h.bf16 %v591_v1 }
 0x1c4   : > { %v849_v32 = vunpack.c.l.bf16 %v593_v3 }
 0x1c5   : > { %1518 = vadd.xlane.f32.xlu0 %v1105_v52  ;;  %1520 = vadd.xlane.f32.xlu1 %v1106_v20  ;;  %v1111_v62 = vmul.f32 %v11280_v48, %v848_v46 }
 0x1c6   : > { %v11395_v53 = vpop.xlane.xlu0 %1378  ;;  %v11398_v29 = vpop.xlane.xlu1 %1380  ;;  %v1112_v13 = vmul.f32 %v11280_v48, %v849_v32 }
 0x1c7   : > { %17252 = vst [vmem:[#allocation66_spill] sm:$0xff] %v11395_v53  ;;  %17253 = vst [vmem:[#allocation67_spill] sm:$0xff] %v11398_v29  ;;  %v595_v53 = vld [vmem:[%s10954_s24 + $0x298] sm:$0xff]   ;;  %v850_v29 = vunpack.c.h.bf16 %v593_v3 }
 0x1c8   : > { %v851_v1 = vunpack.c.l.bf16 %v595_v53 }
 0x1c9   : > { %1522 = vadd.xlane.f32.xlu0 %v1107_v59  ;;  %1524 = vadd.xlane.f32.xlu1 %v1108_v5  ;;  %v1113_v24 = vmul.f32 %v11280_v48, %v850_v29 }
 0x1ca   : > { %v11402_v52 = vpop.xlane.xlu0 %1382  ;;  %v11405_v20 = vpop.xlane.xlu1 %1384  ;;  %v1114_v46 = vmul.f32 %v11280_v48, %v851_v1 }
 0x1cb   : > { %17254 = vst [vmem:[#allocation68_spill] sm:$0xff] %v11402_v52  ;;  %17255 = vst [vmem:[#allocation69_spill] sm:$0xff] %v11405_v20  ;;  %v597_v52 = vld [vmem:[%s10954_s24 + $0x2a0] sm:$0xff]   ;;  %v852_v20 = vunpack.c.h.bf16 %v595_v53 }
 0x1cc   : > { %v853_v3 = vunpack.c.l.bf16 %v597_v52 }
 0x1cd   : > { %1526 = vadd.xlane.f32.xlu0 %v1109_v27  ;;  %1528 = vadd.xlane.f32.xlu1 %v1110_v39  ;;  %v1115_v32 = vmul.f32 %v11280_v48, %v852_v20 }
 0x1ce   : > { %v11409_v59 = vpop.xlane.xlu0 %1386  ;;  %v11412_v5 = vpop.xlane.xlu1 %1388  ;;  %v1116_v29 = vmul.f32 %v11280_v48, %v853_v3 }
 0x1cf   : > { %17256 = vst [vmem:[#allocation70_spill] sm:$0xff] %v11409_v59  ;;  %17257 = vst [vmem:[#allocation71_spill] sm:$0xff] %v11412_v5  ;;  %v599_v59 = vld [vmem:[%s10954_s24 + $0x2a8] sm:$0xff]   ;;  %v854_v5 = vunpack.c.h.bf16 %v597_v52 }
 0x1d0   : > { %v855_v53 = vunpack.c.l.bf16 %v599_v59 }
 0x1d1   : > { %1530 = vadd.xlane.f32.xlu0 %v1111_v62  ;;  %1532 = vadd.xlane.f32.xlu1 %v1112_v13  ;;  %v1117_v1 = vmul.f32 %v11280_v48, %v854_v5 }
 0x1d2   : > { %v11416_v27 = vpop.xlane.xlu0 %1390  ;;  %v11419_v39 = vpop.xlane.xlu1 %1392  ;;  %v1118_v20 = vmul.f32 %v11280_v48, %v855_v53 }
 0x1d3   : > { %17258 = vst [vmem:[#allocation72_spill] sm:$0xff] %v11416_v27  ;;  %17259 = vst [vmem:[#allocation73_spill] sm:$0xff] %v11419_v39  ;;  %v601_v27 = vld [vmem:[%s10954_s24 + $0x2b0] sm:$0xff]   ;;  %v856_v39 = vunpack.c.h.bf16 %v599_v59 }
 0x1d4   : > { %v857_v52 = vunpack.c.l.bf16 %v601_v27 }
 0x1d5   : > { %1534 = vadd.xlane.f32.xlu0 %v1113_v24  ;;  %1536 = vadd.xlane.f32.xlu1 %v1114_v46  ;;  %v1119_v3 = vmul.f32 %v11280_v48, %v856_v39 }
 0x1d6   : > { %v11423_v62 = vpop.xlane.xlu0 %1394  ;;  %v11426_v13 = vpop.xlane.xlu1 %1396  ;;  %v1120_v5 = vmul.f32 %v11280_v48, %v857_v52 }
 0x1d7   : > { %17260 = vst [vmem:[#allocation74_spill] sm:$0xff] %v11423_v62  ;;  %17261 = vst [vmem:[#allocation75_spill] sm:$0xff] %v11426_v13  ;;  %v603_v62 = vld [vmem:[%s10954_s24 + $0x2b8] sm:$0xff]   ;;  %v858_v13 = vunpack.c.h.bf16 %v601_v27 }
 0x1d8   : > { %v859_v59 = vunpack.c.l.bf16 %v603_v62 }
 0x1d9   : > { %1538 = vadd.xlane.f32.xlu0 %v1115_v32  ;;  %1540 = vadd.xlane.f32.xlu1 %v1116_v29  ;;  %v1121_v53 = vmul.f32 %v11280_v48, %v858_v13 }
 0x1da   : > { %v11430_v24 = vpop.xlane.xlu0 %1398  ;;  %v11433_v46 = vpop.xlane.xlu1 %1400  ;;  %v1122_v39 = vmul.f32 %v11280_v48, %v859_v59 }
 0x1db   : > { %17262 = vst [vmem:[#allocation76_spill] sm:$0xff] %v11430_v24  ;;  %17263 = vst [vmem:[#allocation77_spill] sm:$0xff] %v11433_v46  ;;  %v605_v24 = vld [vmem:[%s10954_s24 + $0x2c0] sm:$0xff]   ;;  %v860_v46 = vunpack.c.h.bf16 %v603_v62 }
 0x1dc   : > { %v861_v27 = vunpack.c.l.bf16 %v605_v24 }
 0x1dd   : > { %1542 = vadd.xlane.f32.xlu0 %v1117_v1  ;;  %1544 = vadd.xlane.f32.xlu1 %v1118_v20  ;;  %v1123_v52 = vmul.f32 %v11280_v48, %v860_v46 }
 0x1de   : > { %v11437_v32 = vpop.xlane.xlu0 %1402  ;;  %v11440_v29 = vpop.xlane.xlu1 %1404  ;;  %v1124_v13 = vmul.f32 %v11280_v48, %v861_v27 }
 0x1df   : > { %17264 = vst [vmem:[#allocation78_spill] sm:$0xff] %v11437_v32  ;;  %17265 = vst [vmem:[#allocation79_spill] sm:$0xff] %v11440_v29  ;;  %v607_v32 = vld [vmem:[%s10954_s24 + $0x2c8] sm:$0xff]   ;;  %v862_v29 = vunpack.c.h.bf16 %v605_v24 }
 0x1e0   : > { %v863_v62 = vunpack.c.l.bf16 %v607_v32 }
 0x1e1   : > { %1546 = vadd.xlane.f32.xlu0 %v1119_v3  ;;  %1548 = vadd.xlane.f32.xlu1 %v1120_v5  ;;  %v1125_v59 = vmul.f32 %v11280_v48, %v862_v29 }
 0x1e2   : > { %v11444_v1 = vpop.xlane.xlu0 %1406  ;;  %v11447_v20 = vpop.xlane.xlu1 %1408  ;;  %v1126_v46 = vmul.f32 %v11280_v48, %v863_v62 }
 0x1e3   : > { %17266 = vst [vmem:[#allocation80_spill] sm:$0xff] %v11444_v1  ;;  %17267 = vst [vmem:[#allocation81_spill] sm:$0xff] %v11447_v20  ;;  %v609_v1 = vld [vmem:[%s10954_s24 + $0x2d0] sm:$0xff]   ;;  %v864_v20 = vunpack.c.h.bf16 %v607_v32 }
 0x1e4   : > { %v865_v24 = vunpack.c.l.bf16 %v609_v1 }
 0x1e5   : > { %1550 = vadd.xlane.f32.xlu0 %v1121_v53  ;;  %1552 = vadd.xlane.f32.xlu1 %v1122_v39  ;;  %v1127_v27 = vmul.f32 %v11280_v48, %v864_v20 }
 0x1e6   : > { %v11451_v3 = vpop.xlane.xlu0 %1410  ;;  %v11454_v5 = vpop.xlane.xlu1 %1412  ;;  %v1128_v29 = vmul.f32 %v11280_v48, %v865_v24 }
 0x1e7   : > { %17268 = vst [vmem:[#allocation82_spill] sm:$0xff] %v11451_v3  ;;  %17269 = vst [vmem:[#allocation83_spill] sm:$0xff] %v11454_v5  ;;  %v611_v3 = vld [vmem:[%s10954_s24 + $0x2d8] sm:$0xff]   ;;  %v866_v5 = vunpack.c.h.bf16 %v609_v1 }
 0x1e8   : > { %v867_v32 = vunpack.c.l.bf16 %v611_v3 }
 0x1e9   : > { %1554 = vadd.xlane.f32.xlu0 %v1123_v52  ;;  %1556 = vadd.xlane.f32.xlu1 %v1124_v13  ;;  %v1129_v62 = vmul.f32 %v11280_v48, %v866_v5 }
 0x1ea   : > { %v11458_v53 = vpop.xlane.xlu0 %1414  ;;  %v11461_v39 = vpop.xlane.xlu1 %1416  ;;  %v1130_v20 = vmul.f32 %v11280_v48, %v867_v32 }
 0x1eb   : > { %17270 = vst [vmem:[#allocation84_spill] sm:$0xff] %v11458_v53  ;;  %17271 = vst [vmem:[#allocation85_spill] sm:$0xff] %v11461_v39  ;;  %v613_v53 = vld [vmem:[%s10954_s24 + $0x2e0] sm:$0xff]   ;;  %v868_v39 = vunpack.c.h.bf16 %v611_v3 }
 0x1ec   : > { %v869_v1 = vunpack.c.l.bf16 %v613_v53 }
 0x1ed   : > { %1558 = vadd.xlane.f32.xlu0 %v1125_v59  ;;  %1560 = vadd.xlane.f32.xlu1 %v1126_v46  ;;  %v1131_v24 = vmul.f32 %v11280_v48, %v868_v39 }
 0x1ee   : > { %v11465_v52 = vpop.xlane.xlu0 %1418  ;;  %v11468_v13 = vpop.xlane.xlu1 %1420  ;;  %v1132_v5 = vmul.f32 %v11280_v48, %v869_v1 }
 0x1ef   : > { %17272 = vst [vmem:[#allocation86_spill] sm:$0xff] %v11465_v52  ;;  %17273 = vst [vmem:[#allocation87_spill] sm:$0xff] %v11468_v13  ;;  %v615_v52 = vld [vmem:[%s10954_s24 + $0x2e8] sm:$0xff]   ;;  %v870_v13 = vunpack.c.h.bf16 %v613_v53 }
 0x1f0   : > { %v871_v3 = vunpack.c.l.bf16 %v615_v52 }
 0x1f1   : > { %1562 = vadd.xlane.f32.xlu0 %v1127_v27  ;;  %1564 = vadd.xlane.f32.xlu1 %v1128_v29  ;;  %v1133_v32 = vmul.f32 %v11280_v48, %v870_v13 }
 0x1f2   : > { %v11472_v59 = vpop.xlane.xlu0 %1422  ;;  %v11475_v46 = vpop.xlane.xlu1 %1424  ;;  %v1134_v39 = vmul.f32 %v11280_v48, %v871_v3 }
 0x1f3   : > { %17274 = vst [vmem:[#allocation88_spill] sm:$0xff] %v11472_v59  ;;  %17275 = vst [vmem:[#allocation89_spill] sm:$0xff] %v11475_v46  ;;  %v617_v59 = vld [vmem:[%s10954_s24 + $0x2f0] sm:$0xff]   ;;  %v872_v46 = vunpack.c.h.bf16 %v615_v52 }
 0x1f4   : > { %v873_v53 = vunpack.c.l.bf16 %v617_v59 }
 0x1f5   : > { %1566 = vadd.xlane.f32.xlu0 %v1129_v62  ;;  %1568 = vadd.xlane.f32.xlu1 %v1130_v20  ;;  %v1135_v1 = vmul.f32 %v11280_v48, %v872_v46 }
 0x1f6   : > { %v11479_v27 = vpop.xlane.xlu0 %1426  ;;  %v11482_v29 = vpop.xlane.xlu1 %1428  ;;  %v1136_v13 = vmul.f32 %v11280_v48, %v873_v53 }
 0x1f7   : > { %17276 = vst [vmem:[#allocation90_spill] sm:$0xff] %v11479_v27  ;;  %17277 = vst [vmem:[#allocation91_spill] sm:$0xff] %v11482_v29  ;;  %v619_v27 = vld [vmem:[%s10954_s24 + $0x2f8] sm:$0xff]   ;;  %v874_v29 = vunpack.c.h.bf16 %v617_v59 }
 0x1f8   : > { %v875_v52 = vunpack.c.l.bf16 %v619_v27 }
 0x1f9   : > { %1570 = vadd.xlane.f32.xlu0 %v1131_v24  ;;  %1572 = vadd.xlane.f32.xlu1 %v1132_v5  ;;  %v1137_v3 = vmul.f32 %v11280_v48, %v874_v29 }
 0x1fa   : > { %v11486_v62 = vpop.xlane.xlu0 %1430  ;;  %v11489_v20 = vpop.xlane.xlu1 %1432  ;;  %v1138_v46 = vmul.f32 %v11280_v48, %v875_v52 }
 0x1fb   : > { %17278 = vst [vmem:[#allocation92_spill] sm:$0xff] %v11486_v62  ;;  %17279 = vst [vmem:[#allocation93_spill] sm:$0xff] %v11489_v20  ;;  %v621_v62 = vld [vmem:[%s10954_s24 + $0x300] sm:$0xff]   ;;  %v876_v20 = vunpack.c.h.bf16 %v619_v27 }
 0x1fc   : > { %v877_v59 = vunpack.c.l.bf16 %v621_v62 }
 0x1fd   : > { %1574 = vadd.xlane.f32.xlu0 %v1133_v32  ;;  %1576 = vadd.xlane.f32.xlu1 %v1134_v39  ;;  %v1139_v53 = vmul.f32 %v11280_v48, %v876_v20 }
 0x1fe   : > { %v11493_v24 = vpop.xlane.xlu0 %1434  ;;  %v11496_v5 = vpop.xlane.xlu1 %1436  ;;  %v1140_v29 = vmul.f32 %v11280_v48, %v877_v59 }
 0x1ff   : > { %17280 = vst [vmem:[#allocation94_spill] sm:$0xff] %v11493_v24  ;;  %17281 = vst [vmem:[#allocation95_spill] sm:$0xff] %v11496_v5  ;;  %v623_v24 = vld [vmem:[%s10954_s24 + $0x308] sm:$0xff]   ;;  %v878_v5 = vunpack.c.h.bf16 %v621_v62 }
 0x200   : > { %v879_v27 = vunpack.c.l.bf16 %v623_v24 }
 0x201   : > { %1578 = vadd.xlane.f32.xlu0 %v1135_v1  ;;  %1580 = vadd.xlane.f32.xlu1 %v1136_v13  ;;  %v1141_v52 = vmul.f32 %v11280_v48, %v878_v5 }
 0x202   : > { %v11500_v32 = vpop.xlane.xlu0 %1438  ;;  %v11503_v39 = vpop.xlane.xlu1 %1440  ;;  %v1142_v20 = vmul.f32 %v11280_v48, %v879_v27 }
 0x203   : > { %17282 = vst [vmem:[#allocation96_spill] sm:$0xff] %v11500_v32  ;;  %17283 = vst [vmem:[#allocation97_spill] sm:$0xff] %v11503_v39  ;;  %v625_v32 = vld [vmem:[%s10954_s24 + $0x310] sm:$0xff]   ;;  %v880_v39 = vunpack.c.h.bf16 %v623_v24 }
 0x204   : > { %v881_v62 = vunpack.c.l.bf16 %v625_v32 }
 0x205   : > { %1582 = vadd.xlane.f32.xlu0 %v1137_v3  ;;  %1584 = vadd.xlane.f32.xlu1 %v1138_v46  ;;  %v1143_v59 = vmul.f32 %v11280_v48, %v880_v39 }
 0x206   : > { %v11507_v1 = vpop.xlane.xlu0 %1442  ;;  %v11510_v13 = vpop.xlane.xlu1 %1444  ;;  %v1144_v5 = vmul.f32 %v11280_v48, %v881_v62 }
 0x207   : > { %17284 = vst [vmem:[#allocation98_spill] sm:$0xff] %v11507_v1  ;;  %17285 = vst [vmem:[#allocation99_spill] sm:$0xff] %v11510_v13  ;;  %v627_v1 = vld [vmem:[%s10954_s24 + $0x318] sm:$0xff]   ;;  %v882_v13 = vunpack.c.h.bf16 %v625_v32 }
 0x208   : > { %v883_v24 = vunpack.c.l.bf16 %v627_v1  ;;  %v884_v34 = vunpack.c.h.bf16 %v627_v1 }
 0x209   : > { %1586 = vadd.xlane.f32.xlu0 %v1139_v53  ;;  %1588 = vadd.xlane.f32.xlu1 %v1140_v29  ;;  %v1145_v27 = vmul.f32 %v11280_v48, %v882_v13 }
 0x20a   : > { %v11514_v3 = vpop.xlane.xlu0 %1446  ;;  %v11517_v46 = vpop.xlane.xlu1 %1448  ;;  %v1146_v39 = vmul.f32 %v11280_v48, %v883_v24  ;;  %v1147_v62 = vmul.f32 %v11280_v48, %v884_v34 }
 0x20b   : > { %17286 = vst [vmem:[#allocation100_spill] sm:$0xff] %v11514_v3  ;;  %17287 = vst [vmem:[#allocation101_spill] sm:$0xff] %v11517_v46  ;;  %v629_v3 = vld [vmem:[%s10954_s24 + $0x320] sm:$0xff]   ;;  %v631_v46 = vld [vmem:[%s10954_s24 + $0x328] sm:$0xff]  }
 0x20c   : > { %v885_v32 = vunpack.c.l.bf16 %v629_v3  ;;  %v887_v13 = vunpack.c.l.bf16 %v631_v46 }
 0x20d   : > { %1590 = vadd.xlane.f32.xlu0 %v1141_v52  ;;  %1592 = vadd.xlane.f32.xlu1 %v1142_v20 }
 0x20e   : > { %v11521_v53 = vpop.xlane.xlu0 %1450  ;;  %v11524_v29 = vpop.xlane.xlu1 %1452  ;;  %v1148_v1 = vmul.f32 %v11280_v48, %v885_v32 }
 0x20f   : > { %17288 = vst [vmem:[#allocation102_spill] sm:$0xff] %v11521_v53  ;;  %17289 = vst [vmem:[#allocation103_spill] sm:$0xff] %v11524_v29  ;;  %v10699_v53 = vmov 0   ;;  %v633_v29 = vld [vmem:[%s10954_s24 + $0x330] sm:$0xff]  }
 0x210   : > { %9691 = vset.pattern.permute.xlu1 %v10699_v53  ;;  %9692 = vset.pattern.permute.xlu0 %v10699_v53  ;;  %v1150_v53 = vmul.f32 %v11280_v48, %v887_v13  ;;  %v890_v32 = vunpack.c.h.bf16 %v633_v29 }
 0x211   : > { %1594 = vadd.xlane.f32.xlu0 %v1143_v59  ;;  %1596 = vadd.xlane.f32.xlu1 %v1144_v5  ;;  %v886_v59 = vunpack.c.h.bf16 %v629_v3  ;;  %v635_v3 = vld [vmem:[%s10954_s24 + $0x338] sm:$0xff]  }
 0x212   : > { %v11528_v52 = vpop.xlane.xlu0 %1454  ;;  %v11531_v20 = vpop.xlane.xlu1 %1456  ;;  %v892_v13 = vunpack.c.h.bf16 %v635_v3 }
 0x213   : > { %17290 = vst [vmem:[#allocation104_spill] sm:$0xff] %v11528_v52  ;;  %17291 = vst [vmem:[#allocation105_spill] sm:$0xff] %v11531_v20  ;;  %v1149_v20 = vmul.f32 %v11280_v48, %v886_v59  ;;  %v888_v52 = vunpack.c.h.bf16 %v631_v46  ;;  %v637_v46 = vld [vmem:[%s10954_s24 + $0x340] sm:$0xff]  }
 0x215   : > { %1598 = vadd.xlane.f32.xlu0 %v1145_v27  ;;  %1600 = vadd.xlane.f32.xlu1 %v1146_v39  ;;  %v889_v27 = vunpack.c.l.bf16 %v633_v29  ;;  %v1151_v39 = vmul.f32 %v11280_v48, %v888_v52  ;;  %v639_v29 = vld [vmem:[%s10954_s24 + $0x348] sm:$0xff]  }
 0x216   : > { %v11536_v5 = vpop.xlane.xlu1 %1460  ;;  %v11539_v24 = vpop.xlane.xlu0 %1458 }
 0x217   : > { %17292 = vst [vmem:[#allocation106_spill] sm:$0xff] %v11536_v5  ;;  %17293 = vst [vmem:[#allocation107_spill] sm:$0xff] %v11539_v24  ;;  %v891_v24 = vunpack.c.l.bf16 %v635_v3  ;;  %v641_v3 = vld [vmem:[%s10954_s24 + $0x350] sm:$0xff]  }
 0x219   : > { %1602 = vadd.xlane.f32.xlu0 %v1147_v62  ;;  %1604 = vadd.xlane.f32.xlu1 %v1148_v1  ;;  %v1152_v62 = vmul.f32 %v11280_v48, %v889_v27  ;;  %v1153_v1 = vmul.f32 %v11280_v48, %v890_v32  ;;  %v894_v27 = vunpack.c.h.bf16 %v637_v46 }
 0x21a   : > { %v11543_v34 = vpop.xlane.xlu1 %1464  ;;  %v11547_v5 = vpop.xlane.xlu0 %1462 }
 0x21b   : > { %17294 = vst [vmem:[#allocation108_spill] sm:$0xff] %v11543_v34  ;;  %17295 = vst [vmem:[#allocation109_spill] sm:$0xff] %v11547_v5  ;;  %v893_v34 = vunpack.c.l.bf16 %v637_v46  ;;  %v643_v46 = vld [vmem:[%s10954_s24 + $0x358] sm:$0xff]  }
 0x21d   : > { %1606 = vadd.xlane.f32.xlu0 %v1149_v20  ;;  %1608 = vadd.xlane.f32.xlu1 %v1150_v53  ;;  %v1154_v20 = vmul.f32 %v11280_v48, %v891_v24  ;;  %v1155_v53 = vmul.f32 %v11280_v48, %v892_v13  ;;  %v1157_v24 = vmul.f32 %v11280_v48, %v894_v27 }
 0x21e   : > { %v11550_v59 = vpop.xlane.xlu1 %1468  ;;  %v11558_v5 = vpop.xlane.xlu0 %1466 }
 0x21f   : > { %17296 = vst [vmem:[#allocation110_spill] sm:$0xff] %v11550_v59  ;;  %17298 = vst [vmem:[#allocation112_spill] sm:$0xff] %v11558_v5  ;;  %v895_v59 = vunpack.c.l.bf16 %v639_v29  ;;  %v897_v5 = vunpack.c.l.bf16 %v641_v3 }
 0x221   : > { %1610 = vadd.xlane.f32.xlu0 %v1151_v39  ;;  %1612 = vadd.xlane.f32.xlu1 %v1152_v62  ;;  %v1156_v39 = vmul.f32 %v11280_v48, %v893_v34  ;;  %v896_v62 = vunpack.c.h.bf16 %v639_v29  ;;  %v645_v29 = vld [vmem:[%s10954_s24 + $0x360] sm:$0xff]  }
 0x222   : > { %v11555_v52 = vpop.xlane.xlu1 %1472 }
 0x223   : > { %17297 = vst [vmem:[#allocation111_spill] sm:$0xff] %v11555_v52  ;;  %v11566_v52 = vpop.xlane.xlu0 %1470  ;;  %v1159_v34 = vmul.f32 %v11280_v48, %v896_v62 }
 0x224   : > { %17300 = vst [vmem:[#allocation114_spill] sm:$0xff] %v11566_v52 }
 0x225   : > { %1614 = vadd.xlane.f32.xlu0 %v1153_v1  ;;  %1616 = vadd.xlane.f32.xlu1 %v1154_v20  ;;  %v1158_v1 = vmul.f32 %v11280_v48, %v895_v59  ;;  %v898_v20 = vunpack.c.h.bf16 %v641_v3  ;;  %v647_v3 = vld [vmem:[%s10954_s24 + $0x368] sm:$0xff]  }
 0x226   : > { %v11562_v32 = vpop.xlane.xlu1 %1476 }
 0x227   : > { %17299 = vst [vmem:[#allocation113_spill] sm:$0xff] %v11562_v32  ;;  %v899_v32 = vunpack.c.l.bf16 %v643_v46  ;;  %v11577_v52 = vpop.xlane.xlu0 %1474  ;;  %v1161_v59 = vmul.f32 %v11280_v48, %v898_v20 }
 0x228   : > { %17303 = vst [vmem:[#allocation117_spill] sm:$0xff] %v11577_v52  ;;  %v903_v52 = vunpack.c.l.bf16 %v647_v3 }
 0x229   : > { %1618 = vadd.xlane.f32.xlu0 %v1155_v53  ;;  %1620 = vadd.xlane.f32.xlu1 %v1156_v39  ;;  %v1160_v53 = vmul.f32 %v11280_v48, %v897_v5  ;;  %v900_v39 = vunpack.c.h.bf16 %v643_v46  ;;  %v649_v46 = vld [vmem:[%s10954_s24 + $0x370] sm:$0xff]  }
 0x22a   : > { %v11569_v13 = vpop.xlane.xlu1 %1480 }
 0x22b   : > { %17301 = vst [vmem:[#allocation115_spill] sm:$0xff] %v11569_v13  ;;  %v901_v13 = vunpack.c.l.bf16 %v645_v29  ;;  %v1163_v5 = vmul.f32 %v11280_v48, %v900_v39 }
 0x22d   : > { %1622 = vadd.xlane.f32.xlu0 %v1157_v24  ;;  %1624 = vadd.xlane.f32.xlu1 %v1158_v1  ;;  %v1162_v24 = vmul.f32 %v11280_v48, %v899_v32  ;;  %v902_v1 = vunpack.c.h.bf16 %v645_v29  ;;  %v651_v29 = vld [vmem:[%s10954_s24 + $0x378] sm:$0xff]  }
 0x22e   : > { %v11574_v27 = vpop.xlane.xlu1 %1484 }
 0x22f   : > { %17302 = vst [vmem:[#allocation116_spill] sm:$0xff] %v11574_v27  ;;  %v11585_v27 = vpop.xlane.xlu0 %1478  ;;  %v1165_v32 = vmul.f32 %v11280_v48, %v902_v1 }
 0x230   : > { %17305 = vst [vmem:[#allocation119_spill] sm:$0xff] %v11585_v27 }
 0x231   : > { %1626 = vadd.xlane.f32.xlu0 %v1159_v34  ;;  %1628 = vadd.xlane.f32.xlu1 %v1160_v53  ;;  %v1164_v34 = vmul.f32 %v11280_v48, %v901_v13  ;;  %v904_v53 = vunpack.c.h.bf16 %v647_v3  ;;  %v653_v3 = vld [vmem:[%s10954_s24 + $0x380] sm:$0xff]  }
 0x232   : > { %v11581_v62 = vpop.xlane.xlu1 %1488 }
 0x233   : > { %17304 = vst [vmem:[#allocation118_spill] sm:$0xff] %v11581_v62  ;;  %v905_v62 = vunpack.c.l.bf16 %v649_v46  ;;  %v11596_v27 = vpop.xlane.xlu0 %1482  ;;  %v1167_v13 = vmul.f32 %v11280_v48, %v904_v53 }
 0x234   : > { %17308 = vst [vmem:[#allocation122_spill] sm:$0xff] %v11596_v27  ;;  %v909_v27 = vunpack.c.l.bf16 %v653_v3 }
 0x235   : > { %1630 = vadd.xlane.f32.xlu0 %v1161_v59  ;;  %1632 = vadd.xlane.f32.xlu1 %v1162_v24  ;;  %v1166_v59 = vmul.f32 %v11280_v48, %v903_v52  ;;  %v906_v24 = vunpack.c.h.bf16 %v649_v46  ;;  %v655_v46 = vld [vmem:[%s10954_s24 + $0x388] sm:$0xff]  }
 0x236   : > { %v11588_v20 = vpop.xlane.xlu1 %1492 }
 0x237   : > { %17306 = vst [vmem:[#allocation120_spill] sm:$0xff] %v11588_v20  ;;  %v907_v20 = vunpack.c.l.bf16 %v651_v29  ;;  %v1169_v52 = vmul.f32 %v11280_v48, %v906_v24 }
 0x239   : > { %1634 = vadd.xlane.f32.xlu0 %v1163_v5  ;;  %1636 = vadd.xlane.f32.xlu1 %v1164_v34  ;;  %v1168_v5 = vmul.f32 %v11280_v48, %v905_v62  ;;  %v908_v34 = vunpack.c.h.bf16 %v651_v29  ;;  %v657_v29 = vld [vmem:[%s10954_s24 + $0x390] sm:$0xff]  }
 0x23a   : > { %v11593_v39 = vpop.xlane.xlu1 %1496 }
 0x23b   : > { %17307 = vst [vmem:[#allocation121_spill] sm:$0xff] %v11593_v39  ;;  %v11604_v39 = vpop.xlane.xlu0 %1486  ;;  %v1171_v62 = vmul.f32 %v11280_v48, %v908_v34 }
 0x23c   : > { %17310 = vst [vmem:[#allocation124_spill] sm:$0xff] %v11604_v39 }
 0x23d   : > { %1638 = vadd.xlane.f32.xlu0 %v1165_v32  ;;  %1640 = vadd.xlane.f32.xlu1 %v1166_v59  ;;  %v1170_v32 = vmul.f32 %v11280_v48, %v907_v20  ;;  %v910_v59 = vunpack.c.h.bf16 %v653_v3  ;;  %v659_v3 = vld [vmem:[%s10954_s24 + $0x398] sm:$0xff]  }
 0x23e   : > { %v11600_v1 = vpop.xlane.xlu1 %1500 }
 0x23f   : > { %17309 = vst [vmem:[#allocation123_spill] sm:$0xff] %v11600_v1  ;;  %v911_v1 = vunpack.c.l.bf16 %v655_v46  ;;  %v11615_v39 = vpop.xlane.xlu0 %1490  ;;  %v1173_v20 = vmul.f32 %v11280_v48, %v910_v59 }
 0x240   : > { %17313 = vst [vmem:[#allocation127_spill] sm:$0xff] %v11615_v39  ;;  %v915_v39 = vunpack.c.l.bf16 %v659_v3 }
 0x241   : > { %1642 = vadd.xlane.f32.xlu0 %v1167_v13  ;;  %1644 = vadd.xlane.f32.xlu1 %v1168_v5  ;;  %v1172_v13 = vmul.f32 %v11280_v48, %v909_v27  ;;  %v912_v5 = vunpack.c.h.bf16 %v655_v46  ;;  %v661_v46 = vld [vmem:[%s10954_s24 + $0x3a0] sm:$0xff]  }
 0x242   : > { %v11607_v53 = vpop.xlane.xlu1 %1504 }
 0x243   : > { %17311 = vst [vmem:[#allocation125_spill] sm:$0xff] %v11607_v53  ;;  %v913_v53 = vunpack.c.l.bf16 %v657_v29  ;;  %v1175_v27 = vmul.f32 %v11280_v48, %v912_v5 }
 0x245   : > { %1646 = vadd.xlane.f32.xlu0 %v1169_v52  ;;  %1648 = vadd.xlane.f32.xlu1 %v1170_v32  ;;  %v1174_v52 = vmul.f32 %v11280_v48, %v911_v1  ;;  %v914_v32 = vunpack.c.h.bf16 %v657_v29  ;;  %v663_v29 = vld [vmem:[%s10954_s24 + $0x3a8] sm:$0xff]  }
 0x246   : > { %v11612_v24 = vpop.xlane.xlu1 %1508 }
 0x247   : > { %17312 = vst [vmem:[#allocation126_spill] sm:$0xff] %v11612_v24  ;;  %v11623_v24 = vpop.xlane.xlu0 %1494  ;;  %v1177_v1 = vmul.f32 %v11280_v48, %v914_v32 }
 0x248   : > { %17315 = vst [vmem:[#allocation129_spill] sm:$0xff] %v11623_v24 }
 0x249   : > { %1650 = vadd.xlane.f32.xlu0 %v1171_v62  ;;  %1652 = vadd.xlane.f32.xlu1 %v1172_v13  ;;  %v1176_v62 = vmul.f32 %v11280_v48, %v913_v53  ;;  %v916_v13 = vunpack.c.h.bf16 %v659_v3  ;;  %v665_v3 = vld [vmem:[%s10954_s24 + $0x3b0] sm:$0xff]  }
 0x24a   : > { %v11619_v34 = vpop.xlane.xlu1 %1512 }
 0x24b   : > { %17314 = vst [vmem:[#allocation128_spill] sm:$0xff] %v11619_v34  ;;  %v917_v34 = vunpack.c.l.bf16 %v661_v46  ;;  %v11634_v24 = vpop.xlane.xlu0 %1498  ;;  %v1179_v53 = vmul.f32 %v11280_v48, %v916_v13 }
 0x24c   : > { %17318 = vst [vmem:[#allocation132_spill] sm:$0xff] %v11634_v24  ;;  %v921_v24 = vunpack.c.l.bf16 %v665_v3 }
 0x24d   : > { %1654 = vadd.xlane.f32.xlu0 %v1173_v20  ;;  %1656 = vadd.xlane.f32.xlu1 %v1174_v52  ;;  %v1178_v20 = vmul.f32 %v11280_v48, %v915_v39  ;;  %v918_v52 = vunpack.c.h.bf16 %v661_v46  ;;  %v667_v46 = vld [vmem:[%s10954_s24 + $0x3b8] sm:$0xff]  }
 0x24e   : > { %v11626_v59 = vpop.xlane.xlu1 %1516 }
 0x24f   : > { %17316 = vst [vmem:[#allocation130_spill] sm:$0xff] %v11626_v59  ;;  %v919_v59 = vunpack.c.l.bf16 %v663_v29  ;;  %v1181_v39 = vmul.f32 %v11280_v48, %v918_v52 }
 0x251   : > { %1658 = vadd.xlane.f32.xlu0 %v1175_v27  ;;  %1660 = vadd.xlane.f32.xlu1 %v1176_v62  ;;  %v1180_v27 = vmul.f32 %v11280_v48, %v917_v34  ;;  %v920_v62 = vunpack.c.h.bf16 %v663_v29  ;;  %v669_v29 = vld [vmem:[%s10954_s24 + $0x3c0] sm:$0xff]  }
 0x252   : > { %v11631_v5 = vpop.xlane.xlu1 %1520 }
 0x253   : > { %17317 = vst [vmem:[#allocation131_spill] sm:$0xff] %v11631_v5  ;;  %v11642_v5 = vpop.xlane.xlu0 %1502  ;;  %v1183_v34 = vmul.f32 %v11280_v48, %v920_v62 }
 0x254   : > { %17320 = vst [vmem:[#allocation134_spill] sm:$0xff] %v11642_v5 }
 0x255   : > { %1662 = vadd.xlane.f32.xlu0 %v1177_v1  ;;  %1664 = vadd.xlane.f32.xlu1 %v1178_v20  ;;  %v1182_v1 = vmul.f32 %v11280_v48, %v919_v59  ;;  %v922_v20 = vunpack.c.h.bf16 %v665_v3  ;;  %v671_v3 = vld [vmem:[%s10954_s24 + $0x3c8] sm:$0xff]  }
 0x256   : > { %v11638_v32 = vpop.xlane.xlu1 %1524 }
 0x257   : > { %17319 = vst [vmem:[#allocation133_spill] sm:$0xff] %v11638_v32  ;;  %v923_v32 = vunpack.c.l.bf16 %v667_v46  ;;  %v11653_v5 = vpop.xlane.xlu0 %1506  ;;  %v1185_v59 = vmul.f32 %v11280_v48, %v922_v20 }
 0x258   : > { %17323 = vst [vmem:[#allocation137_spill] sm:$0xff] %v11653_v5  ;;  %v927_v5 = vunpack.c.l.bf16 %v671_v3 }
 0x259   : > { %1666 = vadd.xlane.f32.xlu0 %v1179_v53  ;;  %1668 = vadd.xlane.f32.xlu1 %v1180_v27  ;;  %v1184_v53 = vmul.f32 %v11280_v48, %v921_v24  ;;  %v924_v27 = vunpack.c.h.bf16 %v667_v46  ;;  %v673_v46 = vld [vmem:[%s10954_s24 + $0x3d0] sm:$0xff]  }
 0x25a   : > { %v11645_v13 = vpop.xlane.xlu1 %1528 }
 0x25b   : > { %17321 = vst [vmem:[#allocation135_spill] sm:$0xff] %v11645_v13  ;;  %v925_v13 = vunpack.c.l.bf16 %v669_v29  ;;  %v1187_v24 = vmul.f32 %v11280_v48, %v924_v27  ;;  %v929_v27 = vunpack.c.l.bf16 %v673_v46 }
 0x25d   : > { %1670 = vadd.xlane.f32.xlu0 %v1181_v39  ;;  %1672 = vadd.xlane.f32.xlu1 %v1182_v1  ;;  %v1186_v39 = vmul.f32 %v11280_v48, %v923_v32  ;;  %v926_v1 = vunpack.c.h.bf16 %v669_v29 }
 0x25e   : > { %v11650_v52 = vpop.xlane.xlu1 %1532 }
 0x25f   : > { %17322 = vst [vmem:[#allocation136_spill] sm:$0xff] %v11650_v52  ;;  %v11661_v52 = vpop.xlane.xlu0 %1510  ;;  %v1189_v32 = vmul.f32 %v11280_v48, %v926_v1 }
 0x260   : > { %17325 = vst [vmem:[#allocation139_spill] sm:$0xff] %v11661_v52 }
 0x261   : > { %1674 = vadd.xlane.f32.xlu0 %v1183_v34  ;;  %1676 = vadd.xlane.f32.xlu1 %v1184_v53  ;;  %v1188_v34 = vmul.f32 %v11280_v48, %v925_v13  ;;  %v928_v53 = vunpack.c.h.bf16 %v671_v3 }
 0x262   : > { %v11657_v62 = vpop.xlane.xlu1 %1536 }
 0x263   : > { %17324 = vst [vmem:[#allocation138_spill] sm:$0xff] %v11657_v62  ;;  %v11674_v13 = vpop.xlane.xlu0 %1514 }
 0x264   : > { %17328 = vst [vmem:[#allocation142_spill] sm:$0xff] %v11674_v13 }
 0x265   : > { %1678 = vadd.xlane.f32.xlu0 %v1185_v59  ;;  %1680 = vadd.xlane.f32.xlu1 %v1186_v39  ;;  %v10350_v59 = vld [vmem:[%s16851_s3] ss:$0 sm:$0xff]  ;;  %v675_v39 = vld [vmem:[%s10954_s24 + $0x3d8] sm:$0xff]  }
 0x266   : > { %v11664_v20 = vpop.xlane.xlu1 %1540  ;;  %v1190_v29 = vmul.f32 %v10350_v59, %v927_v5  ;;  %v1192_v48 = vmul.f32 %v10350_v59, %v929_v27  ;;  %v931_v1 = vunpack.c.l.bf16 %v675_v39  ;;  %v932_v5 = vunpack.c.h.bf16 %v675_v39 }
 0x267   : > { %17326 = vst [vmem:[#allocation140_spill] sm:$0xff] %v11664_v20  ;;  %v1191_v20 = vmul.f32 %v10350_v59, %v928_v53  ;;  %v11679_v7 = vpop.xlane.xlu0 %1518 }
 0x268   : > { %17330 = vst [vmem:[#allocation144_spill] sm:$0xff] %v11679_v7 }
 0x269   : > { %1682 = vadd.xlane.f32.xlu0 %v1187_v24  ;;  %1684 = vadd.xlane.f32.xlu1 %v1188_v34  ;;  %v930_v24 = vunpack.c.h.bf16 %v673_v46  ;;  %v677_v34 = vld [vmem:[%s10954_s24 + $0x3e0] sm:$0xff]   ;;  %v1195_v46 = vmul.f32 %v10350_v59, %v932_v5 }
 0x26a   : > { %v11671_v62 = vpop.xlane.xlu1 %1544  ;;  %v933_v10 = vunpack.c.l.bf16 %v677_v34  ;;  %v934_v53 = vunpack.c.h.bf16 %v677_v34 }
 0x26b   : > { %17327 = vst [vmem:[#allocation141_spill] sm:$0xff] %v11671_v62  ;;  %v1193_v52 = vmul.f32 %v10350_v59, %v930_v24  ;;  %v1194_v62 = vmul.f32 %v10350_v59, %v931_v1  ;;  %v11687_v24 = vpop.xlane.xlu0 %1522 }
 0x26c   : > { %v1197_v39 = vmul.f32 %v10350_v59, %v934_v53 }
 0x26d   : > { %1686 = vadd.xlane.f32.xlu0 %v1189_v32  ;;  %1688 = vadd.xlane.f32.xlu1 %v1190_v29  ;;  %v679_v32 = vld [vmem:[%s10954_s24 + $0x3e8] sm:$0xff]   ;;  %v1196_v29 = vmul.f32 %v10350_v59, %v933_v10 }
 0x26e   : > { %v11676_v3 = vpop.xlane.xlu1 %1548  ;;  %v935_v27 = vunpack.c.l.bf16 %v679_v32 }
 0x26f   : > { %17329 = vst [vmem:[#allocation143_spill] sm:$0xff] %v11676_v3 }
 0x270   : > { %v1198_v1 = vmul.f32 %v10350_v59, %v935_v27 }
 0x271   : > { %1690 = vadd.xlane.f32.xlu0 %v1191_v20  ;;  %1692 = vadd.xlane.f32.xlu1 %v1192_v48  ;;  %v681_v20 = vld [vmem:[%s10954_s24 + $0x3f0] sm:$0xff]   ;;  %v936_v48 = vunpack.c.h.bf16 %v679_v32 }
 0x272   : > { %v11681_v13 = vpop.xlane.xlu1 %1552  ;;  %v937_v7 = vunpack.c.l.bf16 %v681_v20  ;;  %v938_v34 = vunpack.c.h.bf16 %v681_v20 }
 0x273   : > { %17331 = vst [vmem:[#allocation145_spill] sm:$0xff] %v11681_v13  ;;  %v1199_v5 = vmul.f32 %v10350_v59, %v936_v48 }
 0x274   : > { %v1200_v10 = vmul.f32 %v10350_v59, %v937_v7 }
 0x275   : > { %1694 = vadd.xlane.f32.xlu0 %v1193_v52  ;;  %1696 = vadd.xlane.f32.xlu1 %v1194_v62  ;;  %v683_v52 = vld [vmem:[%s10954_s24 + $0x3f8] sm:$0xff]   ;;  %v11692_v62 = vpop.xlane.xlu0 %1526 }
 0x276   : > { %v11684_v3 = vpop.xlane.xlu1 %1556  ;;  %v940_v53 = vunpack.c.h.bf16 %v683_v52 }
 0x277   : > { %17332 = vst [vmem:[#allocation146_spill] sm:$0xff] %v11684_v3  ;;  %v939_v3 = vunpack.c.l.bf16 %v683_v52 }
 0x279   : > { %1698 = vadd.xlane.f32.xlu0 %v1195_v46  ;;  %1700 = vadd.xlane.f32.xlu1 %v1196_v29  ;;  %v1201_v46 = vmul.f32 %v10350_v59, %v938_v34  ;;  %v1202_v32 = vmul.f32 %v10350_v59, %v939_v3  ;;  %v11698_v27 = vpop.xlane.xlu0 %1530  ;;  %v1716_v34 = vld [vmem:[#allocation4] sm:$0xff] }
 0x27a   : > { %v11689_v13 = vpop.xlane.xlu1 %1560 }
 0x27b   : > { %17333 = vst [vmem:[#allocation147_spill] sm:$0xff] %v11689_v13 }
 0x27d   : > { %1702 = vadd.xlane.f32.xlu0 %v1197_v39  ;;  %1704 = vadd.xlane.f32.xlu1 %v1198_v1  ;;  %v1203_v39 = vmul.f32 %v10350_v59, %v940_v53  ;;  %v11702_v48 = vpop.xlane.xlu0 %1534 }
 0x27e   : > { %v11694_v56 = vpop.xlane.xlu1 %1564 }
 0x27f   : > { %17334 = vst [vmem:[#allocation148_spill] sm:$0xff] %v11694_v56 }
 0x281   : > { %1706 = vadd.xlane.f32.xlu0 %v1199_v5  ;;  %1708 = vadd.xlane.f32.xlu1 %v1200_v10  ;;  %v11708_v5 = vpop.xlane.xlu0 %1538 }
 0x282   : > { %v11696_v29 = vpop.xlane.xlu1 %1568 }
 0x283   : > { %17335 = vst [vmem:[#allocation149_spill] sm:$0xff] %v11696_v29 }
 0x285   : > { %1710 = vadd.xlane.f32.xlu0 %v1201_v46  ;;  %1712 = vadd.xlane.f32.xlu1 %v1202_v32  ;;  %v11712_v3 = vpop.xlane.xlu0 %1542 }
 0x286   : > { %v11700_v20 = vpop.xlane.xlu1 %1572 }
 0x287   : > { %17336 = vst [vmem:[#allocation150_spill] sm:$0xff] %v11700_v20 }
 0x289   : > { %1714 = vadd.xlane.f32.xlu0 %v1203_v39  ;;  %v11718_v46 = vpop.xlane.xlu0 %1546 }
 0x28a   : > { %v11704_v7 = vpop.xlane.xlu1 %1576 }
 0x28b   : > { %17337 = vst [vmem:[#allocation151_spill] sm:$0xff] %v11704_v7 }
 0x28d   : > { %v11722_v32 = vpop.xlane.xlu0 %1550 }
 0x28e   : > { %v11706_v1 = vpop.xlane.xlu1 %1580 }
 0x28f   : > { %17338 = vst [vmem:[#allocation152_spill] sm:$0xff] %v11706_v1 }
 0x291   : > { %v11728_v7 = vpop.xlane.xlu0 %1554 }
 0x292   : > { %v11710_v52 = vpop.xlane.xlu1 %1584 }
 0x293   : > { %17339 = vst [vmem:[#allocation153_spill] sm:$0xff] %v11710_v52 }
 0x295   : > { %v11732_v20 = vpop.xlane.xlu0 %1558 }
 0x296   : > { %v11714_v10 = vpop.xlane.xlu1 %1588  ;;  %1719 = vperm.xlu1 %9691, %v1716_v34   ;;  %17346 = vst [vmem:[#allocation160_spill] sm:$0xff] %v11732_v20 }
 0x297   : > { %17340 = vst [vmem:[#allocation154_spill] sm:$0xff] %v11714_v10 }
 0x29a   : > { %v11716_v59 = vpop.xlane.xlu1 %1592 }
 0x29b   : > { %17341 = vst [vmem:[#allocation155_spill] sm:$0xff] %v11716_v59  ;;  %v11738_v59 = vpop.xlane.xlu0 %1562 }
 0x29c   : > { %17349 = vst [vmem:[#allocation163_spill] sm:$0xff] %v11738_v59 }
 0x29e   : > { %v11720_v53 = vpop.xlane.xlu1 %1596 }
 0x29f   : > { %17342 = vst [vmem:[#allocation156_spill] sm:$0xff] %v11720_v53  ;;  %v11742_v53 = vpop.xlane.xlu0 %1566 }
 0x2a0   : > { %17351 = vst [vmem:[#allocation165_spill] sm:$0xff] %v11742_v53 }
 0x2a2   : > { %v11724_v39 = vpop.xlane.xlu1 %1600 }
 0x2a3   : > { %17343 = vst [vmem:[#allocation157_spill] sm:$0xff] %v11724_v39 }
 0x2a6   : > { %v11726_v1 = vpop.xlane.xlu1 %1604 }
 0x2a7   : > { %17344 = vst [vmem:[#allocation158_spill] sm:$0xff] %v11726_v1  ;;  %v11748_v1 = vpop.xlane.xlu0 %1570 }
 0x2a8   : > { %17354 = vst [vmem:[#allocation168_spill] sm:$0xff] %v11748_v1 }
 0x2aa   : > { %v11730_v52 = vpop.xlane.xlu1 %1608 }
 0x2ab   : > { %17345 = vst [vmem:[#allocation159_spill] sm:$0xff] %v11730_v52  ;;  %v11752_v52 = vpop.xlane.xlu0 %1574 }
 0x2ac   : > { %17356 = vst [vmem:[#allocation170_spill] sm:$0xff] %v11752_v52 }
 0x2ae   : > { %v11734_v10 = vpop.xlane.xlu1 %1612 }
 0x2af   : > { %17347 = vst [vmem:[#allocation161_spill] sm:$0xff] %v11734_v10 }
 0x2b2   : > { %v11736_v34 = vpop.xlane.xlu1 %1616 }
 0x2b3   : > { %17348 = vst [vmem:[#allocation162_spill] sm:$0xff] %v11736_v34  ;;  %v11758_v34 = vpop.xlane.xlu0 %1578 }
 0x2b4   : > { %17359 = vst [vmem:[#allocation173_spill] sm:$0xff] %v11758_v34 }
 0x2b6   : > { %v11740_v29 = vpop.xlane.xlu1 %1620 }
 0x2b7   : > { %17350 = vst [vmem:[#allocation164_spill] sm:$0xff] %v11740_v29  ;;  %v11762_v29 = vpop.xlane.xlu0 %1582 }
 0x2b8   : > { %17361 = vst [vmem:[#allocation175_spill] sm:$0xff] %v11762_v29 }
 0x2ba   : > { %v11744_v56 = vpop.xlane.xlu1 %1624 }
 0x2bb   : > { %17352 = vst [vmem:[#allocation166_spill] sm:$0xff] %v11744_v56 }
 0x2be   : > { %v11746_v39 = vpop.xlane.xlu1 %1628 }
 0x2bf   : > { %17353 = vst [vmem:[#allocation167_spill] sm:$0xff] %v11746_v39  ;;  %v11768_v39 = vpop.xlane.xlu0 %1586 }
 0x2c0   : > { %17364 = vst [vmem:[#allocation178_spill] sm:$0xff] %v11768_v39 }
 0x2c2   : > { %v11750_v13 = vpop.xlane.xlu1 %1632 }
 0x2c3   : > { %17355 = vst [vmem:[#allocation169_spill] sm:$0xff] %v11750_v13  ;;  %v11772_v13 = vpop.xlane.xlu0 %1590 }
 0x2c4   : > { %17366 = vst [vmem:[#allocation180_spill] sm:$0xff] %v11772_v13 }
 0x2c6   : > { %v11754_v20 = vpop.xlane.xlu1 %1636 }
 0x2c7   : > { %17357 = vst [vmem:[#allocation171_spill] sm:$0xff] %v11754_v20 }
 0x2ca   : > { %v11756_v10 = vpop.xlane.xlu1 %1640 }
 0x2cb   : > { %17358 = vst [vmem:[#allocation172_spill] sm:$0xff] %v11756_v10  ;;  %v11778_v10 = vpop.xlane.xlu0 %1594 }
 0x2cc   : > { %17369 = vst [vmem:[#allocation183_spill] sm:$0xff] %v11778_v10 }
 0x2ce   : > { %v11760_v59 = vpop.xlane.xlu1 %1644 }
 0x2cf   : > { %17360 = vst [vmem:[#allocation174_spill] sm:$0xff] %v11760_v59  ;;  %v11782_v59 = vpop.xlane.xlu0 %1598 }
 0x2d0   : > { %17371 = vst [vmem:[#allocation185_spill] sm:$0xff] %v11782_v59 }
 0x2d2   : > { %v11764_v53 = vpop.xlane.xlu1 %1648 }
 0x2d3   : > { %17362 = vst [vmem:[#allocation176_spill] sm:$0xff] %v11764_v53 }
 0x2d6   : > { %v11766_v56 = vpop.xlane.xlu1 %1652 }
 0x2d7   : > { %17363 = vst [vmem:[#allocation177_spill] sm:$0xff] %v11766_v56  ;;  %v11788_v56 = vpop.xlane.xlu0 %1602 }
 0x2d8   : > { %17374 = vst [vmem:[#allocation188_spill] sm:$0xff] %v11788_v56 }
 0x2da   : > { %v11770_v1 = vpop.xlane.xlu1 %1656 }
 0x2db   : > { %17365 = vst [vmem:[#allocation179_spill] sm:$0xff] %v11770_v1  ;;  %v11792_v1 = vpop.xlane.xlu0 %1606 }
 0x2dc   : > { %17376 = vst [vmem:[#allocation190_spill] sm:$0xff] %v11792_v1 }
 0x2de   : > { %v11774_v52 = vpop.xlane.xlu1 %1660 }
 0x2df   : > { %17367 = vst [vmem:[#allocation181_spill] sm:$0xff] %v11774_v52 }
 0x2e2   : > { %v11776_v20 = vpop.xlane.xlu1 %1664 }
 0x2e3   : > { %17368 = vst [vmem:[#allocation182_spill] sm:$0xff] %v11776_v20  ;;  %v11798_v20 = vpop.xlane.xlu0 %1610 }
 0x2e4   : > { %17379 = vst [vmem:[#allocation193_spill] sm:$0xff] %v11798_v20 }
 0x2e6   : > { %v11780_v34 = vpop.xlane.xlu1 %1668 }
 0x2e7   : > { %17370 = vst [vmem:[#allocation184_spill] sm:$0xff] %v11780_v34  ;;  %v11802_v34 = vpop.xlane.xlu0 %1614 }
 0x2e8   : > { %17381 = vst [vmem:[#allocation195_spill] sm:$0xff] %v11802_v34 }
 0x2ea   : > { %v11784_v29 = vpop.xlane.xlu1 %1672 }
 0x2eb   : > { %17372 = vst [vmem:[#allocation186_spill] sm:$0xff] %v11784_v29 }
 0x2ee   : > { %v11786_v53 = vpop.xlane.xlu1 %1676 }
 0x2ef   : > { %17373 = vst [vmem:[#allocation187_spill] sm:$0xff] %v11786_v53  ;;  %v11808_v53 = vpop.xlane.xlu0 %1618 }
 0x2f2   : > { %v11790_v39 = vpop.xlane.xlu1 %1680 }
 0x2f3   : > { %17375 = vst [vmem:[#allocation189_spill] sm:$0xff] %v11790_v39  ;;  %v16862_v39 = vlaneseq  ;;  %v11812_v1 = vpop.xlane.xlu0 %1622 }
 0x2f6   : > { %v11794_v13 = vpop.xlane.xlu1 %1684 }
 0x2f7   : > { %17377 = vst [vmem:[#allocation191_spill] sm:$0xff] %v11794_v13 }
 0x2fa   : > { %v11796_v52 = vpop.xlane.xlu1 %1688 }
 0x2fb   : > { %17378 = vst [vmem:[#allocation192_spill] sm:$0xff] %v11796_v52  ;;  %v11817_v52 = vshrl.u32 %v16862_v39, 7 }
 0x2fd   : > { %17386 = vst [vmem:[#allocation200_spill] sm:$0xff] %v11817_v52 }
 0x2fe   : > { %v11800_v10 = vpop.xlane.xlu1 %1692 }
 0x2ff   : > { %17380 = vst [vmem:[#allocation194_spill] sm:$0xff] %v11800_v10  ;;  %v11821_v10 = vpop.xlane.xlu0 %1626 }
 0x302   : > { %v11804_v59 = vpop.xlane.xlu1 %1696 }
 0x303   : > { %17382 = vst [vmem:[#allocation196_spill] sm:$0xff] %v11804_v59  ;;  %v16863_v59 = vsub.s32 0, %v11817_v52 }
 0x306   : > { %v11806_v29 = vpop.xlane.xlu1 %1700 }
 0x307   : > { %17383 = vst [vmem:[#allocation197_spill] sm:$0xff] %v11806_v29  ;;  %v11831_v29 = vpop.xlane.xlu0 %1630 }
 0x308   : > { %17388 = vst [vmem:[#allocation202_spill] sm:$0xff] %v11831_v29 }
 0x30a   : > { %v11810_v56 = vpop.xlane.xlu1 %1704 }
 0x30b   : > { %17384 = vst [vmem:[#allocation198_spill] sm:$0xff] %v11810_v56  ;;  %v11851_v29 = vpop.xlane.xlu0 %1634 }
 0x30e   : > { %v11814_v13 = vpop.xlane.xlu1 %1708 }
 0x30f   : > { %17385 = vst [vmem:[#allocation199_spill] sm:$0xff] %v11814_v13 }
 0x312   : > { %v11819_v20 = vpop.xlane.xlu1 %1712 }
 0x313   : > { %17387 = vst [vmem:[#allocation201_spill] sm:$0xff] %v11819_v20 }
 0x316   : > { %v11824_v34 = vpop.permute.xlu1 %1719 }
 0x317   : > { %v11829_v56 = vrot.slane %v11824_v34, %v16863_v59 }
 0x319   : > { %v11835_v13 = vadd.f32 %v11829_v56, %v11089_v9  ;;  %v11839_v39 = vadd.f32 %v11829_v56, %v11084_v4  ;;  %v11845_v20 = vadd.f32 %v11829_v56, %v11092_v12  ;;  %v11849_v59 = vadd.f32 %v11829_v56, %v11117_v37  ;;  %v11865_v12 = vpop.xlane.xlu0 %1638 }
 0x31a   : > { %v11857_v4 = vadd.f32 %v11829_v56, %v11096_v16  ;;  %v11861_v9 = vadd.f32 %v11829_v56, %v11124_v44  ;;  %v11869_v37 = vadd.f32 %v11829_v56, %v11099_v19  ;;  %v11879_v16 = vadd.f32 %v11829_v56, %v11103_v23 }
 0x31b   : > { %17389 = vst [vmem:[#allocation203_spill] sm:$0xff] %v11835_v13  ;;  %17390 = vst [vmem:[#allocation204_spill] sm:$0xff] %v11839_v39  ;;  %2277 = vperm.xlu1 %9691, %v11839_v39   ;;  %2274 = vperm.xlu0 %9692, %v11835_v13   ;;  %v11883_v44 = vadd.f32 %v11829_v56, %v11138_v58  ;;  %v11891_v19 = vadd.f32 %v11829_v56, %v11106_v26  ;;  %v17516_v39 = vld [vmem:[#allocation55_spill] sm:$0xff] }
 0x31c   : > { %17391 = vst [vmem:[#allocation205_spill] sm:$0xff] %v11845_v20  ;;  %17392 = vst [vmem:[#allocation206_spill] sm:$0xff] %v11849_v59  ;;  %v11903_v58 = vadd.f32 %v11829_v56, %v11110_v30  ;;  %v11913_v26 = vadd.f32 %v11829_v56, %v11113_v33  ;;  %v11925_v30 = vadd.f32 %v11829_v56, %v11120_v40 }
 0x31d   : > { %17393 = vst [vmem:[#allocation207_spill] sm:$0xff] %v11857_v4  ;;  %17394 = vst [vmem:[#allocation208_spill] sm:$0xff] %v11861_v9  ;;  %v11947_v40 = vadd.f32 %v11829_v56, %v11134_v54  ;;  %v11964_v54 = vadd.f32 %v11829_v56, %v11187_v60  ;;  %v11987_v60 = vadd.f32 %v11829_v56, %v11155_v15 }
 0x31e   : > { %17395 = vst [vmem:[#allocation209_spill] sm:$0xff] %v11869_v37  ;;  %17397 = vst [vmem:[#allocation211_spill] sm:$0xff] %v11879_v16 }
 0x31f   : > { %2280 = vperm.xlu1 %9691, %v11845_v20   ;;  %2301 = vperm.xlu0 %9692, %v11849_v59   ;;  %v11873_v20 = vadd.f32 %v11829_v56, %v11131_v51  ;;  %17398 = vst [vmem:[#allocation212_spill] sm:$0xff] %v11883_v44  ;;  %17399 = vst [vmem:[#allocation213_spill] sm:$0xff] %v11891_v19  ;;  %v11895_v51 = vadd.f32 %v11829_v56, %v11145_v2 }
 0x320   : > { %17401 = vst [vmem:[#allocation215_spill] sm:$0xff] %v11903_v58  ;;  %17403 = vst [vmem:[#allocation217_spill] sm:$0xff] %v11913_v26  ;;  %v11917_v2 = vadd.f32 %v11829_v56, %v11159_v21  ;;  %v11937_v21 = vadd.f32 %v11829_v56, %v11127_v47  ;;  %v11959_v47 = vadd.f32 %v11829_v56, %v11141_v61 }
 0x321   : > { %17396 = vst [vmem:[#allocation210_spill] sm:$0xff] %v11873_v20  ;;  %17400 = vst [vmem:[#allocation214_spill] sm:$0xff] %v11895_v51 }
 0x322   : > { %17404 = vst [vmem:[#allocation218_spill] sm:$0xff] %v11917_v2  ;;  %17405 = vst [vmem:[#allocation219_spill] sm:$0xff] %v11925_v30 }
 0x323   : > { %2283 = vperm.xlu1 %9691, %v11857_v4   ;;  %2307 = vperm.xlu0 %9692, %v11861_v9   ;;  %v11885_v9 = vpop.xlane.xlu0 %1642  ;;  %17407 = vst [vmem:[#allocation221_spill] sm:$0xff] %v11937_v21  ;;  %17409 = vst [vmem:[#allocation223_spill] sm:$0xff] %v11947_v40 }
 0x324   : > { %17411 = vst [vmem:[#allocation225_spill] sm:$0xff] %v11959_v47  ;;  %17412 = vst [vmem:[#allocation226_spill] sm:$0xff] %v11964_v54 }
 0x325   : > { %17415 = vst [vmem:[#allocation229_spill] sm:$0xff] %v11987_v60 }
 0x327   : > { %2286 = vperm.xlu1 %9691, %v11869_v37   ;;  %2313 = vperm.xlu0 %9692, %v11873_v20   ;;  %v11899_v23 = vpop.xlane.xlu0 %1646  ;;  %v17497_v37 = vld [vmem:[#allocation47_spill] sm:$0xff] }
 0x32b   : > { %2289 = vperm.xlu1 %9691, %v11879_v16   ;;  %2319 = vperm.xlu0 %9692, %v11883_v44   ;;  %v11907_v16 = vadd.f32 %v11829_v56, %v11152_v11  ;;  %v11929_v11 = vadd.f32 %v11829_v56, %v11166_v31  ;;  %v11951_v31 = vadd.f32 %v11829_v56, %v11180_v50 }
 0x32d   : > { %17402 = vst [vmem:[#allocation216_spill] sm:$0xff] %v11907_v16  ;;  %17406 = vst [vmem:[#allocation220_spill] sm:$0xff] %v11929_v11 }
 0x32e   : > { %17410 = vst [vmem:[#allocation224_spill] sm:$0xff] %v11951_v31 }
 0x32f   : > { %2292 = vperm.xlu1 %9691, %v11891_v19   ;;  %2325 = vperm.xlu0 %9692, %v11895_v51   ;;  %v11919_v19 = vpop.xlane.xlu0 %1650 }
 0x333   : > { %2295 = vperm.xlu1 %9691, %v11903_v58   ;;  %2331 = vperm.xlu0 %9692, %v11907_v16   ;;  %v11933_v33 = vpop.xlane.xlu0 %1654  ;;  %v11941_v58 = vadd.f32 %v11829_v56, %v11173_v41  ;;  %v16873_v41 = vsub.s32 1, %v11817_v52  ;;  %v17492_v16 = vld [vmem:[#allocation45_spill] sm:$0xff] }
 0x335   : > { %17408 = vst [vmem:[#allocation222_spill] sm:$0xff] %v11941_v58  ;;  %v11977_v61 = vrot.slane %v11824_v34, %v16873_v41 }
 0x337   : > { %2298 = vperm.xlu1 %9691, %v11913_v26   ;;  %2337 = vperm.xlu0 %9692, %v11917_v2   ;;  %v12003_v41 = vadd.f32 %v11977_v61, %v11208_v36  ;;  %v12025_v36 = vadd.f32 %v11977_v61, %v11222_v63  ;;  %v12045_v63 = vadd.f32 %v11829_v56, %v11190_v0  ;;  %v17522_v26 = vld [vmem:[#allocation57_spill] sm:$0xff] }
 0x338   : > { %v12067_v0 = vadd.f32 %v11977_v61, %v11204_v28  ;;  %v17433_v28 = vld [vmem:[#allocation23_spill] sm:$0xff] }
 0x339   : > { %17418 = vst [vmem:[#allocation232_spill] sm:$0xff] %v12003_v41  ;;  %17422 = vst [vmem:[#allocation236_spill] sm:$0xff] %v12025_v36 }
 0x33a   : > { %17425 = vst [vmem:[#allocation239_spill] sm:$0xff] %v12045_v63  ;;  %17429 = vst [vmem:[#allocation243_spill] sm:$0xff] %v12067_v0 }
 0x33b   : > { %2304 = vperm.xlu1 %9691, %v11925_v30   ;;  %2343 = vperm.xlu0 %9692, %v11929_v11   ;;  %v11953_v30 = vpop.xlane.xlu0 %1658 }
 0x33f   : > { %2310 = vperm.xlu1 %9691, %v11937_v21   ;;  %2349 = vperm.xlu0 %9692, %v11941_v58   ;;  %v11968_v50 = vpop.xlane.xlu0 %1662  ;;  %v11972_v58 = vadd.f32 %v11829_v56, %v11148_v6  ;;  %v11991_v6 = vadd.f32 %v11977_v61, %v11201_v22  ;;  %v12011_v22 = vadd.f32 %v11829_v56, %v11169_v35  ;;  %v17510_v21 = vld [vmem:[#allocation53_spill] sm:$0xff] }
 0x340   : > { %v12033_v35 = vadd.f32 %v11829_v56, %v11183_v55  ;;  %v12055_v55 = vadd.f32 %v11977_v61, %v11197_v14 }
 0x341   : > { %17413 = vst [vmem:[#allocation227_spill] sm:$0xff] %v11972_v58  ;;  %17416 = vst [vmem:[#allocation230_spill] sm:$0xff] %v11991_v6 }
 0x342   : > { %17419 = vst [vmem:[#allocation233_spill] sm:$0xff] %v12011_v22  ;;  %17423 = vst [vmem:[#allocation237_spill] sm:$0xff] %v12033_v35 }
 0x343   : > { %2316 = vperm.xlu1 %9691, %v11947_v40   ;;  %2355 = vperm.xlu0 %9692, %v11951_v31   ;;  %v11981_v31 = vadd.f32 %v11829_v56, %v11194_v8  ;;  %v11999_v8 = vadd.f32 %v11829_v56, %v11162_v25  ;;  %v12021_v25 = vadd.f32 %v11829_v56, %v11176_v45  ;;  %v17505_v40 = vld [vmem:[#allocation51_spill] sm:$0xff] }
 0x344   : > { %17427 = vst [vmem:[#allocation241_spill] sm:$0xff] %v12055_v55  ;;  %v12071_v56 = vadd.f32 %v11977_v61, %v11250_v17  ;;  %v12089_v17 = vadd.f32 %v11977_v61, %v17433_v28  ;;  %v17441_v28 = vld [vmem:[#allocation25_spill] sm:$0xff] }
 0x345   : > { %17414 = vst [vmem:[#allocation228_spill] sm:$0xff] %v11981_v31  ;;  %17417 = vst [vmem:[#allocation231_spill] sm:$0xff] %v11999_v8 }
 0x346   : > { %17421 = vst [vmem:[#allocation235_spill] sm:$0xff] %v12021_v25  ;;  %17430 = vst [vmem:[#allocation244_spill] sm:$0xff] %v12071_v56 }
 0x347   : > { %2322 = vperm.xlu1 %9691, %v11959_v47   ;;  %2361 = vperm.xlu0 %9692, %v11964_v54   ;;  %v11993_v54 = vpop.xlane.xlu0 %1666  ;;  %17434 = vst [vmem:[#allocation23_spill] sm:$0xff] %v12089_v17  ;;  %v17501_v47 = vld [vmem:[#allocation49_spill] sm:$0xff] }
 0x34b   : > { %2328 = vperm.xlu1 %9691, %v11972_v58   ;;  %2367 = vperm.xlu0 %9692, %v11981_v31   ;;  %v12007_v15 = vpop.xlane.xlu0 %1670 }
 0x34f   : > { %2334 = vperm.xlu1 %9691, %v11987_v60   ;;  %2373 = vperm.xlu0 %9692, %v11991_v6   ;;  %v12015_v6 = vadd.f32 %v11977_v61, %v11215_v49  ;;  %v12037_v49 = vadd.f32 %v11977_v61, %v11229_v18  ;;  %v12059_v18 = vadd.f32 %v11977_v61, %v11243_v57  ;;  %v17487_v60 = vld [vmem:[#allocation43_spill] sm:$0xff] }
 0x350   : > { %v12083_v57 = vadd.f32 %v11977_v61, %v11257_v43 }
 0x351   : > { %17420 = vst [vmem:[#allocation234_spill] sm:$0xff] %v12015_v6  ;;  %17424 = vst [vmem:[#allocation238_spill] sm:$0xff] %v12037_v49 }
 0x352   : > { %17428 = vst [vmem:[#allocation242_spill] sm:$0xff] %v12059_v18  ;;  %17432 = vst [vmem:[#allocation246_spill] sm:$0xff] %v12083_v57 }
 0x353   : > { %2340 = vperm.xlu1 %9691, %v11999_v8   ;;  %2379 = vperm.xlu0 %9692, %v12003_v41   ;;  %v12027_v41 = vpop.xlane.xlu0 %1674  ;;  %v17482_v8 = vld [vmem:[#allocation41_spill] sm:$0xff] }
 0x357   : > { %2346 = vperm.xlu1 %9691, %v12011_v22   ;;  %2385 = vperm.xlu0 %9692, %v12015_v6   ;;  %v12041_v45 = vpop.xlane.xlu0 %1678  ;;  %v17439_v6 = vld [vmem:[#allocation32_spill] sm:$0xff] }
 0x35b   : > { %2352 = vperm.xlu1 %9691, %v12021_v25   ;;  %2391 = vperm.xlu0 %9692, %v12025_v36   ;;  %v12049_v36 = vadd.f32 %v11977_v61, %v11236_v38  ;;  %v12079_v38 = vadd.f32 %v11977_v61, %v11211_v42  ;;  %v17437_v42 = vld [vmem:[#allocation24_spill] sm:$0xff] }
 0x35c   : > { %v12101_v43 = vadd.f32 %v11977_v61, %v17437_v42 }
 0x35d   : > { %17426 = vst [vmem:[#allocation240_spill] sm:$0xff] %v12049_v36  ;;  %17431 = vst [vmem:[#allocation245_spill] sm:$0xff] %v12079_v38 }
 0x35e   : > { %17438 = vst [vmem:[#allocation24_spill] sm:$0xff] %v12101_v43 }
 0x35f   : > { %2358 = vperm.xlu1 %9691, %v12033_v35   ;;  %2397 = vperm.xlu0 %9692, %v12037_v49   ;;  %v12061_v49 = vpop.xlane.xlu0 %1682 }
 0x363   : > { %2364 = vperm.xlu1 %9691, %v12045_v63   ;;  %2403 = vperm.xlu0 %9692, %v12049_v36   ;;  %v12075_v14 = vpop.xlane.xlu0 %1686 }
 0x367   : > { %2370 = vperm.xlu1 %9691, %v12055_v55   ;;  %2409 = vperm.xlu0 %9692, %v12059_v18   ;;  %v17435_v18 = vld [vmem:[#allocation30_spill] sm:$0xff]  ;;  %v12095_v36 = vpop.xlane.xlu0 %1690 }
 0x36b   : > { %2376 = vperm.xlu1 %9691, %v12067_v0   ;;  %2415 = vperm.xlu0 %9692, %v12071_v56   ;;  %v12093_v56 = vadd.f32 %v11977_v61, %v17435_v18  ;;  %v12109_v18 = vpop.xlane.xlu0 %1694 }
 0x36d   : > { %17436 = vst [vmem:[#allocation30_spill] sm:$0xff] %v12093_v56 }
 0x36f   : > { %2382 = vperm.xlu1 %9691, %v12079_v38   ;;  %2421 = vperm.xlu0 %9692, %v12083_v57   ;;  %v12105_v57 = vadd.f32 %v11977_v61, %v17439_v6  ;;  %v12113_v38 = vadd.f32 %v11977_v61, %v17441_v28  ;;  %v17445_v6 = vld [vmem:[#allocation26_spill] sm:$0xff]  ;;  %v12129_v0 = vpop.xlane.xlu0 %1698 }
 0x370   : > { %v12123_v42 = vadd.f32 %v11977_v61, %v17445_v6  ;;  %v17453_v6 = vld [vmem:[#allocation28_spill] sm:$0xff] }
 0x371   : > { %17440 = vst [vmem:[#allocation32_spill] sm:$0xff] %v12105_v57  ;;  %17442 = vst [vmem:[#allocation25_spill] sm:$0xff] %v12113_v38  ;;  %v12147_v55 = vadd.f32 %v11977_v61, %v17453_v6  ;;  %v17459_v6 = vld [vmem:[#allocation42_spill] sm:$0xff] }
 0x372   : > { %17446 = vst [vmem:[#allocation26_spill] sm:$0xff] %v12123_v42  ;;  %v12167_v31 = vadd.f32 %v11977_v61, %v17459_v6 }
 0x373   : > { %2388 = vperm.xlu1 %9691, %v12089_v17   ;;  %2427 = vperm.xlu0 %9692, %v12093_v56   ;;  %v17443_v17 = vld [vmem:[#allocation34_spill] sm:$0xff]  ;;  %17454 = vst [vmem:[#allocation28_spill] sm:$0xff] %v12147_v55 }
 0x374   : > { %v12117_v56 = vadd.f32 %v11977_v61, %v17443_v17  ;;  %v17449_v17 = vld [vmem:[#allocation27_spill] sm:$0xff]  ;;  %17460 = vst [vmem:[#allocation42_spill] sm:$0xff] %v12167_v31 }
 0x375   : > { %v12135_v28 = vadd.f32 %v11977_v61, %v17449_v17 }
 0x376   : > { %17444 = vst [vmem:[#allocation34_spill] sm:$0xff] %v12117_v56 }
 0x377   : > { %2394 = vperm.xlu1 %9691, %v12101_v43   ;;  %2433 = vperm.xlu0 %9692, %v12105_v57   ;;  %v17447_v43 = vld [vmem:[#allocation36_spill] sm:$0xff]  ;;  %17450 = vst [vmem:[#allocation27_spill] sm:$0xff] %v12135_v28 }
 0x378   : > { %v12127_v57 = vadd.f32 %v11977_v61, %v17447_v43  ;;  %v12143_v43 = vpop.xlane.xlu0 %1702 }
 0x37a   : > { %17448 = vst [vmem:[#allocation36_spill] sm:$0xff] %v12127_v57 }
 0x37b   : > { %2400 = vperm.xlu1 %9691, %v12113_v38   ;;  %2439 = vperm.xlu0 %9692, %v12117_v56   ;;  %v17451_v38 = vld [vmem:[#allocation38_spill] sm:$0xff] }
 0x37c   : > { %v12139_v56 = vadd.f32 %v11977_v61, %v17451_v38  ;;  %v17457_v38 = vld [vmem:[#allocation29_spill] sm:$0xff]  ;;  %v12169_v63 = vpop.xlane.xlu0 %1706 }
 0x37e   : > { %17452 = vst [vmem:[#allocation38_spill] sm:$0xff] %v12139_v56 }
 0x37f   : > { %2406 = vperm.xlu1 %9691, %v12123_v42   ;;  %2445 = vperm.xlu0 %9692, %v12127_v57   ;;  %v16900_v57 = vsub.s32 2, %v11817_v52  ;;  %v17455_v42 = vld [vmem:[#allocation40_spill] sm:$0xff] }
 0x380   : > { %v12152_v17 = vadd.f32 %v11977_v61, %v17455_v42  ;;  %v17461_v42 = vld [vmem:[#allocation31_spill] sm:$0xff]  ;;  %v12183_v6 = vpop.xlane.xlu0 %1710 }
 0x382   : > { %17456 = vst [vmem:[#allocation40_spill] sm:$0xff] %v12152_v17 }
 0x383   : > { %2412 = vperm.xlu1 %9691, %v12135_v28   ;;  %2451 = vperm.xlu0 %9692, %v12139_v56   ;;  %v12158_v28 = vadd.f32 %v11977_v61, %v17457_v38  ;;  %v12163_v56 = vrot.slane %v11824_v34, %v16900_v57  ;;  %v17463_v38 = vld [vmem:[#allocation44_spill] sm:$0xff]  ;;  %v17465_v57 = vld [vmem:[#allocation33_spill] sm:$0xff] }
 0x384   : > { %v12187_v35 = vadd.f32 %v11977_v61, %v17465_v57  ;;  %v12203_v25 = vpop.xlane.xlu0 %1714  ;;  %v17473_v57 = vld [vmem:[#allocation37_spill] sm:$0xff] }
 0x385   : > { %17458 = vst [vmem:[#allocation29_spill] sm:$0xff] %v12158_v28 }
 0x386   : > { %17466 = vst [vmem:[#allocation33_spill] sm:$0xff] %v12187_v35 }
 0x387   : > { %2418 = vperm.xlu1 %9691, %v12147_v55   ;;  %2457 = vperm.xlu0 %9692, %v12152_v17   ;;  %v12175_v17 = vadd.f32 %v11977_v61, %v17461_v42  ;;  %v12179_v55 = vadd.f32 %v12163_v56, %v17463_v38  ;;  %v17469_v42 = vld [vmem:[#allocation35_spill] sm:$0xff] }
 0x388   : > { %v12197_v38 = vadd.f32 %v11977_v61, %v17469_v42 }
 0x389   : > { %17462 = vst [vmem:[#allocation31_spill] sm:$0xff] %v12175_v17  ;;  %17464 = vst [vmem:[#allocation44_spill] sm:$0xff] %v12179_v55 }
 0x38a   : > { %17470 = vst [vmem:[#allocation35_spill] sm:$0xff] %v12197_v38 }
 0x38b   : > { %2424 = vperm.xlu1 %9691, %v12158_v28   ;;  %2463 = vperm.xlu0 %9692, %v12167_v31   ;;  %v17467_v28 = vld [vmem:[#allocation46_spill] sm:$0xff] }
 0x38c   : > { %v12191_v31 = vadd.f32 %v12163_v56, %v17467_v28  ;;  %v12209_v28 = vadd.f32 %v11977_v61, %v17473_v57 }
 0x38e   : > { %17468 = vst [vmem:[#allocation46_spill] sm:$0xff] %v12191_v31  ;;  %17474 = vst [vmem:[#allocation37_spill] sm:$0xff] %v12209_v28 }
 0x38f   : > { %2430 = vperm.xlu1 %9691, %v12175_v17   ;;  %2469 = vperm.xlu0 %9692, %v12179_v55   ;;  %v17471_v17 = vld [vmem:[#allocation48_spill] sm:$0xff] }
 0x390   : > { %v12201_v55 = vadd.f32 %v12163_v56, %v17471_v17  ;;  %v17477_v17 = vld [vmem:[#allocation39_spill] sm:$0xff] }
 0x392   : > { %17472 = vst [vmem:[#allocation48_spill] sm:$0xff] %v12201_v55 }
 0x393   : > { %2436 = vperm.xlu1 %9691, %v12187_v35   ;;  %2475 = vperm.xlu0 %9692, %v12191_v31   ;;  %v17475_v35 = vld [vmem:[#allocation50_spill] sm:$0xff] }
 0x394   : > { %v12213_v31 = vadd.f32 %v12163_v56, %v17475_v35 }
 0x396   : > { %17476 = vst [vmem:[#allocation50_spill] sm:$0xff] %v12213_v31 }
 0x397   : > { %2442 = vperm.xlu1 %9691, %v12197_v38   ;;  %2481 = vperm.xlu0 %9692, %v12201_v55   ;;  %v12223_v38 = vadd.f32 %v11977_v61, %v17477_v17  ;;  %v17479_v55 = vld [vmem:[#allocation52_spill] sm:$0xff] }
 0x398   : > { %v12227_v57 = vadd.f32 %v12163_v56, %v17479_v55 }
 0x399   : > { %17478 = vst [vmem:[#allocation39_spill] sm:$0xff] %v12223_v38 }
 0x39a   : > { %v12215_v42 = vpop.permute.xlu1 %2277  ;;  %v12217_v22 = vpop.permute.xlu0 %2274  ;;  %17480 = vst [vmem:[#allocation52_spill] sm:$0xff] %v12227_v57 }
 0x39b   : > { %2448 = vperm.xlu1 %9691, %v12209_v28   ;;  %2487 = vperm.xlu0 %9692, %v12213_v31   ;;  %v12237_v28 = vadd.f32 %v11977_v61, %v17482_v8  ;;  %v17484_v31 = vld [vmem:[#allocation54_spill] sm:$0xff] }
 0x39c   : > { %v12241_v17 = vadd.f32 %v12163_v56, %v17484_v31 }
 0x39d   : > { %17483 = vst [vmem:[#allocation41_spill] sm:$0xff] %v12237_v28 }
 0x39e   : > { %v12229_v11 = vpop.permute.xlu1 %2280  ;;  %v12231_v35 = vpop.permute.xlu0 %2301  ;;  %17485 = vst [vmem:[#allocation54_spill] sm:$0xff] %v12241_v17 }
 0x39f   : > { %17481 = vst [vmem:[#allocation247_spill] sm:$0xff] %v12231_v35  ;;  %2454 = vperm.xlu1 %9691, %v12223_v38   ;;  %2493 = vperm.xlu0 %9692, %v12227_v57   ;;  %v12251_v38 = vadd.f32 %v12163_v56, %v17487_v60  ;;  %v17489_v57 = vld [vmem:[#allocation56_spill] sm:$0xff] }
 0x3a0   : > { %v12255_v61 = vadd.f32 %v12163_v56, %v17489_v57 }
 0x3a1   : > { %17488 = vst [vmem:[#allocation43_spill] sm:$0xff] %v12251_v38 }
 0x3a2   : > { %v12243_v2 = vpop.permute.xlu1 %2283  ;;  %v12245_v55 = vpop.permute.xlu0 %2307  ;;  %17490 = vst [vmem:[#allocation56_spill] sm:$0xff] %v12255_v61 }
 0x3a3   : > { %17486 = vst [vmem:[#allocation248_spill] sm:$0xff] %v12245_v55  ;;  %2460 = vperm.xlu1 %9691, %v12237_v28   ;;  %2499 = vperm.xlu0 %9692, %v12241_v17   ;;  %v12265_v28 = vadd.f32 %v12163_v56, %v17492_v16  ;;  %v17494_v17 = vld [vmem:[#allocation58_spill] sm:$0xff] }
 0x3a4   : > { %v12269_v60 = vadd.f32 %v12163_v56, %v17494_v17 }
 0x3a5   : > { %17493 = vst [vmem:[#allocation45_spill] sm:$0xff] %v12265_v28 }
 0x3a6   : > { %v12257_v8 = vpop.permute.xlu1 %2286  ;;  %v12259_v31 = vpop.permute.xlu0 %2313  ;;  %17495 = vst [vmem:[#allocation58_spill] sm:$0xff] %v12269_v60 }
 0x3a7   : > { %17491 = vst [vmem:[#allocation249_spill] sm:$0xff] %v12259_v31  ;;  %2466 = vperm.xlu1 %9691, %v12251_v38   ;;  %2505 = vperm.xlu0 %9692, %v12255_v61   ;;  %v12279_v38 = vadd.f32 %v12163_v56, %v17497_v37  ;;  %v17499_v61 = vld [vmem:[#allocation60_spill] sm:$0xff] }
 0x3a8   : > { %v12283_v16 = vadd.f32 %v12163_v56, %v17499_v61 }
 0x3a9   : > { %17498 = vst [vmem:[#allocation47_spill] sm:$0xff] %v12279_v38 }
 0x3aa   : > { %v12271_v58 = vpop.permute.xlu1 %2289  ;;  %v12273_v57 = vpop.permute.xlu0 %2319  ;;  %17500 = vst [vmem:[#allocation60_spill] sm:$0xff] %v12283_v16 }
 0x3ab   : > { %17496 = vst [vmem:[#allocation250_spill] sm:$0xff] %v12273_v57  ;;  %2472 = vperm.xlu1 %9691, %v12265_v28   ;;  %2511 = vperm.xlu0 %9692, %v12269_v60   ;;  %v12293_v28 = vadd.f32 %v12163_v56, %v17501_v47  ;;  %v17503_v60 = vld [vmem:[#allocation62_spill] sm:$0xff]  ;;  %v17528_v57 = vld [vmem:[#allocation59_spill] sm:$0xff] }
 0x3ac   : > { %v12297_v37 = vadd.f32 %v12163_v56, %v17503_v60 }
 0x3ad   : > { %17502 = vst [vmem:[#allocation49_spill] sm:$0xff] %v12293_v28 }
 0x3ae   : > { %v12285_v51 = vpop.permute.xlu1 %2292  ;;  %v12287_v17 = vpop.permute.xlu0 %2325  ;;  %17504 = vst [vmem:[#allocation62_spill] sm:$0xff] %v12297_v37 }
 0x3af   : > { %2478 = vperm.xlu1 %9691, %v12279_v38   ;;  %2517 = vperm.xlu0 %9692, %v12283_v16   ;;  %v12307_v38 = vadd.f32 %v12163_v56, %v17505_v40  ;;  %v17507_v16 = vld [vmem:[#allocation64_spill] sm:$0xff] }
 0x3b0   : > { %v12311_v47 = vadd.f32 %v12163_v56, %v17507_v16 }
 0x3b1   : > { %17506 = vst [vmem:[#allocation51_spill] sm:$0xff] %v12307_v38 }
 0x3b2   : > { %v12299_v44 = vpop.permute.xlu1 %2295  ;;  %v12301_v61 = vpop.permute.xlu0 %2331  ;;  %17508 = vst [vmem:[#allocation64_spill] sm:$0xff] %v12311_v47 }
 0x3b3   : > { %2484 = vperm.xlu1 %9691, %v12293_v28   ;;  %2523 = vperm.xlu0 %9692, %v12297_v37   ;;  %v12321_v28 = vadd.f32 %v12163_v56, %v17510_v21  ;;  %v17512_v37 = vld [vmem:[#allocation66_spill] sm:$0xff] }
 0x3b4   : > { %v12325_v40 = vadd.f32 %v12163_v56, %v17512_v37 }
 0x3b5   : > { %17511 = vst [vmem:[#allocation53_spill] sm:$0xff] %v12321_v28 }
 0x3b6   : > { %v12313_v20 = vpop.permute.xlu1 %2298  ;;  %v12315_v60 = vpop.permute.xlu0 %2337  ;;  %17513 = vst [vmem:[#allocation66_spill] sm:$0xff] %v12325_v40 }
 0x3b7   : > { %17509 = vst [vmem:[#allocation251_spill] sm:$0xff] %v12315_v60  ;;  %2490 = vperm.xlu1 %9691, %v12307_v38   ;;  %2529 = vperm.xlu0 %9692, %v12311_v47   ;;  %v12335_v38 = vadd.f32 %v12163_v56, %v17516_v39  ;;  %v17518_v47 = vld [vmem:[#allocation68_spill] sm:$0xff] }
 0x3b8   : > { %v12339_v21 = vadd.f32 %v12163_v56, %v17518_v47 }
 0x3b9   : > { %17517 = vst [vmem:[#allocation55_spill] sm:$0xff] %v12335_v38 }
 0x3ba   : > { %v12327_v4 = vpop.permute.xlu1 %2304  ;;  %v12329_v16 = vpop.permute.xlu0 %2343  ;;  %17519 = vst [vmem:[#allocation68_spill] sm:$0xff] %v12339_v21 }
 0x3bb   : > { %17514 = vst [vmem:[#allocation252_spill] sm:$0xff] %v12327_v4  ;;  %17515 = vst [vmem:[#allocation253_spill] sm:$0xff] %v12329_v16  ;;  %2496 = vperm.xlu1 %9691, %v12321_v28   ;;  %2535 = vperm.xlu0 %9692, %v12325_v40   ;;  %v12349_v28 = vadd.f32 %v12163_v56, %v17522_v26  ;;  %v17524_v40 = vld [vmem:[#allocation70_spill] sm:$0xff]  ;;  %v17530_v26 = vld [vmem:[#allocation72_spill] sm:$0xff] }
 0x3bc   : > { %v12353_v39 = vadd.f32 %v12163_v56, %v17524_v40  ;;  %v12368_v31 = vadd.f32 %v12163_v56, %v17530_v26  ;;  %v17548_v16 = vld [vmem:[#allocation67_spill] sm:$0xff] }
 0x3bd   : > { %17523 = vst [vmem:[#allocation57_spill] sm:$0xff] %v12349_v28 }
 0x3be   : > { %v12341_v59 = vpop.permute.xlu1 %2310  ;;  %v12343_v37 = vpop.permute.xlu0 %2349  ;;  %17525 = vst [vmem:[#allocation70_spill] sm:$0xff] %v12353_v39  ;;  %17531 = vst [vmem:[#allocation72_spill] sm:$0xff] %v12368_v31 }
 0x3bf   : > { %17520 = vst [vmem:[#allocation254_spill] sm:$0xff] %v12341_v59  ;;  %17521 = vst [vmem:[#allocation255_spill] sm:$0xff] %v12343_v37  ;;  %2502 = vperm.xlu1 %9691, %v12335_v38   ;;  %2541 = vperm.xlu0 %9692, %v12339_v21   ;;  %v12363_v38 = vadd.f32 %v12163_v56, %v17528_v57  ;;  %v16954_v21 = vsub.s32 3, %v11817_v52 }
 0x3c1   : > { %17529 = vst [vmem:[#allocation59_spill] sm:$0xff] %v12363_v38  ;;  %v12383_v57 = vrot.slane %v11824_v34, %v16954_v21 }
 0x3c2   : > { %v12355_v13 = vpop.permute.xlu1 %2316  ;;  %v12357_v47 = vpop.permute.xlu0 %2355 }
 0x3c3   : > { %17526 = vst [vmem:[#allocation256_spill] sm:$0xff] %v12355_v13  ;;  %17527 = vst [vmem:[#allocation257_spill] sm:$0xff] %v12357_v47  ;;  %2508 = vperm.xlu1 %9691, %v12349_v28   ;;  %2547 = vperm.xlu0 %9692, %v12353_v39   ;;  %v17533_v28 = vld [vmem:[#allocation61_spill] sm:$0xff]  ;;  %v17535_v47 = vld [vmem:[#allocation74_spill] sm:$0xff] }
 0x3c4   : > { %v12378_v39 = vadd.f32 %v12163_v56, %v17533_v28  ;;  %v12387_v26 = vadd.f32 %v12163_v56, %v17535_v47 }
 0x3c6   : > { %v12370_v40 = vpop.permute.xlu1 %2322  ;;  %v12372_v37 = vpop.permute.xlu0 %2361  ;;  %17534 = vst [vmem:[#allocation61_spill] sm:$0xff] %v12378_v39  ;;  %17536 = vst [vmem:[#allocation74_spill] sm:$0xff] %v12387_v26 }
 0x3c7   : > { %17532 = vst [vmem:[#allocation258_spill] sm:$0xff] %v12372_v37  ;;  %2514 = vperm.xlu1 %9691, %v12363_v38   ;;  %2553 = vperm.xlu0 %9692, %v12368_v31   ;;  %v17538_v31 = vld [vmem:[#allocation63_spill] sm:$0xff]  ;;  %v17540_v38 = vld [vmem:[#allocation76_spill] sm:$0xff] }
 0x3c8   : > { %v12397_v28 = vadd.f32 %v12163_v56, %v17538_v31  ;;  %v12401_v21 = vadd.f32 %v12383_v57, %v17540_v38 }
 0x3ca   : > { %v12389_v13 = vpop.permute.xlu1 %2328  ;;  %v12391_v37 = vpop.permute.xlu0 %2367  ;;  %17539 = vst [vmem:[#allocation63_spill] sm:$0xff] %v12397_v28  ;;  %17541 = vst [vmem:[#allocation76_spill] sm:$0xff] %v12401_v21 }
 0x3cb   : > { %17537 = vst [vmem:[#allocation259_spill] sm:$0xff] %v12391_v37  ;;  %2520 = vperm.xlu1 %9691, %v12378_v39   ;;  %2559 = vperm.xlu0 %9692, %v12387_v26   ;;  %v17542_v37 = vld [vmem:[#allocation65_spill] sm:$0xff]  ;;  %v17544_v26 = vld [vmem:[#allocation78_spill] sm:$0xff] }
 0x3cc   : > { %v12411_v39 = vadd.f32 %v12163_v56, %v17542_v37  ;;  %v12415_v31 = vadd.f32 %v12383_v57, %v17544_v26 }
 0x3ce   : > { %v12403_v55 = vpop.permute.xlu1 %2334  ;;  %v12405_v47 = vpop.permute.xlu0 %2373  ;;  %17543 = vst [vmem:[#allocation65_spill] sm:$0xff] %v12411_v39  ;;  %17545 = vst [vmem:[#allocation78_spill] sm:$0xff] %v12415_v31 }
 0x3cf   : > { %2526 = vperm.xlu1 %9691, %v12397_v28   ;;  %2565 = vperm.xlu0 %9692, %v12401_v21   ;;  %v12425_v28 = vadd.f32 %v12163_v56, %v17548_v16  ;;  %v17550_v21 = vld [vmem:[#allocation80_spill] sm:$0xff] }
 0x3d0   : > { %v12429_v37 = vadd.f32 %v12383_v57, %v17550_v21 }
 0x3d1   : > { %17549 = vst [vmem:[#allocation67_spill] sm:$0xff] %v12425_v28 }
 0x3d2   : > { %v12417_v59 = vpop.permute.xlu1 %2340  ;;  %v12419_v38 = vpop.permute.xlu0 %2379  ;;  %17551 = vst [vmem:[#allocation80_spill] sm:$0xff] %v12429_v37 }
 0x3d3   : > { %17546 = vst [vmem:[#allocation260_spill] sm:$0xff] %v12417_v59  ;;  %17547 = vst [vmem:[#allocation261_spill] sm:$0xff] %v12419_v38  ;;  %2532 = vperm.xlu1 %9691, %v12411_v39   ;;  %2571 = vperm.xlu0 %9692, %v12415_v31   ;;  %v17554_v38 = vld [vmem:[#allocation69_spill] sm:$0xff]  ;;  %v17556_v31 = vld [vmem:[#allocation82_spill] sm:$0xff] }
 0x3d4   : > { %v12439_v39 = vadd.f32 %v12163_v56, %v17554_v38  ;;  %v12443_v16 = vadd.f32 %v12383_v57, %v17556_v31 }
 0x3d6   : > { %v12431_v35 = vpop.permute.xlu1 %2346  ;;  %v12433_v26 = vpop.permute.xlu0 %2385  ;;  %17555 = vst [vmem:[#allocation69_spill] sm:$0xff] %v12439_v39  ;;  %17557 = vst [vmem:[#allocation82_spill] sm:$0xff] %v12443_v16 }
 0x3d7   : > { %17552 = vst [vmem:[#allocation262_spill] sm:$0xff] %v12431_v35  ;;  %17553 = vst [vmem:[#allocation263_spill] sm:$0xff] %v12433_v26  ;;  %2538 = vperm.xlu1 %9691, %v12425_v28   ;;  %2577 = vperm.xlu0 %9692, %v12429_v37   ;;  %v17560_v26 = vld [vmem:[#allocation71_spill] sm:$0xff]  ;;  %v17562_v37 = vld [vmem:[#allocation84_spill] sm:$0xff] }
 0x3d8   : > { %v12453_v28 = vadd.f32 %v12163_v56, %v17560_v26  ;;  %v12457_v38 = vadd.f32 %v12383_v57, %v17562_v37 }
 0x3da   : > { %v12445_v4 = vpop.permute.xlu1 %2352  ;;  %v12447_v21 = vpop.permute.xlu0 %2391  ;;  %17561 = vst [vmem:[#allocation71_spill] sm:$0xff] %v12453_v28  ;;  %17563 = vst [vmem:[#allocation84_spill] sm:$0xff] %v12457_v38 }
 0x3db   : > { %17558 = vst [vmem:[#allocation264_spill] sm:$0xff] %v12445_v4  ;;  %17559 = vst [vmem:[#allocation265_spill] sm:$0xff] %v12447_v21  ;;  %2544 = vperm.xlu1 %9691, %v12439_v39   ;;  %2583 = vperm.xlu0 %9692, %v12443_v16   ;;  %v17566_v21 = vld [vmem:[#allocation73_spill] sm:$0xff]  ;;  %v17568_v16 = vld [vmem:[#allocation86_spill] sm:$0xff] }
 0x3dc   : > { %v12467_v39 = vadd.f32 %v12163_v56, %v17566_v21  ;;  %v12471_v26 = vadd.f32 %v12383_v57, %v17568_v16 }
 0x3de   : > { %v12459_v35 = vpop.permute.xlu1 %2358  ;;  %v12461_v31 = vpop.permute.xlu0 %2397  ;;  %17567 = vst [vmem:[#allocation73_spill] sm:$0xff] %v12467_v39  ;;  %17569 = vst [vmem:[#allocation86_spill] sm:$0xff] %v12471_v26 }
 0x3df   : > { %17564 = vst [vmem:[#allocation266_spill] sm:$0xff] %v12459_v35  ;;  %17565 = vst [vmem:[#allocation267_spill] sm:$0xff] %v12461_v31  ;;  %2550 = vperm.xlu1 %9691, %v12453_v28   ;;  %2589 = vperm.xlu0 %9692, %v12457_v38   ;;  %v17572_v31 = vld [vmem:[#allocation75_spill] sm:$0xff]  ;;  %v17574_v38 = vld [vmem:[#allocation88_spill] sm:$0xff] }
 0x3e0   : > { %v12481_v28 = vadd.f32 %v12383_v57, %v17572_v31  ;;  %v12485_v56 = vadd.f32 %v12383_v57, %v17574_v38 }
 0x3e2   : > { %v12473_v4 = vpop.permute.xlu1 %2364  ;;  %v12475_v37 = vpop.permute.xlu0 %2403  ;;  %17573 = vst [vmem:[#allocation75_spill] sm:$0xff] %v12481_v28  ;;  %17575 = vst [vmem:[#allocation88_spill] sm:$0xff] %v12485_v56 }
 0x3e3   : > { %17570 = vst [vmem:[#allocation268_spill] sm:$0xff] %v12473_v4  ;;  %17571 = vst [vmem:[#allocation269_spill] sm:$0xff] %v12475_v37  ;;  %2556 = vperm.xlu1 %9691, %v12467_v39   ;;  %2595 = vperm.xlu0 %9692, %v12471_v26   ;;  %v17577_v37 = vld [vmem:[#allocation77_spill] sm:$0xff]  ;;  %v17579_v26 = vld [vmem:[#allocation90_spill] sm:$0xff] }
 0x3e4   : > { %v12495_v39 = vadd.f32 %v12383_v57, %v17577_v37  ;;  %v12499_v31 = vadd.f32 %v12383_v57, %v17579_v26 }
 0x3e6   : > { %v12487_v21 = vpop.permute.xlu1 %2370  ;;  %v12489_v16 = vpop.permute.xlu0 %2409  ;;  %17578 = vst [vmem:[#allocation77_spill] sm:$0xff] %v12495_v39  ;;  %17580 = vst [vmem:[#allocation90_spill] sm:$0xff] %v12499_v31 }
 0x3e7   : > { %17576 = vst [vmem:[#allocation270_spill] sm:$0xff] %v12489_v16  ;;  %2562 = vperm.xlu1 %9691, %v12481_v28   ;;  %2601 = vperm.xlu0 %9692, %v12485_v56   ;;  %v17582_v16 = vld [vmem:[#allocation79_spill] sm:$0xff]  ;;  %v17584_v56 = vld [vmem:[#allocation92_spill] sm:$0xff] }
 0x3e8   : > { %v12509_v28 = vadd.f32 %v12383_v57, %v17582_v16  ;;  %v12513_v37 = vadd.f32 %v12383_v57, %v17584_v56 }
 0x3ea   : > { %v12501_v4 = vpop.permute.xlu1 %2376  ;;  %v12503_v38 = vpop.permute.xlu0 %2415  ;;  %17583 = vst [vmem:[#allocation79_spill] sm:$0xff] %v12509_v28  ;;  %17585 = vst [vmem:[#allocation92_spill] sm:$0xff] %v12513_v37 }
 0x3eb   : > { %17581 = vst [vmem:[#allocation271_spill] sm:$0xff] %v12503_v38  ;;  %2568 = vperm.xlu1 %9691, %v12495_v39   ;;  %2607 = vperm.xlu0 %9692, %v12499_v31   ;;  %v17588_v38 = vld [vmem:[#allocation81_spill] sm:$0xff]  ;;  %v17590_v31 = vld [vmem:[#allocation94_spill] sm:$0xff] }
 0x3ec   : > { %v12523_v39 = vadd.f32 %v12383_v57, %v17588_v38  ;;  %v12527_v16 = vadd.f32 %v12383_v57, %v17590_v31 }
 0x3ee   : > { %v12515_v35 = vpop.permute.xlu1 %2382  ;;  %v12517_v26 = vpop.permute.xlu0 %2421  ;;  %17589 = vst [vmem:[#allocation81_spill] sm:$0xff] %v12523_v39  ;;  %17591 = vst [vmem:[#allocation94_spill] sm:$0xff] %v12527_v16 }
 0x3ef   : > { %17586 = vst [vmem:[#allocation272_spill] sm:$0xff] %v12515_v35  ;;  %17587 = vst [vmem:[#allocation273_spill] sm:$0xff] %v12517_v26  ;;  %2574 = vperm.xlu1 %9691, %v12509_v28   ;;  %2613 = vperm.xlu0 %9692, %v12513_v37   ;;  %v17594_v26 = vld [vmem:[#allocation83_spill] sm:$0xff]  ;;  %v17596_v37 = vld [vmem:[#allocation96_spill] sm:$0xff] }
 0x3f0   : > { %v12537_v28 = vadd.f32 %v12383_v57, %v17594_v26  ;;  %v12541_v38 = vadd.f32 %v12383_v57, %v17596_v37 }
 0x3f2   : > { %v12529_v60 = vpop.permute.xlu1 %2388  ;;  %v12531_v56 = vpop.permute.xlu0 %2427  ;;  %17595 = vst [vmem:[#allocation83_spill] sm:$0xff] %v12537_v28  ;;  %17597 = vst [vmem:[#allocation96_spill] sm:$0xff] %v12541_v38 }
 0x3f3   : > { %17592 = vst [vmem:[#allocation274_spill] sm:$0xff] %v12529_v60  ;;  %17593 = vst [vmem:[#allocation275_spill] sm:$0xff] %v12531_v56  ;;  %2580 = vperm.xlu1 %9691, %v12523_v39   ;;  %2619 = vperm.xlu0 %9692, %v12527_v16   ;;  %v17600_v56 = vld [vmem:[#allocation85_spill] sm:$0xff]  ;;  %v17602_v16 = vld [vmem:[#allocation98_spill] sm:$0xff] }
 0x3f4   : > { %v12551_v39 = vadd.f32 %v12383_v57, %v17600_v56  ;;  %v12555_v26 = vadd.f32 %v12383_v57, %v17602_v16 }
 0x3f6   : > { %v12543_v35 = vpop.permute.xlu1 %2394  ;;  %v12545_v31 = vpop.permute.xlu0 %2433  ;;  %17601 = vst [vmem:[#allocation85_spill] sm:$0xff] %v12551_v39  ;;  %17603 = vst [vmem:[#allocation98_spill] sm:$0xff] %v12555_v26 }
 0x3f7   : > { %17598 = vst [vmem:[#allocation276_spill] sm:$0xff] %v12543_v35  ;;  %17599 = vst [vmem:[#allocation277_spill] sm:$0xff] %v12545_v31  ;;  %2586 = vperm.xlu1 %9691, %v12537_v28   ;;  %2625 = vperm.xlu0 %9692, %v12541_v38   ;;  %v17606_v31 = vld [vmem:[#allocation87_spill] sm:$0xff]  ;;  %v17608_v38 = vld [vmem:[#allocation100_spill] sm:$0xff] }
 0x3f8   : > { %v12565_v28 = vadd.f32 %v12383_v57, %v17606_v31  ;;  %v12569_v56 = vadd.f32 %v12383_v57, %v17608_v38 }
 0x3fa   : > { %v12557_v60 = vpop.permute.xlu1 %2400  ;;  %v12559_v37 = vpop.permute.xlu0 %2439  ;;  %17607 = vst [vmem:[#allocation87_spill] sm:$0xff] %v12565_v28  ;;  %17609 = vst [vmem:[#allocation100_spill] sm:$0xff] %v12569_v56 }
 0x3fb   : > { %17604 = vst [vmem:[#allocation278_spill] sm:$0xff] %v12557_v60  ;;  %17605 = vst [vmem:[#allocation279_spill] sm:$0xff] %v12559_v37  ;;  %2592 = vperm.xlu1 %9691, %v12551_v39   ;;  %2631 = vperm.xlu0 %9692, %v12555_v26   ;;  %v17612_v37 = vld [vmem:[#allocation89_spill] sm:$0xff]  ;;  %v17614_v26 = vld [vmem:[#allocation102_spill] sm:$0xff] }
 0x3fc   : > { %v12579_v39 = vadd.f32 %v12383_v57, %v17612_v37  ;;  %v12583_v31 = vadd.f32 %v12383_v57, %v17614_v26  ;;  %v17620_v37 = vld [vmem:[#allocation104_spill] sm:$0xff] }
 0x3fe   : > { %v12571_v35 = vpop.permute.xlu1 %2406  ;;  %v12573_v16 = vpop.permute.xlu0 %2445  ;;  %17613 = vst [vmem:[#allocation89_spill] sm:$0xff] %v12579_v39  ;;  %17615 = vst [vmem:[#allocation102_spill] sm:$0xff] %v12583_v31 }
 0x3ff   : > { %17610 = vst [vmem:[#allocation280_spill] sm:$0xff] %v12571_v35  ;;  %17611 = vst [vmem:[#allocation281_spill] sm:$0xff] %v12573_v16  ;;  %2598 = vperm.xlu1 %9691, %v12565_v28   ;;  %2637 = vperm.xlu0 %9692, %v12569_v56   ;;  %v17618_v16 = vld [vmem:[#allocation91_spill] sm:$0xff]  ;;  %v16991_v56 = vsub.s32 4, %v11817_v52  ;;  %v12598_v35 = vadd.f32 %v12383_v57, %v17620_v37 }
 0x400   : > { %v12593_v28 = vadd.f32 %v12383_v57, %v17618_v16 }
 0x401   : > { %17621 = vst [vmem:[#allocation104_spill] sm:$0xff] %v12598_v35  ;;  %v12613_v16 = vrot.slane %v11824_v34, %v16991_v56 }
 0x402   : > { %v12585_v60 = vpop.permute.xlu1 %2412  ;;  %v12587_v38 = vpop.permute.xlu0 %2451  ;;  %17619 = vst [vmem:[#allocation91_spill] sm:$0xff] %v12593_v28 }
 0x403   : > { %17616 = vst [vmem:[#allocation282_spill] sm:$0xff] %v12585_v60  ;;  %17617 = vst [vmem:[#allocation283_spill] sm:$0xff] %v12587_v38  ;;  %2604 = vperm.xlu1 %9691, %v12579_v39   ;;  %2643 = vperm.xlu0 %9692, %v12583_v31   ;;  %v17624_v39 = vld [vmem:[#allocation93_spill] sm:$0xff]  ;;  %v17626_v38 = vld [vmem:[#allocation107_spill] sm:$0xff] }
 0x404   : > { %v12608_v31 = vadd.f32 %v12383_v57, %v17624_v39  ;;  %v12617_v37 = vadd.f32 %v12383_v57, %v17626_v38 }
 0x406   : > { %v12600_v26 = vpop.permute.xlu1 %2418  ;;  %v12602_v59 = vpop.permute.xlu0 %2457  ;;  %17625 = vst [vmem:[#allocation93_spill] sm:$0xff] %v12608_v31  ;;  %17627 = vst [vmem:[#allocation107_spill] sm:$0xff] %v12617_v37 }
 0x407   : > { %17622 = vst [vmem:[#allocation284_spill] sm:$0xff] %v12600_v26  ;;  %17623 = vst [vmem:[#allocation285_spill] sm:$0xff] %v12602_v59  ;;  %2610 = vperm.xlu1 %9691, %v12593_v28   ;;  %2649 = vperm.xlu0 %9692, %v12598_v35   ;;  %v17630_v35 = vld [vmem:[#allocation95_spill] sm:$0xff]  ;;  %v17632_v28 = vld [vmem:[#allocation109_spill] sm:$0xff] }
 0x408   : > { %v12627_v39 = vadd.f32 %v12383_v57, %v17630_v35  ;;  %v12631_v56 = vadd.f32 %v12613_v16, %v17632_v28 }
 0x40a   : > { %v12619_v60 = vpop.permute.xlu1 %2424  ;;  %v12621_v59 = vpop.permute.xlu0 %2463  ;;  %17631 = vst [vmem:[#allocation95_spill] sm:$0xff] %v12627_v39  ;;  %17633 = vst [vmem:[#allocation109_spill] sm:$0xff] %v12631_v56 }
 0x40b   : > { %17628 = vst [vmem:[#allocation286_spill] sm:$0xff] %v12619_v60  ;;  %17629 = vst [vmem:[#allocation287_spill] sm:$0xff] %v12621_v59  ;;  %2616 = vperm.xlu1 %9691, %v12608_v31   ;;  %2655 = vperm.xlu0 %9692, %v12617_v37   ;;  %v17636_v59 = vld [vmem:[#allocation97_spill] sm:$0xff]  ;;  %v17638_v37 = vld [vmem:[#allocation112_spill] sm:$0xff] }
 0x40c   : > { %v12641_v31 = vadd.f32 %v12383_v57, %v17636_v59  ;;  %v12645_v35 = vadd.f32 %v12613_v16, %v17638_v37 }
 0x40e   : > { %v12633_v26 = vpop.permute.xlu1 %2430  ;;  %v12635_v38 = vpop.permute.xlu0 %2469  ;;  %17637 = vst [vmem:[#allocation97_spill] sm:$0xff] %v12641_v31  ;;  %17639 = vst [vmem:[#allocation112_spill] sm:$0xff] %v12645_v35 }
 0x40f   : > { %17634 = vst [vmem:[#allocation288_spill] sm:$0xff] %v12633_v26  ;;  %17635 = vst [vmem:[#allocation289_spill] sm:$0xff] %v12635_v38  ;;  %2622 = vperm.xlu1 %9691, %v12627_v39   ;;  %2661 = vperm.xlu0 %9692, %v12631_v56   ;;  %v17642_v38 = vld [vmem:[#allocation99_spill] sm:$0xff]  ;;  %v17644_v56 = vld [vmem:[#allocation114_spill] sm:$0xff] }
 0x410   : > { %v12655_v39 = vadd.f32 %v12383_v57, %v17642_v38  ;;  %v12659_v59 = vadd.f32 %v12613_v16, %v17644_v56 }
 0x412   : > { %v12647_v60 = vpop.permute.xlu1 %2436  ;;  %v12649_v28 = vpop.permute.xlu0 %2475  ;;  %17643 = vst [vmem:[#allocation99_spill] sm:$0xff] %v12655_v39  ;;  %17645 = vst [vmem:[#allocation114_spill] sm:$0xff] %v12659_v59 }
 0x413   : > { %17640 = vst [vmem:[#allocation290_spill] sm:$0xff] %v12647_v60  ;;  %17641 = vst [vmem:[#allocation291_spill] sm:$0xff] %v12649_v28  ;;  %2628 = vperm.xlu1 %9691, %v12641_v31   ;;  %2667 = vperm.xlu0 %9692, %v12645_v35   ;;  %v17648_v28 = vld [vmem:[#allocation101_spill] sm:$0xff] }
 0x414   : > { %v12669_v31 = vadd.f32 %v12383_v57, %v17648_v28  ;;  %v17650_v35 = vld [vmem:[#allocation117_spill] sm:$0xff] }
 0x415   : > { %v12673_v38 = vadd.f32 %v12613_v16, %v17650_v35 }
 0x416   : > { %v12661_v26 = vpop.permute.xlu1 %2442  ;;  %v12663_v37 = vpop.permute.xlu0 %2481  ;;  %17649 = vst [vmem:[#allocation101_spill] sm:$0xff] %v12669_v31 }
 0x417   : > { %17646 = vst [vmem:[#allocation292_spill] sm:$0xff] %v12661_v26  ;;  %17647 = vst [vmem:[#allocation293_spill] sm:$0xff] %v12663_v37  ;;  %2634 = vperm.xlu1 %9691, %v12655_v39   ;;  %2673 = vperm.xlu0 %9692, %v12659_v59   ;;  %v17654_v37 = vld [vmem:[#allocation103_spill] sm:$0xff] }
 0x418   : > { %17651 = vst [vmem:[#allocation117_spill] sm:$0xff] %v12673_v38  ;;  %v12683_v39 = vadd.f32 %v12383_v57, %v17654_v37  ;;  %v17656_v59 = vld [vmem:[#allocation119_spill] sm:$0xff] }
 0x419   : > { %v12687_v28 = vadd.f32 %v12613_v16, %v17656_v59 }
 0x41a   : > { %v12675_v60 = vpop.permute.xlu1 %2448  ;;  %v12677_v56 = vpop.permute.xlu0 %2487  ;;  %17655 = vst [vmem:[#allocation103_spill] sm:$0xff] %v12683_v39 }
 0x41b   : > { %17652 = vst [vmem:[#allocation294_spill] sm:$0xff] %v12675_v60  ;;  %17653 = vst [vmem:[#allocation295_spill] sm:$0xff] %v12677_v56  ;;  %2640 = vperm.xlu1 %9691, %v12669_v31   ;;  %2679 = vperm.xlu0 %9692, %v12673_v38   ;;  %v17660_v56 = vld [vmem:[#allocation105_spill] sm:$0xff]  ;;  %v17662_v38 = vld [vmem:[#allocation122_spill] sm:$0xff] }
 0x41c   : > { %17657 = vst [vmem:[#allocation119_spill] sm:$0xff] %v12687_v28  ;;  %v12697_v31 = vadd.f32 %v12383_v57, %v17660_v56  ;;  %v12701_v37 = vadd.f32 %v12613_v16, %v17662_v38 }
 0x41e   : > { %v12689_v26 = vpop.permute.xlu1 %2454  ;;  %v12691_v35 = vpop.permute.xlu0 %2493  ;;  %17661 = vst [vmem:[#allocation105_spill] sm:$0xff] %v12697_v31  ;;  %17663 = vst [vmem:[#allocation122_spill] sm:$0xff] %v12701_v37 }
 0x41f   : > { %17658 = vst [vmem:[#allocation296_spill] sm:$0xff] %v12689_v26  ;;  %17659 = vst [vmem:[#allocation297_spill] sm:$0xff] %v12691_v35  ;;  %2646 = vperm.xlu1 %9691, %v12683_v39   ;;  %2685 = vperm.xlu0 %9692, %v12687_v28   ;;  %v17666_v35 = vld [vmem:[#allocation106_spill] sm:$0xff]  ;;  %v17668_v28 = vld [vmem:[#allocation124_spill] sm:$0xff] }
 0x420   : > { %v12711_v39 = vadd.f32 %v12613_v16, %v17666_v35  ;;  %v12715_v57 = vadd.f32 %v12613_v16, %v17668_v28 }
 0x422   : > { %v12703_v60 = vpop.permute.xlu1 %2460  ;;  %v12705_v59 = vpop.permute.xlu0 %2499  ;;  %17667 = vst [vmem:[#allocation106_spill] sm:$0xff] %v12711_v39  ;;  %17669 = vst [vmem:[#allocation124_spill] sm:$0xff] %v12715_v57 }
 0x423   : > { %17664 = vst [vmem:[#allocation298_spill] sm:$0xff] %v12703_v60  ;;  %17665 = vst [vmem:[#allocation299_spill] sm:$0xff] %v12705_v59  ;;  %2652 = vperm.xlu1 %9691, %v12697_v31   ;;  %2691 = vperm.xlu0 %9692, %v12701_v37   ;;  %v17672_v59 = vld [vmem:[#allocation108_spill] sm:$0xff]  ;;  %v17674_v37 = vld [vmem:[#allocation127_spill] sm:$0xff] }
 0x424   : > { %v12725_v31 = vadd.f32 %v12613_v16, %v17672_v59  ;;  %v12729_v35 = vadd.f32 %v12613_v16, %v17674_v37 }
 0x426   : > { %v12717_v56 = vpop.permute.xlu1 %2466  ;;  %v12719_v38 = vpop.permute.xlu0 %2505  ;;  %17673 = vst [vmem:[#allocation108_spill] sm:$0xff] %v12725_v31  ;;  %17675 = vst [vmem:[#allocation127_spill] sm:$0xff] %v12729_v35 }
 0x427   : > { %17670 = vst [vmem:[#allocation300_spill] sm:$0xff] %v12717_v56  ;;  %17671 = vst [vmem:[#allocation301_spill] sm:$0xff] %v12719_v38  ;;  %2658 = vperm.xlu1 %9691, %v12711_v39   ;;  %2697 = vperm.xlu0 %9692, %v12715_v57   ;;  %v17678_v38 = vld [vmem:[#allocation110_spill] sm:$0xff]  ;;  %v17680_v57 = vld [vmem:[#allocation129_spill] sm:$0xff] }
 0x428   : > { %v12739_v39 = vadd.f32 %v12613_v16, %v17678_v38  ;;  %v12743_v59 = vadd.f32 %v12613_v16, %v17680_v57 }
 0x42a   : > { %v12731_v60 = vpop.permute.xlu1 %2472  ;;  %v12733_v28 = vpop.permute.xlu0 %2511  ;;  %17679 = vst [vmem:[#allocation110_spill] sm:$0xff] %v12739_v39  ;;  %17681 = vst [vmem:[#allocation129_spill] sm:$0xff] %v12743_v59 }
 0x42b   : > { %17676 = vst [vmem:[#allocation302_spill] sm:$0xff] %v12731_v60  ;;  %17677 = vst [vmem:[#allocation303_spill] sm:$0xff] %v12733_v28  ;;  %2664 = vperm.xlu1 %9691, %v12725_v31   ;;  %2703 = vperm.xlu0 %9692, %v12729_v35   ;;  %v17684_v28 = vld [vmem:[#allocation111_spill] sm:$0xff]  ;;  %v17686_v35 = vld [vmem:[#allocation132_spill] sm:$0xff] }
 0x42c   : > { %v12753_v31 = vadd.f32 %v12613_v16, %v17684_v28  ;;  %v12757_v38 = vadd.f32 %v12613_v16, %v17686_v35 }
 0x42e   : > { %v12745_v26 = vpop.permute.xlu1 %2478  ;;  %v12747_v37 = vpop.permute.xlu0 %2517  ;;  %17685 = vst [vmem:[#allocation111_spill] sm:$0xff] %v12753_v31  ;;  %17687 = vst [vmem:[#allocation132_spill] sm:$0xff] %v12757_v38 }
 0x42f   : > { %17682 = vst [vmem:[#allocation304_spill] sm:$0xff] %v12745_v26  ;;  %17683 = vst [vmem:[#allocation305_spill] sm:$0xff] %v12747_v37  ;;  %2670 = vperm.xlu1 %9691, %v12739_v39   ;;  %2709 = vperm.xlu0 %9692, %v12743_v59   ;;  %v17690_v37 = vld [vmem:[#allocation113_spill] sm:$0xff]  ;;  %v17692_v59 = vld [vmem:[#allocation134_spill] sm:$0xff] }
 0x430   : > { %v12767_v39 = vadd.f32 %v12613_v16, %v17690_v37  ;;  %v12771_v28 = vadd.f32 %v12613_v16, %v17692_v59 }
 0x432   : > { %v12759_v60 = vpop.permute.xlu1 %2484  ;;  %v12761_v57 = vpop.permute.xlu0 %2523  ;;  %17691 = vst [vmem:[#allocation113_spill] sm:$0xff] %v12767_v39  ;;  %17693 = vst [vmem:[#allocation134_spill] sm:$0xff] %v12771_v28 }
 0x433   : > { %17688 = vst [vmem:[#allocation306_spill] sm:$0xff] %v12759_v60  ;;  %17689 = vst [vmem:[#allocation307_spill] sm:$0xff] %v12761_v57  ;;  %2676 = vperm.xlu1 %9691, %v12753_v31   ;;  %2715 = vperm.xlu0 %9692, %v12757_v38   ;;  %v17696_v57 = vld [vmem:[#allocation115_spill] sm:$0xff]  ;;  %v17698_v38 = vld [vmem:[#allocation137_spill] sm:$0xff] }
 0x434   : > { %v12781_v31 = vadd.f32 %v12613_v16, %v17696_v57  ;;  %v12785_v37 = vadd.f32 %v12613_v16, %v17698_v38 }
 0x436   : > { %v12773_v26 = vpop.permute.xlu1 %2490  ;;  %v12775_v35 = vpop.permute.xlu0 %2529  ;;  %17697 = vst [vmem:[#allocation115_spill] sm:$0xff] %v12781_v31  ;;  %17699 = vst [vmem:[#allocation137_spill] sm:$0xff] %v12785_v37 }
 0x437   : > { %17694 = vst [vmem:[#allocation308_spill] sm:$0xff] %v12773_v26  ;;  %17695 = vst [vmem:[#allocation309_spill] sm:$0xff] %v12775_v35  ;;  %2682 = vperm.xlu1 %9691, %v12767_v39   ;;  %2721 = vperm.xlu0 %9692, %v12771_v28   ;;  %v17702_v35 = vld [vmem:[#allocation116_spill] sm:$0xff]  ;;  %v17704_v28 = vld [vmem:[#allocation139_spill] sm:$0xff] }
 0x438   : > { %v12795_v39 = vadd.f32 %v12613_v16, %v17702_v35  ;;  %v12799_v57 = vadd.f32 %v12613_v16, %v17704_v28 }
 0x43a   : > { %v12787_v60 = vpop.permute.xlu1 %2496  ;;  %v12789_v59 = vpop.permute.xlu0 %2535  ;;  %17703 = vst [vmem:[#allocation116_spill] sm:$0xff] %v12795_v39  ;;  %17705 = vst [vmem:[#allocation139_spill] sm:$0xff] %v12799_v57 }
 0x43b   : > { %17700 = vst [vmem:[#allocation310_spill] sm:$0xff] %v12787_v60  ;;  %17701 = vst [vmem:[#allocation311_spill] sm:$0xff] %v12789_v59  ;;  %2688 = vperm.xlu1 %9691, %v12781_v31   ;;  %2727 = vperm.xlu0 %9692, %v12785_v37   ;;  %v17708_v59 = vld [vmem:[#allocation118_spill] sm:$0xff] }
 0x43c   : > { %v12809_v31 = vadd.f32 %v12613_v16, %v17708_v59  ;;  %v17710_v37 = vld [vmem:[#allocation142_spill] sm:$0xff]  ;;  %v17716_v59 = vld [vmem:[#allocation144_spill] sm:$0xff] }
 0x43d   : > { %v12813_v35 = vadd.f32 %v12613_v16, %v17710_v37 }
 0x43e   : > { %v12801_v26 = vpop.permute.xlu1 %2502  ;;  %v12803_v38 = vpop.permute.xlu0 %2541  ;;  %17709 = vst [vmem:[#allocation118_spill] sm:$0xff] %v12809_v31 }
 0x43f   : > { %17706 = vst [vmem:[#allocation312_spill] sm:$0xff] %v12801_v26  ;;  %17707 = vst [vmem:[#allocation313_spill] sm:$0xff] %v12803_v38  ;;  %2694 = vperm.xlu1 %9691, %v12795_v39   ;;  %2733 = vperm.xlu0 %9692, %v12799_v57   ;;  %v17714_v38 = vld [vmem:[#allocation120_spill] sm:$0xff]  ;;  %v17029_v57 = vsub.s32 5, %v11817_v52  ;;  %v12828_v26 = vadd.f32 %v12613_v16, %v17716_v59  ;;  %v12847_v59 = vadd.f32 %v12613_v16, %v11687_v24 }
 0x440   : > { %17711 = vst [vmem:[#allocation142_spill] sm:$0xff] %v12813_v35  ;;  %v12823_v39 = vadd.f32 %v12613_v16, %v17714_v38 }
 0x441   : > { %17717 = vst [vmem:[#allocation144_spill] sm:$0xff] %v12828_v26  ;;  %v12843_v38 = vrot.slane %v11824_v34, %v17029_v57  ;;  %17721 = vst [vmem:[#allocation317_spill] sm:$0xff] %v12847_v59 }
 0x442   : > { %v12815_v60 = vpop.permute.xlu1 %2508  ;;  %v12817_v28 = vpop.permute.xlu0 %2547  ;;  %17715 = vst [vmem:[#allocation120_spill] sm:$0xff] %v12823_v39 }
 0x443   : > { %17712 = vst [vmem:[#allocation314_spill] sm:$0xff] %v12815_v60  ;;  %17713 = vst [vmem:[#allocation315_spill] sm:$0xff] %v12817_v28  ;;  %2700 = vperm.xlu1 %9691, %v12809_v31   ;;  %2739 = vperm.xlu0 %9692, %v12813_v35   ;;  %v17719_v31 = vld [vmem:[#allocation121_spill] sm:$0xff]  ;;  %v12861_v57 = vadd.f32 %v12843_v38, %v11692_v62  ;;  %v17730_v60 = vld [vmem:[#allocation126_spill] sm:$0xff] }
 0x444   : > { %v12838_v35 = vadd.f32 %v12613_v16, %v17719_v31 }
 0x445   : > { %17725 = vst [vmem:[#allocation319_spill] sm:$0xff] %v12861_v57 }
 0x446   : > { %v12830_v37 = vpop.permute.xlu1 %2514  ;;  %v12832_v56 = vpop.permute.xlu0 %2553  ;;  %17720 = vst [vmem:[#allocation121_spill] sm:$0xff] %v12838_v35 }
 0x447   : > { %17718 = vst [vmem:[#allocation316_spill] sm:$0xff] %v12832_v56  ;;  %2706 = vperm.xlu1 %9691, %v12823_v39   ;;  %2745 = vperm.xlu0 %9692, %v12828_v26   ;;  %v17723_v26 = vld [vmem:[#allocation123_spill] sm:$0xff] }
 0x448   : > { %v12857_v31 = vadd.f32 %v12613_v16, %v17723_v26  ;;  %v12875_v26 = vadd.f32 %v12843_v38, %v11698_v27 }
 0x44a   : > { %v12849_v28 = vpop.permute.xlu1 %2520  ;;  %v12851_v56 = vpop.permute.xlu0 %2559  ;;  %17724 = vst [vmem:[#allocation123_spill] sm:$0xff] %v12857_v31  ;;  %17728 = vst [vmem:[#allocation320_spill] sm:$0xff] %v12875_v26 }
 0x44b   : > { %17722 = vst [vmem:[#allocation318_spill] sm:$0xff] %v12851_v56  ;;  %2712 = vperm.xlu1 %9691, %v12838_v35   ;;  %2751 = vperm.xlu0 %9692, %v12847_v59   ;;  %v17726_v56 = vld [vmem:[#allocation125_spill] sm:$0xff] }
 0x44c   : > { %v12871_v35 = vadd.f32 %v12613_v16, %v17726_v56  ;;  %v12889_v56 = vadd.f32 %v12843_v38, %v11702_v48 }
 0x44e   : > { %v12863_v39 = vpop.permute.xlu1 %2526  ;;  %v12865_v24 = vpop.permute.xlu0 %2565  ;;  %17727 = vst [vmem:[#allocation125_spill] sm:$0xff] %v12871_v35  ;;  %17732 = vst [vmem:[#allocation322_spill] sm:$0xff] %v12889_v56 }
 0x44f   : > { %2718 = vperm.xlu1 %9691, %v12857_v31   ;;  %2757 = vperm.xlu0 %9692, %v12861_v57   ;;  %v12885_v31 = vadd.f32 %v12613_v16, %v17730_v60  ;;  %v12903_v60 = vadd.f32 %v12843_v38, %v11708_v5 }
 0x451   : > { %17731 = vst [vmem:[#allocation126_spill] sm:$0xff] %v12885_v31  ;;  %17737 = vst [vmem:[#allocation325_spill] sm:$0xff] %v12903_v60 }
 0x452   : > { %v12877_v59 = vpop.permute.xlu1 %2532  ;;  %v12879_v62 = vpop.permute.xlu0 %2571 }
 0x453   : > { %17729 = vst [vmem:[#allocation321_spill] sm:$0xff] %v12877_v59  ;;  %2724 = vperm.xlu1 %9691, %v12871_v35   ;;  %2763 = vperm.xlu0 %9692, %v12875_v26   ;;  %v17735_v59 = vld [vmem:[#allocation128_spill] sm:$0xff] }
 0x454   : > { %v12899_v35 = vadd.f32 %v12613_v16, %v17735_v59  ;;  %v12917_v59 = vadd.f32 %v12843_v38, %v11712_v3 }
 0x456   : > { %v12891_v57 = vpop.permute.xlu1 %2538  ;;  %v12893_v27 = vpop.permute.xlu0 %2577  ;;  %17736 = vst [vmem:[#allocation128_spill] sm:$0xff] %v12899_v35  ;;  %17742 = vst [vmem:[#allocation328_spill] sm:$0xff] %v12917_v59 }
 0x457   : > { %17733 = vst [vmem:[#allocation323_spill] sm:$0xff] %v12891_v57  ;;  %17734 = vst [vmem:[#allocation324_spill] sm:$0xff] %v12893_v27  ;;  %2730 = vperm.xlu1 %9691, %v12885_v31   ;;  %2769 = vperm.xlu0 %9692, %v12889_v56   ;;  %v17740_v57 = vld [vmem:[#allocation130_spill] sm:$0xff] }
 0x458   : > { %v12913_v31 = vadd.f32 %v12613_v16, %v17740_v57  ;;  %v12931_v57 = vadd.f32 %v12843_v38, %v11718_v46 }
 0x45a   : > { %v12905_v26 = vpop.permute.xlu1 %2544  ;;  %v12907_v48 = vpop.permute.xlu0 %2583  ;;  %17741 = vst [vmem:[#allocation130_spill] sm:$0xff] %v12913_v31  ;;  %17747 = vst [vmem:[#allocation331_spill] sm:$0xff] %v12931_v57 }
 0x45b   : > { %17738 = vst [vmem:[#allocation326_spill] sm:$0xff] %v12905_v26  ;;  %17739 = vst [vmem:[#allocation327_spill] sm:$0xff] %v12907_v48  ;;  %2736 = vperm.xlu1 %9691, %v12899_v35   ;;  %2775 = vperm.xlu0 %9692, %v12903_v60   ;;  %v17745_v26 = vld [vmem:[#allocation131_spill] sm:$0xff] }
 0x45c   : > { %v12927_v35 = vadd.f32 %v12613_v16, %v17745_v26  ;;  %v12945_v16 = vadd.f32 %v12843_v38, %v11722_v32 }
 0x45e   : > { %v12919_v56 = vpop.permute.xlu1 %2550  ;;  %v12921_v5 = vpop.permute.xlu0 %2589  ;;  %17746 = vst [vmem:[#allocation131_spill] sm:$0xff] %v12927_v35  ;;  %17752 = vst [vmem:[#allocation334_spill] sm:$0xff] %v12945_v16 }
 0x45f   : > { %17743 = vst [vmem:[#allocation329_spill] sm:$0xff] %v12919_v56  ;;  %17744 = vst [vmem:[#allocation330_spill] sm:$0xff] %v12921_v5  ;;  %2742 = vperm.xlu1 %9691, %v12913_v31   ;;  %2781 = vperm.xlu0 %9692, %v12917_v59   ;;  %v17750_v56 = vld [vmem:[#allocation133_spill] sm:$0xff]  ;;  %v17754_v59 = vld [vmem:[#allocation135_spill] sm:$0xff] }
 0x460   : > { %v12941_v31 = vadd.f32 %v12843_v38, %v17750_v56  ;;  %v12959_v56 = vadd.f32 %v12843_v38, %v11728_v7  ;;  %v17768_v5 = vld [vmem:[#allocation140_spill] sm:$0xff] }
 0x462   : > { %v12933_v60 = vpop.permute.xlu1 %2556  ;;  %v12935_v3 = vpop.permute.xlu0 %2595  ;;  %17751 = vst [vmem:[#allocation133_spill] sm:$0xff] %v12941_v31  ;;  %17756 = vst [vmem:[#allocation336_spill] sm:$0xff] %v12959_v56 }
 0x463   : > { %17748 = vst [vmem:[#allocation332_spill] sm:$0xff] %v12933_v60  ;;  %17749 = vst [vmem:[#allocation333_spill] sm:$0xff] %v12935_v3  ;;  %2748 = vperm.xlu1 %9691, %v12927_v35   ;;  %2787 = vperm.xlu0 %9692, %v12931_v57   ;;  %v12955_v35 = vadd.f32 %v12843_v38, %v17754_v59  ;;  %v17758_v60 = vld [vmem:[#allocation136_spill] sm:$0xff] }
 0x465   : > { %17755 = vst [vmem:[#allocation135_spill] sm:$0xff] %v12955_v35 }
 0x466   : > { %v12947_v26 = vpop.permute.xlu1 %2562  ;;  %v12949_v46 = vpop.permute.xlu0 %2601 }
 0x467   : > { %17753 = vst [vmem:[#allocation335_spill] sm:$0xff] %v12949_v46  ;;  %2754 = vperm.xlu1 %9691, %v12941_v31   ;;  %2793 = vperm.xlu0 %9692, %v12945_v16   ;;  %v12969_v31 = vadd.f32 %v12843_v38, %v17758_v60  ;;  %v17760_v16 = vld [vmem:[#allocation160_spill] sm:$0xff] }
 0x468   : > { %v12973_v59 = vadd.f32 %v12843_v38, %v17760_v16 }
 0x469   : > { %17759 = vst [vmem:[#allocation136_spill] sm:$0xff] %v12969_v31 }
 0x46a   : > { %v12961_v57 = vpop.permute.xlu1 %2568  ;;  %v12963_v32 = vpop.permute.xlu0 %2607  ;;  %17761 = vst [vmem:[#allocation160_spill] sm:$0xff] %v12973_v59 }
 0x46b   : > { %17757 = vst [vmem:[#allocation337_spill] sm:$0xff] %v12963_v32  ;;  %2760 = vperm.xlu1 %9691, %v12955_v35   ;;  %2799 = vperm.xlu0 %9692, %v12959_v56   ;;  %v17763_v32 = vld [vmem:[#allocation138_spill] sm:$0xff]  ;;  %v17765_v56 = vld [vmem:[#allocation163_spill] sm:$0xff] }
 0x46c   : > { %v12983_v35 = vadd.f32 %v12843_v38, %v17763_v32  ;;  %v12987_v60 = vadd.f32 %v12843_v38, %v17765_v56 }
 0x46e   : > { %v12975_v46 = vpop.permute.xlu1 %2574  ;;  %v12977_v7 = vpop.permute.xlu0 %2613  ;;  %17764 = vst [vmem:[#allocation138_spill] sm:$0xff] %v12983_v35  ;;  %17766 = vst [vmem:[#allocation163_spill] sm:$0xff] %v12987_v60 }
 0x46f   : > { %17762 = vst [vmem:[#allocation338_spill] sm:$0xff] %v12977_v7  ;;  %2766 = vperm.xlu1 %9691, %v12969_v31   ;;  %2805 = vperm.xlu0 %9692, %v12973_v59   ;;  %v12997_v31 = vadd.f32 %v12843_v38, %v17768_v5  ;;  %v17770_v59 = vld [vmem:[#allocation165_spill] sm:$0xff] }
 0x470   : > { %v13001_v32 = vadd.f32 %v12843_v38, %v17770_v59 }
 0x471   : > { %17769 = vst [vmem:[#allocation140_spill] sm:$0xff] %v12997_v31 }
 0x472   : > { %v12989_v3 = vpop.permute.xlu1 %2580  ;;  %v12991_v16 = vpop.permute.xlu0 %2619  ;;  %17771 = vst [vmem:[#allocation165_spill] sm:$0xff] %v13001_v32 }
 0x473   : > { %17767 = vst [vmem:[#allocation339_spill] sm:$0xff] %v12991_v16  ;;  %2772 = vperm.xlu1 %9691, %v12983_v35   ;;  %2811 = vperm.xlu0 %9692, %v12987_v60   ;;  %v17774_v16 = vld [vmem:[#allocation141_spill] sm:$0xff]  ;;  %v17776_v60 = vld [vmem:[#allocation168_spill] sm:$0xff] }
 0x474   : > { %v13011_v35 = vadd.f32 %v12843_v38, %v17774_v16  ;;  %v13015_v5 = vadd.f32 %v12843_v38, %v17776_v60 }
 0x476   : > { %v13003_v7 = vpop.permute.xlu1 %2586  ;;  %v13005_v56 = vpop.permute.xlu0 %2625  ;;  %17775 = vst [vmem:[#allocation141_spill] sm:$0xff] %v13011_v35  ;;  %17777 = vst [vmem:[#allocation168_spill] sm:$0xff] %v13015_v5 }
 0x477   : > { %17772 = vst [vmem:[#allocation340_spill] sm:$0xff] %v13003_v7  ;;  %17773 = vst [vmem:[#allocation341_spill] sm:$0xff] %v13005_v56  ;;  %2778 = vperm.xlu1 %9691, %v12997_v31   ;;  %2817 = vperm.xlu0 %9692, %v13001_v32   ;;  %v17780_v56 = vld [vmem:[#allocation143_spill] sm:$0xff]  ;;  %v17782_v32 = vld [vmem:[#allocation170_spill] sm:$0xff] }
 0x478   : > { %v13025_v31 = vadd.f32 %v12843_v38, %v17780_v56  ;;  %v13029_v16 = vadd.f32 %v12843_v38, %v17782_v32 }
 0x47a   : > { %v13017_v48 = vpop.permute.xlu1 %2592  ;;  %v13019_v59 = vpop.permute.xlu0 %2631  ;;  %17781 = vst [vmem:[#allocation143_spill] sm:$0xff] %v13025_v31  ;;  %17783 = vst [vmem:[#allocation170_spill] sm:$0xff] %v13029_v16 }
 0x47b   : > { %17778 = vst [vmem:[#allocation342_spill] sm:$0xff] %v13017_v48  ;;  %17779 = vst [vmem:[#allocation343_spill] sm:$0xff] %v13019_v59  ;;  %2784 = vperm.xlu1 %9691, %v13011_v35   ;;  %2823 = vperm.xlu0 %9692, %v13015_v5   ;;  %v17786_v59 = vld [vmem:[#allocation145_spill] sm:$0xff] }
 0x47c   : > { %v13039_v35 = vadd.f32 %v12843_v38, %v17786_v59  ;;  %v17788_v5 = vld [vmem:[#allocation173_spill] sm:$0xff]  ;;  %v17794_v59 = vld [vmem:[#allocation175_spill] sm:$0xff] }
 0x47d   : > { %v13043_v56 = vadd.f32 %v12843_v38, %v17788_v5 }
 0x47e   : > { %v13031_v7 = vpop.permute.xlu1 %2598  ;;  %v13033_v60 = vpop.permute.xlu0 %2637  ;;  %17787 = vst [vmem:[#allocation145_spill] sm:$0xff] %v13039_v35 }
 0x47f   : > { %17784 = vst [vmem:[#allocation344_spill] sm:$0xff] %v13031_v7  ;;  %17785 = vst [vmem:[#allocation345_spill] sm:$0xff] %v13033_v60  ;;  %2790 = vperm.xlu1 %9691, %v13025_v31   ;;  %2829 = vperm.xlu0 %9692, %v13029_v16   ;;  %v17792_v60 = vld [vmem:[#allocation146_spill] sm:$0xff]  ;;  %v17065_v16 = vsub.s32 6, %v11817_v52  ;;  %v13058_v7 = vadd.f32 %v12843_v38, %v17794_v59 }
 0x480   : > { %17789 = vst [vmem:[#allocation173_spill] sm:$0xff] %v13043_v56  ;;  %v13053_v31 = vadd.f32 %v12843_v38, %v17792_v60 }
 0x481   : > { %17795 = vst [vmem:[#allocation175_spill] sm:$0xff] %v13058_v7  ;;  %v13073_v60 = vrot.slane %v11824_v34, %v17065_v16 }
 0x482   : > { %v13045_v48 = vpop.permute.xlu1 %2604  ;;  %v13047_v32 = vpop.permute.xlu0 %2643  ;;  %17793 = vst [vmem:[#allocation146_spill] sm:$0xff] %v13053_v31 }
 0x483   : > { %17790 = vst [vmem:[#allocation346_spill] sm:$0xff] %v13045_v48  ;;  %17791 = vst [vmem:[#allocation347_spill] sm:$0xff] %v13047_v32  ;;  %2796 = vperm.xlu1 %9691, %v13039_v35   ;;  %2835 = vperm.xlu0 %9692, %v13043_v56   ;;  %v17798_v35 = vld [vmem:[#allocation147_spill] sm:$0xff]  ;;  %v17800_v32 = vld [vmem:[#allocation178_spill] sm:$0xff] }
 0x484   : > { %v13068_v56 = vadd.f32 %v12843_v38, %v17798_v35  ;;  %v13077_v59 = vadd.f32 %v12843_v38, %v17800_v32 }
 0x486   : > { %v13060_v5 = vpop.permute.xlu1 %2610  ;;  %v13062_v27 = vpop.permute.xlu0 %2649  ;;  %17799 = vst [vmem:[#allocation147_spill] sm:$0xff] %v13068_v56  ;;  %17801 = vst [vmem:[#allocation178_spill] sm:$0xff] %v13077_v59 }
 0x487   : > { %17796 = vst [vmem:[#allocation348_spill] sm:$0xff] %v13060_v5  ;;  %17797 = vst [vmem:[#allocation349_spill] sm:$0xff] %v13062_v27  ;;  %2802 = vperm.xlu1 %9691, %v13053_v31   ;;  %2841 = vperm.xlu0 %9692, %v13058_v7   ;;  %v17804_v7 = vld [vmem:[#allocation148_spill] sm:$0xff] }
 0x488   : > { %v13087_v35 = vadd.f32 %v12843_v38, %v17804_v7  ;;  %v17806_v31 = vld [vmem:[#allocation180_spill] sm:$0xff] }
 0x489   : > { %v13091_v16 = vadd.f32 %v13073_v60, %v17806_v31 }
 0x48a   : > { %v13079_v48 = vpop.permute.xlu1 %2616  ;;  %v13081_v27 = vpop.permute.xlu0 %2655  ;;  %17805 = vst [vmem:[#allocation148_spill] sm:$0xff] %v13087_v35 }
 0x48b   : > { %17802 = vst [vmem:[#allocation350_spill] sm:$0xff] %v13079_v48  ;;  %17803 = vst [vmem:[#allocation351_spill] sm:$0xff] %v13081_v27  ;;  %2808 = vperm.xlu1 %9691, %v13068_v56   ;;  %2847 = vperm.xlu0 %9692, %v13077_v59   ;;  %v17810_v27 = vld [vmem:[#allocation149_spill] sm:$0xff]  ;;  %v17812_v59 = vld [vmem:[#allocation183_spill] sm:$0xff] }
 0x48c   : > { %17807 = vst [vmem:[#allocation180_spill] sm:$0xff] %v13091_v16  ;;  %v13101_v56 = vadd.f32 %v12843_v38, %v17810_v27  ;;  %v13105_v7 = vadd.f32 %v13073_v60, %v17812_v59 }
 0x48e   : > { %v13093_v5 = vpop.permute.xlu1 %2622  ;;  %v13095_v32 = vpop.permute.xlu0 %2661  ;;  %17811 = vst [vmem:[#allocation149_spill] sm:$0xff] %v13101_v56  ;;  %17813 = vst [vmem:[#allocation183_spill] sm:$0xff] %v13105_v7 }
 0x48f   : > { %17808 = vst [vmem:[#allocation352_spill] sm:$0xff] %v13093_v5  ;;  %17809 = vst [vmem:[#allocation353_spill] sm:$0xff] %v13095_v32  ;;  %2814 = vperm.xlu1 %9691, %v13087_v35   ;;  %2853 = vperm.xlu0 %9692, %v13091_v16   ;;  %v17816_v32 = vld [vmem:[#allocation150_spill] sm:$0xff]  ;;  %v17818_v16 = vld [vmem:[#allocation185_spill] sm:$0xff] }
 0x490   : > { %v13115_v35 = vadd.f32 %v12843_v38, %v17816_v32  ;;  %v13119_v27 = vadd.f32 %v13073_v60, %v17818_v16 }
 0x492   : > { %v13107_v48 = vpop.permute.xlu1 %2628  ;;  %v13109_v31 = vpop.permute.xlu0 %2667  ;;  %17817 = vst [vmem:[#allocation150_spill] sm:$0xff] %v13115_v35  ;;  %17819 = vst [vmem:[#allocation185_spill] sm:$0xff] %v13119_v27 }
 0x493   : > { %17814 = vst [vmem:[#allocation354_spill] sm:$0xff] %v13107_v48  ;;  %17815 = vst [vmem:[#allocation355_spill] sm:$0xff] %v13109_v31  ;;  %2820 = vperm.xlu1 %9691, %v13101_v56   ;;  %2859 = vperm.xlu0 %9692, %v13105_v7   ;;  %v17822_v31 = vld [vmem:[#allocation151_spill] sm:$0xff]  ;;  %v17824_v7 = vld [vmem:[#allocation188_spill] sm:$0xff] }
 0x494   : > { %v13129_v56 = vadd.f32 %v12843_v38, %v17822_v31  ;;  %v13133_v32 = vadd.f32 %v13073_v60, %v17824_v7 }
 0x496   : > { %v13121_v5 = vpop.permute.xlu1 %2634  ;;  %v13123_v59 = vpop.permute.xlu0 %2673  ;;  %17823 = vst [vmem:[#allocation151_spill] sm:$0xff] %v13129_v56  ;;  %17825 = vst [vmem:[#allocation188_spill] sm:$0xff] %v13133_v32 }
 0x497   : > { %17820 = vst [vmem:[#allocation356_spill] sm:$0xff] %v13121_v5  ;;  %17821 = vst [vmem:[#allocation357_spill] sm:$0xff] %v13123_v59  ;;  %2826 = vperm.xlu1 %9691, %v13115_v35   ;;  %2865 = vperm.xlu0 %9692, %v13119_v27   ;;  %v17828_v59 = vld [vmem:[#allocation152_spill] sm:$0xff]  ;;  %v17830_v27 = vld [vmem:[#allocation190_spill] sm:$0xff] }
 0x498   : > { %v13143_v35 = vadd.f32 %v12843_v38, %v17828_v59  ;;  %v13147_v31 = vadd.f32 %v13073_v60, %v17830_v27 }
 0x49a   : > { %v13135_v48 = vpop.permute.xlu1 %2640  ;;  %v13137_v16 = vpop.permute.xlu0 %2679  ;;  %17829 = vst [vmem:[#allocation152_spill] sm:$0xff] %v13143_v35  ;;  %17831 = vst [vmem:[#allocation190_spill] sm:$0xff] %v13147_v31 }
 0x49b   : > { %17826 = vst [vmem:[#allocation358_spill] sm:$0xff] %v13135_v48  ;;  %17827 = vst [vmem:[#allocation359_spill] sm:$0xff] %v13137_v16  ;;  %2832 = vperm.xlu1 %9691, %v13129_v56   ;;  %2871 = vperm.xlu0 %9692, %v13133_v32   ;;  %v17834_v16 = vld [vmem:[#allocation153_spill] sm:$0xff] }
 0x49c   : > { %v13157_v56 = vadd.f32 %v12843_v38, %v17834_v16  ;;  %v17836_v32 = vld [vmem:[#allocation193_spill] sm:$0xff] }
 0x49d   : > { %v13161_v59 = vadd.f32 %v13073_v60, %v17836_v32 }
 0x49e   : > { %v13149_v5 = vpop.permute.xlu1 %2646  ;;  %v13151_v7 = vpop.permute.xlu0 %2685  ;;  %17835 = vst [vmem:[#allocation153_spill] sm:$0xff] %v13157_v56 }
 0x49f   : > { %17832 = vst [vmem:[#allocation360_spill] sm:$0xff] %v13149_v5  ;;  %17833 = vst [vmem:[#allocation361_spill] sm:$0xff] %v13151_v7  ;;  %2838 = vperm.xlu1 %9691, %v13143_v35   ;;  %2877 = vperm.xlu0 %9692, %v13147_v31   ;;  %v17840_v5 = vld [vmem:[#allocation154_spill] sm:$0xff]  ;;  %v17842_v31 = vld [vmem:[#allocation195_spill] sm:$0xff] }
 0x4a0   : > { %17837 = vst [vmem:[#allocation193_spill] sm:$0xff] %v13161_v59  ;;  %v13171_v35 = vadd.f32 %v13073_v60, %v17840_v5  ;;  %v13175_v38 = vadd.f32 %v13073_v60, %v17842_v31  ;;  %v13189_v5 = vadd.f32 %v13073_v60, %v11808_v53 }
 0x4a2   : > { %v13163_v48 = vpop.permute.xlu1 %2652  ;;  %v13165_v27 = vpop.permute.xlu0 %2691  ;;  %17841 = vst [vmem:[#allocation154_spill] sm:$0xff] %v13171_v35  ;;  %17843 = vst [vmem:[#allocation195_spill] sm:$0xff] %v13175_v38 }
 0x4a3   : > { %17838 = vst [vmem:[#allocation362_spill] sm:$0xff] %v13163_v48  ;;  %17839 = vst [vmem:[#allocation363_spill] sm:$0xff] %v13165_v27  ;;  %2844 = vperm.xlu1 %9691, %v13157_v56   ;;  %2883 = vperm.xlu0 %9692, %v13161_v59   ;;  %v17845_v48 = vld [vmem:[#allocation155_spill] sm:$0xff] }
 0x4a4   : > { %v13185_v56 = vadd.f32 %v13073_v60, %v17845_v48  ;;  %17847 = vst [vmem:[#allocation365_spill] sm:$0xff] %v13189_v5  ;;  %v13203_v48 = vadd.f32 %v13073_v60, %v11812_v1 }
 0x4a6   : > { %v13177_v16 = vpop.permute.xlu1 %2658  ;;  %v13179_v32 = vpop.permute.xlu0 %2697  ;;  %17846 = vst [vmem:[#allocation155_spill] sm:$0xff] %v13185_v56  ;;  %17851 = vst [vmem:[#allocation367_spill] sm:$0xff] %v13203_v48 }
 0x4a7   : > { %17844 = vst [vmem:[#allocation364_spill] sm:$0xff] %v13179_v32  ;;  %2850 = vperm.xlu1 %9691, %v13171_v35   ;;  %2889 = vperm.xlu0 %9692, %v13175_v38   ;;  %v17849_v32 = vld [vmem:[#allocation156_spill] sm:$0xff] }
 0x4a8   : > { %v13199_v35 = vadd.f32 %v13073_v60, %v17849_v32  ;;  %v13217_v32 = vadd.f32 %v13073_v60, %v11821_v10 }
 0x4aa   : > { %v13191_v59 = vpop.permute.xlu1 %2664  ;;  %v13193_v31 = vpop.permute.xlu0 %2703  ;;  %17850 = vst [vmem:[#allocation156_spill] sm:$0xff] %v13199_v35  ;;  %17855 = vst [vmem:[#allocation369_spill] sm:$0xff] %v13217_v32 }
 0x4ab   : > { %17848 = vst [vmem:[#allocation366_spill] sm:$0xff] %v13193_v31  ;;  %2856 = vperm.xlu1 %9691, %v13185_v56   ;;  %2895 = vperm.xlu0 %9692, %v13189_v5   ;;  %v17853_v31 = vld [vmem:[#allocation157_spill] sm:$0xff] }
 0x4ac   : > { %v13213_v56 = vadd.f32 %v13073_v60, %v17853_v31 }
 0x4ae   : > { %v13205_v38 = vpop.permute.xlu1 %2670  ;;  %v13207_v53 = vpop.permute.xlu0 %2709  ;;  %17854 = vst [vmem:[#allocation157_spill] sm:$0xff] %v13213_v56 }
 0x4af   : > { %17852 = vst [vmem:[#allocation368_spill] sm:$0xff] %v13207_v53  ;;  %2862 = vperm.xlu1 %9691, %v13199_v35   ;;  %2901 = vperm.xlu0 %9692, %v13203_v48   ;;  %v17857_v53 = vld [vmem:[#allocation158_spill] sm:$0xff] }
 0x4b0   : > { %v13227_v35 = vadd.f32 %v13073_v60, %v17857_v53  ;;  %v17859_v48 = vld [vmem:[#allocation202_spill] sm:$0xff]  ;;  %v13245_v53 = vadd.f32 %v13073_v60, %v11851_v29 }
 0x4b1   : > { %v13231_v31 = vadd.f32 %v13073_v60, %v17859_v48 }
 0x4b2   : > { %v13219_v5 = vpop.permute.xlu1 %2676  ;;  %v13221_v1 = vpop.permute.xlu0 %2715  ;;  %17858 = vst [vmem:[#allocation158_spill] sm:$0xff] %v13227_v35  ;;  %17864 = vst [vmem:[#allocation372_spill] sm:$0xff] %v13245_v53 }
 0x4b3   : > { %17856 = vst [vmem:[#allocation370_spill] sm:$0xff] %v13221_v1  ;;  %2868 = vperm.xlu1 %9691, %v13213_v56   ;;  %2907 = vperm.xlu0 %9692, %v13217_v32   ;;  %17860 = vst [vmem:[#allocation202_spill] sm:$0xff] %v13231_v31  ;;  %v17862_v1 = vld [vmem:[#allocation159_spill] sm:$0xff] }
 0x4b4   : > { %v13241_v56 = vadd.f32 %v13073_v60, %v17862_v1  ;;  %v13259_v1 = vadd.f32 %v13073_v60, %v11865_v12 }
 0x4b6   : > { %v13233_v27 = vpop.permute.xlu1 %2682  ;;  %v13235_v10 = vpop.permute.xlu0 %2721  ;;  %17863 = vst [vmem:[#allocation159_spill] sm:$0xff] %v13241_v56  ;;  %17869 = vst [vmem:[#allocation375_spill] sm:$0xff] %v13259_v1 }
 0x4b7   : > { %17861 = vst [vmem:[#allocation371_spill] sm:$0xff] %v13235_v10  ;;  %2874 = vperm.xlu1 %9691, %v13227_v35   ;;  %2913 = vperm.xlu0 %9692, %v13231_v31   ;;  %v17867_v10 = vld [vmem:[#allocation161_spill] sm:$0xff] }
 0x4b8   : > { %v13255_v35 = vadd.f32 %v13073_v60, %v17867_v10  ;;  %v13273_v10 = vadd.f32 %v13073_v60, %v11885_v9 }
 0x4ba   : > { %v13247_v32 = vpop.permute.xlu1 %2688  ;;  %v13249_v48 = vpop.permute.xlu0 %2727  ;;  %17868 = vst [vmem:[#allocation161_spill] sm:$0xff] %v13255_v35  ;;  %17874 = vst [vmem:[#allocation378_spill] sm:$0xff] %v13273_v10 }
 0x4bb   : > { %17865 = vst [vmem:[#allocation373_spill] sm:$0xff] %v13247_v32  ;;  %17866 = vst [vmem:[#allocation374_spill] sm:$0xff] %v13249_v48  ;;  %2880 = vperm.xlu1 %9691, %v13241_v56   ;;  %2919 = vperm.xlu0 %9692, %v13245_v53   ;;  %v17872_v48 = vld [vmem:[#allocation162_spill] sm:$0xff] }
 0x4bc   : > { %v13269_v56 = vadd.f32 %v13073_v60, %v17872_v48  ;;  %v13288_v48 = vadd.f32 %v13073_v60, %v11899_v23  ;;  %v13307_v23 = vadd.f32 %v13073_v60, %v11919_v19 }
 0x4be   : > { %v13261_v31 = vpop.permute.xlu1 %2694  ;;  %v13263_v29 = vpop.permute.xlu0 %2733  ;;  %17873 = vst [vmem:[#allocation162_spill] sm:$0xff] %v13269_v56  ;;  %17879 = vst [vmem:[#allocation381_spill] sm:$0xff] %v13288_v48 }
 0x4bf   : > { %17870 = vst [vmem:[#allocation376_spill] sm:$0xff] %v13261_v31  ;;  %17871 = vst [vmem:[#allocation377_spill] sm:$0xff] %v13263_v29  ;;  %2886 = vperm.xlu1 %9691, %v13255_v35   ;;  %2925 = vperm.xlu0 %9692, %v13259_v1   ;;  %v17877_v29 = vld [vmem:[#allocation164_spill] sm:$0xff]  ;;  %v17100_v1 = vsub.s32 7, %v11817_v52 }
 0x4c0   : > { %v13283_v35 = vadd.f32 %v13073_v60, %v17877_v29  ;;  %17884 = vst [vmem:[#allocation384_spill] sm:$0xff] %v13307_v23 }
 0x4c1   : > { %v13303_v29 = vrot.slane %v11824_v34, %v17100_v1 }
 0x4c2   : > { %v13275_v53 = vpop.permute.xlu1 %2700  ;;  %v13277_v12 = vpop.permute.xlu0 %2739  ;;  %17878 = vst [vmem:[#allocation164_spill] sm:$0xff] %v13283_v35 }
 0x4c3   : > { %17875 = vst [vmem:[#allocation379_spill] sm:$0xff] %v13275_v53  ;;  %17876 = vst [vmem:[#allocation380_spill] sm:$0xff] %v13277_v12  ;;  %2892 = vperm.xlu1 %9691, %v13269_v56   ;;  %2931 = vperm.xlu0 %9692, %v13273_v10   ;;  %v17882_v56 = vld [vmem:[#allocation166_spill] sm:$0xff]  ;;  %v13321_v34 = vadd.f32 %v13303_v29, %v11933_v33 }
 0x4c4   : > { %v13298_v10 = vadd.f32 %v13073_v60, %v17882_v56 }
 0x4c5   : > { %17889 = vst [vmem:[#allocation387_spill] sm:$0xff] %v13321_v34 }
 0x4c6   : > { %v13290_v9 = vpop.permute.xlu1 %2706  ;;  %v13292_v31 = vpop.permute.xlu0 %2745  ;;  %17883 = vst [vmem:[#allocation166_spill] sm:$0xff] %v13298_v10 }
 0x4c7   : > { %17880 = vst [vmem:[#allocation382_spill] sm:$0xff] %v13290_v9  ;;  %17881 = vst [vmem:[#allocation383_spill] sm:$0xff] %v13292_v31  ;;  %2898 = vperm.xlu1 %9691, %v13283_v35   ;;  %2937 = vperm.xlu0 %9692, %v13288_v48   ;;  %v17887_v48 = vld [vmem:[#allocation167_spill] sm:$0xff]  ;;  %v17891_v35 = vld [vmem:[#allocation169_spill] sm:$0xff] }
 0x4c8   : > { %v13317_v56 = vadd.f32 %v13073_v60, %v17887_v48  ;;  %v13335_v48 = vadd.f32 %v13303_v29, %v11953_v30 }
 0x4ca   : > { %v13309_v12 = vpop.permute.xlu1 %2712  ;;  %v13311_v31 = vpop.permute.xlu0 %2751  ;;  %17888 = vst [vmem:[#allocation167_spill] sm:$0xff] %v13317_v56  ;;  %17893 = vst [vmem:[#allocation389_spill] sm:$0xff] %v13335_v48 }
 0x4cb   : > { %17885 = vst [vmem:[#allocation385_spill] sm:$0xff] %v13309_v12  ;;  %17886 = vst [vmem:[#allocation386_spill] sm:$0xff] %v13311_v31  ;;  %2904 = vperm.xlu1 %9691, %v13298_v10   ;;  %2943 = vperm.xlu0 %9692, %v13307_v23   ;;  %v13331_v10 = vadd.f32 %v13073_v60, %v17891_v35  ;;  %v17895_v31 = vld [vmem:[#allocation171_spill] sm:$0xff]  ;;  %v13349_v35 = vadd.f32 %v13303_v29, %v11968_v50 }
 0x4cd   : > { %17892 = vst [vmem:[#allocation169_spill] sm:$0xff] %v13331_v10  ;;  %17897 = vst [vmem:[#allocation391_spill] sm:$0xff] %v13349_v35 }
 0x4ce   : > { %v13323_v1 = vpop.permute.xlu1 %2718  ;;  %v13325_v19 = vpop.permute.xlu0 %2757 }
 0x4cf   : > { %17890 = vst [vmem:[#allocation388_spill] sm:$0xff] %v13323_v1  ;;  %2910 = vperm.xlu1 %9691, %v13317_v56   ;;  %2949 = vperm.xlu0 %9692, %v13321_v34   ;;  %v13345_v56 = vadd.f32 %v13073_v60, %v17895_v31  ;;  %v13363_v31 = vadd.f32 %v13303_v29, %v11993_v54  ;;  %v17927_v1 = vld [vmem:[#allocation182_spill] sm:$0xff] }
 0x4d1   : > { %17896 = vst [vmem:[#allocation171_spill] sm:$0xff] %v13345_v56  ;;  %17902 = vst [vmem:[#allocation394_spill] sm:$0xff] %v13363_v31 }
 0x4d2   : > { %v13337_v23 = vpop.permute.xlu1 %2724  ;;  %v13339_v33 = vpop.permute.xlu0 %2763 }
 0x4d3   : > { %17894 = vst [vmem:[#allocation390_spill] sm:$0xff] %v13337_v23  ;;  %2916 = vperm.xlu1 %9691, %v13331_v10   ;;  %2955 = vperm.xlu0 %9692, %v13335_v48   ;;  %v17900_v23 = vld [vmem:[#allocation172_spill] sm:$0xff] }
 0x4d4   : > { %v13359_v10 = vadd.f32 %v13073_v60, %v17900_v23  ;;  %v13377_v23 = vadd.f32 %v13303_v29, %v12007_v15 }
 0x4d6   : > { %v13351_v34 = vpop.permute.xlu1 %2730  ;;  %v13353_v30 = vpop.permute.xlu0 %2769  ;;  %17901 = vst [vmem:[#allocation172_spill] sm:$0xff] %v13359_v10  ;;  %17907 = vst [vmem:[#allocation397_spill] sm:$0xff] %v13377_v23 }
 0x4d7   : > { %17898 = vst [vmem:[#allocation392_spill] sm:$0xff] %v13351_v34  ;;  %17899 = vst [vmem:[#allocation393_spill] sm:$0xff] %v13353_v30  ;;  %2922 = vperm.xlu1 %9691, %v13345_v56   ;;  %2961 = vperm.xlu0 %9692, %v13349_v35   ;;  %v17905_v34 = vld [vmem:[#allocation174_spill] sm:$0xff] }
 0x4d8   : > { %v13373_v56 = vadd.f32 %v13073_v60, %v17905_v34  ;;  %v13391_v34 = vadd.f32 %v13303_v29, %v12027_v41 }
 0x4da   : > { %v13365_v48 = vpop.permute.xlu1 %2736  ;;  %v13367_v50 = vpop.permute.xlu0 %2775  ;;  %17906 = vst [vmem:[#allocation174_spill] sm:$0xff] %v13373_v56  ;;  %17912 = vst [vmem:[#allocation400_spill] sm:$0xff] %v13391_v34 }
 0x4db   : > { %17903 = vst [vmem:[#allocation395_spill] sm:$0xff] %v13365_v48  ;;  %17904 = vst [vmem:[#allocation396_spill] sm:$0xff] %v13367_v50  ;;  %2928 = vperm.xlu1 %9691, %v13359_v10   ;;  %2967 = vperm.xlu0 %9692, %v13363_v31   ;;  %v17910_v48 = vld [vmem:[#allocation176_spill] sm:$0xff] }
 0x4dc   : > { %v13387_v10 = vadd.f32 %v13073_v60, %v17910_v48  ;;  %v13405_v60 = vadd.f32 %v13303_v29, %v12041_v45 }
 0x4de   : > { %v13379_v35 = vpop.permute.xlu1 %2742  ;;  %v13381_v54 = vpop.permute.xlu0 %2781  ;;  %17911 = vst [vmem:[#allocation176_spill] sm:$0xff] %v13387_v10  ;;  %17917 = vst [vmem:[#allocation403_spill] sm:$0xff] %v13405_v60 }
 0x4df   : > { %17908 = vst [vmem:[#allocation398_spill] sm:$0xff] %v13379_v35  ;;  %17909 = vst [vmem:[#allocation399_spill] sm:$0xff] %v13381_v54  ;;  %2934 = vperm.xlu1 %9691, %v13373_v56   ;;  %2973 = vperm.xlu0 %9692, %v13377_v23   ;;  %v17915_v35 = vld [vmem:[#allocation177_spill] sm:$0xff]  ;;  %v17919_v23 = vld [vmem:[#allocation179_spill] sm:$0xff] }
 0x4e0   : > { %v13401_v56 = vadd.f32 %v13303_v29, %v17915_v35  ;;  %v13419_v35 = vadd.f32 %v13303_v29, %v12061_v49 }
 0x4e2   : > { %v13393_v31 = vpop.permute.xlu1 %2748  ;;  %v13395_v15 = vpop.permute.xlu0 %2787  ;;  %17916 = vst [vmem:[#allocation177_spill] sm:$0xff] %v13401_v56  ;;  %17921 = vst [vmem:[#allocation405_spill] sm:$0xff] %v13419_v35 }
 0x4e3   : > { %17913 = vst [vmem:[#allocation401_spill] sm:$0xff] %v13393_v31  ;;  %17914 = vst [vmem:[#allocation402_spill] sm:$0xff] %v13395_v15  ;;  %2940 = vperm.xlu1 %9691, %v13387_v10   ;;  %2979 = vperm.xlu0 %9692, %v13391_v34   ;;  %v13415_v10 = vadd.f32 %v13303_v29, %v17919_v23  ;;  %v17923_v31 = vld [vmem:[#allocation181_spill] sm:$0xff]  ;;  %v13433_v23 = vadd.f32 %v13303_v29, %v12075_v14 }
 0x4e5   : > { %17920 = vst [vmem:[#allocation179_spill] sm:$0xff] %v13415_v10  ;;  %17925 = vst [vmem:[#allocation407_spill] sm:$0xff] %v13433_v23 }
 0x4e6   : > { %v13407_v48 = vpop.permute.xlu1 %2754  ;;  %v13409_v41 = vpop.permute.xlu0 %2793 }
 0x4e7   : > { %17918 = vst [vmem:[#allocation404_spill] sm:$0xff] %v13409_v41  ;;  %2946 = vperm.xlu1 %9691, %v13401_v56   ;;  %2985 = vperm.xlu0 %9692, %v13405_v60   ;;  %v13429_v56 = vadd.f32 %v13303_v29, %v17923_v31  ;;  %v13447_v31 = vadd.f32 %v13303_v29, %v12095_v36 }
 0x4e9   : > { %17924 = vst [vmem:[#allocation181_spill] sm:$0xff] %v13429_v56  ;;  %17929 = vst [vmem:[#allocation409_spill] sm:$0xff] %v13447_v31 }
 0x4ea   : > { %v13421_v34 = vpop.permute.xlu1 %2760  ;;  %v13423_v45 = vpop.permute.xlu0 %2799 }
 0x4eb   : > { %17922 = vst [vmem:[#allocation406_spill] sm:$0xff] %v13423_v45  ;;  %2952 = vperm.xlu1 %9691, %v13415_v10   ;;  %2991 = vperm.xlu0 %9692, %v13419_v35   ;;  %v13443_v10 = vadd.f32 %v13303_v29, %v17927_v1  ;;  %v13461_v1 = vadd.f32 %v13303_v29, %v12109_v18 }
 0x4ed   : > { %17928 = vst [vmem:[#allocation182_spill] sm:$0xff] %v13443_v10  ;;  %17934 = vst [vmem:[#allocation412_spill] sm:$0xff] %v13461_v1 }
 0x4ee   : > { %v13435_v60 = vpop.permute.xlu1 %2766  ;;  %v13437_v49 = vpop.permute.xlu0 %2805 }
 0x4ef   : > { %17926 = vst [vmem:[#allocation408_spill] sm:$0xff] %v13437_v49  ;;  %2958 = vperm.xlu1 %9691, %v13429_v56   ;;  %2997 = vperm.xlu0 %9692, %v13433_v23   ;;  %v17932_v49 = vld [vmem:[#allocation184_spill] sm:$0xff] }
 0x4f0   : > { %v13457_v56 = vadd.f32 %v13303_v29, %v17932_v49  ;;  %v13475_v49 = vadd.f32 %v13303_v29, %v12129_v0 }
 0x4f2   : > { %v13449_v35 = vpop.permute.xlu1 %2772  ;;  %v13451_v14 = vpop.permute.xlu0 %2811  ;;  %17933 = vst [vmem:[#allocation184_spill] sm:$0xff] %v13457_v56  ;;  %17939 = vst [vmem:[#allocation415_spill] sm:$0xff] %v13475_v49 }
 0x4f3   : > { %17930 = vst [vmem:[#allocation410_spill] sm:$0xff] %v13449_v35  ;;  %17931 = vst [vmem:[#allocation411_spill] sm:$0xff] %v13451_v14  ;;  %2964 = vperm.xlu1 %9691, %v13443_v10   ;;  %3003 = vperm.xlu0 %9692, %v13447_v31   ;;  %v17937_v14 = vld [vmem:[#allocation186_spill] sm:$0xff] }
 0x4f4   : > { %v13471_v10 = vadd.f32 %v13303_v29, %v17937_v14  ;;  %v13489_v14 = vadd.f32 %v13303_v29, %v12143_v43 }
 0x4f6   : > { %v13463_v23 = vpop.permute.xlu1 %2778  ;;  %v13465_v36 = vpop.permute.xlu0 %2817  ;;  %17938 = vst [vmem:[#allocation186_spill] sm:$0xff] %v13471_v10  ;;  %17944 = vst [vmem:[#allocation418_spill] sm:$0xff] %v13489_v14 }
 0x4f7   : > { %17935 = vst [vmem:[#allocation413_spill] sm:$0xff] %v13463_v23  ;;  %17936 = vst [vmem:[#allocation414_spill] sm:$0xff] %v13465_v36  ;;  %2970 = vperm.xlu1 %9691, %v13457_v56   ;;  %3009 = vperm.xlu0 %9692, %v13461_v1   ;;  %v17942_v36 = vld [vmem:[#allocation187_spill] sm:$0xff] }
 0x4f8   : > { %v13485_v56 = vadd.f32 %v13303_v29, %v17942_v36  ;;  %v13503_v36 = vadd.f32 %v13303_v29, %v12169_v63 }
 0x4fa   : > { %v13477_v31 = vpop.permute.xlu1 %2784  ;;  %v13479_v18 = vpop.permute.xlu0 %2823  ;;  %17943 = vst [vmem:[#allocation187_spill] sm:$0xff] %v13485_v56  ;;  %17949 = vst [vmem:[#allocation421_spill] sm:$0xff] %v13503_v36 }
 0x4fb   : > { %17940 = vst [vmem:[#allocation416_spill] sm:$0xff] %v13477_v31  ;;  %17941 = vst [vmem:[#allocation417_spill] sm:$0xff] %v13479_v18  ;;  %2976 = vperm.xlu1 %9691, %v13471_v10   ;;  %3015 = vperm.xlu0 %9692, %v13475_v49   ;;  %v17947_v18 = vld [vmem:[#allocation189_spill] sm:$0xff] }
 0x4fc   : > { %v13499_v10 = vadd.f32 %v13303_v29, %v17947_v18  ;;  %v13517_v18 = vadd.f32 %v13303_v29, %v12183_v6 }
 0x4fe   : > { %v13491_v1 = vpop.permute.xlu1 %2790  ;;  %v13493_v0 = vpop.permute.xlu0 %2829  ;;  %17948 = vst [vmem:[#allocation189_spill] sm:$0xff] %v13499_v10  ;;  %17954 = vst [vmem:[#allocation424_spill] sm:$0xff] %v13517_v18 }
 0x4ff   : > { %17945 = vst [vmem:[#allocation419_spill] sm:$0xff] %v13491_v1  ;;  %17946 = vst [vmem:[#allocation420_spill] sm:$0xff] %v13493_v0  ;;  %2982 = vperm.xlu1 %9691, %v13485_v56   ;;  %3021 = vperm.xlu0 %9692, %v13489_v14   ;;  %v17952_v0 = vld [vmem:[#allocation191_spill] sm:$0xff] }
 0x500   : > { %v13513_v56 = vadd.f32 %v13303_v29, %v17952_v0  ;;  %v13531_v0 = vadd.f32 %v13303_v29, %v12203_v25  ;;  %v17965_v25 = vld [vmem:[#allocation196_spill] sm:$0xff] }
 0x502   : > { %v13505_v49 = vpop.permute.xlu1 %2796  ;;  %v13507_v43 = vpop.permute.xlu0 %2835  ;;  %17953 = vst [vmem:[#allocation191_spill] sm:$0xff] %v13513_v56  ;;  %17959 = vst [vmem:[#allocation427_spill] sm:$0xff] %v13531_v0 }
 0x503   : > { %17950 = vst [vmem:[#allocation422_spill] sm:$0xff] %v13505_v49  ;;  %17951 = vst [vmem:[#allocation423_spill] sm:$0xff] %v13507_v43  ;;  %2988 = vperm.xlu1 %9691, %v13499_v10   ;;  %3027 = vperm.xlu0 %9692, %v13503_v36   ;;  %v17957_v43 = vld [vmem:[#allocation192_spill] sm:$0xff]  ;;  %v17979_v49 = vld [vmem:[#allocation201_spill] sm:$0xff] }
 0x504   : > { %v13527_v10 = vadd.f32 %v13303_v29, %v17957_v43 }
 0x506   : > { %v13519_v14 = vpop.permute.xlu1 %2802  ;;  %v13521_v63 = vpop.permute.xlu0 %2841  ;;  %17958 = vst [vmem:[#allocation192_spill] sm:$0xff] %v13527_v10 }
 0x507   : > { %17955 = vst [vmem:[#allocation425_spill] sm:$0xff] %v13519_v14  ;;  %17956 = vst [vmem:[#allocation426_spill] sm:$0xff] %v13521_v63  ;;  %2994 = vperm.xlu1 %9691, %v13513_v56   ;;  %3033 = vperm.xlu0 %9692, %v13517_v18   ;;  %v17962_v63 = vld [vmem:[#allocation194_spill] sm:$0xff]  ;;  %v13550_v14 = vadd.f32 %v13303_v29, %v17965_v25 }
 0x508   : > { %v13541_v56 = vadd.f32 %v13303_v29, %v17962_v63  ;;  %v17970_v63 = vld [vmem:[#allocation197_spill] sm:$0xff] }
 0x509   : > { %17966 = vst [vmem:[#allocation196_spill] sm:$0xff] %v13550_v14 }
 0x50a   : > { %v13533_v36 = vpop.permute.xlu1 %2808  ;;  %v13535_v6 = vpop.permute.xlu0 %2847  ;;  %17963 = vst [vmem:[#allocation194_spill] sm:$0xff] %v13541_v56 }
 0x50b   : > { %17960 = vst [vmem:[#allocation428_spill] sm:$0xff] %v13533_v36  ;;  %17961 = vst [vmem:[#allocation429_spill] sm:$0xff] %v13535_v6  ;;  %3000 = vperm.xlu1 %9691, %v13527_v10   ;;  %3039 = vperm.xlu0 %9692, %v13531_v0   ;;  %v17969_v0 = vlaneseq }
 0x50d   : > { %v13558_v10 = vand.u32 127, %v17969_v0  ;;  %v17976_v0 = vld [vmem:[#allocation199_spill] sm:$0xff] }
 0x50e   : > { %v13543_v18 = vpop.permute.xlu1 %2814  ;;  %v13545_v43 = vpop.permute.xlu0 %2853  ;;  %v13577_v41 = vadd.f32 %v13303_v29, %v17976_v0 }
 0x50f   : > { %17964 = vst [vmem:[#allocation430_spill] sm:$0xff] %v13543_v18  ;;  %3006 = vperm.xlu1 %9691, %v13541_v56   ;;  %v13562_v18 = vadd.f32 %v13303_v29, %v17970_v63  ;;  %v3047_v25 = vadd.s32 4294967288, %v13558_v10  ;;  %v3061_v9 = vadd.s32 4294967272, %v13558_v10  ;;  %v3068_v15 = vadd.s32 4294967264, %v13558_v10 }
 0x510   : > { %17977 = vst [vmem:[#allocation199_spill] sm:$0xff] %v13577_v41  ;;  %v13596_v0 = vsub.s32 %v13558_v10, %v11817_v52 }
 0x511   : > { %17971 = vst [vmem:[#allocation197_spill] sm:$0xff] %v13562_v18  ;;  %v13592_v1 = vsub.s32 %v3047_v25, %v11817_v52  ;;  %v3082_v25 = vadd.s32 4294967248, %v13558_v10  ;;  %v13611_v53 = vsub.s32 %v3061_v9, %v11817_v52  ;;  %v3096_v9 = vadd.s32 4294967232, %v13558_v10 }
 0x512   : > { %v13552_v36 = vpop.permute.xlu1 %2820  ;;  %v13554_v6 = vpop.permute.xlu0 %2859  ;;  %17983 = vst [vmem:[#allocation438_spill] sm:$0xff] %v13596_v0 }
 0x513   : > { %17967 = vst [vmem:[#allocation431_spill] sm:$0xff] %v13552_v36  ;;  %17968 = vst [vmem:[#allocation432_spill] sm:$0xff] %v13554_v6  ;;  %3012 = vperm.xlu1 %9691, %v13550_v14   ;;  %v17974_v36 = vld [vmem:[#allocation198_spill] sm:$0xff]  ;;  %v3054_v14 = vadd.s32 4294967280, %v13558_v10  ;;  %v3051_v23 = vrot.slane %v12215_v42, %v13592_v1  ;;  %v13641_v30 = vsub.s32 %v3082_v25, %v11817_v52 }
 0x514   : > { %v13572_v45 = vadd.f32 %v13303_v29, %v17974_v36  ;;  %17982 = vst [vmem:[#allocation437_spill] sm:$0xff] %v13592_v1 }
 0x516   : > { %v13564_v12 = vpop.permute.xlu1 %2826  ;;  %v13566_v56 = vpop.permute.xlu0 %2865  ;;  %17975 = vst [vmem:[#allocation198_spill] sm:$0xff] %v13572_v45 }
 0x517   : > { %17972 = vst [vmem:[#allocation433_spill] sm:$0xff] %v13564_v12  ;;  %17973 = vst [vmem:[#allocation434_spill] sm:$0xff] %v13566_v56  ;;  %3018 = vperm.xlu1 %9691, %v13562_v18   ;;  %v13583_v12 = vadd.f32 %v13303_v29, %v17979_v49  ;;  %v3103_v18 = vadd.s32 4294967224, %v13558_v10  ;;  %v13599_v29 = vsub.s32 %v3054_v14, %v11817_v52  ;;  %v3075_v49 = vadd.s32 4294967256, %v13558_v10 }
 0x518   : > { %v13614_v14 = vsub.s32 %v3068_v15, %v11817_v52 }
 0x519   : > { %17980 = vst [vmem:[#allocation201_spill] sm:$0xff] %v13583_v12  ;;  %v13608_v31 = vsub.s32 %v3103_v18, %v11817_v52  ;;  %v3046_v18 = vrot.slane %v12217_v22, %v13596_v0  ;;  %v3058_v15 = vrot.slane %v12229_v11, %v13599_v29  ;;  %v13629_v56 = vsub.s32 %v3075_v49, %v11817_v52 }
 0x51a   : > { %v13579_v63 = vpop.permute.xlu1 %2832  ;;  %v13588_v36 = vpop.permute.xlu0 %2871  ;;  %v3164_v11 = vrot.slane %v12389_v13, %v13599_v29  ;;  %v3065_v49 = vrot.slane %v12243_v2, %v13611_v53  ;;  %v3072_v13 = vrot.slane %v12257_v8, %v13614_v14  ;;  %v13664_v2 = vsub.s32 %v3096_v9, %v11817_v52 }
 0x51b   : > { %17978 = vst [vmem:[#allocation435_spill] sm:$0xff] %v13579_v63  ;;  %17981 = vst [vmem:[#allocation436_spill] sm:$0xff] %v13588_v36  ;;  %3024 = vperm.xlu1 %9691, %v13572_v45   ;;  %v3117_v63 = vadd.s32 4294967208, %v13558_v10  ;;  %v3131_v45 = vadd.s32 4294967192, %v13558_v10  ;;  %v3089_v36 = vadd.s32 4294967240, %v13558_v10  ;;  %v3053_v25 = vsel %vm17154_vm1, %v3051_v23, %v3046_v18 }
 0x51c   : > { %v3086_v8 = vrot.slane %v12285_v51, %v13641_v30  ;;  %v3174_v18 = vrot.slane %v12403_v55, %v13614_v14  ;;  %v3234_v9 = vrot.slane %v12487_v21, %v13596_v0  ;;  %v3243_v51 = vrot.slane %v12501_v4, %v13599_v29 }
 0x51d   : > { %v13635_v42 = vsub.s32 %v3117_v63, %v11817_v52  ;;  %v13638_v22 = vsub.s32 %v3131_v45, %v11817_v52  ;;  %v13652_v63 = vsub.s32 %v3089_v36, %v11817_v52  ;;  %v3079_v36 = vrot.slane %v12271_v58, %v13629_v56 }
 0x51e   : > { %v13605_v54 = vpop.permute.xlu1 %2838  ;;  %v13617_v50 = vpop.permute.xlu0 %2877  ;;  %v3100_v21 = vrot.slane %v12313_v20, %v13664_v2 }
 0x51f   : > { %17984 = vst [vmem:[#allocation439_spill] sm:$0xff] %v13605_v54  ;;  %17985 = vst [vmem:[#allocation440_spill] sm:$0xff] %v13617_v50  ;;  %3030 = vperm.xlu1 %9691, %v13577_v41   ;;  %v3145_v54 = vadd.s32 4294967176, %v13558_v10  ;;  %v3110_v50 = vadd.s32 4294967216, %v13558_v10  ;;  %v3155_v41 = vrot.slane %v12370_v40, %v13596_v0  ;;  %v3159_v40 = vrot.slane %v12287_v17, %v13592_v1 }
 0x520   : > { %17986 = vst [vmem:[#allocation441_spill] sm:$0xff] %v13638_v22  ;;  %v3060_v17 = vsel %vm3059_vm2, %v3058_v15, %v3053_v25 }
 0x521   : > { %v3160_v23 = vsel %vm17154_vm1, %v3159_v40, %v3155_v41  ;;  %v3067_v58 = vsel %vm3066_vm3, %v3065_v49, %v3060_v17  ;;  %v3169_v41 = vrot.slane %v12301_v61, %v13611_v53  ;;  %v3124_v40 = vadd.s32 4294967200, %v13558_v10 }
 0x522   : > { %v13645_v35 = vpop.permute.xlu1 %2844  ;;  %v13654_v45 = vpop.permute.xlu0 %2883  ;;  %v3074_v55 = vsel %vm3073_vm4, %v3072_v13, %v3067_v58  ;;  %v3238_v49 = vrot.slane %v12405_v47, %v13592_v1  ;;  %v17991_v13 = vld [vmem:[#allocation260_spill] sm:$0xff]  ;;  %v17992_v47 = vld [vmem:[#allocation251_spill] sm:$0xff] }
 0x523   : > { %17987 = vst [vmem:[#allocation442_spill] sm:$0xff] %v13645_v35  ;;  %17988 = vst [vmem:[#allocation443_spill] sm:$0xff] %v13654_v45  ;;  %3036 = vperm.xlu1 %9691, %v13583_v12   ;;  %v13661_v35 = vsub.s32 %v3145_v54, %v11817_v52  ;;  %v13670_v45 = vsub.s32 %v3110_v50, %v11817_v52  ;;  %v3165_v54 = vsel %vm3059_vm2, %v3164_v11, %v3160_v23 }
 0x524   : > { %v3093_v50 = vrot.slane %v12299_v44, %v13652_v63  ;;  %v3081_v44 = vsel %vm17155_vm5, %v3079_v36, %v3074_v55  ;;  %v3170_v61 = vsel %vm3066_vm3, %v3169_v41, %v3165_v54  ;;  %v3184_v17 = vrot.slane %v17991_v13, %v13641_v30  ;;  %v17993_v54 = vld [vmem:[#allocation272_spill] sm:$0xff] }
 0x525   : > { %17989 = vst [vmem:[#allocation444_spill] sm:$0xff] %v13661_v35  ;;  %v3088_v4 = vsel %vm17152_vm6, %v3086_v8, %v3081_v44  ;;  %v3175_v25 = vsel %vm3073_vm4, %v3174_v18, %v3170_v61  ;;  %v3239_v20 = vsel %vm17154_vm1, %v3238_v49, %v3234_v9  ;;  %v3179_v36 = vrot.slane %v17992_v47, %v13629_v56  ;;  %v17995_v44 = vld [vmem:[#allocation252_spill] sm:$0xff] }
 0x526   : > { %v13680_v15 = vpop.permute.xlu1 %2850  ;;  %v13689_v11 = vpop.permute.xlu0 %2889  ;;  %v3095_v58 = vsel %vm17147_vm7, %v3093_v50, %v3088_v4  ;;  %v3244_v55 = vsel %vm3059_vm2, %v3243_v51, %v3239_v20  ;;  %v3253_v41 = vrot.slane %v17993_v54, %v13614_v14  ;;  %v3114_v61 = vrot.slane %v17995_v44, %v13670_v45  ;;  %v17997_v50 = vld [vmem:[#allocation261_spill] sm:$0xff]  ;;  %v17998_v4 = vld [vmem:[#allocation247_spill] sm:$0xff] }
 0x527   : > { %17990 = vst [vmem:[#allocation445_spill] sm:$0xff] %v13689_v11  ;;  %v3102_v18 = vsel %vm3101_vm8, %v3100_v21, %v3095_v58  ;;  %v13718_v9 = vsub.s32 %v3124_v40, %v11817_v52  ;;  %v3248_v49 = vrot.slane %v17997_v50, %v13611_v53  ;;  %v3107_v13 = vrot.slane %v17998_v4, %v13608_v31  ;;  %v17999_v58 = vld [vmem:[#allocation262_spill] sm:$0xff]  ;;  %v18000_v50 = vld [vmem:[#allocation253_spill] sm:$0xff] }
 0x528   : > { %v3138_v51 = vadd.s32 4294967184, %v13558_v10  ;;  %v3180_v20 = vsel %vm17155_vm5, %v3179_v36, %v3175_v25  ;;  %v3194_v47 = vrot.slane %v17999_v58, %v13664_v2  ;;  %v3189_v4 = vrot.slane %v18000_v50, %v13652_v63  ;;  %v18001_v10 = vld [vmem:[#allocation274_spill] sm:$0xff]  ;;  %v18006_v50 = vld [vmem:[#allocation248_spill] sm:$0xff] }
 0x529   : > { %17996 = vst [vmem:[#allocation251_spill] sm:$0xff] %v13718_v9  ;;  %v3185_v21 = vsel %vm17152_vm6, %v3184_v17, %v3180_v20  ;;  %v3249_v40 = vsel %vm3066_vm3, %v3248_v49, %v3244_v55  ;;  %v3109_v44 = vsel %vm3108_vm9, %v3107_v13, %v3102_v18  ;;  %v3263_v25 = vrot.slane %v18001_v10, %v13641_v30  ;;  %v18003_v20 = vld [vmem:[#allocation254_spill] sm:$0xff]  ;;  %v18004_v55 = vld [vmem:[#allocation263_spill] sm:$0xff]  ;;  %v18005_v18 = vld [vmem:[#allocation284_spill] sm:$0xff] }
 0x52a   : > { %v13704_v23 = vpop.permute.xlu1 %2856  ;;  %v13712_v8 = vpop.permute.xlu0 %2895  ;;  %v3254_v12 = vsel %vm3073_vm4, %v3253_v41, %v3249_v40  ;;  %v3116_v17 = vsel %vm17148_vm10, %v3114_v61, %v3109_v44  ;;  %v3128_v58 = vrot.slane %v18003_v20, %v13718_v9  ;;  %v3258_v49 = vrot.slane %v18004_v55, %v13629_v56  ;;  %v18008_v10 = vld [vmem:[#allocation286_spill] sm:$0xff]  ;;  %v18009_v20 = vld [vmem:[#allocation264_spill] sm:$0xff]  ;;  %v18010_v55 = vld [vmem:[#allocation273_spill] sm:$0xff] }
 0x52b   : > { %17994 = vst [vmem:[#allocation260_spill] sm:$0xff] %v13712_v8  ;;  %v3313_v13 = vrot.slane %v18005_v18, %v13596_v0  ;;  %v3121_v8 = vrot.slane %v18006_v50, %v13635_v42  ;;  %v13750_v41 = vsub.s32 %v3138_v51, %v11817_v52  ;;  %v3190_v40 = vsel %vm17147_vm7, %v3189_v4, %v3185_v21  ;;  %v18012_v50 = vld [vmem:[#allocation255_spill] sm:$0xff] }
 0x52c   : > { %v3322_v61 = vrot.slane %v18008_v10, %v13599_v29  ;;  %v3195_v44 = vsel %vm3101_vm8, %v3194_v47, %v3190_v40  ;;  %v3317_v11 = vrot.slane %v18010_v55, %v13592_v1  ;;  %v3259_v18 = vsel %vm17155_vm5, %v3258_v49, %v3254_v12  ;;  %v18013_v10 = vld [vmem:[#allocation276_spill] sm:$0xff]  ;;  %v18016_v12 = vld [vmem:[#allocation265_spill] sm:$0xff] }
 0x52d   : > { %18007 = vst [vmem:[#allocation252_spill] sm:$0xff] %v13750_v41  ;;  %v3123_v51 = vsel %vm3122_vm11, %v3121_v8, %v3116_v17  ;;  %v3199_v21 = vrot.slane %v18012_v50, %v13608_v31  ;;  %v3264_v4 = vsel %vm17152_vm6, %v3263_v25, %v3259_v18  ;;  %v3273_v47 = vrot.slane %v18013_v10, %v13664_v2  ;;  %v18017_v17 = vld [vmem:[#allocation256_spill] sm:$0xff] }
 0x52e   : > { %v13730_v54 = vpop.permute.xlu1 %2862  ;;  %v13738_v36 = vpop.permute.xlu0 %2901  ;;  %v3130_v55 = vsel %vm3129_vm12, %v3128_v58, %v3123_v51  ;;  %v3268_v49 = vrot.slane %v18016_v12, %v13652_v63  ;;  %v3318_v8 = vsel %vm17154_vm1, %v3317_v11, %v3313_v13  ;;  %v3142_v50 = vrot.slane %v18017_v17, %v13750_v41  ;;  %v18018_v10 = vld [vmem:[#allocation288_spill] sm:$0xff]  ;;  %v18020_v51 = vld [vmem:[#allocation275_spill] sm:$0xff] }
 0x52f   : > { %18002 = vst [vmem:[#allocation272_spill] sm:$0xff] %v13738_v36  ;;  %v3204_v36 = vrot.slane %v18009_v20, %v13670_v45  ;;  %v18015_v20 = vld [vmem:[#allocation249_spill] sm:$0xff]  ;;  %v3200_v25 = vsel %vm3108_vm9, %v3199_v21, %v3195_v44  ;;  %v3323_v18 = vsel %vm3059_vm2, %v3322_v61, %v3318_v8  ;;  %v3327_v12 = vrot.slane %v18020_v51, %v13611_v53  ;;  %v18023_v8 = vld [vmem:[#allocation278_spill] sm:$0xff] }
 0x530   : > { %v3135_v52 = vrot.slane %v18015_v20, %v13638_v22  ;;  %v18019_v20 = vld [vmem:[#allocation266_spill] sm:$0xff]  ;;  %v3269_v11 = vsel %vm17147_vm7, %v3268_v49, %v3264_v4  ;;  %v18022_v44 = vld [vmem:[#allocation257_spill] sm:$0xff]  ;;  %v3283_v17 = vrot.slane %v18023_v8, %v13670_v45  ;;  %v18026_v4 = vld [vmem:[#allocation267_spill] sm:$0xff] }
 0x531   : > { %v3214_v58 = vrot.slane %v18019_v20, %v13718_v9  ;;  %v3209_v21 = vrot.slane %v18022_v44, %v13635_v42  ;;  %v3274_v61 = vsel %vm3101_vm8, %v3273_v47, %v3269_v11  ;;  %v3278_v49 = vrot.slane %v18026_v4, %v13608_v31  ;;  %v18027_v11 = vld [vmem:[#allocation290_spill] sm:$0xff] }
 0x532   : > { %v13761_v32 = vpop.permute.xlu1 %2868  ;;  %v13769_v40 = vpop.permute.xlu0 %2907  ;;  %v3137_v20 = vsel %vm3136_vm13, %v3135_v52, %v3130_v55  ;;  %v3328_v51 = vsel %vm3066_vm3, %v3327_v12, %v3323_v18  ;;  %v3342_v8 = vrot.slane %v18027_v11, %v13641_v30  ;;  %v18029_v55 = vld [vmem:[#allocation300_spill] sm:$0xff] }
 0x533   : > { %18011 = vst [vmem:[#allocation261_spill] sm:$0xff] %v13761_v32  ;;  %18014 = vst [vmem:[#allocation247_spill] sm:$0xff] %v13769_v40  ;;  %v3332_v40 = vrot.slane %v18018_v10, %v13614_v14  ;;  %v3205_v32 = vsel %vm17148_vm10, %v3204_v36, %v3200_v25  ;;  %v18025_v25 = vld [vmem:[#allocation250_spill] sm:$0xff]  ;;  %v3279_v52 = vsel %vm3108_vm9, %v3278_v49, %v3274_v61  ;;  %v18032_v12 = vld [vmem:[#allocation280_spill] sm:$0xff] }
 0x534   : > { %v3149_v10 = vrot.slane %v18025_v25, %v13661_v35  ;;  %v3210_v44 = vsel %vm3122_vm11, %v3209_v21, %v3205_v32  ;;  %v18028_v25 = vld [vmem:[#allocation277_spill] sm:$0xff]  ;;  %v3392_v4 = vrot.slane %v18029_v55, %v13596_v0  ;;  %v3293_v21 = vrot.slane %v18032_v12, %v13718_v9  ;;  %v18035_v61 = vld [vmem:[#allocation258_spill] sm:$0xff] }
 0x535   : > { %v3333_v47 = vsel %vm3073_vm4, %v3332_v40, %v3328_v51  ;;  %v3337_v6 = vrot.slane %v18028_v25, %v13629_v56  ;;  %v3284_v40 = vsel %vm17148_vm10, %v3283_v17, %v3279_v52  ;;  %v3219_v49 = vrot.slane %v18035_v61, %v13638_v22  ;;  %v18037_v25 = vld [vmem:[#allocation289_spill] sm:$0xff]  ;;  %v18038_v52 = vld [vmem:[#allocation259_spill] sm:$0xff] }
 0x536   : > { %v13789_v13 = vpop.permute.xlu1 %2874  ;;  %v13796_v36 = vpop.permute.xlu0 %2913  ;;  %v3396_v55 = vrot.slane %v18037_v25, %v13592_v1  ;;  %v3229_v12 = vrot.slane %v18038_v52, %v13661_v35 }
 0x537   : > { %18021 = vst [vmem:[#allocation262_spill] sm:$0xff] %v13789_v13  ;;  %18024 = vst [vmem:[#allocation253_spill] sm:$0xff] %v13796_v36  ;;  %v3144_v13 = vsel %vm3143_vm14, %v3142_v50, %v3137_v20  ;;  %v3215_v36 = vsel %vm3129_vm12, %v3214_v58, %v3210_v44  ;;  %v18031_v50 = vld [vmem:[#allocation268_spill] sm:$0xff]  ;;  %v18033_v58 = vld [vmem:[#allocation302_spill] sm:$0xff] }
 0x538   : > { %v3224_v32 = vrot.slane %v18031_v50, %v13750_v41  ;;  %v3401_v20 = vrot.slane %v18033_v58, %v13599_v29  ;;  %v18036_v44 = vld [vmem:[#allocation269_spill] sm:$0xff]  ;;  %v3338_v50 = vsel %vm17155_vm5, %v3337_v6, %v3333_v47  ;;  %v13834_v17 = vsel %vm3150_vm15, %v3149_v10, %v3144_v13 }
 0x539   : > { %v3288_v11 = vrot.slane %v18036_v44, %v13635_v42  ;;  %v3343_v58 = vsel %vm17152_vm6, %v3342_v8, %v3338_v50  ;;  %v3220_v61 = vsel %vm3136_vm13, %v3219_v49, %v3215_v36  ;;  %v18040_v44 = vld [vmem:[#allocation279_spill] sm:$0xff]  ;;  %v3397_v6 = vsel %vm17154_vm1, %v3396_v55, %v3392_v4  ;;  %v18041_v50 = vld [vmem:[#allocation304_spill] sm:$0xff]  ;;  %v18043_v36 = vld [vmem:[#allocation270_spill] sm:$0xff] }
 0x53a   : > { %v13815_v18 = vpop.permute.xlu1 %2880  ;;  %v13824_v51 = vpop.permute.xlu0 %2919  ;;  %v3347_v7 = vrot.slane %v18040_v44, %v13652_v63  ;;  %v3225_v13 = vsel %vm3143_vm14, %v3224_v32, %v3220_v61  ;;  %v3402_v8 = vsel %vm3059_vm2, %v3401_v20, %v3397_v6  ;;  %v3298_v49 = vrot.slane %v18043_v36, %v13638_v22  ;;  %v18045_v4 = vld [vmem:[#allocation291_spill] sm:$0xff]  ;;  %v18047_v44 = vld [vmem:[#allocation294_spill] sm:$0xff] }
 0x53b   : > { %18030 = vst [vmem:[#allocation274_spill] sm:$0xff] %v13815_v18  ;;  %18034 = vst [vmem:[#allocation254_spill] sm:$0xff] %v13824_v51  ;;  %v18039_v51 = vld [vmem:[#allocation292_spill] sm:$0xff]  ;;  %v3289_v25 = vsel %vm3122_vm11, %v3288_v11, %v3284_v40  ;;  %v18044_v40 = vld [vmem:[#allocation271_spill] sm:$0xff]  ;;  %v3406_v55 = vrot.slane %v18045_v4, %v13611_v53  ;;  %v3550_v6 = vrot.slane %v12947_v26, %v13596_v0 }
 0x53c   : > { %v3352_v18 = vrot.slane %v18039_v51, %v13664_v2  ;;  %v3294_v10 = vsel %vm3129_vm12, %v3293_v21, %v3289_v25  ;;  %v3411_v51 = vrot.slane %v18041_v50, %v13614_v14  ;;  %v3308_v11 = vrot.slane %v18044_v40, %v13661_v35  ;;  %v18046_v21 = vld [vmem:[#allocation282_spill] sm:$0xff]  ;;  %v18048_v50 = vld [vmem:[#allocation281_spill] sm:$0xff] }
 0x53d   : > { %v3348_v32 = vsel %vm17147_vm7, %v3347_v7, %v3343_v58  ;;  %v3303_v61 = vrot.slane %v18046_v21, %v13750_v41  ;;  %v3362_v25 = vrot.slane %v18047_v44, %v13670_v45  ;;  %v3357_v36 = vrot.slane %v18048_v50, %v13608_v31 }
 0x53e   : > { %v13846_v47 = vpop.permute.xlu1 %2886  ;;  %v13853_v52 = vpop.permute.xlu0 %2925  ;;  %v3353_v20 = vsel %vm3101_vm8, %v3352_v18, %v3348_v32  ;;  %v3299_v40 = vsel %vm3136_vm13, %v3298_v49, %v3294_v10  ;;  %v3407_v4 = vsel %vm3066_vm3, %v3406_v55, %v3402_v8  ;;  %v3559_v7 = vrot.slane %v12961_v57, %v13599_v29  ;;  %v18050_v32 = vld [vmem:[#allocation306_spill] sm:$0xff]  ;;  %v18052_v10 = vld [vmem:[#allocation283_spill] sm:$0xff]  ;;  %v18053_v57 = vld [vmem:[#allocation293_spill] sm:$0xff] }
 0x53f   : > { %18042 = vst [vmem:[#allocation263_spill] sm:$0xff] %v13853_v52  ;;  %v3412_v18 = vsel %vm3073_vm4, %v3411_v51, %v3407_v4  ;;  %v3421_v21 = vrot.slane %v18050_v32, %v13641_v30  ;;  %v3471_v26 = vrot.slane %v12830_v37, %v13596_v0  ;;  %v3554_v44 = vrot.slane %v12865_v24, %v13592_v1  ;;  %v18054_v32 = vld [vmem:[#allocation305_spill] sm:$0xff]  ;;  %v18055_v52 = vld [vmem:[#allocation296_spill] sm:$0xff] }
 0x540   : > { %v3367_v8 = vrot.slane %v18052_v10, %v13635_v42  ;;  %v3416_v49 = vrot.slane %v18053_v57, %v13629_v56  ;;  %v3358_v55 = vsel %vm3108_vm9, %v3357_v36, %v3353_v20  ;;  %v3480_v51 = vrot.slane %v12849_v28, %v13599_v29 }
 0x541   : > { %v3304_v4 = vsel %vm3143_vm14, %v3303_v61, %v3299_v40  ;;  %v3363_v37 = vsel %vm17148_vm10, %v3362_v25, %v3358_v55  ;;  %v3475_v24 = vrot.slane %v18054_v32, %v13592_v1  ;;  %v3372_v10 = vrot.slane %v18055_v52, %v13718_v9  ;;  %v18056_v25 = vld [vmem:[#allocation308_spill] sm:$0xff] }
 0x542   : > { %v13875_v58 = vpop.permute.xlu1 %2892  ;;  %v13884_v50 = vpop.permute.xlu0 %2931  ;;  %v3569_v20 = vrot.slane %v12975_v46, %v13614_v14  ;;  %v3431_v36 = vrot.slane %v18056_v25, %v13664_v2  ;;  %v18062_v32 = vld [vmem:[#allocation324_spill] sm:$0xff] }
 0x543   : > { %18049 = vst [vmem:[#allocation284_spill] sm:$0xff] %v13875_v58  ;;  %18051 = vst [vmem:[#allocation248_spill] sm:$0xff] %v13884_v50  ;;  %v3555_v50 = vsel %vm17154_vm1, %v3554_v44, %v3550_v6  ;;  %v3417_v58 = vsel %vm17155_vm5, %v3416_v49, %v3412_v18  ;;  %v3476_v40 = vsel %vm17154_vm1, %v3475_v24, %v3471_v26 }
 0x544   : > { %v3560_v57 = vsel %vm3059_vm2, %v3559_v7, %v3555_v50  ;;  %v3422_v61 = vsel %vm17152_vm6, %v3421_v21, %v3417_v58  ;;  %v3564_v6 = vrot.slane %v12879_v62, %v13611_v53  ;;  %v13915_v18 = vsel %vm3150_vm15, %v3229_v12, %v3225_v13  ;;  %v18059_v7 = vld [vmem:[#allocation295_spill] sm:$0xff] }
 0x545   : > { %18058 = vst [vmem:[#allocation264_spill] sm:$0xff] %v13915_v18  ;;  %v3426_v46 = vrot.slane %v18059_v7, %v13652_v63  ;;  %v3481_v44 = vsel %vm3059_vm2, %v3480_v51, %v3476_v40  ;;  %v3490_v58 = vrot.slane %v12863_v39, %v13614_v14  ;;  %v13923_v21 = vsel %vm3150_vm15, %v3308_v11, %v3304_v4  ;;  %v18060_v62 = vld [vmem:[#allocation307_spill] sm:$0xff] }
 0x546   : > { %v13904_v28 = vpop.permute.xlu1 %2898  ;;  %v13912_v52 = vpop.permute.xlu0 %2937  ;;  %v3368_v26 = vsel %vm3122_vm11, %v3367_v8, %v3363_v37  ;;  %v3485_v50 = vrot.slane %v18060_v62, %v13611_v53  ;;  %v3565_v49 = vsel %vm3066_vm3, %v3564_v6, %v3560_v57  ;;  %v3579_v51 = vrot.slane %v12989_v3, %v13641_v30  ;;  %v18061_v8 = vld [vmem:[#allocation310_spill] sm:$0xff]  ;;  %v18064_v57 = vld [vmem:[#allocation285_spill] sm:$0xff]  ;;  %v18067_v6 = vld [vmem:[#allocation287_spill] sm:$0xff] }
 0x547   : > { %18057 = vst [vmem:[#allocation286_spill] sm:$0xff] %v13912_v52  ;;  %v3373_v12 = vsel %vm3129_vm12, %v3372_v10, %v3368_v26  ;;  %v3427_v13 = vsel %vm17147_vm7, %v3426_v46, %v3422_v61  ;;  %v3570_v55 = vsel %vm3073_vm4, %v3569_v20, %v3565_v49  ;;  %v3441_v4 = vrot.slane %v18061_v8, %v13670_v45  ;;  %v18065_v61 = vld [vmem:[#allocation297_spill] sm:$0xff]  ;;  %v18068_v46 = vld [vmem:[#allocation298_spill] sm:$0xff]  ;;  %v18070_v8 = vld [vmem:[#allocation340_spill] sm:$0xff] }
 0x548   : > { %v3432_v11 = vsel %vm3101_vm8, %v3431_v36, %v3427_v13  ;;  %v3486_v37 = vsel %vm3066_vm3, %v3485_v50, %v3481_v44  ;;  %v3574_v24 = vrot.slane %v18062_v32, %v13629_v56  ;;  %v3377_v20 = vrot.slane %v18064_v57, %v13638_v22  ;;  %v18066_v36 = vld [vmem:[#allocation321_spill] sm:$0xff] }
 0x549   : > { %v3436_v3 = vrot.slane %v18065_v61, %v13608_v31  ;;  %v3491_v25 = vsel %vm3073_vm4, %v3490_v58, %v3486_v37  ;;  %v3500_v40 = vrot.slane %v18066_v36, %v13641_v30  ;;  %v3382_v44 = vrot.slane %v18068_v46, %v13750_v41  ;;  %v18069_v26 = vld [vmem:[#allocation309_spill] sm:$0xff]  ;;  %v18072_v61 = vld [vmem:[#allocation312_spill] sm:$0xff] }
 0x54a   : > { %v13934_v39 = vpop.permute.xlu1 %2904  ;;  %v13942_v10 = vpop.permute.xlu0 %2943  ;;  %v3495_v62 = vrot.slane %v18069_v26, %v13629_v56  ;;  %v3575_v50 = vsel %vm17155_vm5, %v3574_v24, %v3570_v55  ;;  %v3378_v49 = vsel %vm3136_vm13, %v3377_v20, %v3373_v12  ;;  %v3589_v37 = vrot.slane %v18070_v8, %v13664_v2  ;;  %v18073_v55 = vld [vmem:[#allocation327_spill] sm:$0xff] }
 0x54b   : > { %18063 = vst [vmem:[#allocation273_spill] sm:$0xff] %v13942_v10  ;;  %v3437_v13 = vsel %vm3108_vm9, %v3436_v3, %v3432_v11  ;;  %v3580_v58 = vsel %vm17152_vm6, %v3579_v51, %v3575_v50  ;;  %v3451_v36 = vrot.slane %v18072_v61, %v13718_v9  ;;  %v3584_v24 = vrot.slane %v18073_v55, %v13652_v63  ;;  %v18074_v11 = vld [vmem:[#allocation299_spill] sm:$0xff]  ;;  %v18078_v61 = vld [vmem:[#allocation350_spill] sm:$0xff] }
 0x54c   : > { %v3442_v57 = vsel %vm17148_vm10, %v3441_v4, %v3437_v13  ;;  %v3496_v46 = vsel %vm17155_vm5, %v3495_v62, %v3491_v25  ;;  %v3446_v51 = vrot.slane %v18074_v11, %v13635_v42  ;;  %v18075_v3 = vld [vmem:[#allocation323_spill] sm:$0xff]  ;;  %v18076_v4 = vld [vmem:[#allocation348_spill] sm:$0xff]  ;;  %v13981_v13 = vsel %vm3143_vm14, %v3382_v44, %v3378_v49  ;;  %v18082_v49 = vld [vmem:[#allocation301_spill] sm:$0xff] }
 0x54d   : > { %v3501_v20 = vsel %vm17152_vm6, %v3500_v40, %v3496_v46  ;;  %v3510_v26 = vrot.slane %v18075_v3, %v13664_v2  ;;  %v3629_v50 = vrot.slane %v18076_v4, %v13596_v0  ;;  %v18077_v25 = vld [vmem:[#allocation311_spill] sm:$0xff]  ;;  %v3585_v8 = vsel %vm17147_vm7, %v3584_v24, %v3580_v58  ;;  %v18079_v40 = vld [vmem:[#allocation338_spill] sm:$0xff] }
 0x54e   : > { %v13963_v32 = vpop.permute.xlu1 %2910  ;;  %v13971_v12 = vpop.permute.xlu0 %2949  ;;  %v3505_v62 = vrot.slane %v18077_v25, %v13652_v63  ;;  %v3638_v55 = vrot.slane %v18078_v61, %v13599_v29  ;;  %v3447_v11 = vsel %vm3122_vm11, %v3446_v51, %v3442_v57  ;;  %v3633_v46 = vrot.slane %v18079_v40, %v13592_v1  ;;  %v18080_v4 = vld [vmem:[#allocation342_spill] sm:$0xff] }
 0x54f   : > { %18071 = vst [vmem:[#allocation255_spill] sm:$0xff] %v13963_v32  ;;  %v3590_v3 = vsel %vm3101_vm8, %v3589_v37, %v3585_v8  ;;  %v3599_v7 = vrot.slane %v18080_v4, %v13670_v45  ;;  %v3456_v25 = vrot.slane %v18082_v49, %v13638_v22  ;;  %v3452_v58 = vsel %vm3129_vm12, %v3451_v36, %v3447_v11  ;;  %v18083_v61 = vld [vmem:[#allocation330_spill] sm:$0xff]  ;;  %v18086_v36 = vld [vmem:[#allocation313_spill] sm:$0xff] }
 0x550   : > { %v3506_v24 = vsel %vm17147_vm7, %v3505_v62, %v3501_v20  ;;  %v3594_v57 = vrot.slane %v18083_v61, %v13608_v31  ;;  %v18084_v37 = vld [vmem:[#allocation314_spill] sm:$0xff]  ;;  %v3634_v49 = vsel %vm17154_vm1, %v3633_v46, %v3629_v50  ;;  %v3515_v11 = vrot.slane %v18086_v36, %v13608_v31  ;;  %v18087_v61 = vld [vmem:[#allocation352_spill] sm:$0xff] }
 0x551   : > { %v3461_v8 = vrot.slane %v18084_v37, %v13750_v41  ;;  %v3511_v40 = vsel %vm3101_vm8, %v3510_v26, %v3506_v24  ;;  %v18085_v4 = vld [vmem:[#allocation326_spill] sm:$0xff]  ;;  %vm17151_vm7 = vcmask 1042434   ;;  %v3639_v62 = vsel %vm3059_vm2, %v3638_v55, %v3634_v49  ;;  %v18088_v37 = vld [vmem:[#allocation303_spill] sm:$0xff]  ;;  %v18090_v50 = vld [vmem:[#allocation344_spill] sm:$0xff] }
 0x552   : > { %v13994_v44 = vpop.permute.xlu1 %2916  ;;  %v14002_v51 = vpop.permute.xlu0 %2955  ;;  %v3520_v10 = vrot.slane %v18085_v4, %v13670_v45  ;;  %v3595_v20 = vsel %vm3108_vm9, %v3594_v57, %v3590_v3  ;;  %v3648_v18 = vrot.slane %v18087_v61, %v13614_v14  ;;  %v3466_v52 = vrot.slane %v18088_v37, %v13661_v35  ;;  %v18089_v26 = vld [vmem:[#allocation339_spill] sm:$0xff]  ;;  %v18093_v61 = vld [vmem:[#allocation333_spill] sm:$0xff] }
 0x553   : > { %18081 = vst [vmem:[#allocation276_spill] sm:$0xff] %v13994_v44  ;;  %v3643_v24 = vrot.slane %v18089_v26, %v13611_v53  ;;  %v3600_v4 = vsel %vm17148_vm10, %v3599_v7, %v3595_v20  ;;  %v3609_v46 = vrot.slane %v18090_v50, %v13718_v9  ;;  %v3457_v3 = vsel %vm3136_vm13, %v3456_v25, %v3452_v58  ;;  %v18092_v55 = vld [vmem:[#allocation315_spill] sm:$0xff]  ;;  %v18094_v20 = vld [vmem:[#allocation329_spill] sm:$0xff] }
 0x554   : > { %v3525_v57 = vrot.slane %v18092_v55, %v13635_v42  ;;  %v3516_v49 = vsel %vm3108_vm9, %v3515_v11, %v3511_v40  ;;  %v3604_v37 = vrot.slane %v18093_v61, %v13635_v42  ;;  %v3462_v26 = vsel %vm3143_vm14, %v3461_v8, %v3457_v3  ;;  %v18095_v40 = vld [vmem:[#allocation354_spill] sm:$0xff]  ;;  %v18096_v61 = vld [vmem:[#allocation341_spill] sm:$0xff] }
 0x555   : > { %v3521_v7 = vsel %vm17148_vm10, %v3520_v10, %v3516_v49  ;;  %v3530_v50 = vrot.slane %v18094_v20, %v13718_v9  ;;  %v3658_v11 = vrot.slane %v18095_v40, %v13641_v30  ;;  %v3708_v55 = vrot.slane %v13177_v16, %v13596_v0  ;;  %v18097_v3 = vld [vmem:[#allocation346_spill] sm:$0xff]  ;;  %v18099_v16 = vld [vmem:[#allocation335_spill] sm:$0xff] }
 0x556   : > { %v14023_v36 = vpop.permute.xlu1 %2922  ;;  %v14031_v44 = vpop.permute.xlu0 %2961  ;;  %v3605_v25 = vsel %vm3122_vm11, %v3604_v37, %v3600_v4  ;;  %v3653_v8 = vrot.slane %v18096_v61, %v13629_v56  ;;  %vm17150_vm10 = vcmask 1043459   ;;  %v3619_v49 = vrot.slane %v18097_v3, %v13750_v41  ;;  %v18100_v37 = vld [vmem:[#allocation353_spill] sm:$0xff] }
 0x557   : > { %18091 = vst [vmem:[#allocation249_spill] sm:$0xff] %v14023_v36  ;;  %v3644_v36 = vsel %vm3066_vm3, %v3643_v24, %v3639_v62  ;;  %v3610_v10 = vsel %vm3129_vm12, %v3609_v46, %v3605_v25  ;;  %v3717_v62 = vrot.slane %v13191_v59, %v13599_v29  ;;  %v3526_v4 = vsel %vm3122_vm11, %v3525_v57, %v3521_v7  ;;  %v18101_v25 = vld [vmem:[#allocation316_spill] sm:$0xff] }
 0x558   : > { %v3649_v58 = vsel %vm3073_vm4, %v3648_v18, %v3644_v36  ;;  %v3467_v18 = vsel %vm3150_vm15, %v3466_v52, %v3462_v26  ;;  %v3614_v36 = vrot.slane %v18099_v16, %v13638_v22  ;;  %v3712_v20 = vrot.slane %v18100_v37, %v13592_v1  ;;  %v18102_v59 = vld [vmem:[#allocation332_spill] sm:$0xff] }
 0x559   : > { %v3535_v40 = vrot.slane %v18101_v25, %v13638_v22  ;;  %v3531_v61 = vsel %vm3129_vm12, %v3530_v50, %v3526_v4  ;;  %v3540_v3 = vrot.slane %v18102_v59, %v13750_v41  ;;  %v3654_v52 = vsel %vm17155_vm5, %v3653_v8, %v3649_v58  ;;  %v18103_v7 = vld [vmem:[#allocation356_spill] sm:$0xff] }
 0x55a   : > { %v14051_v24 = vpop.permute.xlu1 %2928  ;;  %v14059_v46 = vpop.permute.xlu0 %2967  ;;  %v3615_v57 = vsel %vm3136_vm13, %v3614_v36, %v3610_v10  ;;  %v3659_v26 = vsel %vm17152_vm6, %v3658_v11, %v3654_v52  ;;  %v3668_v16 = vrot.slane %v18103_v7, %v13664_v2  ;;  %v3713_v37 = vsel %vm17154_vm1, %v3712_v20, %v3708_v55  ;;  %v18106_v10 = vld [vmem:[#allocation337_spill] sm:$0xff]  ;;  %v18108_v20 = vld [vmem:[#allocation318_spill] sm:$0xff] }
 0x55b   : > { %18098 = vst [vmem:[#allocation265_spill] sm:$0xff] %v14051_v24  ;;  %v18104_v24 = vld [vmem:[#allocation343_spill] sm:$0xff]  ;;  %v3620_v25 = vsel %vm3143_vm14, %v3619_v49, %v3615_v57  ;;  %v3718_v50 = vsel %vm3059_vm2, %v3717_v62, %v3713_v37  ;;  %v3727_v4 = vrot.slane %v13205_v38, %v13614_v14  ;;  %v4338_v11 = vsel %vm17149_vm0, %v13923_v21, %v13834_v17  ;;  %v18110_v7 = vld [vmem:[#allocation358_spill] sm:$0xff] }
 0x55c   : > { %v3663_v32 = vrot.slane %v18104_v24, %v13652_v63  ;;  %v18105_v55 = vrot.slane %v18067_v6, %v13661_v35  ;;  %v3624_v49 = vrot.slane %v18106_v10, %v13661_v35  ;;  %v18107_v62 = vld [vmem:[#allocation355_spill] sm:$0xff]  ;;  %v4340_v36 = vsel %vm17151_vm7, %v3467_v18, %v4338_v11 }
 0x55d   : > { %v3722_v24 = vrot.slane %v18107_v62, %v13611_v53  ;;  %v3545_v17 = vrot.slane %v18108_v20, %v13661_v35  ;;  %v3536_v21 = vsel %vm3136_vm13, %v3535_v40, %v3531_v61  ;;  %vm18109_vm0 = vcmask 523712   ;;  %v18111_v61 = vld [vmem:[#allocation345_spill] sm:$0xff] }
 0x55e   : > { %v14078_v58 = vpop.permute.xlu1 %2934  ;;  %v14088_v8 = vsel %vm3150_vm15, %v18105_v55, %v13981_v13  ;;  %v14094_v38 = vpop.permute.xlu0 %2973  ;;  %v3664_v6 = vsel %vm18109_vm0, %v3663_v32, %v3659_v26  ;;  %v3541_v13 = vsel %vm3143_vm14, %v3540_v3, %v3536_v21  ;;  %v3625_v59 = vsel %vm3150_vm15, %v3624_v49, %v3620_v25  ;;  %v18112_v26 = vld [vmem:[#allocation357_spill] sm:$0xff]  ;;  %v18115_v21 = vld [vmem:[#allocation359_spill] sm:$0xff] }
 0x55f   : > { %v3669_v52 = vsel %vm3101_vm8, %v3668_v16, %v3664_v6  ;;  %v3723_v57 = vsel %vm3066_vm3, %v3722_v24, %v3718_v50  ;;  %v3678_v37 = vrot.slane %v18110_v7, %v13670_v45  ;;  %v3737_v11 = vrot.slane %v13219_v5, %v13641_v30  ;;  %v18113_v5 = vld [vmem:[#allocation347_spill] sm:$0xff] }
 0x560   : > { %v3728_v18 = vsel %vm3073_vm4, %v3727_v4, %v3723_v57  ;;  %v3866_v40 = vrot.slane %v13407_v48, %v13596_v0  ;;  %v3673_v3 = vrot.slane %v18111_v61, %v13608_v31  ;;  %v3732_v16 = vrot.slane %v18112_v26, %v13629_v56 }
 0x561   : > { %v3875_v25 = vrot.slane %v13421_v34, %v13599_v29  ;;  %v4024_v50 = vrot.slane %v13680_v15, %v13596_v0  ;;  %v14123_v4 = vsel %vm3150_vm15, %v3545_v17, %v3541_v13  ;;  %v3683_v48 = vrot.slane %v18113_v5, %v13635_v42  ;;  %v18120_v5 = vld [vmem:[#allocation410_spill] sm:$0xff] }
 0x562   : > { %v14112_v32 = vpop.permute.xlu1 %2940  ;;  %v3870_v55 = vrot.slane %v13325_v19, %v13592_v1  ;;  %v4033_v10 = vrot.slane %v13704_v23, %v13599_v29  ;;  %v14132_v49 = vsel %vm17150_vm10, %v3625_v59, %v4340_v36  ;;  %v3674_v34 = vsel %vm3108_vm9, %v3673_v3, %v3669_v52  ;;  %v14138_v24 = vpop.permute.xlu0 %2979  ;;  %v18119_v3 = vld [vmem:[#allocation373_spill] sm:$0xff] }
 0x563   : > { %v3733_v62 = vsel %vm17155_vm5, %v3732_v16, %v3728_v18  ;;  %v4028_v15 = vrot.slane %v13545_v43, %v13592_v1  ;;  %vm18114_vm0 = vcmask 720512   ;;  %v3747_v19 = vrot.slane %v13233_v27, %v13664_v2  ;;  %v18116_v18 = vld [vmem:[#allocation361_spill] sm:$0xff] }
 0x564   : > { %v3679_v20 = vsel %vm18114_vm0, %v3678_v37, %v3674_v34  ;;  %v3738_v17 = vsel %vm17152_vm6, %v3737_v11, %v3733_v62  ;;  %v3871_v23 = vsel %vm17154_vm1, %v3870_v55, %v3866_v40  ;;  %v3742_v6 = vrot.slane %v18115_v21, %v13652_v63  ;;  %v18118_v40 = vld [vmem:[#allocation432_spill] sm:$0xff]  ;;  %v18121_v62 = vld [vmem:[#allocation393_spill] sm:$0xff] }
 0x565   : > { %v3876_v13 = vsel %vm3059_vm2, %v3875_v25, %v3871_v23  ;;  %v3885_v43 = vrot.slane %v13435_v60, %v13614_v14  ;;  %v4029_v59 = vsel %vm17154_vm1, %v4028_v15, %v4024_v50  ;;  %v3880_v52 = vrot.slane %v13339_v33, %v13611_v53  ;;  %v18123_v23 = vld [vmem:[#allocation363_spill] sm:$0xff] }
 0x566   : > { %v2947_v36 = vpop.permute.xlu1 %2946  ;;  %v4034_v57 = vsel %vm3059_vm2, %v4033_v10, %v4029_v59  ;;  %v4043_v27 = vrot.slane %v13730_v54, %v13614_v14  ;;  %v14158_v37 = vsel %vm3122_vm11, %v3683_v48, %v3679_v20  ;;  %v3752_v11 = vrot.slane %v18116_v18, %v13608_v31  ;;  %v14175_v10 = vpop.permute.xlu0 %2985 }
 0x567   : > { %v4182_v7 = vrot.slane %v2947_v36, %v13596_v0  ;;  %vm18117_vm0 = vcmask 523712   ;;  %v4038_v61 = vrot.slane %v18118_v40, %v13611_v53  ;;  %v3757_v26 = vrot.slane %v18119_v3, %v13670_v45  ;;  %v18128_v3 = vld [vmem:[#allocation396_spill] sm:$0xff] }
 0x568   : > { %v3743_v60 = vsel %vm18117_vm0, %v3742_v6, %v3738_v17  ;;  %v3881_v54 = vsel %vm3066_vm3, %v3880_v52, %v3876_v13  ;;  %v4186_v16 = vrot.slane %v13971_v12, %v13592_v1  ;;  %v3895_v48 = vrot.slane %v18120_v5, %v13641_v30  ;;  %v18122_v17 = vld [vmem:[#allocation261_spill] sm:$0xff]  ;;  %v18124_v6 = vld [vmem:[#allocation434_spill] sm:$0xff]  ;;  %v18126_v52 = vld [vmem:[#allocation376_spill] sm:$0xff] }
 0x569   : > { %v3748_v33 = vsel %vm3101_vm8, %v3747_v19, %v3743_v60  ;;  %v3886_v50 = vsel %vm3073_vm4, %v3885_v43, %v3881_v54  ;;  %v4039_v55 = vsel %vm3066_vm3, %v4038_v61, %v4034_v57  ;;  %v3890_v15 = vrot.slane %v18121_v62, %v13629_v56 }
 0x56a   : > { %v2953_v25 = vpop.permute.xlu1 %2952  ;;  %v4044_v20 = vsel %vm3073_vm4, %v4043_v27, %v4039_v55  ;;  %v4053_v12 = vrot.slane %v18122_v17, %v13641_v30  ;;  %v4187_v19 = vsel %vm17154_vm1, %v4186_v16, %v4182_v7  ;;  %v3762_v36 = vrot.slane %v18123_v23, %v13635_v42  ;;  %v18129_v16 = vld [vmem:[#allocation262_spill] sm:$0xff]  ;;  %v18131_v55 = vld [vmem:[#allocation436_spill] sm:$0xff]  ;;  %v14212_v62 = vpop.permute.xlu0 %2991  ;;  %v18132_v17 = vld [vmem:[#allocation379_spill] sm:$0xff] }
 0x56b   : > { %v4191_v34 = vrot.slane %v2953_v25, %v13599_v29  ;;  %v3753_v21 = vsel %vm3108_vm9, %v3752_v11, %v3748_v33  ;;  %v4048_v13 = vrot.slane %v18124_v6, %v13629_v56  ;;  %vm18125_vm0 = vcmask 720512   ;;  %v18127_v11 = vld [vmem:[#allocation413_spill] sm:$0xff]  ;;  %v18134_v6 = vld [vmem:[#allocation416_spill] sm:$0xff] }
 0x56c   : > { %v3758_v59 = vsel %vm18125_vm0, %v3757_v26, %v3753_v21  ;;  %v3767_v57 = vrot.slane %v18126_v52, %v13718_v9  ;;  %v3891_v27 = vsel %vm17155_vm5, %v3890_v15, %v3886_v50  ;;  %v4196_v7 = vrot.slane %v14002_v51, %v13611_v53  ;;  %v18130_v50 = vld [vmem:[#allocation364_spill] sm:$0xff]  ;;  %v18136_v52 = vld [vmem:[#allocation399_spill] sm:$0xff] }
 0x56d   : > { %v4192_v43 = vsel %vm3059_vm2, %v4191_v34, %v4187_v19  ;;  %v3896_v60 = vsel %vm17152_vm6, %v3895_v48, %v3891_v27  ;;  %v3905_v40 = vrot.slane %v18127_v11, %v13664_v2  ;;  %v4049_v61 = vsel %vm17155_vm5, %v4048_v13, %v4044_v20 }
 0x56e   : > { %v2959_v18 = vpop.permute.xlu1 %2958  ;;  %v3900_v26 = vrot.slane %v18128_v3, %v13652_v63  ;;  %v4054_v54 = vsel %vm17152_vm6, %v4053_v12, %v4049_v61  ;;  %v4063_v25 = vrot.slane %v18129_v16, %v13664_v2  ;;  %v4197_v51 = vsel %vm3066_vm3, %v4196_v7, %v4192_v43  ;;  %v18137_v7 = vld [vmem:[#allocation274_spill] sm:$0xff]  ;;  %v18139_v61 = vld [vmem:[#allocation440_spill] sm:$0xff] }
 0x56f   : > { %v4201_v33 = vrot.slane %v2959_v18, %v13614_v14  ;;  %v3772_v5 = vrot.slane %v18130_v50, %v13638_v22  ;;  %v3763_v48 = vsel %vm3122_vm11, %v3762_v36, %v3758_v59  ;;  %v4058_v34 = vrot.slane %v18131_v55, %v13652_v63 }
 0x570   : > { %v3768_v20 = vsel %vm3129_vm12, %v3767_v57, %v3763_v48  ;;  %v3777_v12 = vrot.slane %v18132_v17, %v13750_v41  ;;  %vm18133_vm0 = vcmask 523712   ;;  %v4206_v23 = vrot.slane %v14031_v44, %v13629_v56  ;;  %v18143_v17 = vld [vmem:[#allocation402_spill] sm:$0xff] }
 0x571   : > { %v4202_v15 = vsel %vm3073_vm4, %v4201_v33, %v4197_v51  ;;  %v3901_v19 = vsel %vm18133_vm0, %v3900_v26, %v3896_v60  ;;  %v3915_v13 = vrot.slane %v18134_v6, %v13670_v45  ;;  %vm18135_vm10 = vmmov %vm18133_vm0  ;;  %vm4343_vm7 = vcmask 1044484   ;;  %v18138_v60 = vld [vmem:[#allocation360_spill] sm:$0xff]  ;;  %v18140_v26 = vld [vmem:[#allocation366_spill] sm:$0xff] }
 0x572   : > { %v2965_v21 = vpop.permute.xlu1 %2964  ;;  %v3906_v36 = vsel %vm3101_vm8, %v3905_v40, %v3901_v19  ;;  %v4059_v43 = vsel %vm18135_vm10, %v4058_v34, %v4054_v54  ;;  %v3910_v57 = vrot.slane %v18136_v52, %v13608_v31  ;;  %v4073_v18 = vrot.slane %v18137_v7, %v13670_v45 }
 0x573   : > { %v4211_v59 = vrot.slane %v2965_v21, %v13641_v30  ;;  %v4064_v27 = vsel %vm3101_vm8, %v4063_v25, %v4059_v43  ;;  %v4207_v44 = vsel %vm17155_vm5, %v4206_v23, %v4202_v15  ;;  %v3688_v11 = vrot.slane %v18138_v60, %v13718_v9  ;;  %v14248_v15 = vpop.permute.xlu0 %2997  ;;  %v18146_v21 = vld [vmem:[#allocation349_spill] sm:$0xff] }
 0x574   : > { %v3773_v40 = vsel %vm3136_vm13, %v3772_v5, %v3768_v20  ;;  %v4068_v33 = vrot.slane %v18139_v61, %v13608_v31  ;;  %v3782_v54 = vrot.slane %v18140_v26, %v13661_v35  ;;  %v3911_v25 = vsel %vm3108_vm9, %v3910_v57, %v3906_v36  ;;  %v18142_v5 = vld [vmem:[#allocation419_spill] sm:$0xff]  ;;  %v18148_v57 = vld [vmem:[#allocation382_spill] sm:$0xff]  ;;  %v18150_v61 = vld [vmem:[#allocation404_spill] sm:$0xff] }
 0x575   : > { %v4212_v3 = vsel %vm17152_vm6, %v4211_v59, %v4207_v44  ;;  %v3778_v16 = vsel %vm3143_vm14, %v3777_v12, %v3773_v40  ;;  %v4216_v51 = vrot.slane %v14059_v46, %v13652_v63  ;;  %vm18141_vm10 = vcmask 720512   ;;  %v18151_v26 = vld [vmem:[#allocation284_spill] sm:$0xff] }
 0x576   : > { %v2971_v50 = vpop.permute.xlu1 %2970  ;;  %v3916_v48 = vsel %vm18141_vm10, %v3915_v13, %v3911_v25  ;;  %v3925_v55 = vrot.slane %v18142_v5, %v13718_v9  ;;  %v4069_v34 = vsel %vm3108_vm9, %v4068_v33, %v4064_v27  ;;  %v3920_v12 = vrot.slane %v18143_v17, %v13635_v42  ;;  %vm18144_vm0 = vmmov %vm18141_vm10  ;;  %v18147_v13 = vld [vmem:[#allocation443_spill] sm:$0xff]  ;;  %v18152_v25 = vld [vmem:[#allocation368_spill] sm:$0xff] }
 0x577   : > { %v4221_v20 = vrot.slane %v2971_v50, %v13664_v2  ;;  %v4074_v19 = vsel %vm18144_vm0, %v4073_v18, %v4069_v34  ;;  %v4083_v46 = vrot.slane %v13846_v47, %v13718_v9  ;;  %vm18145_vm6 = vcmask 523712   ;;  %v18153_v50 = vld [vmem:[#allocation445_spill] sm:$0xff]  ;;  %v14288_v5 = vpop.permute.xlu0 %3003  ;;  %v18155_v34 = vld [vmem:[#allocation370_spill] sm:$0xff] }
 0x578   : > { %v4217_v23 = vsel %vm18145_vm6, %v4216_v51, %v4212_v3  ;;  %v3693_v36 = vrot.slane %v18146_v21, %v13638_v22  ;;  %v3689_v6 = vsel %vm3129_vm12, %v3688_v11, %v14158_v37  ;;  %v4078_v43 = vrot.slane %v18147_v13, %v13635_v42  ;;  %v18149_v37 = vld [vmem:[#allocation422_spill] sm:$0xff]  ;;  %vm18154_vm6 = vmmov %vm18144_vm0 }
 0x579   : > { %v4222_v59 = vsel %vm3101_vm8, %v4221_v20, %v4217_v23  ;;  %v3783_v52 = vsel %vm3150_vm15, %v3782_v54, %v3778_v16  ;;  %v3787_v27 = vrot.slane %v18148_v57, %v13596_v0  ;;  %v3921_v47 = vsel %vm3122_vm11, %v3920_v12, %v3916_v48  ;;  %v18156_v13 = vld [vmem:[#allocation406_spill] sm:$0xff]  ;;  %v18157_v57 = vld [vmem:[#allocation385_spill] sm:$0xff] }
 0x57a   : > { %v4226_v7 = vrot.slane %v14094_v38, %v13608_v31  ;;  %v2977_v18 = vpop.permute.xlu1 %2976  ;;  %v3926_v44 = vsel %vm3129_vm12, %v3925_v55, %v3921_v47  ;;  %v3935_v60 = vrot.slane %v18149_v37, %v13750_v41  ;;  %v4079_v11 = vsel %vm3122_vm11, %v4078_v43, %v4074_v19  ;;  %v18160_v37 = vld [vmem:[#allocation425_spill] sm:$0xff] }
 0x57b   : > { %v4231_v40 = vrot.slane %v2977_v18, %v13670_v45  ;;  %v3930_v33 = vrot.slane %v18150_v61, %v13638_v22  ;;  %v4084_v3 = vsel %vm3129_vm12, %v4083_v46, %v4079_v11  ;;  %v4093_v54 = vrot.slane %v18151_v26, %v13750_v41  ;;  %v18161_v61 = vld [vmem:[#allocation428_spill] sm:$0xff] }
 0x57c   : > { %v4227_v38 = vsel %vm3108_vm9, %v4226_v7, %v4222_v59  ;;  %v14282_v16 = vsel %vm3136_vm13, %v3693_v36, %v3689_v6  ;;  %v3791_v51 = vrot.slane %v18152_v25, %v13592_v1  ;;  %v4088_v48 = vrot.slane %v18153_v50, %v13638_v22  ;;  %v18159_v7 = vld [vmem:[#allocation260_spill] sm:$0xff] }
 0x57d   : > { %v4232_v55 = vsel %vm18154_vm6, %v4231_v40, %v4227_v38  ;;  %v3801_v20 = vrot.slane %v18155_v34, %v13611_v53  ;;  %v3931_v17 = vsel %vm3136_vm13, %v3930_v33, %v3926_v44  ;;  %v4236_v12 = vrot.slane %v14138_v24, %v13635_v42 }
 0x57e   : > { %v2983_v19 = vpop.permute.xlu1 %2982  ;;  %vm4345_vm10 = vcmask 1045509   ;;  %v4344_v46 = vsel %vm4343_vm7, %v3783_v52, %v14132_v49  ;;  %v3936_v23 = vsel %vm3143_vm14, %v3935_v60, %v3931_v17  ;;  %v4089_v21 = vsel %vm3136_vm13, %v4088_v48, %v4084_v3  ;;  %v18158_v49 = vld [vmem:[#allocation408_spill] sm:$0xff] }
 0x57f   : > { %v4241_v36 = vrot.slane %v2983_v19, %v13718_v9  ;;  %v3792_v6 = vsel %vm17154_vm1, %v3791_v51, %v3787_v27  ;;  %v3940_v43 = vrot.slane %v18156_v13, %v13661_v35  ;;  %v4094_v59 = vsel %vm3143_vm14, %v4093_v54, %v4089_v21  ;;  %v14324_v54 = vpop.permute.xlu0 %3009  ;;  %v18162_v48 = vld [vmem:[#allocation272_spill] sm:$0xff] }
 0x580   : > { %v4237_v24 = vsel %vm3122_vm11, %v4236_v12, %v4232_v55  ;;  %v3796_v47 = vrot.slane %v18157_v57, %v13599_v29  ;;  %v3949_v52 = vrot.slane %v18158_v49, %v13592_v1  ;;  %v4098_v18 = vrot.slane %v18159_v7, %v13661_v35  ;;  %v18163_v17 = vld [vmem:[#allocation388_spill] sm:$0xff]  ;;  %v18166_v57 = vld [vmem:[#allocation255_spill] sm:$0xff] }
 0x581   : > { %v4242_v44 = vsel %vm3129_vm12, %v4241_v36, %v4237_v24  ;;  %v3941_v27 = vsel %vm3150_vm15, %v3940_v43, %v3936_v23  ;;  %v3945_v60 = vrot.slane %v18160_v37, %v13596_v0  ;;  %v4246_v11 = vrot.slane %v14175_v10, %v13638_v22  ;;  %v18164_v36 = vld [vmem:[#allocation430_spill] sm:$0xff]  ;;  %v18169_v37 = vld [vmem:[#allocation247_spill] sm:$0xff] }
 0x582   : > { %v2989_v40 = vpop.permute.xlu1 %2988  ;;  %vm17175_vm0 = vcmask 1046534   ;;  %v3954_v33 = vrot.slane %v18161_v61, %v13599_v29  ;;  %v4099_v3 = vsel %vm3150_vm15, %v4098_v18, %v4094_v59  ;;  %v4103_v26 = vrot.slane %v13904_v28, %v13596_v0  ;;  %v18168_v18 = vld [vmem:[#allocation371_spill] sm:$0xff]  ;;  %v18170_v61 = vld [vmem:[#allocation390_spill] sm:$0xff] }
 0x583   : > { %v4251_v38 = vrot.slane %v2989_v40, %v13750_v41  ;;  %v4112_v25 = vrot.slane %v13934_v39, %v13599_v29  ;;  %v4256_v10 = vrot.slane %v14212_v62, %v13661_v35  ;;  %v4247_v51 = vsel %vm3136_vm13, %v4246_v11, %v4242_v44  ;;  %v14366_v11 = vpop.permute.xlu0 %3015 }
 0x584   : > { %vm17153_vm6 = vcmask 1047559   ;;  %v3797_v50 = vsel %vm3059_vm2, %v3796_v47, %v3792_v6  ;;  %v4107_v55 = vrot.slane %v18162_v48, %v13592_v1  ;;  %v4346_v34 = vsel %vm4345_vm10, %v3941_v27, %v4344_v46  ;;  %v18165_v46 = vld [vmem:[#allocation411_spill] sm:$0xff]  ;;  %v18172_v48 = vld [vmem:[#allocation414_spill] sm:$0xff] }
 0x585   : > { %v4252_v28 = vsel %vm3143_vm14, %v4251_v38, %v4247_v51  ;;  %v3806_v12 = vrot.slane %v18163_v17, %v13614_v14  ;;  %v3950_v39 = vsel %vm17154_vm1, %v3949_v52, %v3945_v60  ;;  %v4348_v23 = vsel %vm17175_vm0, %v4099_v3, %v4346_v34  ;;  %v18167_v52 = vld [vmem:[#allocation362_spill] sm:$0xff]  ;;  %v18173_v34 = vld [vmem:[#allocation276_spill] sm:$0xff] }
 0x586   : > { %v2995_v19 = vpop.permute.xlu1 %2994  ;;  %v4257_v62 = vsel %vm3150_vm15, %v4256_v10, %v4252_v28  ;;  %v3955_v21 = vsel %vm3059_vm2, %v3954_v33, %v3950_v39  ;;  %v3964_v6 = vrot.slane %v18164_v36, %v13614_v14  ;;  %v4108_v13 = vsel %vm17154_vm1, %v4107_v55, %v4103_v26 }
 0x587   : > { %v14347_v43 = vsel %vm17153_vm6, %v4257_v62, %v4348_v23  ;;  %v3959_v59 = vrot.slane %v18165_v46, %v13611_v53  ;;  %v4113_v24 = vsel %vm3059_vm2, %v4112_v25, %v4108_v13  ;;  %v4122_v47 = vrot.slane %v18166_v57, %v13614_v14  ;;  %v18175_v62 = vld [vmem:[#allocation253_spill] sm:$0xff] }
 0x588   : > { %v4261_v49 = vrot.slane %v2995_v19, %v13596_v0  ;;  %4363 = vst [vmem:[%s14355_s25] sm:$0xff] %v14347_v43  ;;  %v3698_v7 = vrot.slane %v18167_v52, %v13750_v41  ;;  %v3811_v44 = vrot.slane %v18168_v18, %v13629_v56  ;;  %v3802_v27 = vsel %vm3066_vm3, %v3801_v20, %v3797_v50  ;;  %v18171_v20 = vld [vmem:[#allocation431_spill] sm:$0xff]  ;;  %v18208_v52 = vld [vmem:[#allocation386_spill] sm:$0xff] }
 0x589   : > { %v4117_v60 = vrot.slane %v18169_v37, %v13611_v53  ;;  %v3807_v40 = vsel %vm3073_vm4, %v3806_v12, %v3802_v27  ;;  %v3816_v33 = vrot.slane %v18170_v61, %v13641_v30  ;;  %v3960_v3 = vsel %vm3066_vm3, %v3959_v59, %v3955_v21  ;;  %v18174_v12 = vld [vmem:[#allocation374_spill] sm:$0xff]  ;;  %v18180_v37 = vld [vmem:[#allocation417_spill] sm:$0xff] }
 0x58a   : > { %v4265_v26 = vrot.slane %v14248_v15, %v13592_v1  ;;  %v3001_v38 = vpop.permute.xlu1 %3000  ;;  %v3965_v25 = vsel %vm3073_vm4, %v3964_v6, %v3960_v3  ;;  %v3974_v10 = vrot.slane %v18171_v20, %v13641_v30  ;;  %v3969_v55 = vrot.slane %v18172_v48, %v13629_v56  ;;  %v18177_v6 = vld [vmem:[#allocation392_spill] sm:$0xff]  ;;  %v18182_v61 = vld [vmem:[#allocation249_spill] sm:$0xff] }
 0x58b   : > { %v4118_v51 = vsel %vm3066_vm3, %v4117_v60, %v4113_v24  ;;  %v4270_v50 = vrot.slane %v3001_v38, %v13599_v29  ;;  %v4132_v17 = vrot.slane %v18173_v34, %v13641_v30  ;;  %v3821_v39 = vrot.slane %v18174_v12, %v13652_v63  ;;  %v18183_v3 = vld [vmem:[#allocation377_spill] sm:$0xff] }
 0x58c   : > { %v4123_v28 = vsel %vm3073_vm4, %v4122_v47, %v4118_v51  ;;  %v4266_v15 = vsel %vm17154_vm1, %v4265_v26, %v4261_v49  ;;  %v3812_v19 = vsel %vm17155_vm5, %v3811_v44, %v3807_v40  ;;  %v4127_v23 = vrot.slane %v18175_v62, %v13629_v56  ;;  %v18179_v47 = vld [vmem:[#allocation433_spill] sm:$0xff]  ;;  %v3022_v44 = vpop.permute.xlu0 %3021  ;;  %v18189_v62 = vld [vmem:[#allocation420_spill] sm:$0xff] }
 0x58d   : > { %v4271_v21 = vsel %vm3059_vm2, %v4270_v50, %v4266_v15  ;;  %vm18176_vm6 = vcmask 458112   ;;  %v3826_v13 = vrot.slane %v18177_v6, %v13664_v2  ;;  %v3970_v46 = vsel %vm17155_vm5, %v3969_v55, %v3965_v25  ;;  %v18185_v25 = vld [vmem:[#allocation254_spill] sm:$0xff]  ;;  %v18186_v50 = vld [vmem:[#allocation395_spill] sm:$0xff] }
 0x58e   : > { %v3817_v36 = vsel %vm18176_vm6, %v3816_v33, %v3812_v19  ;;  %v4275_v59 = vrot.slane %v14288_v5, %v13611_v53  ;;  %v3007_v24 = vpop.permute.xlu1 %3006  ;;  %vm18178_vm1 = vmmov %vm18176_vm6  ;;  %v3984_v49 = vrot.slane %v18179_v47, %v13664_v2  ;;  %v4128_v18 = vsel %vm17155_vm5, %v4127_v23, %v4123_v28  ;;  %v18188_v15 = vld [vmem:[#allocation435_spill] sm:$0xff] }
 0x58f   : > { %v3975_v57 = vsel %vm18178_vm1, %v3974_v10, %v3970_v46  ;;  %v4280_v27 = vrot.slane %v3007_v24, %v13614_v14  ;;  %v3979_v60 = vrot.slane %v18180_v37, %v13652_v63  ;;  %vm18181_vm6 = vmmov %vm18178_vm1  ;;  %v4142_v33 = vrot.slane %v18182_v61, %v13664_v2  ;;  %v18192_v24 = vld [vmem:[#allocation263_spill] sm:$0xff] }
 0x590   : > { %v4133_v40 = vsel %vm18181_vm6, %v4132_v17, %v4128_v18  ;;  %v4276_v5 = vsel %vm3066_vm3, %v4275_v59, %v4271_v21  ;;  %v3831_v26 = vrot.slane %v18183_v3, %v13608_v31  ;;  %vm18184_vm1 = vcmask 523712   ;;  %v3028_v47 = vpop.permute.xlu0 %3027 }
 0x591   : > { %v3822_v38 = vsel %vm18184_vm1, %v3821_v39, %v3817_v36  ;;  %v4137_v20 = vrot.slane %v18185_v25, %v13652_v63  ;;  %v4281_v10 = vsel %vm3073_vm4, %v4280_v27, %v4276_v5  ;;  %v3836_v48 = vrot.slane %v18186_v50, %v13670_v45  ;;  %vm18187_vm6 = vmmov %vm18184_vm1  ;;  %v18190_v36 = vld [vmem:[#allocation265_spill] sm:$0xff]  ;;  %v18195_v27 = vld [vmem:[#allocation398_spill] sm:$0xff] }
 0x592   : > { %v3827_v51 = vsel %vm3101_vm8, %v3826_v13, %v3822_v38  ;;  %v3980_v55 = vsel %vm18187_vm6, %v3979_v60, %v3975_v57  ;;  %v4285_v28 = vrot.slane %v14324_v54, %v13629_v56  ;;  %v3013_v34 = vpop.permute.xlu1 %3012  ;;  %v3994_v12 = vrot.slane %v18188_v15, %v13670_v45  ;;  %v18191_v13 = vld [vmem:[#allocation380_spill] sm:$0xff]  ;;  %v18197_v5 = vld [vmem:[#allocation439_spill] sm:$0xff] }
 0x593   : > { %v3985_v17 = vsel %vm3101_vm8, %v3984_v49, %v3980_v55  ;;  %v4138_v39 = vsel %vm18184_vm1, %v4137_v20, %v4133_v40  ;;  %v4290_v19 = vrot.slane %v3013_v34, %v13641_v30  ;;  %v3989_v23 = vrot.slane %v18189_v62, %v13608_v31  ;;  %v18198_v25 = vld [vmem:[#allocation423_spill] sm:$0xff] }
 0x594   : > { %v4143_v21 = vsel %vm3101_vm8, %v4142_v33, %v4138_v39  ;;  %v4152_v6 = vrot.slane %v18190_v36, %v13670_v45  ;;  %v4286_v54 = vsel %vm17155_vm5, %v4285_v28, %v4281_v10  ;;  %v3841_v46 = vrot.slane %v18191_v13, %v13635_v42  ;;  %v18201_v50 = vld [vmem:[#allocation383_spill] sm:$0xff]  ;;  %v18202_v28 = vld [vmem:[#allocation248_spill] sm:$0xff] }
 0x595   : > { %v3832_v59 = vsel %vm3108_vm9, %v3831_v26, %v3827_v51  ;;  %v4147_v57 = vrot.slane %v18192_v24, %v13608_v31  ;;  %vm18193_vm6 = vcmask 458112   ;;  %vm18194_vm1 = vcmask 720512  }
 0x596   : > { %v4291_v49 = vsel %vm18193_vm6, %v4290_v19, %v4286_v54  ;;  %v3837_v18 = vsel %vm18194_vm1, %v3836_v48, %v3832_v59  ;;  %v3846_v37 = vrot.slane %v18195_v27, %v13718_v9  ;;  %v3990_v60 = vsel %vm3108_vm9, %v3989_v23, %v3985_v17  ;;  %v3019_v61 = vpop.permute.xlu1 %3018  ;;  %vm18196_vm5 = vmmov %vm18194_vm1  ;;  %v3034_v54 = vpop.permute.xlu0 %3033  ;;  %v18206_v27 = vld [vmem:[#allocation286_spill] sm:$0xff] }
 0x597   : > { %v4295_v40 = vrot.slane %v14366_v11, %v13652_v63  ;;  %v3995_v33 = vsel %vm18196_vm5, %v3994_v12, %v3990_v60  ;;  %v4004_v3 = vrot.slane %v18197_v5, %v13718_v9  ;;  %v4148_v26 = vsel %vm3108_vm9, %v4147_v57, %v4143_v21  ;;  %vm18199_vm6 = vmmov %vm18194_vm1  ;;  %v18203_v12 = vld [vmem:[#allocation401_spill] sm:$0xff]  ;;  %v18204_v21 = vld [vmem:[#allocation442_spill] sm:$0xff] }
 0x598   : > { %v4300_v38 = vrot.slane %v3019_v61, %v13664_v2  ;;  %v3999_v20 = vrot.slane %v18198_v25, %v13635_v42  ;;  %v4153_v10 = vsel %vm18199_vm6, %v4152_v6, %v4148_v26  ;;  %v4162_v51 = vrot.slane %v14078_v58, %v13718_v9 }
 0x599   : > { %vm18200_vm1 = vcmask 523712   ;;  %v3851_v48 = vrot.slane %v18201_v50, %v13638_v22  ;;  %v3842_v55 = vsel %vm3122_vm11, %v3841_v46, %v3837_v18  ;;  %v4157_v34 = vrot.slane %v18202_v28, %v13635_v42  ;;  %v18205_v46 = vld [vmem:[#allocation426_spill] sm:$0xff] }
 0x59a   : > { %v4296_v11 = vsel %vm18200_vm1, %v4295_v40, %v4291_v49  ;;  %v3847_v15 = vsel %vm3129_vm12, %v3846_v37, %v3842_v55  ;;  %v3856_v39 = vrot.slane %v18203_v12, %v13750_v41  ;;  %v4000_v19 = vsel %vm3122_vm11, %v3999_v20, %v3995_v33  ;;  %v3025_v62 = vpop.permute.xlu1 %3024  ;;  %v18207_v40 = vld [vmem:[#allocation351_spill] sm:$0xff]  ;;  %v18209_v20 = vld [vmem:[#allocation429_spill] sm:$0xff] }
 0x59b   : > { %v4301_v17 = vsel %vm3101_vm8, %v4300_v38, %v4296_v11  ;;  %v4305_v58 = vrot.slane %v3022_v44, %v13608_v31  ;;  %v4005_v23 = vsel %vm3129_vm12, %v4004_v3, %v4000_v19  ;;  %v4014_v36 = vrot.slane %v18204_v21, %v13750_v41  ;;  %v18212_v55 = vld [vmem:[#allocation273_spill] sm:$0xff] }
 0x59c   : > { %v4158_v6 = vsel %vm3122_vm11, %v4157_v34, %v4153_v10  ;;  %v4310_v13 = vrot.slane %v3025_v62, %v13670_v45  ;;  %v4009_v59 = vrot.slane %v18205_v46, %v13638_v22  ;;  %v4172_v57 = vrot.slane %v14112_v32, %v13750_v41  ;;  %v3040_v34 = vpop.permute.xlu0 %3039 }
 0x59d   : > { %v4163_v24 = vsel %vm3129_vm12, %v4162_v51, %v4158_v6  ;;  %v4306_v44 = vsel %vm3108_vm9, %v4305_v58, %v4301_v17  ;;  %v3699_v49 = vsel %vm3143_vm14, %v3698_v7, %v14282_v16  ;;  %v3852_v18 = vsel %vm3136_vm13, %v3851_v48, %v3847_v15 }
 0x59e   : > { %v4167_v37 = vrot.slane %v18206_v27, %v13638_v22  ;;  %v4311_v60 = vsel %vm18196_vm5, %v4310_v13, %v4306_v44  ;;  %v3703_v61 = vrot.slane %v18207_v40, %v13661_v35  ;;  %v3857_v32 = vsel %vm3143_vm14, %v3856_v39, %v3852_v18  ;;  %v3031_v3 = vpop.permute.xlu1 %3030  ;;  %v18220_v27 = vld [vmem:[#allocation200_spill] sm:$0xff] }
 0x59f   : > { %v4010_v33 = vsel %vm3136_vm13, %v4009_v59, %v4005_v23  ;;  %v4315_v5 = vrot.slane %v3028_v47, %v13635_v42  ;;  %v3861_v16 = vrot.slane %v18208_v52, %v13661_v35  ;;  %v4320_v38 = vrot.slane %v3031_v3, %v13718_v9  ;;  %v18210_v47 = vld [vmem:[#allocation264_spill] sm:$0xff] }
 0x5a0   : > { %v4015_v7 = vsel %vm3143_vm14, %v4014_v36, %v4010_v33  ;;  %v4168_v26 = vsel %vm3136_vm13, %v4167_v37, %v4163_v24  ;;  %v3704_v25 = vsel %vm3150_vm15, %v3703_v61, %v3699_v49  ;;  %v4019_v10 = vrot.slane %v18209_v20, %v13661_v35  ;;  %v14524_v24 = vld [vmem:[#allocation2] sm:$0xff]  ;;  %v18224_v33 = vld [vmem:[#allocation206_spill] sm:$0xff]  ;;  %v18225_v3 = vld [vmem:[#allocation204_spill] sm:$0xff] }
 0x5a1   : > { %v4173_v51 = vsel %vm3143_vm14, %v4172_v57, %v4168_v26  ;;  %v4316_v11 = vsel %vm3122_vm11, %v4315_v5, %v4311_v60  ;;  %vm18211_vm6 = vcmask 1041409   ;;  %v3862_v48 = vsel %vm3150_vm15, %v3861_v16, %v3857_v32  ;;  %18216 = vst [vmem:[#allocation256_spill] sm:$0xff] %v14524_v24  ;;  %v18222_v60 = vld [vmem:[#allocation203_spill] sm:$0xff]  ;;  %v18223_v61 = vld [vmem:[#allocation217_spill] sm:$0xff] }
 0x5a2   : > { %v4351_v50 = vsel %vm18211_vm6, %v14088_v8, %v18210_v47  ;;  %v4177_v28 = vrot.slane %v18212_v55, %v13661_v35  ;;  %v4321_v17 = vsel %vm3129_vm12, %v4320_v38, %v4316_v11  ;;  %vm18213_vm1 = vcmask 1042434   ;;  %v3037_v19 = vpop.permute.xlu1 %3036  ;;  %v18226_v55 = vld [vmem:[#allocation205_spill] sm:$0xff] }
 0x5a3   : > { %v4352_v15 = vsel %vm18213_vm1, %v14123_v4, %v4351_v50  ;;  %v4020_v12 = vsel %vm3150_vm15, %v4019_v10, %v4015_v7  ;;  %v4325_v39 = vrot.slane %v3034_v54, %v13638_v22  ;;  %vm18214_vm5 = vcmask 1043459  }
 0x5a4   : > { %v4353_v58 = vsel %vm18214_vm5, %v3704_v25, %v4352_v15  ;;  %v4178_v8 = vsel %vm3150_vm15, %v4177_v28, %v4173_v51  ;;  %v4330_v62 = vrot.slane %v3037_v19, %v13750_v41  ;;  %v4335_v21 = vrot.slane %v3040_v34, %v13661_v35  ;;  %v18227_v34 = vld [vmem:[#allocation207_spill] sm:$0xff]  ;;  %v18228_v15 = vld [vmem:[#allocation221_spill] sm:$0xff] }
 0x5a5   : > { %v4354_v23 = vsel %vm4343_vm7, %v3862_v48, %v4353_v58  ;;  %v4326_v36 = vsel %vm3136_vm13, %v4325_v39, %v4321_v17  ;;  %vm18215_vm6 = vcmask 1047559   ;;  %vm18218_vm1 = vcmask 7168   ;;  %v18229_v39 = vld [vmem:[#allocation210_spill] sm:$0xff]  ;;  %v18230_v58 = vld [vmem:[#allocation223_spill] sm:$0xff] }
 0x5a6   : > { %v4331_v4 = vsel %vm3143_vm14, %v4330_v62, %v4326_v36  ;;  %v4355_v6 = vsel %vm4345_vm10, %v4020_v12, %v4354_v23  ;;  %v18231_v23 = vld [vmem:[#allocation212_spill] sm:$0xff]  ;;  %vm18369_vm5 = vcmask 130112  }
 0x5a7   : > { %v4336_v13 = vsel %vm3150_vm15, %v4335_v21, %v4331_v4  ;;  %v4356_v54 = vsel %vm17175_vm0, %v4178_v8, %v4355_v6 }
 0x5a8   : > { %v4357_v46 = vsel %vm18215_vm6, %v4336_v13, %v4356_v54  ;;  %v18232_v13 = vld [vmem:[#allocation225_spill] sm:$0xff]  ;;  %vm18370_vm6 = vmmov %vm18369_vm5 }
 0x5a9   : > { %v4366_v59 = vmax.f32 %v14347_v43, %v4357_v46  ;;  %4364 = vst [vmem:[%s14355_s25 + $0x8] sm:$0xff] %v4357_v46  ;;  %v18221_v43 = vsub.s32 0, %v18220_v27 }
 0x5ab   : > { %4367 = vmax.xlane.f32.xlu1 %v4366_v59  ;;  %v18233_v59 = vld [vmem:[#allocation214_spill] sm:$0xff] }
 0x638   : > { %v4368_v57 = vpop.xlane.xlu1 %4367 }
 0x639   : > { %v14527_v44 = vmax.f32 %v14524_v24, %v4368_v57 }
 0x63b   : > { %18217 = vst [vmem:[#allocation288_spill] sm:$0xff] %v14527_v44  ;;  %8882 = vst.msk [vmem:[#allocation2] sm:$0xff] %vm18218_vm1, %v14527_v44  ;;  %4375 = vperm.xlu0 %9692, %v14527_v44   ;;  %vm18373_vm1 = vcmask 392512  }
 0x6ba   : > { %v14534_v18 = vpop.permute.xlu0 %4375 }
 0x6bb   : > { %18219 = vst [vmem:[#allocation266_spill] sm:$0xff] %v14534_v18  ;;  %v14539_v37 = vrot.slane %v14534_v18, %v18221_v43 }
 0x6bd   : > { %v4417_v40 = vsub.f32 %v18222_v60, %v14539_v37  ;;  %v4425_v32 = vsub.f32 %v18223_v61, %v14539_v37  ;;  %v4426_v5 = vsub.f32 %v18224_v33, %v14539_v37  ;;  %v4418_v52 = vsub.f32 %v18225_v3, %v14539_v37  ;;  %v18234_v60 = vld [vmem:[#allocation209_spill] sm:$0xff]  ;;  %v18235_v61 = vld [vmem:[#allocation211_spill] sm:$0xff] }
 0x6be   : > { %v4419_v28 = vsub.f32 %v18226_v55, %v14539_v37  ;;  %v4420_v17 = vsub.f32 %v18227_v34, %v14539_v37  ;;  %v4429_v12 = vsub.f32 %v18228_v15, %v14539_v37  ;;  %v4430_v19 = vsub.f32 %v18229_v39, %v14539_v37  ;;  %v18236_v33 = vld [vmem:[#allocation227_spill] sm:$0xff] }
 0x6bf   : > { %v4689_v16 = vmul.f32 1.442695, %v4425_v32  ;;  %v4691_v7 = vmul.f32 1.442695, %v4426_v5  ;;  %v4673_v26 = vmul.f32 1.442695, %v4417_v40  ;;  %v4431_v8 = vsub.f32 %v18230_v58, %v14539_v37 }
 0x6c0   : > { %v4675_v38 = vmul.f32 1.442695, %v4418_v52  ;;  %v4677_v62 = vmul.f32 1.442695, %v4419_v28  ;;  %v4432_v21 = vsub.f32 %v18231_v23, %v14539_v37  ;;  %v4679_v36 = vmul.f32 1.442695, %v4420_v17 }
 0x6c1   : > { %9829 = vpow2.f32 %v4689_v16  ;;  %v4697_v4 = vmul.f32 1.442695, %v4429_v12  ;;  %v4699_v6 = vmul.f32 1.442695, %v4430_v19  ;;  %v4433_v54 = vsub.f32 %v18232_v13, %v14539_v37  ;;  %v18237_v52 = vld [vmem:[#allocation216_spill] sm:$0xff]  ;;  %v18240_v28 = vld [vmem:[#allocation213_spill] sm:$0xff] }
 0x6c2   : > { %9831 = vpow2.f32 %v4691_v7  ;;  %v4701_v46 = vmul.f32 1.442695, %v4431_v8  ;;  %v4434_v57 = vsub.f32 %v18233_v59, %v14539_v37  ;;  %v4703_v43 = vmul.f32 1.442695, %v4432_v21  ;;  %v18241_v15 = vld [vmem:[#allocation215_spill] sm:$0xff]  ;;  %v18243_v23 = vld [vmem:[#allocation220_spill] sm:$0xff] }
 0x6c3   : > { %9833 = vpow2.f32 %v4673_v26  ;;  %v4421_v40 = vsub.f32 %v18234_v60, %v14539_v37  ;;  %v4422_v32 = vsub.f32 %v18235_v61, %v14539_v37  ;;  %v4435_v5 = vsub.f32 %v18236_v33, %v14539_v37  ;;  %v18242_v19 = vld [vmem:[#allocation231_spill] sm:$0xff] }
 0x6c4   : > { %9835 = vpow2.f32 %v4675_v38  ;;  %v4705_v3 = vmul.f32 1.442695, %v4433_v54  ;;  %v4436_v16 = vsub.f32 %v18237_v52, %v14539_v37  ;;  %v4707_v7 = vmul.f32 1.442695, %v4434_v57  ;;  %v18244_v54 = vld [vmem:[#allocation233_spill] sm:$0xff] }
 0x6c5   : > { %9837 = vpow2.f32 %v4677_v62  ;;  %v4681_v26 = vmul.f32 1.442695, %v4421_v40  ;;  %v4683_v38 = vmul.f32 1.442695, %v4422_v32  ;;  %v4423_v34 = vsub.f32 %v18240_v28, %v14539_v37  ;;  %v18245_v40 = vld [vmem:[#allocation222_spill] sm:$0xff] }
 0x6c6   : > { %9839 = vpow2.f32 %v4679_v36  ;;  %v4424_v12 = vsub.f32 %v18241_v15, %v14539_v37  ;;  %v4439_v58 = vsub.f32 %v18242_v19, %v14539_v37  ;;  %v4440_v21 = vsub.f32 %v18243_v23, %v14539_v37  ;;  %v18250_v19 = vld [vmem:[#allocation237_spill] sm:$0xff] }
 0x6c7   : > { %9841 = vpow2.f32 %v4697_v4  ;;  %v4442_v61 = vsub.f32 %v18245_v40, %v14539_v37 }
 0x6c8   : > { %9843 = vpow2.f32 %v4699_v6  ;;  %v4685_v6 = vmul.f32 1.442695, %v4423_v34  ;;  %v4687_v59 = vmul.f32 1.442695, %v4424_v12  ;;  %v4717_v57 = vmul.f32 1.442695, %v4439_v58 }
 0x6c9   : > { %9845 = vpow2.f32 %v4701_v46  ;;  %v4441_v46 = vsub.f32 %v18244_v54, %v14539_v37  ;;  %v4719_v32 = vmul.f32 1.442695, %v4440_v21  ;;  %v18249_v12 = vld [vmem:[#allocation208_spill] sm:$0xff]  ;;  %v4445_v58 = vsub.f32 %v18250_v19, %v14539_v37  ;;  %v18251_v21 = vld [vmem:[#allocation226_spill] sm:$0xff] }
 0x6ca   : > { %9847 = vpow2.f32 %v4703_v43 }
 0x6cb   : > { %v9830_v25 = vpop.eup %9829  ;;  %9849 = vpow2.f32 %v4705_v3 }
 0x6cc   : > { %v9832_v20 = vpop.eup %9831  ;;  %9851 = vpow2.f32 %v4707_v7 }
 0x6cd   : > { %v9834_v10 = vpop.eup %9833  ;;  %v14549_v51 = vpack.c.bf16 %v9832_v20, %v9830_v25  ;;  %v18238_v25 = vld [vmem:[#allocation229_spill] sm:$0xff]  ;;  %9853 = vpow2.f32 %v4681_v26  ;;  %v18246_v26 = vld [vmem:[#allocation235_spill] sm:$0xff] }
 0x6ce   : > { %v9836_v11 = vpop.eup %9835  ;;  %v4437_v20 = vsub.f32 %v18238_v25, %v14539_v37  ;;  %9855 = vpow2.f32 %v4683_v38  ;;  %v4443_v38 = vsub.f32 %v18246_v26, %v14539_v37 }
 0x6cf   : > { %v5337_v47 = vunpack.c.l.b16 %v14549_v51  ;;  %v14552_v50 = vpack.c.bf16 %v9836_v11, %v9834_v10  ;;  %v4709_v10 = vmul.f32 1.442695, %v4435_v5  ;;  %v18239_v11 = vld [vmem:[#allocation218_spill] sm:$0xff]  ;;  %v9838_v55 = vpop.eup %9837 }
 0x6d0   : > { %v9840_v17 = vpop.eup %9839  ;;  %v4713_v8 = vmul.f32 1.442695, %v4437_v20 }
 0x6d1   : > { %5386 = vperm.xlu1 %9691, %v5337_v47   ;;  %v5329_v48 = vunpack.c.l.b16 %v14552_v50  ;;  %v4438_v47 = vsub.f32 %v18239_v11, %v14539_v37  ;;  %v9842_v39 = vpop.eup %9841  ;;  %9857 = vpow2.f32 %v4709_v10  ;;  %v5330_v60 = vunpack.c.h.b16 %v14552_v50  ;;  %v18247_v10 = vld [vmem:[#allocation224_spill] sm:$0xff] }
 0x6d2   : > { %v9844_v62 = vpop.eup %9843  ;;  %v5186_v33 = vpack.c.bf16 %v9840_v17, %v9838_v55  ;;  %v4721_v50 = vmul.f32 1.442695, %v4441_v46  ;;  %v4444_v11 = vsub.f32 %v18247_v10, %v14539_v37  ;;  %v18248_v55 = vld [vmem:[#allocation219_spill] sm:$0xff] }
 0x6d3   : > { %5362 = vperm.xlu0 %9692, %v5329_v48   ;;  %v4711_v48 = vmul.f32 1.442695, %v4436_v16  ;;  %v4715_v36 = vmul.f32 1.442695, %v4438_v47  ;;  %v9846_v4 = vpop.eup %9845  ;;  %v14593_v43 = vpack.c.bf16 %v9844_v62, %v9842_v39  ;;  %v4723_v47 = vmul.f32 1.442695, %v4442_v61 }
 0x6d4   : > { %v9848_v13 = vpop.eup %9847  ;;  %v5331_v25 = vunpack.c.l.b16 %v5186_v33  ;;  %v4427_v28 = vsub.f32 %v18248_v55, %v14539_v37  ;;  %v4428_v39 = vsub.f32 %v18249_v12, %v14539_v37  ;;  %v5332_v62 = vunpack.c.h.b16 %v5186_v33 }
 0x6d5   : > { %9859 = vpow2.f32 %v4711_v48  ;;  %v9850_v5 = vpop.eup %9849  ;;  %v5342_v3 = vunpack.c.h.b16 %v14593_v43  ;;  %v14599_v52 = vpack.c.bf16 %v9848_v13, %v9846_v4  ;;  %v4727_v4 = vmul.f32 1.442695, %v4444_v11  ;;  %v18255_v11 = vld [vmem:[#allocation241_spill] sm:$0xff] }
 0x6d6   : > { %9861 = vpow2.f32 %v4713_v8  ;;  %v9852_v16 = vpop.eup %9851  ;;  %v4725_v8 = vmul.f32 1.442695, %v4443_v38  ;;  %v4693_v13 = vmul.f32 1.442695, %v4427_v28  ;;  %v4695_v40 = vmul.f32 1.442695, %v4428_v39 }
 0x6d7   : > { %9863 = vpow2.f32 %v4715_v36  ;;  %5365 = vperm.xlu0 %9692, %v5330_v60   ;;  %v9854_v7 = vpop.eup %9853  ;;  %5401 = vperm.xlu1 %9691, %v5342_v3   ;;  %v5344_v34 = vunpack.c.h.b16 %v14599_v52  ;;  %v14608_v17 = vpack.c.bf16 %v9852_v16, %v9850_v5  ;;  %v4446_v36 = vsub.f32 %v18251_v21, %v14539_v37 }
 0x6d8   : > { %9865 = vpow2.f32 %v4685_v6  ;;  %v9856_v20 = vpop.eup %9855  ;;  %v4729_v5 = vmul.f32 1.442695, %v4445_v58 }
 0x6d9   : > { %9867 = vpow2.f32 %v4687_v59  ;;  %v5187_v23 = vpack.c.bf16 %v9856_v20, %v9854_v7  ;;  %v5346_v54 = vunpack.c.h.b16 %v14608_v17  ;;  %v18254_v7 = vld [vmem:[#allocation228_spill] sm:$0xff]  ;;  %v4731_v38 = vmul.f32 1.442695, %v4446_v36 }
 0x6da   : > { %9869 = vpow2.f32 %v4717_v57  ;;  %v18252_v57 = vsub.s32 1, %v18220_v27  ;;  %v4448_v26 = vsub.f32 %v18254_v7, %v14539_v37  ;;  %v18258_v36 = vld [vmem:[#allocation232_spill] sm:$0xff] }
 0x6db   : > { %9871 = vpow2.f32 %v4719_v32  ;;  %v9858_v48 = vpop.eup %9857  ;;  %5368 = vperm.xlu0 %9692, %v5331_v25   ;;  %5407 = vperm.xlu1 %9691, %v5344_v34   ;;  %v18253_v32 = vld [vmem:[#allocation239_spill] sm:$0xff]  ;;  %v5333_v3 = vunpack.c.l.b16 %v5187_v23  ;;  %v5334_v55 = vunpack.c.h.b16 %v5187_v23 }
 0x6dc   : > { %9873 = vpow2.f32 %v4721_v50  ;;  %v14622_v60 = vrot.slane %v14534_v18, %v18252_v57  ;;  %v4447_v33 = vsub.f32 %v18253_v32, %v14539_v37  ;;  %v18256_v37 = vld [vmem:[#allocation230_spill] sm:$0xff] }
 0x6dd   : > { %9875 = vpow2.f32 %v4723_v47 }
 0x6de   : > { %9877 = vpow2.f32 %v4725_v8  ;;  %v4449_v47 = vsub.f32 %v18255_v11, %v14622_v60  ;;  %v4450_v34 = vsub.f32 %v18256_v37, %v14622_v60  ;;  %v18257_v8 = vld [vmem:[#allocation243_spill] sm:$0xff]  ;;  %v18262_v37 = vld [vmem:[#allocation236_spill] sm:$0xff] }
 0x6df   : > { %v9860_v15 = vpop.eup %9859  ;;  %5371 = vperm.xlu0 %9692, %v5332_v62   ;;  %5413 = vperm.xlu1 %9691, %v5346_v54   ;;  %9879 = vpow2.f32 %v4727_v4  ;;  %v4451_v62 = vsub.f32 %v18257_v8, %v14622_v60  ;;  %v4452_v4 = vsub.f32 %v18258_v36, %v14622_v60  ;;  %v18261_v11 = vld [vmem:[#allocation23_spill] sm:$0xff]  ;;  %v18264_v36 = vld [vmem:[#allocation238_spill] sm:$0xff] }
 0x6e0   : > { %v9862_v6 = vpop.eup %9861  ;;  %v14617_v46 = vpack.c.bf16 %v9860_v15, %v9858_v48  ;;  %9881 = vpow2.f32 %v4693_v13  ;;  %v4733_v48 = vmul.f32 1.442695, %v4447_v33  ;;  %v4735_v15 = vmul.f32 1.442695, %v4448_v26 }
 0x6e1   : > { %v9864_v59 = vpop.eup %9863  ;;  %9883 = vpow2.f32 %v4695_v40  ;;  %v4737_v21 = vmul.f32 1.442695, %v4449_v47  ;;  %v4741_v33 = vmul.f32 1.442695, %v4451_v62  ;;  %v4743_v26 = vmul.f32 1.442695, %v4452_v4 }
 0x6e2   : > { %v9866_v61 = vpop.eup %9865  ;;  %v5348_v25 = vunpack.c.h.b16 %v14617_v46  ;;  %v14629_v20 = vpack.c.bf16 %v9864_v59, %v9862_v6  ;;  %9885 = vpow2.f32 %v4729_v5  ;;  %v4739_v6 = vmul.f32 1.442695, %v4450_v34  ;;  %v18263_v62 = vld [vmem:[#allocation24_spill] sm:$0xff] }
 0x6e3   : > { %v9868_v16 = vpop.eup %9867  ;;  %5374 = vperm.xlu0 %9692, %v5333_v3   ;;  %9887 = vpow2.f32 %v4731_v38  ;;  %v4455_v47 = vsub.f32 %v18261_v11, %v14622_v60  ;;  %v4456_v34 = vsub.f32 %v18262_v37, %v14622_v60  ;;  %v4458_v4 = vsub.f32 %v18264_v36, %v14622_v60  ;;  %v18267_v11 = vld [vmem:[#allocation26_spill] sm:$0xff] }
 0x6e4   : > { %v9870_v50 = vpop.eup %9869  ;;  %5419 = vperm.xlu1 %9691, %v5348_v25   ;;  %v5188_v28 = vpack.c.bf16 %v9868_v16, %v9866_v61  ;;  %v5350_v39 = vunpack.c.h.b16 %v14629_v20  ;;  %9889 = vpow2.f32 %v4733_v48  ;;  %v18259_v61 = vld [vmem:[#allocation245_spill] sm:$0xff]  ;;  %v18260_v16 = vld [vmem:[#allocation234_spill] sm:$0xff] }
 0x6e5   : > { %v9872_v10 = vpop.eup %9871  ;;  %9891 = vpow2.f32 %v4735_v15  ;;  %v4453_v32 = vsub.f32 %v18259_v61, %v14622_v60  ;;  %v4454_v7 = vsub.f32 %v18260_v16, %v14622_v60  ;;  %v18265_v61 = vld [vmem:[#allocation25_spill] sm:$0xff] }
 0x6e6   : > { %v9874_v12 = vpop.eup %9873  ;;  %v14636_v19 = vpack.c.bf16 %v9872_v10, %v9870_v50  ;;  %v5335_v23 = vunpack.c.l.b16 %v5188_v28  ;;  %9893 = vpow2.f32 %v4737_v21  ;;  %v5336_v5 = vunpack.c.h.b16 %v5188_v28 }
 0x6e7   : > { %5377 = vperm.xlu0 %9692, %v5334_v55   ;;  %v9876_v58 = vpop.eup %9875  ;;  %9895 = vpow2.f32 %v4739_v6  ;;  %v4745_v48 = vmul.f32 1.442695, %v4453_v32  ;;  %v5338_v55 = vunpack.c.h.b16 %v14549_v51  ;;  %v4747_v15 = vmul.f32 1.442695, %v4454_v7 }
 0x6e8   : > { %5425 = vperm.xlu1 %9691, %v5350_v39   ;;  %v9878_v13 = vpop.eup %9877  ;;  %v5352_v54 = vunpack.c.h.b16 %v14636_v19  ;;  %v14643_v59 = vpack.c.bf16 %v9876_v58, %v9874_v12  ;;  %9897 = vpow2.f32 %v4741_v33  ;;  %v4457_v21 = vsub.f32 %v18263_v62, %v14622_v60  ;;  %v18269_v62 = vld [vmem:[#allocation27_spill] sm:$0xff] }
 0x6e9   : > { %v9880_v57 = vpop.eup %9879  ;;  %9899 = vpow2.f32 %v4743_v26  ;;  %v4751_v6 = vmul.f32 1.442695, %v4456_v34  ;;  %v4459_v32 = vsub.f32 %v18265_v61, %v14622_v60  ;;  %v4755_v7 = vmul.f32 1.442695, %v4458_v4  ;;  %v18271_v61 = vld [vmem:[#allocation28_spill] sm:$0xff] }
 0x6ea   : > { %v9882_v40 = vpop.eup %9881  ;;  %v5354_v50 = vunpack.c.h.b16 %v14643_v59  ;;  %v14650_v25 = vpack.c.bf16 %v9880_v57, %v9878_v13  ;;  %9901 = vpow2.f32 %v4745_v48  ;;  %v4753_v33 = vmul.f32 1.442695, %v4457_v21 }
 0x6eb   : > { %5380 = vperm.xlu0 %9692, %v5335_v23   ;;  %v9884_v3 = vpop.eup %9883  ;;  %v4749_v23 = vmul.f32 1.442695, %v4455_v47  ;;  %9903 = vpow2.f32 %v4747_v15  ;;  %v4461_v47 = vsub.f32 %v18267_v11, %v14622_v60  ;;  %v4757_v48 = vmul.f32 1.442695, %v4459_v32  ;;  %v18273_v11 = vld [vmem:[#allocation29_spill] sm:$0xff] }
 0x6ec   : > { %5431 = vperm.xlu1 %9691, %v5352_v54   ;;  %v9886_v38 = vpop.eup %9885  ;;  %v5190_v28 = vpack.c.bf16 %v9884_v3, %v9882_v40  ;;  %v5356_v39 = vunpack.c.h.b16 %v14650_v25  ;;  %v18266_v3 = vld [vmem:[#allocation240_spill] sm:$0xff]  ;;  %v4463_v21 = vsub.f32 %v18269_v62, %v14622_v60  ;;  %v4465_v32 = vsub.f32 %v18271_v61, %v14622_v60 }
 0x6ed   : > { %v9888_v10 = vpop.eup %9887  ;;  %9905 = vpow2.f32 %v4749_v23  ;;  %v4460_v16 = vsub.f32 %v18266_v3, %v14622_v60  ;;  %v4761_v23 = vmul.f32 1.442695, %v4461_v47  ;;  %v4467_v47 = vsub.f32 %v18273_v11, %v14622_v60 }
 0x6ee   : > { %v9890_v12 = vpop.eup %9889  ;;  %v14658_v58 = vpack.c.bf16 %v9888_v10, %v9886_v38  ;;  %v5339_v51 = vunpack.c.l.b16 %v5190_v28  ;;  %9907 = vpow2.f32 %v4751_v6 }
 0x6ef   : > { %5383 = vperm.xlu0 %9692, %v5336_v5   ;;  %v9892_v8 = vpop.eup %9891  ;;  %v5340_v5 = vunpack.c.h.b16 %v5190_v28  ;;  %9909 = vpow2.f32 %v4753_v33  ;;  %v18268_v28 = vld [vmem:[#allocation242_spill] sm:$0xff]  ;;  %v4759_v34 = vmul.f32 1.442695, %v4460_v16  ;;  %v4765_v33 = vmul.f32 1.442695, %v4463_v21  ;;  %v18275_v21 = vld [vmem:[#allocation31_spill] sm:$0xff] }
 0x6f0   : > { %5437 = vperm.xlu1 %9691, %v5354_v50   ;;  %v9894_v13 = vpop.eup %9893  ;;  %v5358_v54 = vunpack.c.h.b16 %v14658_v58  ;;  %v14665_v57 = vpack.c.bf16 %v9892_v8, %v9890_v12  ;;  %v4462_v37 = vsub.f32 %v18268_v28, %v14622_v60  ;;  %9911 = vpow2.f32 %v4755_v7  ;;  %v18274_v28 = vld [vmem:[#allocation30_spill] sm:$0xff] }
 0x6f1   : > { %v9896_v40 = vpop.eup %9895  ;;  %9913 = vpow2.f32 %v4757_v48  ;;  %v4769_v48 = vmul.f32 1.442695, %v4465_v32 }
 0x6f2   : > { %v9898_v26 = vpop.eup %9897  ;;  %v5360_v38 = vunpack.c.h.b16 %v14665_v57  ;;  %v14672_v50 = vpack.c.bf16 %v9896_v40, %v9894_v13  ;;  %v4763_v4 = vmul.f32 1.442695, %v4462_v37  ;;  %9915 = vpow2.f32 %v4759_v34 }
 0x6f3   : > { %5389 = vperm.xlu0 %9692, %v5338_v55   ;;  %v9900_v10 = vpop.eup %9899  ;;  %v5341_v55 = vunpack.c.l.b16 %v14593_v43  ;;  %v5343_v43 = vunpack.c.l.b16 %v14599_v52  ;;  %9917 = vpow2.f32 %v4761_v23  ;;  %v5345_v52 = vunpack.c.l.b16 %v14608_v17 }
 0x6f4   : > { %5443 = vperm.xlu1 %9691, %v5356_v39   ;;  %v9902_v15 = vpop.eup %9901  ;;  %v5772_v12 = vunpack.c.h.b16 %v14672_v50  ;;  %v14680_v39 = vpack.c.bf16 %v9900_v10, %v9898_v26  ;;  %9919 = vpow2.f32 %v4763_v4  ;;  %v5347_v17 = vunpack.c.l.b16 %v14617_v46  ;;  %v18276_v4 = vld [vmem:[#allocation32_spill] sm:$0xff] }
 0x6f5   : > { %v9904_v8 = vpop.eup %9903  ;;  %9921 = vpow2.f32 %v4765_v33  ;;  %v4468_v37 = vsub.f32 %v18274_v28, %v14622_v60  ;;  %v4469_v23 = vsub.f32 %v18275_v21, %v14622_v60  ;;  %v4773_v46 = vmul.f32 1.442695, %v4467_v47  ;;  %v18279_v28 = vld [vmem:[#allocation35_spill] sm:$0xff] }
 0x6f6   : > { %v5774_v13 = vunpack.c.h.b16 %v14680_v39 }
 0x6f7   : > { %5392 = vperm.xlu0 %9692, %v5339_v51   ;;  %v18270_v51 = vld [vmem:[#allocation244_spill] sm:$0xff]  ;;  %v9906_v6 = vpop.eup %9905 }
 0x6f8   : > { %5449 = vperm.xlu1 %9691, %v5358_v54   ;;  %v4464_v36 = vsub.f32 %v18270_v51, %v14622_v60  ;;  %v14688_v54 = vpack.c.bf16 %v9904_v8, %v9902_v15  ;;  %v9908_v40 = vpop.eup %9907  ;;  %v10352_v51 = vld [vmem:[%s10954_s24] sm:$0xff]  }
 0x6f9   : > { %v9910_v7 = vpop.eup %9909 }
 0x6fa   : > { %v4767_v16 = vmul.f32 1.442695, %v4464_v36  ;;  %v5776_v26 = vunpack.c.h.b16 %v14688_v54  ;;  %v9912_v10 = vpop.eup %9911  ;;  %v10353_v36 = vld [vmem:[%s10954_s24 + $0x48] sm:$0xff]  }
 0x6fb   : > { %5395 = vperm.xlu0 %9692, %v5340_v5   ;;  %v18272_v5 = vld [vmem:[#allocation246_spill] sm:$0xff]  ;;  %v9914_v15 = vpop.eup %9913  ;;  %v14705_v8 = vpack.c.bf16 %v9912_v10, %v9910_v7  ;;  %v10355_v7 = vld [vmem:[%s10954_s24 + $0x50] sm:$0xff]  }
 0x6fc   : > { %5455 = vperm.xlu1 %9691, %v5360_v38   ;;  %v4466_v3 = vsub.f32 %v18272_v5, %v14622_v60  ;;  %v14696_v38 = vpack.c.bf16 %v9908_v40, %v9906_v6  ;;  %9923 = vpow2.f32 %v4767_v16  ;;  %v9916_v62 = vpop.eup %9915  ;;  %v4470_v6 = vsub.f32 %v18276_v4, %v14622_v60  ;;  %v10354_v16 = vld [vmem:[%s10954_s24 + $0x8] sm:$0xff]   ;;  %v18281_v4 = vld [vmem:[#allocation37_spill] sm:$0xff] }
 0x6fd   : > { %9925 = vpow2.f32 %v4769_v48  ;;  %v9918_v40 = vpop.eup %9917  ;;  %v5780_v61 = vunpack.c.h.b16 %v14705_v8  ;;  %v14715_v32 = vpack.c.bf16 %v9916_v62, %v9914_v15  ;;  %v4777_v5 = vmul.f32 1.442695, %v4469_v23  ;;  %v10356_v15 = vld [vmem:[%s10954_s24 + $0x10] sm:$0xff]   ;;  %v18280_v62 = vld [vmem:[#allocation36_spill] sm:$0xff] }
 0x6fe   : > { %v4771_v34 = vmul.f32 1.442695, %v4466_v3  ;;  %v9920_v33 = vpop.eup %9919  ;;  %v5351_v3 = vunpack.c.l.b16 %v14636_v19  ;;  %v4779_v11 = vmul.f32 1.442695, %v4470_v6  ;;  %v4473_v19 = vsub.f32 %v18279_v28, %v14622_v60 }
 0x6ff   : > { %5398 = vperm.xlu0 %9692, %v5341_v55   ;;  %v10351_v55 = vld [vmem:[%s10954_s24 + $0x40] sm:$0xff]   ;;  %v9922_v47 = vpop.eup %9921  ;;  %v5782_v48 = vunpack.c.h.b16 %v14715_v32  ;;  %v4474_v21 = vsub.f32 %v18280_v62, %v14622_v60  ;;  %v18285_v62 = vsub.s32 2, %v18220_v27 }
 0x700   : > { %5807 = vperm.xlu1 %9691, %v5772_v12   ;;  %v5778_v12 = vunpack.c.h.b16 %v14696_v38  ;;  %9347 = vmatprep.subr.bf16.mxu0 %v10351_v55  ;;  %9927 = vpow2.f32 %v4771_v34  ;;  %v5353_v34 = vunpack.c.l.b16 %v14643_v59  ;;  %v4475_v59 = vsub.f32 %v18281_v4, %v14622_v60  ;;  %v10363_v4 = vld [vmem:[%s10954_s24 + $0x70] sm:$0xff]  }
 0x701   : > { %9348 = vmatpush3.bf16.msra.mxu0 %v10352_v51  ;;  %9929 = vpow2.f32 %v4773_v46  ;;  %v4785_v6 = vmul.f32 1.442695, %v4473_v19 }
 0x702   : > { %9349 = vmatprep.subr.bf16.mxu0 %v10353_v36 }
 0x703   : > { %5404 = vperm.xlu0 %9692, %v5343_v43   ;;  %v5349_v43 = vunpack.c.l.b16 %v14629_v20 }
 0x704   : > { %5813 = vperm.xlu1 %9691, %v5774_v13   ;;  %v4775_v13 = vmul.f32 1.442695, %v4468_v37 }
 0x705   : > { %9350 = vmatpush3.bf16.msra.mxu0 %v10354_v16 }
 0x706   : > { %9931 = vpow2.f32 %v4775_v13  ;;  %v9924_v55 = vpop.eup %9923  ;;  %9351 = vmatprep.subr.bf16.mxu0 %v10355_v7  ;;  %v5355_v13 = vunpack.c.l.b16 %v14650_v25 }
 0x707   : > { %5410 = vperm.xlu0 %9692, %v5345_v52   ;;  %v18277_v52 = vld [vmem:[#allocation33_spill] sm:$0xff]  ;;  %9933 = vpow2.f32 %v4777_v5  ;;  %v9926_v46 = vpop.eup %9925  ;;  %v14735_v51 = vpack.c.bf16 %v9924_v55, %v9922_v47  ;;  %v18284_v55 = vld [vmem:[#allocation40_spill] sm:$0xff] }
 0x708   : > { %5819 = vperm.xlu1 %9691, %v5776_v26   ;;  %v4471_v20 = vsub.f32 %v18277_v52, %v14622_v60  ;;  %v18278_v26 = vld [vmem:[#allocation34_spill] sm:$0xff]  ;;  %9935 = vpow2.f32 %v4779_v11  ;;  %v5357_v11 = vunpack.c.l.b16 %v14658_v58  ;;  %v10360_v47 = vld [vmem:[%s10954_s24 + $0x20] sm:$0xff]   ;;  %v4478_v28 = vsub.f32 %v18284_v55, %v14622_v60 }
 0x709   : > { %v4472_v10 = vsub.f32 %v18278_v26, %v14622_v60  ;;  %9352 = vmatpush3.bf16.msra.mxu0 %v10356_v15  ;;  %v18283_v26 = vld [vmem:[#allocation39_spill] sm:$0xff]  ;;  %v14760_v58 = vrot.slane %v14534_v18, %v18285_v62 }
 0x70a   : > { %v4781_v37 = vmul.f32 1.442695, %v4471_v20  ;;  %v9928_v36 = vpop.eup %9927  ;;  %v4787_v20 = vmul.f32 1.442695, %v4474_v21  ;;  %v4477_v25 = vsub.f32 %v18283_v26, %v14622_v60  ;;  %v18286_v21 = vld [vmem:[#allocation41_spill] sm:$0xff]  ;;  %v18289_v26 = vld [vmem:[#allocation44_spill] sm:$0xff] }
 0x70b   : > { %5416 = vperm.xlu0 %9692, %v5347_v17   ;;  %v14725_v17 = vpack.c.bf16 %v9920_v33, %v9918_v40  ;;  %v4783_v23 = vmul.f32 1.442695, %v4472_v10  ;;  %v10358_v40 = vld [vmem:[%s10954_s24 + $0x18] sm:$0xff]   ;;  %v18282_v33 = vld [vmem:[#allocation38_spill] sm:$0xff]  ;;  %v9930_v5 = vpop.eup %9929  ;;  %v14745_v16 = vpack.c.bf16 %v9928_v36, %v9926_v46  ;;  %v4789_v10 = vmul.f32 1.442695, %v4475_v59 }
 0x70c   : > { %5825 = vperm.xlu1 %9691, %v5778_v12   ;;  %v10357_v12 = vld [vmem:[%s10954_s24 + $0x58] sm:$0xff]   ;;  %9937 = vpow2.f32 %v4781_v37  ;;  %v4476_v52 = vsub.f32 %v18282_v33, %v14622_v60  ;;  %v4793_v46 = vmul.f32 1.442695, %v4477_v25  ;;  %v10362_v36 = vld [vmem:[%s10954_s24 + $0x28] sm:$0xff]   ;;  %v4482_v25 = vsub.f32 %v18289_v26, %v14760_v58 }
 0x70d   : > { %9353 = vmatprep.subr.bf16.mxu0 %v10357_v12  ;;  %9939 = vpow2.f32 %v4783_v23  ;;  %v4479_v23 = vsub.f32 %v18286_v21, %v14622_v60  ;;  %v18287_v59 = vld [vmem:[#allocation42_spill] sm:$0xff] }
 0x70e   : > { %9354 = vmatpush3.bf16.msra.mxu0 %v10358_v40  ;;  %9941 = vpow2.f32 %v4785_v6  ;;  %v4791_v19 = vmul.f32 1.442695, %v4476_v52  ;;  %v4480_v6 = vsub.f32 %v18287_v59, %v14622_v60  ;;  %v5771_v60 = vunpack.c.l.b16 %v14672_v50  ;;  %v18295_v26 = vld [vmem:[#allocation50_spill] sm:$0xff] }
 0x70f   : > { %5422 = vperm.xlu0 %9692, %v5349_v43   ;;  %v5784_v43 = vunpack.c.h.b16 %v14725_v17  ;;  %9943 = vpow2.f32 %v4787_v20  ;;  %v18288_v20 = vld [vmem:[#allocation43_spill] sm:$0xff]  ;;  %v4803_v21 = vmul.f32 1.442695, %v4482_v25  ;;  %v4488_v25 = vsub.f32 %v18295_v26, %v14760_v58 }
 0x710   : > { %5831 = vperm.xlu1 %9691, %v5780_v61   ;;  %v10359_v61 = vld [vmem:[%s10954_s24 + $0x60] sm:$0xff]   ;;  %v9932_v7 = vpop.eup %9931  ;;  %9945 = vpow2.f32 %v4789_v10  ;;  %v4799_v10 = vmul.f32 1.442695, %v4480_v6 }
 0x711   : > { %9355 = vmatprep.subr.bf16.mxu0 %v10359_v61  ;;  %v9934_v37 = vpop.eup %9933  ;;  %v14755_v15 = vpack.c.bf16 %v9932_v7, %v9930_v5  ;;  %9947 = vpow2.f32 %v4791_v19  ;;  %v4797_v5 = vmul.f32 1.442695, %v4479_v23  ;;  %v10365_v7 = vld [vmem:[%s10954_s24 + $0x78] sm:$0xff]  }
 0x712   : > { %9356 = vmatpush3.bf16.msra.mxu0 %v10360_v47  ;;  %v9936_v12 = vpop.eup %9935  ;;  %9949 = vpow2.f32 %v4793_v46 }
 0x713   : > { %5428 = vperm.xlu0 %9692, %v5351_v3   ;;  %v5786_v3 = vunpack.c.h.b16 %v14735_v51  ;;  %v5790_v61 = vunpack.c.h.b16 %v14755_v15  ;;  %v14770_v33 = vpack.c.bf16 %v9936_v12, %v9934_v37  ;;  %v5773_v37 = vunpack.c.l.b16 %v14680_v39  ;;  %v18291_v12 = vld [vmem:[#allocation46_spill] sm:$0xff] }
 0x714   : > { %5837 = vperm.xlu1 %9691, %v5782_v48   ;;  %v10361_v48 = vld [vmem:[%s10954_s24 + $0x68] sm:$0xff]   ;;  %v4484_v62 = vsub.f32 %v18291_v12, %v14760_v58  ;;  %v5775_v39 = vunpack.c.l.b16 %v14688_v54  ;;  %v5777_v54 = vunpack.c.l.b16 %v14696_v38  ;;  %v5779_v38 = vunpack.c.l.b16 %v14705_v8 }
 0x715   : > { %9357 = vmatprep.subr.bf16.mxu0 %v10361_v48  ;;  %v5792_v47 = vunpack.c.h.b16 %v14770_v33  ;;  %v5781_v8 = vunpack.c.l.b16 %v14715_v32  ;;  %v5783_v32 = vunpack.c.l.b16 %v14725_v17  ;;  %v5785_v17 = vunpack.c.l.b16 %v14735_v51 }
 0x716   : > { %v9938_v40 = vpop.eup %9937  ;;  %9358 = vmatpush3.bf16.msra.mxu0 %v10362_v36  ;;  %v5787_v51 = vunpack.c.l.b16 %v14745_v16 }
 0x717   : > { %5434 = vperm.xlu0 %9692, %v5353_v34   ;;  %v5788_v34 = vunpack.c.h.b16 %v14745_v16  ;;  %v9940_v52 = vpop.eup %9939  ;;  %9359 = vmatprep.subr.bf16.mxu0 %v10363_v4  ;;  %v18292_v4 = vld [vmem:[#allocation47_spill] sm:$0xff]  ;;  %v5789_v16 = vunpack.c.l.b16 %v14755_v15 }
 0x718   : > { %5843 = vperm.xlu1 %9691, %v5784_v43   ;;  %v5359_v43 = vunpack.c.l.b16 %v14665_v57  ;;  %v4481_v57 = vsub.f32 %v18288_v20, %v14760_v58  ;;  %v14780_v48 = vpack.c.bf16 %v9940_v52, %v9938_v40  ;;  %v4485_v59 = vsub.f32 %v18292_v4, %v14760_v58  ;;  %v18298_v4 = vld [vmem:[#allocation53_spill] sm:$0xff] }
 0x71a   : > { %v4801_v50 = vmul.f32 1.442695, %v4481_v57  ;;  %v5794_v46 = vunpack.c.h.b16 %v14780_v48 }
 0x71b   : > { %5440 = vperm.xlu0 %9692, %v5355_v13   ;;  %v4795_v13 = vmul.f32 1.442695, %v4478_v28  ;;  %v18290_v28 = vld [vmem:[#allocation45_spill] sm:$0xff] }
 0x71c   : > { %5849 = vperm.xlu1 %9691, %v5786_v3   ;;  %v10364_v3 = vld [vmem:[%s10954_s24 + $0x30] sm:$0xff]   ;;  %v4483_v19 = vsub.f32 %v18290_v28, %v14760_v58 }
 0x71d   : > { %9951 = vpow2.f32 %v4795_v13  ;;  %9360 = vmatpush3.bf16.msra.mxu0 %v10364_v3  ;;  %v18293_v13 = vld [vmem:[#allocation48_spill] sm:$0xff] }
 0x71e   : > { %9361 = vmatprep.subr.bf16.mxu0 %v10365_v7  ;;  %9953 = vpow2.f32 %v4797_v5  ;;  %v4805_v6 = vmul.f32 1.442695, %v4483_v19  ;;  %v4486_v40 = vsub.f32 %v18293_v13, %v14760_v58  ;;  %v4809_v7 = vmul.f32 1.442695, %v4485_v59  ;;  %v18296_v19 = vld [vmem:[#allocation51_spill] sm:$0xff] }
 0x71f   : > { %5446 = vperm.xlu0 %9692, %v5357_v11   ;;  %v9942_v11 = vpop.eup %9941  ;;  %9955 = vpow2.f32 %v4799_v10  ;;  %v4491_v59 = vsub.f32 %v18298_v4, %v14760_v58  ;;  %v18304_v4 = vld [vmem:[#allocation59_spill] sm:$0xff] }
 0x720   : > { %5855 = vperm.xlu1 %9691, %v5788_v34   ;;  %v9944_v55 = vpop.eup %9943  ;;  %v10366_v34 = vld [vmem:[%s10954_s24 + $0x38] sm:$0xff]   ;;  %9957 = vpow2.f32 %v4801_v50  ;;  %v4811_v10 = vmul.f32 1.442695, %v4486_v40  ;;  %v4489_v50 = vsub.f32 %v18296_v19, %v14760_v58  ;;  %v18302_v19 = vld [vmem:[#allocation57_spill] sm:$0xff] }
 0x721   : > { %v9946_v23 = vpop.eup %9945  ;;  %9362 = vmatpush3.bf16.msra.mxu0 %v10366_v34  ;;  %9959 = vpow2.f32 %v4803_v21  ;;  %v18297_v34 = vld [vmem:[#allocation52_spill] sm:$0xff] }
 0x722   : > { %v9948_v36 = vpop.eup %9947  ;;  %9961 = vpow2.f32 %v4805_v6  ;;  %v4490_v12 = vsub.f32 %v18297_v34, %v14760_v58  ;;  %v4817_v6 = vmul.f32 1.442695, %v4489_v50  ;;  %v4495_v50 = vsub.f32 %v18302_v19, %v14760_v58 }
 0x723   : > { %5452 = vperm.xlu0 %9692, %v5359_v43   ;;  %v14789_v43 = vpack.c.bf16 %v9944_v55, %v9942_v11  ;;  %v9950_v52 = vpop.eup %9949  ;;  %v14797_v57 = vpack.c.bf16 %v9948_v36, %v9946_v23 }
 0x724   : > { %5861 = vperm.xlu1 %9691, %v5790_v61   ;;  %v4807_v61 = vmul.f32 1.442695, %v4484_v62  ;;  %v4815_v62 = vmul.f32 1.442695, %v4488_v25  ;;  %v4819_v40 = vmul.f32 1.442695, %v4490_v12 }
 0x725   : > { %v5796_v20 = vunpack.c.h.b16 %v14789_v43 }
 0x726   : > { %9963 = vpow2.f32 %v4807_v61 }
 0x727   : > { %5804 = vperm.xlu0 %9692, %v5771_v60   ;;  %v9952_v5 = vpop.eup %9951  ;;  %v18294_v60 = vld [vmem:[#allocation49_spill] sm:$0xff]  ;;  %9965 = vpow2.f32 %v4809_v7  ;;  %v4821_v7 = vmul.f32 1.442695, %v4491_v59  ;;  %v4497_v59 = vsub.f32 %v18304_v4, %v14760_v58 }
 0x728   : > { %5867 = vperm.xlu1 %9691, %v5792_v47   ;;  %v4487_v3 = vsub.f32 %v18294_v60, %v14760_v58  ;;  %v9954_v11 = vpop.eup %9953  ;;  %v5798_v47 = vunpack.c.h.b16 %v14797_v57  ;;  %v14805_v55 = vpack.c.bf16 %v9952_v5, %v9950_v52  ;;  %9967 = vpow2.f32 %v4811_v10  ;;  %v18300_v60 = vld [vmem:[#allocation55_spill] sm:$0xff] }
 0x729   : > { %v9956_v28 = vpop.eup %9955 }
 0x72a   : > { %v9958_v21 = vpop.eup %9957  ;;  %v5800_v23 = vunpack.c.h.b16 %v14805_v55 }
 0x72b   : > { %5810 = vperm.xlu0 %9692, %v5773_v37   ;;  %v4813_v37 = vmul.f32 1.442695, %v4487_v3  ;;  %v9960_v36 = vpop.eup %9959  ;;  %v4493_v3 = vsub.f32 %v18300_v60, %v14760_v58  ;;  %v18306_v60 = vld [vmem:[#allocation61_spill] sm:$0xff] }
 0x72c   : > { %5873 = vperm.xlu1 %9691, %v5794_v46   ;;  %v14813_v46 = vpack.c.bf16 %v9956_v28, %v9954_v11  ;;  %v9962_v61 = vpop.eup %9961 }
 0x72d   : > { %9969 = vpow2.f32 %v4813_v37  ;;  %v4825_v37 = vmul.f32 1.442695, %v4493_v3  ;;  %v4499_v3 = vsub.f32 %v18306_v60, %v14760_v58 }
 0x72e   : > { %9971 = vpow2.f32 %v4815_v62  ;;  %v5802_v52 = vunpack.c.h.b16 %v14813_v46 }
 0x72f   : > { %5816 = vperm.xlu0 %9692, %v5775_v39   ;;  %v18299_v39 = vld [vmem:[#allocation54_spill] sm:$0xff]  ;;  %9973 = vpow2.f32 %v4817_v6  ;;  %v4829_v6 = vmul.f32 1.442695, %v4495_v50  ;;  %v18308_v50 = vld [vmem:[#allocation63_spill] sm:$0xff]  ;;  %v4837_v15 = vmul.f32 1.442695, %v4499_v3 }
 0x730   : > { %5879 = vperm.xlu1 %9691, %v5796_v20   ;;  %v4492_v13 = vsub.f32 %v18299_v39, %v14760_v58  ;;  %v14821_v20 = vpack.c.bf16 %v9960_v36, %v9958_v21  ;;  %v9964_v5 = vpop.eup %9963  ;;  %9975 = vpow2.f32 %v4819_v40 }
 0x731   : > { %v9966_v10 = vpop.eup %9965  ;;  %9977 = vpow2.f32 %v4821_v7  ;;  %v4833_v7 = vmul.f32 1.442695, %v4497_v59 }
 0x732   : > { %v4823_v25 = vmul.f32 1.442695, %v4492_v13  ;;  %v6214_v11 = vunpack.c.h.b16 %v14821_v20  ;;  %v9968_v28 = vpop.eup %9967 }
 0x733   : > { %5822 = vperm.xlu0 %9692, %v5777_v54   ;;  %v18301_v54 = vld [vmem:[#allocation56_spill] sm:$0xff] }
 0x734   : > { %5885 = vperm.xlu1 %9691, %v5798_v47   ;;  %v4494_v26 = vsub.f32 %v18301_v54, %v14760_v58  ;;  %v14829_v47 = vpack.c.bf16 %v9964_v5, %v9962_v61  ;;  %9979 = vpow2.f32 %v4823_v25  ;;  %v18307_v54 = vld [vmem:[#allocation62_spill] sm:$0xff] }
 0x735   : > { %9981 = vpow2.f32 %v4825_v37  ;;  %v4501_v37 = vsub.f32 %v18308_v50, %v14760_v58  ;;  %v10373_v50 = vld [vmem:[%s10954_s24 + $0xd8] sm:$0xff]  }
 0x736   : > { %v4827_v12 = vmul.f32 1.442695, %v4494_v26  ;;  %v6216_v21 = vunpack.c.h.b16 %v14829_v47  ;;  %v4500_v26 = vsub.f32 %v18307_v54, %v14760_v58 }
 0x737   : > { %5828 = vperm.xlu0 %9692, %v5779_v38   ;;  %v18303_v38 = vld [vmem:[#allocation58_spill] sm:$0xff]  ;;  %v9970_v62 = vpop.eup %9969 }
 0x738   : > { %5891 = vperm.xlu1 %9691, %v5800_v23   ;;  %v4496_v34 = vsub.f32 %v18303_v38, %v14760_v58  ;;  %v14837_v23 = vpack.c.bf16 %v9968_v28, %v9966_v10  ;;  %v9972_v36 = vpop.eup %9971  ;;  %9983 = vpow2.f32 %v4827_v12  ;;  %v10368_v38 = vld [vmem:[%s10954_s24 + $0x80] sm:$0xff]   ;;  %v18309_v12 = vld [vmem:[#allocation64_spill] sm:$0xff] }
 0x739   : > { %v9974_v40 = vpop.eup %9973  ;;  %9985 = vpow2.f32 %v4829_v6 }
 0x73a   : > { %v4831_v13 = vmul.f32 1.442695, %v4496_v34  ;;  %v6218_v61 = vunpack.c.h.b16 %v14837_v23  ;;  %v9976_v5 = vpop.eup %9975  ;;  %v10369_v34 = vld [vmem:[%s10954_s24 + $0xc8] sm:$0xff]  }
 0x73b   : > { %5834 = vperm.xlu0 %9692, %v5781_v8   ;;  %v18305_v8 = vld [vmem:[#allocation60_spill] sm:$0xff]  ;;  %v9978_v10 = vpop.eup %9977  ;;  %v14854_v28 = vpack.c.bf16 %v9976_v5, %v9974_v40  ;;  %v10370_v40 = vld [vmem:[%s10954_s24 + $0x88] sm:$0xff]  }
 0x73c   : > { %5897 = vperm.xlu1 %9691, %v5802_v52   ;;  %v4498_v39 = vsub.f32 %v18305_v8, %v14760_v58  ;;  %v14845_v52 = vpack.c.bf16 %v9972_v36, %v9970_v62  ;;  %9987 = vpow2.f32 %v4831_v13  ;;  %v4502_v62 = vsub.f32 %v18309_v12, %v14760_v58  ;;  %v18311_v5 = vld [vmem:[#allocation66_spill] sm:$0xff] }
 0x73d   : > { %9989 = vpow2.f32 %v4833_v7  ;;  %v6222_v4 = vunpack.c.h.b16 %v14854_v28  ;;  %v4841_v8 = vmul.f32 1.442695, %v4501_v37  ;;  %v5793_v13 = vunpack.c.l.b16 %v14780_v48  ;;  %v18312_v48 = vld [vmem:[#allocation67_spill] sm:$0xff]  ;;  %v18313_v37 = vld [vmem:[#allocation68_spill] sm:$0xff] }
 0x73e   : > { %v4835_v25 = vmul.f32 1.442695, %v4498_v39  ;;  %v9980_v19 = vpop.eup %9979  ;;  %v4504_v60 = vsub.f32 %v18311_v5, %v14760_v58  ;;  %v4843_v3 = vmul.f32 1.442695, %v4502_v62 }
 0x73f   : > { %5840 = vperm.xlu0 %9692, %v5783_v32   ;;  %v10367_v32 = vld [vmem:[%s10954_s24 + $0xc0] sm:$0xff]   ;;  %v9982_v36 = vpop.eup %9981  ;;  %v14864_v59 = vpack.c.bf16 %v9980_v19, %v9978_v10  ;;  %v10372_v19 = vld [vmem:[%s10954_s24 + $0x90] sm:$0xff]  }
 0x740   : > { %6249 = vperm.xlu1 %9691, %v6214_v11   ;;  %v6220_v11 = vunpack.c.h.b16 %v14845_v52  ;;  %9369 = vmatprep.subr.bf16.mxu1 %v10367_v32  ;;  %9991 = vpow2.f32 %v4835_v25  ;;  %v4505_v25 = vsub.f32 %v18312_v48, %v14760_v58 }
 0x741   : > { %9370 = vmatpush3.bf16.msra.mxu1 %v10368_v38  ;;  %9993 = vpow2.f32 %v4837_v15  ;;  %v6224_v32 = vunpack.c.h.b16 %v14864_v59  ;;  %v4506_v15 = vsub.f32 %v18313_v37, %v14760_v58 }
 0x742   : > { %v9984_v6 = vpop.eup %9983  ;;  %9371 = vmatprep.subr.bf16.mxu1 %v10369_v34 }
 0x743   : > { %5846 = vperm.xlu0 %9692, %v5785_v17   ;;  %v5791_v17 = vunpack.c.l.b16 %v14770_v33  ;;  %v14878_v54 = vpack.c.bf16 %v9984_v6, %v9982_v36 }
 0x744   : > { %6255 = vperm.xlu1 %9691, %v6216_v21   ;;  %v4839_v21 = vmul.f32 1.442695, %v4500_v26 }
 0x745   : > { %9372 = vmatpush3.bf16.msra.mxu1 %v10370_v40  ;;  %v6226_v12 = vunpack.c.h.b16 %v14878_v54 }
 0x746   : > { %9995 = vpow2.f32 %v4839_v21 }
 0x747   : > { %5852 = vperm.xlu0 %9692, %v5787_v51   ;;  %v18310_v51 = vld [vmem:[#allocation65_spill] sm:$0xff]  ;;  %9997 = vpow2.f32 %v4841_v8 }
 0x748   : > { %6261 = vperm.xlu1 %9691, %v6218_v61   ;;  %v4503_v33 = vsub.f32 %v18310_v51, %v14760_v58  ;;  %v10371_v61 = vld [vmem:[%s10954_s24 + $0xd0] sm:$0xff]   ;;  %9999 = vpow2.f32 %v4843_v3  ;;  %v5797_v51 = vunpack.c.l.b16 %v14797_v57  ;;  %v10375_v8 = vld [vmem:[%s10954_s24 + $0xe0] sm:$0xff]  }
 0x749   : > { %9373 = vmatprep.subr.bf16.mxu1 %v10371_v61  ;;  %v4851_v61 = vmul.f32 1.442695, %v4506_v15  ;;  %v18317_v57 = vld [vmem:[#allocation71_spill] sm:$0xff] }
 0x74a   : > { %v4845_v10 = vmul.f32 1.442695, %v4503_v33  ;;  %9374 = vmatpush3.bf16.msra.mxu1 %v10372_v19  ;;  %v10374_v33 = vld [vmem:[%s10954_s24 + $0x98] sm:$0xff]   ;;  %v10377_v19 = vld [vmem:[%s10954_s24 + $0xe8] sm:$0xff]  }
 0x74b   : > { %5858 = vperm.xlu0 %9692, %v5789_v16   ;;  %v9986_v16 = vpop.eup %9985  ;;  %9375 = vmatprep.subr.bf16.mxu1 %v10373_v50  ;;  %v18319_v50 = vld [vmem:[#allocation72_spill] sm:$0xff] }
 0x74c   : > { %6267 = vperm.xlu1 %9691, %v6220_v11   ;;  %v9988_v26 = vpop.eup %9987  ;;  %v5795_v11 = vunpack.c.l.b16 %v14789_v43  ;;  %v18314_v43 = vld [vmem:[#allocation69_spill] sm:$0xff]  ;;  %10001 = vpow2.f32 %v4845_v10  ;;  %v5799_v10 = vunpack.c.l.b16 %v14805_v55  ;;  %v4510_v37 = vsub.f32 %v18319_v50, %v14760_v58 }
 0x74d   : > { %v9990_v34 = vpop.eup %9989  ;;  %v14890_v62 = vpack.c.bf16 %v9988_v26, %v9986_v16  ;;  %v4507_v36 = vsub.f32 %v18314_v43, %v14760_v58  ;;  %v4509_v26 = vsub.f32 %v18317_v57, %v14760_v58  ;;  %v18320_v55 = vsub.s32 3, %v18220_v27 }
 0x74e   : > { %v9992_v21 = vpop.eup %9991  ;;  %9376 = vmatpush3.bf16.msra.mxu1 %v10374_v33 }
 0x74f   : > { %5864 = vperm.xlu0 %9692, %v5791_v17   ;;  %v4847_v17 = vmul.f32 1.442695, %v4504_v60  ;;  %v9994_v60 = vpop.eup %9993  ;;  %v6228_v3 = vunpack.c.h.b16 %v14890_v62  ;;  %v14904_v16 = vpack.c.bf16 %v9992_v21, %v9990_v34  ;;  %v4853_v48 = vmul.f32 1.442695, %v4507_v36  ;;  %9377 = vmatprep.subr.bf16.mxu1 %v10375_v8 }
 0x750   : > { %6273 = vperm.xlu1 %9691, %v6222_v4   ;;  %v14875_v7 = vpop.permute.xlu1 %5386  ;;  %v4849_v4 = vmul.f32 1.442695, %v4505_v25  ;;  %v14923_v36 = vrot.slane %v14534_v18, %v18320_v55  ;;  %v4857_v33 = vmul.f32 1.442695, %v4509_v26  ;;  %v18324_v55 = vld [vmem:[#allocation76_spill] sm:$0xff] }
 0x751   : > { %10003 = vpow2.f32 %v4847_v17 }
 0x752   : > { %v14868_v39 = vpop.permute.xlu0 %5362  ;;  %10005 = vpow2.f32 %v4849_v4  ;;  %v18321_v4 = vld [vmem:[#allocation73_spill] sm:$0xff] }
 0x753   : > { %5870 = vperm.xlu0 %9692, %v5793_v13   ;;  %v18316_v13 = vld [vmem:[#allocation70_spill] sm:$0xff]  ;;  %10007 = vpow2.f32 %v4851_v61  ;;  %v10379_v61 = vld [vmem:[%s10954_s24 + $0xf0] sm:$0xff]  }
 0x754   : > { %6279 = vperm.xlu1 %9691, %v6224_v32   ;;  %v4508_v40 = vsub.f32 %v18316_v13, %v14760_v58  ;;  %v9996_v32 = vpop.eup %9995  ;;  %10009 = vpow2.f32 %v4853_v48  ;;  %v5801_v13 = vunpack.c.l.b16 %v14813_v46  ;;  %v18323_v46 = vld [vmem:[#allocation75_spill] sm:$0xff] }
 0x755   : > { %v9998_v34 = vpop.eup %9997  ;;  %v14918_v21 = vpack.c.bf16 %v9996_v32, %v9994_v60  ;;  %v18322_v60 = vld [vmem:[#allocation74_spill] sm:$0xff]  ;;  %v4859_v32 = vmul.f32 1.442695, %v4510_v37  ;;  %v10380_v37 = vld [vmem:[%s10954_s24 + $0xb0] sm:$0xff]  }
 0x756   : > { %v14887_v38 = vpop.permute.xlu0 %5365  ;;  %v14894_v6 = vpop.permute.xlu1 %5401  ;;  %v4855_v15 = vmul.f32 1.442695, %v4508_v40  ;;  %v10378_v40 = vld [vmem:[%s10954_s24 + $0xa8] sm:$0xff]  }
 0x757   : > { %5876 = vperm.xlu0 %9692, %v5795_v11   ;;  %18315 = vst [vmem:[#allocation275_spill] sm:$0xff] %v14894_v6  ;;  %v10376_v11 = vld [vmem:[%s10954_s24 + $0xa0] sm:$0xff]   ;;  %v10000_v43 = vpop.eup %9999  ;;  %v6232_v26 = vunpack.c.h.b16 %v14918_v21 }
 0x758   : > { %6285 = vperm.xlu1 %9691, %v6226_v12   ;;  %v6230_v12 = vunpack.c.h.b16 %v14904_v16  ;;  %9378 = vmatpush3.bf16.msra.mxu1 %v10376_v11  ;;  %10011 = vpow2.f32 %v4855_v15  ;;  %v14937_v11 = vpack.c.bf16 %v10000_v43, %v9998_v34  ;;  %v10381_v15 = vld [vmem:[%s10954_s24 + $0xf8] sm:$0xff]  }
 0x759   : > { %9379 = vmatprep.subr.bf16.mxu1 %v10377_v19  ;;  %v4513_v19 = vsub.f32 %v18323_v46, %v14923_v36  ;;  %10013 = vpow2.f32 %v4857_v33  ;;  %v18326_v46 = vld [vmem:[#allocation78_spill] sm:$0xff] }
 0x75a   : > { %v14901_v5 = vpop.permute.xlu0 %5368  ;;  %v14908_v25 = vpop.permute.xlu1 %5407  ;;  %10015 = vpow2.f32 %v4859_v32  ;;  %v10382_v32 = vld [vmem:[%s10954_s24 + $0xb8] sm:$0xff]  }
 0x75b   : > { %5882 = vperm.xlu0 %9692, %v5797_v51   ;;  %18318 = vst [vmem:[#allocation257_spill] sm:$0xff] %v14908_v25  ;;  %v4511_v51 = vsub.f32 %v18321_v4, %v14760_v58  ;;  %v4514_v4 = vsub.f32 %v18324_v55, %v14923_v36  ;;  %v4516_v55 = vsub.f32 %v18326_v46, %v14923_v36 }
 0x75c   : > { %6291 = vperm.xlu1 %9691, %v6228_v3   ;;  %v4512_v3 = vsub.f32 %v18322_v60, %v14760_v58  ;;  %9380 = vmatpush3.bf16.msra.mxu1 %v10378_v40  ;;  %v6213_v58 = vunpack.c.l.b16 %v14821_v20  ;;  %v18325_v20 = vld [vmem:[#allocation77_spill] sm:$0xff] }
 0x75d   : > { %v4861_v50 = vmul.f32 1.442695, %v4511_v51  ;;  %9381 = vmatprep.subr.bf16.mxu1 %v10379_v61  ;;  %v6234_v51 = vunpack.c.h.b16 %v14937_v11  ;;  %v4515_v61 = vsub.f32 %v18325_v20, %v14923_v36  ;;  %v4871_v49 = vmul.f32 1.442695, %v4516_v55 }
 0x75e   : > { %v14915_v17 = vpop.permute.xlu0 %5371  ;;  %v14927_v8 = vpop.permute.xlu1 %5413  ;;  %v4863_v34 = vmul.f32 1.442695, %v4512_v3  ;;  %v6215_v3 = vunpack.c.l.b16 %v14829_v47  ;;  %v18327_v47 = vld [vmem:[#allocation79_spill] sm:$0xff]  ;;  %v6219_v55 = vunpack.c.l.b16 %v14845_v52 }
 0x75f   : > { %5888 = vperm.xlu0 %9692, %v5799_v10   ;;  %v10002_v10 = vpop.eup %10001  ;;  %10017 = vpow2.f32 %v4861_v50 }
 0x760   : > { %6297 = vperm.xlu1 %9691, %v6230_v12   ;;  %v10004_v48 = vpop.eup %10003  ;;  %9382 = vmatpush3.bf16.msra.mxu1 %v10380_v37  ;;  %10019 = vpow2.f32 %v4863_v34  ;;  %v18328_v34 = vld [vmem:[#allocation80_spill] sm:$0xff] }
 0x761   : > { %v14951_v40 = vpack.c.bf16 %v10004_v48, %v10002_v10  ;;  %9383 = vmatprep.subr.bf16.mxu1 %v10381_v15  ;;  %v4517_v15 = vsub.f32 %v18327_v47, %v14923_v36  ;;  %v4518_v46 = vsub.f32 %v18328_v34, %v14923_v36 }
 0x762   : > { %v14934_v57 = vpop.permute.xlu0 %5374 }
 0x763   : > { %5894 = vperm.xlu0 %9692, %v5801_v13   ;;  %v14941_v12 = vpop.permute.xlu1 %5419  ;;  %v10006_v13 = vpop.eup %10005  ;;  %v6236_v37 = vunpack.c.h.b16 %v14951_v40  ;;  %v4875_v34 = vmul.f32 1.442695, %v4518_v46  ;;  %v6221_v46 = vunpack.c.l.b16 %v14854_v28 }
 0x764   : > { %6303 = vperm.xlu1 %9691, %v6232_v26   ;;  %v10008_v33 = vpop.eup %10007  ;;  %v4865_v26 = vmul.f32 1.442695, %v4513_v19  ;;  %9384 = vmatpush3.bf16.msra.mxu1 %v10382_v32 }
 0x765   : > { %v10010_v48 = vpop.eup %10009  ;;  %v14964_v20 = vpack.c.bf16 %v10008_v33, %v10006_v13 }
 0x766   : > { %v14948_v43 = vpop.permute.xlu0 %5377  ;;  %v10012_v19 = vpop.eup %10011  ;;  %10021 = vpow2.f32 %v4865_v26 }
 0x767   : > { %6246 = vperm.xlu0 %9692, %v6213_v58   ;;  %v14955_v60 = vpop.permute.xlu1 %5425  ;;  %v4867_v58 = vmul.f32 1.442695, %v4514_v4  ;;  %v6217_v4 = vunpack.c.l.b16 %v14837_v23  ;;  %v10014_v13 = vpop.eup %10013  ;;  %v6238_v33 = vunpack.c.h.b16 %v14964_v20  ;;  %v14976_v32 = vpack.c.bf16 %v10012_v19, %v10010_v48 }
 0x768   : > { %6309 = vperm.xlu1 %9691, %v6234_v51   ;;  %v4869_v51 = vmul.f32 1.442695, %v4515_v61  ;;  %v10016_v44 = vpop.eup %10015  ;;  %v18330_v61 = vld [vmem:[#allocation81_spill] sm:$0xff]  ;;  %v4873_v23 = vmul.f32 1.442695, %v4517_v15  ;;  %v18334_v15 = vld [vmem:[#allocation83_spill] sm:$0xff] }
 0x769   : > { %10023 = vpow2.f32 %v4867_v58  ;;  %v4519_v26 = vsub.f32 %v18330_v61, %v14923_v36  ;;  %v18331_v58 = vld [vmem:[#allocation82_spill] sm:$0xff]  ;;  %v10018_v48 = vpop.eup %10017  ;;  %v6240_v19 = vunpack.c.h.b16 %v14976_v32 }
 0x76a   : > { %v14961_v10 = vpop.permute.xlu0 %5380  ;;  %10025 = vpow2.f32 %v4869_v51  ;;  %v10020_v25 = vpop.eup %10019  ;;  %v4521_v51 = vsub.f32 %v18334_v15, %v14923_v36 }
 0x76b   : > { %6252 = vperm.xlu0 %9692, %v6215_v3   ;;  %v14966_v50 = vpop.permute.xlu1 %5431  ;;  %10027 = vpow2.f32 %v4871_v49  ;;  %v4877_v52 = vmul.f32 1.442695, %v4519_v26  ;;  %v18335_v49 = vld [vmem:[#allocation84_spill] sm:$0xff]  ;;  %v18338_v26 = vld [vmem:[#allocation85_spill] sm:$0xff] }
 0x76c   : > { %6315 = vperm.xlu1 %9691, %v6236_v37   ;;  %v4520_v37 = vsub.f32 %v18331_v58, %v14923_v36  ;;  %10029 = vpow2.f32 %v4873_v23  ;;  %v4523_v23 = vsub.f32 %v18338_v26, %v14923_v36  ;;  %v4881_v28 = vmul.f32 1.442695, %v4521_v51  ;;  %v18341_v51 = vld [vmem:[#allocation87_spill] sm:$0xff] }
 0x76d   : > { %10031 = vpow2.f32 %v4875_v34  ;;  %v18339_v34 = vld [vmem:[#allocation86_spill] sm:$0xff] }
 0x76e   : > { %v14973_v3 = vpop.permute.xlu0 %5383  ;;  %v4879_v58 = vmul.f32 1.442695, %v4520_v37  ;;  %10033 = vpow2.f32 %v4877_v52  ;;  %v6223_v37 = vunpack.c.l.b16 %v14864_v59  ;;  %v4525_v52 = vsub.f32 %v18341_v51, %v14923_v36  ;;  %v18343_v59 = vld [vmem:[#allocation88_spill] sm:$0xff] }
 0x76f   : > { %6258 = vperm.xlu0 %9692, %v6217_v4   ;;  %v14978_v47 = vpop.permute.xlu1 %5437  ;;  %v14988_v4 = vpack.c.bf16 %v10016_v44, %v10014_v13  ;;  %v4526_v26 = vsub.f32 %v18343_v59, %v14923_v36 }
 0x770   : > { %18329 = vst [vmem:[#allocation278_spill] sm:$0xff] %v14978_v47  ;;  %6321 = vperm.xlu1 %9691, %v6238_v33   ;;  %v4522_v33 = vsub.f32 %v18335_v49, %v14923_v36  ;;  %v10022_v44 = vpop.eup %10021  ;;  %10035 = vpow2.f32 %v4879_v58  ;;  %v4889_v59 = vmul.f32 1.442695, %v4525_v52  ;;  %v18352_v52 = vld [vmem:[#allocation91_spill] sm:$0xff] }
 0x771   : > { %18332 = vst [vmem:[#allocation250_spill] sm:$0xff] %v14988_v4  ;;  %v6242_v13 = vunpack.c.h.b16 %v14988_v4  ;;  %10037 = vpow2.f32 %v4881_v28  ;;  %v18348_v28 = vld [vmem:[#allocation90_spill] sm:$0xff] }
 0x772   : > { %v14985_v24 = vpop.permute.xlu0 %5389  ;;  %v4883_v49 = vmul.f32 1.442695, %v4522_v33  ;;  %v6225_v33 = vunpack.c.l.b16 %v14878_v54  ;;  %v4528_v54 = vsub.f32 %v18348_v28, %v14923_v36 }
 0x773   : > { %6264 = vperm.xlu0 %9692, %v6219_v55   ;;  %v14990_v61 = vpop.permute.xlu1 %5443  ;;  %v15000_v55 = vpack.c.bf16 %v10020_v25, %v10018_v48  ;;  %v10024_v6 = vpop.eup %10023 }
 0x774   : > { %18333 = vst [vmem:[#allocation267_spill] sm:$0xff] %v14990_v61  ;;  %6327 = vperm.xlu1 %9691, %v6240_v19   ;;  %v4524_v19 = vsub.f32 %v18339_v34, %v14923_v36  ;;  %v10026_v25 = vpop.eup %10025  ;;  %v4885_v34 = vmul.f32 1.442695, %v4523_v23  ;;  %10039 = vpow2.f32 %v4883_v49  ;;  %v6227_v49 = vunpack.c.l.b16 %v14890_v62 }
 0x775   : > { %18336 = vst [vmem:[#allocation290_spill] sm:$0xff] %v15000_v55  ;;  %v6244_v48 = vunpack.c.h.b16 %v15000_v55 }
 0x776   : > { %v14997_v35 = vpop.permute.xlu0 %5392  ;;  %v4887_v58 = vmul.f32 1.442695, %v4524_v19  ;;  %v4891_v19 = vmul.f32 1.442695, %v4526_v26  ;;  %10041 = vpow2.f32 %v4885_v34 }
 0x777   : > { %6270 = vperm.xlu0 %9692, %v6221_v46   ;;  %v15002_v15 = vpop.permute.xlu1 %5449  ;;  %v15012_v46 = vpack.c.bf16 %v10024_v6, %v10022_v44 }
 0x778   : > { %18337 = vst [vmem:[#allocation277_spill] sm:$0xff] %v15002_v15  ;;  %6333 = vperm.xlu1 %9691, %v6242_v13   ;;  %v10028_v15 = vpop.eup %10027  ;;  %10043 = vpow2.f32 %v4887_v58  ;;  %v18356_v58 = vld [vmem:[#allocation94_spill] sm:$0xff] }
 0x779   : > { %18340 = vst [vmem:[#allocation300_spill] sm:$0xff] %v15012_v46  ;;  %v10030_v6 = vpop.eup %10029  ;;  %v6656_v44 = vunpack.c.h.b16 %v15012_v46  ;;  %10045 = vpow2.f32 %v4889_v59  ;;  %v18362_v59 = vld [vmem:[#allocation99_spill] sm:$0xff] }
 0x77a   : > { %v15009_v22 = vpop.permute.xlu0 %5395  ;;  %v10032_v51 = vpop.eup %10031  ;;  %10047 = vpow2.f32 %v4891_v19  ;;  %v10383_v19 = vld [vmem:[%s10954_s24 + $0x140] sm:$0xff]  }
 0x77b   : > { %6276 = vperm.xlu0 %9692, %v6223_v37   ;;  %v15016_v13 = vpop.permute.xlu1 %5455  ;;  %v15024_v37 = vpack.c.bf16 %v10028_v15, %v10026_v25  ;;  %v15045_v34 = vpack.c.bf16 %v10032_v51, %v10030_v6  ;;  %v6229_v6 = vunpack.c.l.b16 %v14904_v16  ;;  %v18359_v51 = vld [vmem:[#allocation96_spill] sm:$0xff]  ;;  %9391 = vmatprep.subr.bf16.mxu0 %v10383_v19 }
 0x77c   : > { %18342 = vst [vmem:[#allocation268_spill] sm:$0xff] %v15016_v13  ;;  %6339 = vperm.xlu1 %9691, %v6244_v48   ;;  %v18346_v13 = vld [vmem:[#allocation89_spill] sm:$0xff]  ;;  %v18349_v48 = vsub.s32 4, %v18220_v27 }
 0x77d   : > { %18345 = vst [vmem:[#allocation302_spill] sm:$0xff] %v15024_v37  ;;  %v4527_v41 = vsub.f32 %v18346_v13, %v14923_v36  ;;  %v10034_v13 = vpop.eup %10033  ;;  %v6658_v26 = vunpack.c.h.b16 %v15024_v37  ;;  %18354 = vst [vmem:[#allocation259_spill] sm:$0xff] %v15045_v34 }
 0x77e   : > { %v15021_v55 = vpop.permute.xlu0 %5398  ;;  %v15036_v15 = vrot.slane %v14534_v18, %v18349_v48  ;;  %v10036_v62 = vpop.eup %10035  ;;  %v4532_v18 = vsub.f32 %v18356_v58, %v14923_v36  ;;  %v18361_v58 = vld [vmem:[#allocation98_spill] sm:$0xff] }
 0x77f   : > { %18344 = vst [vmem:[#allocation280_spill] sm:$0xff] %v15021_v55  ;;  %6282 = vperm.xlu0 %9692, %v6225_v33   ;;  %v15028_v23 = vpop.permute.xlu1 %5807  ;;  %v4529_v33 = vsub.f32 %v18352_v52, %v14923_v36  ;;  %v4893_v27 = vmul.f32 1.442695, %v4527_v41  ;;  %v18358_v52 = vld [vmem:[#allocation95_spill] sm:$0xff]  ;;  %v10038_v61 = vpop.eup %10037  ;;  %v18365_v41 = vld [vmem:[#allocation102_spill] sm:$0xff] }
 0x780   : > { %18347 = vst [vmem:[#allocation258_spill] sm:$0xff] %v15028_v23  ;;  %6691 = vperm.xlu1 %9691, %v6656_v44   ;;  %18350 = vst [vmem:[#allocation269_spill] sm:$0xff] %v15036_v15  ;;  %v18353_v23 = vld [vmem:[#allocation92_spill] sm:$0xff]  ;;  %v18355_v44 = vld [vmem:[#allocation93_spill] sm:$0xff]  ;;  %v4533_v15 = vsub.f32 %v18358_v52, %v14923_v36  ;;  %v6660_v52 = vunpack.c.h.b16 %v15045_v34 }
 0x781   : > { %v4530_v28 = vsub.f32 %v18353_v23, %v14923_v36  ;;  %v4531_v48 = vsub.f32 %v18355_v44, %v14923_v36  ;;  %v4895_v23 = vmul.f32 1.442695, %v4528_v54  ;;  %v18360_v44 = vld [vmem:[#allocation97_spill] sm:$0xff]  ;;  %v18363_v54 = vld [vmem:[#allocation100_spill] sm:$0xff]  ;;  %v4897_v55 = vmul.f32 1.442695, %v4529_v33 }
 0x782   : > { %v15038_v25 = vpop.permute.xlu0 %5404  ;;  %v4535_v37 = vsub.f32 %v18360_v44, %v14923_v36  ;;  %v10040_v44 = vpop.eup %10039  ;;  %10049 = vpow2.f32 %v4893_v27  ;;  %v5543_v27 = vrot.slane %v14927_v8, %v13592_v1 }
 0x783   : > { %18351 = vst [vmem:[#allocation289_spill] sm:$0xff] %v15038_v25  ;;  %6288 = vperm.xlu0 %9692, %v6227_v49   ;;  %v15051_v46 = vpop.permute.xlu1 %5813  ;;  %v4534_v49 = vsub.f32 %v18359_v51, %v14923_v36  ;;  %v15069_v51 = vpack.c.bf16 %v10036_v62, %v10034_v13  ;;  %v4899_v47 = vmul.f32 1.442695, %v4530_v28  ;;  %10051 = vpow2.f32 %v4895_v23  ;;  %v18368_v62 = vld [vmem:[#allocation104_spill] sm:$0xff]  ;;  %v10042_v4 = vpop.eup %10041 }
 0x784   : > { %18357 = vst [vmem:[#allocation292_spill] sm:$0xff] %v15051_v46  ;;  %6697 = vperm.xlu1 %9691, %v6658_v26   ;;  %v6231_v26 = vunpack.c.l.b16 %v14918_v21  ;;  %v4901_v16 = vmul.f32 1.442695, %v4531_v48  ;;  %v15086_v21 = vpack.c.bf16 %v10040_v44, %v10038_v61  ;;  %v10044_v23 = vpop.eup %10043  ;;  %10053 = vpow2.f32 %v4897_v55 }
 0x785   : > { %v6662_v28 = vunpack.c.h.b16 %v15069_v51  ;;  %v4907_v13 = vmul.f32 1.442695, %v4534_v49  ;;  %10055 = vpow2.f32 %v4899_v47  ;;  %v10046_v61 = vpop.eup %10045  ;;  %v5469_v55 = vrot.slane %v14901_v5, %v13599_v29 }
 0x786   : > { %v5411_v25 = vpop.permute.xlu0 %5410  ;;  %10057 = vpow2.f32 %v4901_v16  ;;  %v10048_v49 = vpop.eup %10047  ;;  %v15105_v16 = vpack.c.bf16 %v10044_v23, %v10042_v4  ;;  %v4909_v44 = vmul.f32 1.442695, %v4535_v37  ;;  %v6235_v4 = vunpack.c.l.b16 %v14951_v40 }
 0x787   : > { %6294 = vperm.xlu0 %9692, %v6229_v6   ;;  %v15073_v46 = vpop.permute.xlu1 %5819  ;;  %v5539_v9 = vrot.slane %v5411_v25, %v13596_v0  ;;  %v18367_v6 = vld [vmem:[#allocation103_spill] sm:$0xff]  ;;  %v5489_v37 = vrot.slane %v14961_v10, %v13641_v30  ;;  %v15122_v23 = vpack.c.bf16 %v10048_v49, %v10046_v61  ;;  %v18372_v10 = vsub.f32 %v18362_v59, %v14923_v36 }
 0x788   : > { %18366 = vst [vmem:[#allocation279_spill] sm:$0xff] %v15073_v46  ;;  %6703 = vperm.xlu1 %9691, %v6660_v52   ;;  %v4903_v46 = vmul.f32 1.442695, %v4532_v18  ;;  %v4905_v52 = vmul.f32 1.442695, %v4533_v15  ;;  %v5464_v18 = vrot.slane %v14887_v38, %v13592_v1  ;;  %v5460_v15 = vrot.slane %v14868_v39, %v13596_v0 }
 0x789   : > { %v5544_v48 = vsel %vm18369_vm5, %v5543_v27, %v5539_v9  ;;  %v5553_v9 = vrot.slane %v14941_v12, %v13611_v53  ;;  %v5474_v38 = vrot.slane %v14915_v17, %v13611_v53  ;;  %v5479_v39 = vrot.slane %v14934_v57, %v13614_v14  ;;  %vm18374_vm5 = vmmov %vm18373_vm1 }
 0x78a   : > { %v5417_v33 = vpop.permute.xlu0 %5416  ;;  %10059 = vpow2.f32 %v4903_v46  ;;  %v5465_v27 = vsel %vm18370_vm6, %v5464_v18, %v5460_v15  ;;  %v5484_v17 = vrot.slane %v14948_v43, %v13629_v56  ;;  %v5563_v57 = vrot.slane %v14955_v60, %v13629_v56 }
 0x78b   : > { %v5548_v25 = vrot.slane %v5417_v33, %v13599_v29  ;;  %6300 = vperm.xlu0 %9692, %v6231_v26   ;;  %v15089_v34 = vpop.permute.xlu1 %5825  ;;  %v6233_v26 = vunpack.c.l.b16 %v14937_v11  ;;  %v6664_v11 = vunpack.c.h.b16 %v15086_v21  ;;  %v5470_v46 = vsel %vm3059_vm2, %v5469_v55, %v5465_v27 }
 0x78c   : > { %6709 = vperm.xlu1 %9691, %v6662_v28   ;;  %v5475_v43 = vsel %vm3066_vm3, %v5474_v38, %v5470_v46  ;;  %v5494_v18 = vrot.slane %v14973_v3, %v13652_v63  ;;  %v18371_v60 = vsub.f32 %v18361_v58, %v14923_v36  ;;  %v4913_v61 = vmul.f32 1.442695, %v18372_v10 }
 0x78d   : > { %v5549_v8 = vsel %vm3059_vm2, %v5548_v25, %v5544_v48  ;;  %v10050_v25 = vpop.eup %10049  ;;  %v5480_v15 = vsel %vm3073_vm4, %v5479_v39, %v5475_v43  ;;  %10061 = vpow2.f32 %v4905_v52  ;;  %vm18375_vm6 = vcmask 458112   ;;  %v18382_v43 = vld [vmem:[#allocation280_spill] sm:$0xff] }
 0x78e   : > { %v5423_v47 = vpop.permute.xlu0 %5422  ;;  %v5554_v12 = vsel %vm3066_vm3, %v5553_v9, %v5549_v8  ;;  %v10052_v48 = vpop.eup %10051  ;;  %v6666_v8 = vunpack.c.h.b16 %v15105_v16  ;;  %v5485_v3 = vsel %vm18374_vm5, %v5484_v17, %v5480_v15  ;;  %v6237_v49 = vunpack.c.l.b16 %v14964_v20  ;;  %vm18376_vm0 = vmmov %vm18375_vm6 }
 0x78f   : > { %v5558_v19 = vrot.slane %v5423_v47, %v13614_v14  ;;  %6306 = vperm.xlu0 %9692, %v6233_v26   ;;  %v15109_v5 = vpop.permute.xlu1 %5831  ;;  %v4911_v26 = vmul.f32 1.442695, %v18371_v60  ;;  %v10054_v58 = vpop.eup %10053  ;;  %10063 = vpow2.f32 %v4907_v13  ;;  %v5573_v59 = vrot.slane %v14966_v50, %v13652_v63 }
 0x790   : > { %6715 = vperm.xlu1 %9691, %v6664_v11   ;;  %v5490_v38 = vsel %vm18376_vm0, %v5489_v37, %v5485_v3  ;;  %v15145_v11 = vpack.c.bf16 %v10052_v48, %v10050_v25  ;;  %v10056_v39 = vpop.eup %10055  ;;  %v6668_v20 = vunpack.c.h.b16 %v15122_v23  ;;  %v18378_v50 = vsub.f32 %v18363_v54, %v14923_v36  ;;  %v18381_v48 = vld [vmem:[#allocation251_spill] sm:$0xff] }
 0x791   : > { %v5559_v33 = vsel %vm3073_vm4, %v5558_v19, %v5554_v12  ;;  %v5504_v12 = vrot.slane %v14985_v24, %v13608_v31  ;;  %v10058_v13 = vpop.eup %10057  ;;  %10065 = vpow2.f32 %v4909_v44  ;;  %v5514_v46 = vrot.slane %v15009_v22, %v13635_v42 }
 0x792   : > { %v5429_v28 = vpop.permute.xlu0 %5428  ;;  %v5564_v9 = vsel %vm18373_vm1, %v5563_v57, %v5559_v33  ;;  %vm18377_vm1 = vcmask 523712   ;;  %v4915_v17 = vmul.f32 1.442695, %v18378_v50  ;;  %v5499_v33 = vrot.slane %v14875_v7, %v13664_v2  ;;  %v18380_v7 = vld [vmem:[#allocation278_spill] sm:$0xff] }
 0x793   : > { %v5568_v40 = vrot.slane %v5429_v28, %v13641_v30  ;;  %6312 = vperm.xlu0 %9692, %v6235_v4   ;;  %v15136_v55 = vpop.permute.xlu1 %5837  ;;  %v5495_v52 = vsel %vm18377_vm1, %v5494_v18, %v5490_v38  ;;  %v5509_v4 = vrot.slane %v14997_v35, %v13670_v45  ;;  %vm18379_vm0 = vmmov %vm18377_vm1  ;;  %v6239_v54 = vunpack.c.l.b16 %v14976_v32  ;;  %v18383_v32 = vld [vmem:[#allocation101_spill] sm:$0xff]  ;;  %v18389_v38 = vld [vmem:[#allocation250_spill] sm:$0xff] }
 0x794   : > { %6721 = vperm.xlu1 %9691, %v6666_v8   ;;  %v10060_v37 = vpop.eup %10059  ;;  %10067 = vpow2.f32 %v4911_v26  ;;  %v5583_v28 = vrot.slane %v18380_v7, %v13608_v31  ;;  %v5500_v35 = vsel %vm3101_vm8, %v5499_v33, %v5495_v52  ;;  %v5519_v18 = vrot.slane %v18382_v43, %v18381_v48  ;;  %v18395_v7 = vld [vmem:[#allocation105_spill] sm:$0xff] }
 0x795   : > { %v5569_v47 = vsel %vm18375_vm6, %v5568_v40, %v5564_v9  ;;  %v5505_v44 = vsel %vm3108_vm9, %v5504_v12, %v5500_v35  ;;  %v6670_v8 = vunpack.c.h.b16 %v15145_v11  ;;  %v15174_v60 = vpack.c.bf16 %v10056_v39, %v10054_v58  ;;  %v18390_v39 = vld [vmem:[#allocation267_spill] sm:$0xff]  ;;  %v18391_v12 = vld [vmem:[#allocation252_spill] sm:$0xff] }
 0x796   : > { %v5435_v19 = vpop.permute.xlu0 %5434  ;;  %v5574_v24 = vsel %vm18379_vm0, %v5573_v59, %v5569_v47  ;;  %v18384_v26 = vsub.f32 %v18383_v32, %v14923_v36  ;;  %v18385_v15 = vsub.f32 %v18365_v41, %v14923_v36  ;;  %vm18386_vm5 = vcmask 720512   ;;  %v18396_v35 = vld [vmem:[#allocation107_spill] sm:$0xff] }
 0x797   : > { %v5578_v27 = vrot.slane %v5435_v19, %v13664_v2  ;;  %6318 = vperm.xlu0 %9692, %v6237_v49   ;;  %v15159_v25 = vpop.permute.xlu1 %5843  ;;  %v5510_v3 = vsel %vm18386_vm5, %v5509_v4, %v5505_v44  ;;  %10069 = vpow2.f32 %v4913_v61  ;;  %vm18388_vm6 = vmmov %vm18386_vm5  ;;  %v6241_v19 = vunpack.c.l.b16 %v18389_v38  ;;  %v10062_v33 = vpop.eup %10061  ;;  %v18393_v4 = vld [vmem:[#allocation441_spill] sm:$0xff]  ;;  %v18394_v61 = vld [vmem:[#allocation275_spill] sm:$0xff] }
 0x798   : > { %6727 = vperm.xlu1 %9691, %v6668_v20   ;;  %v4917_v10 = vmul.f32 1.442695, %v18384_v26  ;;  %v4919_v9 = vmul.f32 1.442695, %v18385_v15  ;;  %v5515_v59 = vsel %vm3122_vm11, %v5514_v46, %v5510_v3  ;;  %10071 = vpow2.f32 %v4915_v17  ;;  %v18402_v38 = vld [vmem:[#allocation257_spill] sm:$0xff] }
 0x799   : > { %v5579_v57 = vsel %vm3101_vm8, %v5578_v27, %v5574_v24  ;;  %v5593_v52 = vrot.slane %v18390_v39, %v13635_v42  ;;  %v5520_v41 = vsel %vm3129_vm12, %v5519_v18, %v5515_v59  ;;  %v18392_v27 = vld [vmem:[#allocation289_spill] sm:$0xff]  ;;  %v5524_v24 = vrot.slane %v18394_v61, %v18393_v4  ;;  %v10064_v17 = vpop.eup %10063 }
 0x79a   : > { %v5441_v40 = vpop.permute.xlu0 %5440  ;;  %v5584_v49 = vsel %vm3108_vm9, %v5583_v28, %v5579_v57  ;;  %v5529_v20 = vrot.slane %v18392_v27, %v18391_v12  ;;  %v6672_v57 = vunpack.c.h.b16 %v15174_v60  ;;  %v4543_v28 = vsub.f32 %v18395_v7, %v14923_v36 }
 0x79b   : > { %v5588_v22 = vrot.slane %v5441_v40, %v13670_v45  ;;  %6324 = vperm.xlu0 %9692, %v6239_v54   ;;  %v15183_v47 = vpop.permute.xlu1 %5849  ;;  %v15198_v54 = vpack.c.bf16 %v10060_v37, %v10058_v13  ;;  %v4544_v43 = vsub.f32 %v18396_v35, %v14923_v36  ;;  %v18397_v18 = vsub.f32 %v18367_v6, %v14923_v36  ;;  %v18398_v37 = vld [vmem:[#allocation290_spill] sm:$0xff]  ;;  %v18400_v6 = vld [vmem:[#allocation277_spill] sm:$0xff] }
 0x79c   : > { %18387 = vst [vmem:[#allocation304_spill] sm:$0xff] %v15183_v47  ;;  %6733 = vperm.xlu1 %9691, %v6670_v8   ;;  %10073 = vpow2.f32 %v4917_v10  ;;  %v5525_v8 = vsel %vm3136_vm13, %v5524_v24, %v5520_v41  ;;  %v6243_v32 = vunpack.c.l.b16 %v18398_v37  ;;  %v18399_v26 = vsub.f32 %v18368_v62, %v14923_v36  ;;  %v18401_v10 = vld [vmem:[#allocation444_spill] sm:$0xff]  ;;  %v18403_v62 = vld [vmem:[#allocation269_spill] sm:$0xff] }
 0x79d   : > { %v5589_v58 = vsel %vm18388_vm6, %v5588_v22, %v5584_v49  ;;  %v4921_v40 = vmul.f32 1.442695, %v18397_v18  ;;  %10075 = vpow2.f32 %v4919_v9  ;;  %v5603_v3 = vrot.slane %v18400_v6, %v18393_v4  ;;  %v18404_v9 = vld [vmem:[#allocation120_spill] sm:$0xff]  ;;  %v18407_v35 = vld [vmem:[#allocation129_spill] sm:$0xff] }
 0x79e   : > { %v5447_v50 = vpop.permute.xlu0 %5446  ;;  %v5594_v22 = vsel %vm3122_vm11, %v5593_v52, %v5589_v58  ;;  %v4923_v15 = vmul.f32 1.442695, %v18399_v26  ;;  %v5530_v49 = vsel %vm3143_vm14, %v5529_v20, %v5525_v8  ;;  %v10066_v58 = vpop.eup %10065  ;;  %v6674_v52 = vunpack.c.h.b16 %v15198_v54  ;;  %v18405_v20 = vld [vmem:[#allocation268_spill] sm:$0xff] }
 0x79f   : > { %v5598_v46 = vrot.slane %v5447_v50, %v18381_v48  ;;  %6330 = vperm.xlu0 %9692, %v6241_v19   ;;  %v15207_v44 = vpop.permute.xlu1 %5855  ;;  %v5534_v19 = vrot.slane %v18402_v38, %v18401_v10  ;;  %v15223_v41 = vpack.c.bf16 %v10064_v17, %v10062_v33  ;;  %v10068_v36 = vpop.eup %10067  ;;  %v4561_v27 = vsub.f32 %v18404_v9, %v18403_v62 }
 0x7a0   : > { %6739 = vperm.xlu1 %9691, %v6672_v57   ;;  %v4925_v50 = vmul.f32 1.442695, %v4543_v28  ;;  %v5613_v61 = vrot.slane %v18405_v20, %v18401_v10  ;;  %10077 = vpow2.f32 %v4921_v40  ;;  %v18406_v57 = vld [vmem:[#allocation300_spill] sm:$0xff]  ;;  %v4562_v18 = vsub.f32 %v18407_v35, %v18403_v62  ;;  %v18413_v20 = vld [vmem:[#allocation109_spill] sm:$0xff]  ;;  %v10394_v10 = vld [vmem:[%s10954_s24 + $0x128] sm:$0xff]  }
 0x7a1   : > { %v5599_v13 = vsel %vm3129_vm12, %v5598_v46, %v5594_v22  ;;  %v6655_v7 = vunpack.c.l.b16 %v18406_v57  ;;  %v5535_v17 = vsel %vm3150_vm15, %v5534_v19, %v5530_v49  ;;  %v4927_v28 = vmul.f32 1.442695, %v4544_v43  ;;  %v10070_v37 = vpop.eup %10069  ;;  %v10385_v19 = vld [vmem:[%s10954_s24 + $0x148] sm:$0xff]  }
 0x7a2   : > { %v5453_v59 = vpop.permute.xlu0 %5452  ;;  %v5604_v46 = vsel %vm3136_vm13, %v5603_v3, %v5599_v13  ;;  %10079 = vpow2.f32 %v4923_v15  ;;  %v10384_v13 = vld [vmem:[%s10954_s24 + $0x100] sm:$0xff]   ;;  %v6676_v40 = vunpack.c.h.b16 %v15223_v41  ;;  %v15242_v26 = vpack.c.bf16 %v10068_v36, %v10066_v58  ;;  %v10072_v6 = vpop.eup %10071  ;;  %v18408_v3 = vld [vmem:[#allocation200_spill] sm:$0xff]  ;;  %v18412_v58 = vld [vmem:[#allocation302_spill] sm:$0xff] }
 0x7a3   : > { %v5608_v39 = vrot.slane %v5453_v59, %v18391_v12  ;;  %6336 = vperm.xlu0 %9692, %v6243_v32   ;;  %v15229_v24 = vpop.permute.xlu1 %5861  ;;  %v18409_v49 = vsub.s32 5, %v18408_v3  ;;  %v18410_v59 = vld [vmem:[#allocation266_spill] sm:$0xff]  ;;  %v5615_v15 = vpack.c.b16 %v5535_v17, %v5535_v17  ;;  %v4961_v9 = vmul.f32 1.442695, %v4561_v27  ;;  %v10392_v3 = vld [vmem:[%s10954_s24 + $0x120] sm:$0xff]  }
 0x7a4   : > { %6745 = vperm.xlu1 %9691, %v6674_v52   ;;  %10081 = vpow2.f32 %v4925_v50  ;;  %v6657_v36 = vunpack.c.l.b16 %v18412_v58  ;;  %v6678_v17 = vunpack.c.h.b16 %v15242_v26  ;;  %v15261_v27 = vpack.c.bf16 %v10072_v6, %v10070_v37  ;;  %v10388_v58 = vld [vmem:[%s10954_s24 + $0x110] sm:$0xff]  }
 0x7a5   : > { %v5609_v33 = vsel %vm3143_vm14, %v5608_v39, %v5604_v46  ;;  %v15247_v38 = vrot.slane %v18410_v59, %v18409_v49  ;;  %v18411_v39 = vld [vmem:[#allocation106_spill] sm:$0xff]  ;;  %v4963_v46 = vmul.f32 1.442695, %v4562_v18  ;;  %10083 = vpow2.f32 %v4927_v28 }
 0x7a6   : > { %v15237_v22 = vpop.permute.xlu0 %5804  ;;  %v5614_v8 = vsel %vm3150_vm15, %v5613_v61, %v5609_v33  ;;  %v4545_v52 = vsub.f32 %v18411_v39, %v18403_v62  ;;  %v4546_v61 = vsub.f32 %v18413_v20, %v18403_v62  ;;  %v10386_v33 = vld [vmem:[%s10954_s24 + $0x108] sm:$0xff]   ;;  %10085 = vpow2.f32 %v4961_v9  ;;  %v10389_v20 = vld [vmem:[%s10954_s24 + $0x158] sm:$0xff]  }
 0x7a7   : > { %6688 = vperm.xlu0 %9692, %v6655_v7   ;;  %v5616_v32 = vpack.c.b16 %v5614_v8, %v5614_v8  ;;  %v15249_v43 = vpop.permute.xlu1 %5867  ;;  %v10074_v7 = vpop.eup %10073  ;;  %v10387_v8 = vld [vmem:[%s10954_s24 + $0x150] sm:$0xff]   ;;  %v18414_v18 = vld [vmem:[#allocation146_spill] sm:$0xff]  ;;  %10087 = vpow2.f32 %v4963_v46  ;;  %vm18434_vm1 = vcmask 130112   ;;  %vm18442_vm5 = vcmask 392512  }
 0x7a8   : > { %6751 = vperm.xlu1 %9691, %v6676_v40   ;;  %v10076_v50 = vpop.eup %10075  ;;  %v4593_v28 = vsub.f32 %v18414_v18, %v15247_v38  ;;  %v4929_v40 = vmul.f32 1.442695, %v4545_v52  ;;  %v4931_v6 = vmul.f32 1.442695, %v4546_v61  ;;  %v6661_v18 = vunpack.c.l.b16 %v15069_v51  ;;  %v10391_v51 = vld [vmem:[%s10954_s24 + $0x160] sm:$0xff]   ;;  %vm18439_vm0 = vmmov %vm18434_vm1 }
 0x7a9   : > { %5747 = vmatprep.mubr.bf16.mxu0 %v5616_v32  ;;  %v18415_v32 = vld [vmem:[#allocation259_spill] sm:$0xff]  ;;  %vm18443_vm6 = vcmask 458112  }
 0x7aa   : > { %5748 = vmatmul.mubr.bf16.vlgmr.msra.gmra.mrb[0].mxu0 %v5615_v15  ;;  %v15257_v57 = vpop.permute.xlu0 %5810  ;;  %v6659_v49 = vunpack.c.l.b16 %v18415_v32  ;;  %v18416_v15 = vld [vmem:[#allocation160_spill] sm:$0xff]  ;;  %v10078_v39 = vpop.eup %10077  ;;  %v5025_v46 = vmul.f32 1.442695, %v4593_v28  ;;  %10089 = vpow2.f32 %v4929_v40 }
 0x7ab   : > { %6694 = vperm.xlu0 %9692, %v6657_v36   ;;  %9392 = vmatpush3.bf16.msra.mxu0 %v10384_v13  ;;  %v15263_v35 = vpop.permute.xlu1 %5873  ;;  %v4594_v37 = vsub.f32 %v18416_v15, %v15247_v38  ;;  %v15275_v36 = vpack.c.bf16 %v10076_v50, %v10074_v7  ;;  %v18418_v32 = vld [vmem:[#allocation112_spill] sm:$0xff]  ;;  %10091 = vpow2.f32 %v4931_v6 }
 0x7ac   : > { %9393 = vmatprep.subr.bf16.mxu0 %v10385_v19  ;;  %6757 = vperm.xlu1 %9691, %v6678_v17   ;;  %v6680_v19 = vunpack.c.h.b16 %v15261_v27  ;;  %v10080_v52 = vpop.eup %10079  ;;  %v18417_v17 = vld [vmem:[#allocation108_spill] sm:$0xff]  ;;  %v4548_v7 = vsub.f32 %v18418_v32, %v18403_v62  ;;  %10093 = vpow2.f32 %v5025_v46 }
 0x7ad   : > { %v4547_v61 = vsub.f32 %v18417_v17, %v18403_v62  ;;  %v5027_v50 = vmul.f32 1.442695, %v4594_v37  ;;  %v10390_v15 = vld [vmem:[%s10954_s24 + $0x118] sm:$0xff]   ;;  %v15289_v59 = vpack.c.bf16 %v10080_v52, %v10078_v39  ;;  %v6663_v17 = vunpack.c.l.b16 %v15086_v21  ;;  %v10393_v21 = vld [vmem:[%s10954_s24 + $0x168] sm:$0xff]  }
 0x7ae   : > { %v15271_v13 = vpop.permute.xlu0 %5816  ;;  %v4935_v52 = vmul.f32 1.442695, %v4548_v7 }
 0x7af   : > { %6700 = vperm.xlu0 %9692, %v6659_v49   ;;  %9394 = vmatpush3.bf16.msra.mxu0 %v10386_v33  ;;  %v15277_v9 = vpop.permute.xlu1 %5879  ;;  %v10082_v49 = vpop.eup %10081  ;;  %v4933_v6 = vmul.f32 1.442695, %v4547_v61  ;;  %10095 = vpow2.f32 %v5027_v50 }
 0x7b0   : > { %9395 = vmatprep.subr.bf16.mxu0 %v10387_v8  ;;  %6763 = vperm.xlu1 %9691, %v6680_v19   ;;  %v6682_v8 = vunpack.c.h.b16 %v15275_v36  ;;  %v10084_v28 = vpop.eup %10083  ;;  %v18419_v19 = vld [vmem:[#allocation133_spill] sm:$0xff] }
 0x7b1   : > { %v4577_v37 = vsub.f32 %v18419_v19, %v15247_v38  ;;  %v10086_v32 = vpop.eup %10085  ;;  %v15303_v47 = vpack.c.bf16 %v10084_v28, %v10082_v49  ;;  %10097 = vpow2.f32 %v4933_v6  ;;  %v6665_v19 = vunpack.c.l.b16 %v15105_v16  ;;  %v10395_v16 = vld [vmem:[%s10954_s24 + $0x170] sm:$0xff]  }
 0x7b2   : > { %v15285_v33 = vpop.permute.xlu0 %5822  ;;  %v10088_v61 = vpop.eup %10087  ;;  %10099 = vpow2.f32 %v4935_v52 }
 0x7b3   : > { %6706 = vperm.xlu0 %9692, %v6661_v18   ;;  %9396 = vmatpush3.bf16.msra.mxu0 %v10388_v58  ;;  %v15291_v40 = vpop.permute.xlu1 %5885  ;;  %v18420_v18 = vld [vmem:[#allocation319_spill] sm:$0xff]  ;;  %18421 = vst [vmem:[#allocation270_spill] sm:$0xff] %v15303_v47  ;;  %v4993_v50 = vmul.f32 1.442695, %v4577_v37 }
 0x7b4   : > { %9397 = vmatprep.subr.bf16.mxu0 %v10389_v20  ;;  %6769 = vperm.xlu1 %9691, %v6682_v8   ;;  %v4578_v39 = vsub.f32 %v18420_v18, %v15247_v38  ;;  %v6684_v20 = vunpack.c.h.b16 %v15289_v59  ;;  %v18423_v8 = vld [vmem:[#allocation147_spill] sm:$0xff]  ;;  %v10090_v18 = vpop.eup %10089 }
 0x7b5   : > { %v4595_v7 = vsub.f32 %v18423_v8, %v15247_v38  ;;  %v10092_v37 = vpop.eup %10091  ;;  %10101 = vpow2.f32 %v4993_v50  ;;  %v6667_v8 = vunpack.c.l.b16 %v15122_v23  ;;  %v10397_v23 = vld [vmem:[%s10954_s24 + $0x178] sm:$0xff]  }
 0x7b6   : > { %v15299_v58 = vpop.permute.xlu0 %5828  ;;  %v4995_v28 = vmul.f32 1.442695, %v4578_v39 }
 0x7b7   : > { %6712 = vperm.xlu0 %9692, %v6663_v17   ;;  %9398 = vmatpush3.bf16.msra.mxu0 %v10390_v15  ;;  %v15305_v46 = vpop.permute.xlu1 %5891  ;;  %v18424_v17 = vld [vmem:[#allocation163_spill] sm:$0xff]  ;;  %v5029_v52 = vmul.f32 1.442695, %v4595_v7 }
 0x7b8   : > { %18422 = vst [vmem:[#allocation271_spill] sm:$0xff] %v15305_v46  ;;  %9399 = vmatprep.subr.bf16.mxu0 %v10391_v51  ;;  %6775 = vperm.xlu1 %9691, %v6684_v20   ;;  %v4596_v49 = vsub.f32 %v18424_v17, %v15247_v38  ;;  %v6686_v51 = vunpack.c.h.b16 %v15303_v47  ;;  %v15317_v46 = vpack.c.bf16 %v10088_v61, %v10086_v32  ;;  %v18427_v20 = vld [vmem:[#allocation123_spill] sm:$0xff]  ;;  %10103 = vpow2.f32 %v4995_v28  ;;  %v10094_v17 = vpop.eup %10093  ;;  %v10398_v47 = vld [vmem:[%s10954_s24 + $0x138] sm:$0xff]  }
 0x7b9   : > { %v4565_v39 = vsub.f32 %v18427_v20, %v18403_v62  ;;  %v15331_v20 = vpack.c.bf16 %v10092_v37, %v10090_v18  ;;  %v10096_v7 = vpop.eup %10095  ;;  %10105 = vpow2.f32 %v5029_v52  ;;  %v5911_v52 = vrot.slane %v15257_v57, %v13599_v29 }
 0x7ba   : > { %v15313_v15 = vpop.permute.xlu0 %5834  ;;  %18425 = vst [vmem:[#allocation291_spill] sm:$0xff] %v15317_v46  ;;  %v5031_v61 = vmul.f32 1.442695, %v4596_v49  ;;  %v6669_v49 = vunpack.c.l.b16 %v15145_v11  ;;  %v5902_v11 = vrot.slane %v15237_v22, %v13596_v0 }
 0x7bb   : > { %6718 = vperm.xlu0 %9692, %v6665_v19   ;;  %9400 = vmatpush3.bf16.msra.mxu0 %v10392_v3  ;;  %v15319_v6 = vpop.permute.xlu1 %5897  ;;  %v18428_v19 = vld [vmem:[#allocation134_spill] sm:$0xff]  ;;  %v7098_v18 = vunpack.c.h.b16 %v15331_v20 }
 0x7bc   : > { %18426 = vst [vmem:[#allocation282_spill] sm:$0xff] %v15319_v6  ;;  %9401 = vmatprep.subr.bf16.mxu0 %v10393_v21  ;;  %6781 = vperm.xlu1 %9691, %v6686_v51   ;;  %v4566_v32 = vsub.f32 %v18428_v19, %v18403_v62  ;;  %v10396_v6 = vld [vmem:[%s10954_s24 + $0x130] sm:$0xff]   ;;  %v7114_v21 = vunpack.c.h.b16 %v15317_v46  ;;  %v4969_v51 = vmul.f32 1.442695, %v4565_v39  ;;  %10107 = vpow2.f32 %v5031_v61  ;;  %v10098_v46 = vpop.eup %10097 }
 0x7bd   : > { %v10100_v37 = vpop.eup %10099  ;;  %v6671_v39 = vunpack.c.l.b16 %v15174_v60 }
 0x7be   : > { %v15327_v3 = vpop.permute.xlu0 %5840  ;;  %v4971_v28 = vmul.f32 1.442695, %v4566_v32  ;;  %10109 = vpow2.f32 %v4969_v51 }
 0x7bf   : > { %6724 = vperm.xlu0 %9692, %v6667_v8   ;;  %9402 = vmatpush3.bf16.msra.mxu0 %v10394_v10  ;;  %v15333_v50 = vpop.permute.xlu1 %6249  ;;  %v15341_v10 = vpack.c.bf16 %v10096_v7, %v10094_v17  ;;  %v10102_v32 = vpop.eup %10101 }
 0x7c0   : > { %18429 = vst [vmem:[#allocation294_spill] sm:$0xff] %v15333_v50  ;;  %9403 = vmatprep.subr.bf16.mxu0 %v10395_v16  ;;  %7181 = vperm.xlu1 %9691, %v7114_v21   ;;  %10111 = vpow2.f32 %v4971_v28  ;;  %v15353_v21 = vpack.c.bf16 %v10100_v37, %v10098_v46  ;;  %v10399_v28 = vld [vmem:[%s10954_s24 + $0x1c0] sm:$0xff]   ;;  %v5921_v37 = vrot.slane %v15271_v13, %v13614_v14 }
 0x7c1   : > { %v7555_v17 = vunpack.c.l.b16 %v15341_v10  ;;  %9413 = vmatprep.subr.bf16.mxu1 %v10399_v28 }
 0x7c2   : > { %v15337_v19 = vpop.permute.xlu0 %5846  ;;  %v10104_v22 = vpop.eup %10103 }
 0x7c3   : > { %6730 = vperm.xlu0 %9692, %v6669_v49   ;;  %9404 = vmatpush3.bf16.msra.mxu0 %v10396_v6  ;;  %v15343_v16 = vpop.permute.xlu1 %6255  ;;  %v18431_v6 = vld [vmem:[#allocation258_spill] sm:$0xff]  ;;  %v6673_v49 = vunpack.c.l.b16 %v15198_v54  ;;  %v7099_v54 = vunpack.c.l.b16 %v15353_v21 }
 0x7c4   : > { %18430 = vst [vmem:[#allocation281_spill] sm:$0xff] %v15343_v16  ;;  %9405 = vmatprep.subr.bf16.mxu0 %v10397_v23  ;;  %7133 = vperm.xlu1 %9691, %v7098_v18   ;;  %v5906_v61 = vrot.slane %v18431_v6, %v13592_v1  ;;  %v18433_v23 = vld [vmem:[#allocation148_spill] sm:$0xff]  ;;  %v18435_v18 = vld [vmem:[#allocation165_spill] sm:$0xff]  ;;  %v10106_v6 = vpop.eup %10105 }
 0x7c5   : > { %v4597_v51 = vsub.f32 %v18433_v23, %v15247_v38  ;;  %v18436_v23 = vld [vmem:[#allocation292_spill] sm:$0xff] }
 0x7c6   : > { %v5853_v8 = vpop.permute.xlu0 %5852  ;;  %v5907_v57 = vsel %vm18434_vm1, %v5906_v61, %v5902_v11  ;;  %v5916_v11 = vrot.slane %v18436_v23, %v13611_v53  ;;  %vm18445_vm1 = vmmov %vm18442_vm5 }
 0x7c7   : > { %6736 = vperm.xlu0 %9692, %v6671_v39   ;;  %9406 = vmatpush3.bf16.msra.mxu0 %v10398_v47  ;;  %v15355_v7 = vpop.permute.xlu1 %6261  ;;  %v5981_v60 = vrot.slane %v5853_v8, %v13596_v0  ;;  %v4598_v39 = vsub.f32 %v18435_v18, %v15247_v38  ;;  %v5985_v47 = vrot.slane %v15207_v44, %v13592_v1  ;;  %v10108_v18 = vpop.eup %10107  ;;  %v18437_v44 = vld [vmem:[#allocation125_spill] sm:$0xff]  ;;  %v5033_v23 = vmul.f32 1.442695, %v4597_v51  ;;  %v18440_v51 = vld [vmem:[#allocation279_spill] sm:$0xff] }
 0x7c8   : > { %18432 = vst [vmem:[#allocation306_spill] sm:$0xff] %v15355_v7  ;;  %7620 = vperm.xlu1 %9691, %v7555_v17   ;;  %v5912_v46 = vsel %vm3059_vm2, %v5911_v52, %v5907_v57  ;;  %v15374_v17 = vpack.c.bf16 %v10104_v22, %v10102_v32  ;;  %v4567_v52 = vsub.f32 %v18437_v44, %v18403_v62  ;;  %v18438_v57 = vld [vmem:[#allocation137_spill] sm:$0xff]  ;;  %v6675_v32 = vunpack.c.l.b16 %v15223_v41 }
 0x7c9   : > { %v4568_v13 = vsub.f32 %v18438_v57, %v18403_v62  ;;  %v5986_v7 = vsel %vm18439_vm0, %v5985_v47, %v5981_v60  ;;  %v5035_v22 = vmul.f32 1.442695, %v4598_v39  ;;  %v5931_v44 = vrot.slane %v15285_v33, %v13641_v30  ;;  %v10110_v47 = vpop.eup %10109 }
 0x7ca   : > { %v5859_v8 = vpop.permute.xlu0 %5858  ;;  %v5926_v57 = vrot.slane %v18440_v51, %v13629_v56  ;;  %v15395_v41 = vpack.c.bf16 %v10108_v18, %v10106_v6  ;;  %v10112_v39 = vpop.eup %10111  ;;  %10113 = vpow2.f32 %v5033_v23  ;;  %v6005_v6 = vrot.slane %v15249_v43, %v13629_v56 }
 0x7cb   : > { %v5990_v61 = vrot.slane %v5859_v8, %v13599_v29  ;;  %6742 = vperm.xlu0 %9692, %v6673_v49   ;;  %v15381_v16 = vpop.permute.xlu1 %6267  ;;  %v5917_v8 = vsel %vm3066_vm3, %v5916_v11, %v5912_v46  ;;  %v5995_v49 = vrot.slane %v15229_v24, %v13611_v53  ;;  %v18441_v24 = vld [vmem:[#allocation121_spill] sm:$0xff]  ;;  %10115 = vpow2.f32 %v5035_v22 }
 0x7cc   : > { %7136 = vperm.xlu1 %9691, %v7099_v54   ;;  %v5922_v28 = vsel %vm3073_vm4, %v5921_v37, %v5917_v8  ;;  %v4563_v11 = vsub.f32 %v18441_v24, %v18403_v62  ;;  %v4973_v37 = vmul.f32 1.442695, %v4567_v52  ;;  %v5941_v52 = vrot.slane %v15299_v58, %v13664_v2 }
 0x7cd   : > { %v5991_v50 = vsel %vm3059_vm2, %v5990_v61, %v5986_v7  ;;  %v7539_v7 = vunpack.c.l.b16 %v15374_v17  ;;  %v4975_v61 = vmul.f32 1.442695, %v4568_v13  ;;  %v5927_v8 = vsel %vm18442_vm5, %v5926_v57, %v5922_v28  ;;  %vm18447_vm5 = vmmov %vm18443_vm6 }
 0x7ce   : > { %v5865_v60 = vpop.permute.xlu0 %5864  ;;  %v5996_v33 = vsel %vm3066_vm3, %v5995_v49, %v5991_v50  ;;  %v5932_v18 = vsel %vm18443_vm6, %v5931_v44, %v5927_v8  ;;  %v5936_v50 = vrot.slane %v15089_v34, %v13652_v63  ;;  %v7557_v49 = vunpack.c.l.b16 %v15395_v41  ;;  %v18449_v8 = vld [vmem:[#allocation149_spill] sm:$0xff] }
 0x7cf   : > { %v6000_v46 = vrot.slane %v5865_v60, %v13614_v14  ;;  %6748 = vperm.xlu0 %9692, %v6675_v32   ;;  %v15399_v54 = vpop.permute.xlu1 %6273  ;;  %v6677_v32 = vunpack.c.l.b16 %v15242_v26  ;;  %v15414_v28 = vpack.c.bf16 %v10112_v39, %v10110_v47  ;;  %v18444_v26 = vld [vmem:[#allocation132_spill] sm:$0xff]  ;;  %10117 = vpow2.f32 %v4973_v37 }
 0x7d0   : > { %7572 = vperm.xlu1 %9691, %v7539_v7   ;;  %v4564_v22 = vsub.f32 %v18444_v26, %v18403_v62  ;;  %vm18446_vm0 = vcmask 523712   ;;  %v6679_v34 = vunpack.c.l.b16 %v15261_v27  ;;  %10119 = vpow2.f32 %v4975_v61 }
 0x7d1   : > { %v6001_v60 = vsel %vm3073_vm4, %v6000_v46, %v5996_v33  ;;  %v5937_v58 = vsel %vm18446_vm0, %v5936_v50, %v5932_v18  ;;  %v6015_v47 = vrot.slane %v15263_v35, %v13652_v63  ;;  %v5951_v46 = vrot.slane %v15313_v15, %v13670_v45  ;;  %vm18448_vm6 = vmmov %vm18446_vm0 }
 0x7d2   : > { %v5871_v13 = vpop.permute.xlu0 %5870  ;;  %v6006_v44 = vsel %vm18445_vm1, %v6005_v6, %v6001_v60  ;;  %v5942_v57 = vsel %vm3101_vm8, %v5941_v52, %v5937_v58  ;;  %v4965_v39 = vmul.f32 1.442695, %v4563_v11  ;;  %v5946_v24 = vrot.slane %v15109_v5, %v13608_v31  ;;  %v18453_v58 = vld [vmem:[#allocation139_spill] sm:$0xff] }
 0x7d3   : > { %v6010_v23 = vrot.slane %v5871_v13, %v13641_v30  ;;  %6754 = vperm.xlu0 %9692, %v6677_v32   ;;  %v15418_v43 = vpop.permute.xlu1 %6279  ;;  %v7117_v33 = vunpack.c.l.b16 %v15414_v28  ;;  %v4967_v27 = vmul.f32 1.442695, %v4564_v22  ;;  %v4599_v60 = vsub.f32 %v18449_v8, %v15247_v38  ;;  %v18450_v32 = vld [vmem:[#allocation168_spill] sm:$0xff] }
 0x7d4   : > { %7626 = vperm.xlu1 %9691, %v7557_v49   ;;  %v5947_v15 = vsel %vm3108_vm9, %v5946_v24, %v5942_v57  ;;  %v6681_v5 = vunpack.c.l.b16 %v15275_v36  ;;  %v4600_v6 = vsub.f32 %v18450_v32, %v15247_v38  ;;  %v6025_v18 = vrot.slane %v15277_v9, %v13608_v31 }
 0x7d5   : > { %v6011_v51 = vsel %vm18447_vm5, %v6010_v23, %v6006_v44  ;;  %vm18451_vm1 = vcmask 720512   ;;  %v5961_v13 = vrot.slane %v15327_v3, %v18381_v48  ;;  %v10114_v23 = vpop.eup %10113  ;;  %10121 = vpow2.f32 %v4965_v39  ;;  %v18452_v44 = vld [vmem:[#allocation126_spill] sm:$0xff] }
 0x7d6   : > { %v5877_v7 = vpop.permute.xlu0 %5876  ;;  %v6016_v35 = vsel %vm18448_vm6, %v6015_v47, %v6011_v51  ;;  %v5952_v52 = vsel %vm18451_vm1, %v5951_v46, %v5947_v15  ;;  %v5956_v49 = vrot.slane %v15136_v55, %v13635_v42  ;;  %v7558_v36 = vunpack.c.h.b16 %v15395_v41  ;;  %v10116_v22 = vpop.eup %10115  ;;  %vm18455_vm0 = vmmov %vm18451_vm1 }
 0x7d7   : > { %v6020_v37 = vrot.slane %v5877_v7, %v13664_v2  ;;  %6760 = vperm.xlu0 %9692, %v6679_v34   ;;  %v15433_v61 = vpop.permute.xlu1 %6285  ;;  %v4569_v9 = vsub.f32 %v18452_v44, %v18403_v62  ;;  %v4570_v51 = vsub.f32 %v18453_v58, %v18403_v62  ;;  %10123 = vpow2.f32 %v4967_v27  ;;  %v18460_v44 = vld [vmem:[#allocation282_spill] sm:$0xff] }
 0x7d8   : > { %7190 = vperm.xlu1 %9691, %v7117_v33   ;;  %v5037_v47 = vmul.f32 1.442695, %v4599_v60  ;;  %v5957_v55 = vsel %vm3122_vm11, %v5956_v49, %v5952_v52  ;;  %v6683_v41 = vunpack.c.l.b16 %v15289_v59  ;;  %v5039_v46 = vmul.f32 1.442695, %v4600_v6 }
 0x7d9   : > { %v6021_v11 = vsel %vm3101_vm8, %v6020_v37, %v6016_v35  ;;  %v6035_v7 = vrot.slane %v15291_v40, %v13635_v42  ;;  %v5962_v39 = vsel %vm3129_vm12, %v5961_v13, %v5957_v55  ;;  %v5971_v24 = vrot.slane %v15337_v19, %v18391_v12  ;;  %v10118_v33 = vpop.eup %10117 }
 0x7da   : > { %v5883_v50 = vpop.permute.xlu0 %5882  ;;  %v6026_v34 = vsel %vm3108_vm9, %v6025_v18, %v6021_v11  ;;  %v5966_v27 = vrot.slane %v15159_v25, %v18393_v4  ;;  %v7118_v8 = vunpack.c.h.b16 %v15414_v28  ;;  %v15471_v59 = vpack.c.bf16 %v10116_v22, %v10114_v23  ;;  %v10120_v60 = vpop.eup %10119  ;;  %v18456_v25 = vld [vmem:[#allocation270_spill] sm:$0xff]  ;;  %v18457_v28 = vld [vmem:[#allocation271_spill] sm:$0xff]  ;;  %v18459_v23 = vld [vmem:[#allocation304_spill] sm:$0xff] }
 0x7db   : > { %v6030_v26 = vrot.slane %v5883_v50, %v13670_v45  ;;  %6766 = vperm.xlu0 %9692, %v6681_v5   ;;  %v15456_v3 = vpop.permute.xlu1 %6291  ;;  %v4977_v15 = vmul.f32 1.442695, %v4569_v9  ;;  %10125 = vpow2.f32 %v5037_v47  ;;  %v6685_v32 = vunpack.c.l.b16 %v18456_v25  ;;  %v18458_v50 = vld [vmem:[#allocation444_spill] sm:$0xff]  ;;  %v18461_v47 = vld [vmem:[#allocation291_spill] sm:$0xff] }
 0x7dc   : > { %18454 = vst [vmem:[#allocation283_spill] sm:$0xff] %v15456_v3  ;;  %7629 = vperm.xlu1 %9691, %v7558_v36   ;;  %v5967_v19 = vsel %vm3136_vm13, %v5966_v27, %v5962_v39  ;;  %v4979_v6 = vmul.f32 1.442695, %v4570_v51  ;;  %10127 = vpow2.f32 %v5039_v46  ;;  %v6045_v18 = vrot.slane %v18457_v28, %v18393_v4  ;;  %v18465_v28 = vld [vmem:[#allocation110_spill] sm:$0xff] }
 0x7dd   : > { %v6031_v57 = vsel %vm18455_vm0, %v6030_v26, %v6026_v34  ;;  %v5972_v52 = vsel %vm3143_vm14, %v5971_v24, %v5967_v19  ;;  %v5976_v49 = vrot.slane %v18459_v23, %v18458_v50  ;;  %v7559_v36 = vunpack.c.l.b16 %v15471_v59  ;;  %v10400_v24 = vld [vmem:[%s10954_s24 + $0x180] sm:$0xff]   ;;  %v10401_v19 = vld [vmem:[%s10954_s24 + $0x1c8] sm:$0xff]  }
 0x7de   : > { %v5889_v37 = vpop.permute.xlu0 %5888  ;;  %v6036_v11 = vsel %vm3122_vm11, %v6035_v7, %v6031_v57  ;;  %v15486_v22 = vpack.c.bf16 %v10120_v60, %v10118_v33  ;;  %v6055_v9 = vrot.slane %v18460_v44, %v18458_v50  ;;  %10129 = vpow2.f32 %v4977_v15  ;;  %v10402_v44 = vld [vmem:[%s10954_s24 + $0x188] sm:$0xff]  }
 0x7df   : > { %v6040_v35 = vrot.slane %v5889_v37, %v18381_v48  ;;  %6772 = vperm.xlu0 %9692, %v6683_v41   ;;  %v15473_v40 = vpop.permute.xlu1 %6297  ;;  %v10122_v34 = vpop.eup %10121  ;;  %v7113_v55 = vunpack.c.l.b16 %v18461_v47  ;;  %v5977_v41 = vsel %vm3150_vm15, %v5976_v49, %v5972_v52  ;;  %10131 = vpow2.f32 %v4979_v6  ;;  %v18462_v37 = vld [vmem:[#allocation135_spill] sm:$0xff]  ;;  %v18466_v52 = vld [vmem:[#allocation170_spill] sm:$0xff] }
 0x7e0   : > { %7193 = vperm.xlu1 %9691, %v7118_v8   ;;  %v4579_v33 = vsub.f32 %v18462_v37, %v15247_v38  ;;  %v7119_v27 = vunpack.c.l.b16 %v15486_v22  ;;  %v18463_v8 = vld [vmem:[#allocation320_spill] sm:$0xff]  ;;  %vm18499_vm5 = vcmask 130112   ;;  %vm18503_vm1 = vcmask 392512  }
 0x7e1   : > { %v6041_v5 = vsel %vm3129_vm12, %v6040_v35, %v6036_v11  ;;  %v10124_v46 = vpop.eup %10123  ;;  %v4580_v60 = vsub.f32 %v18463_v8, %v15247_v38  ;;  %v6057_v11 = vpack.c.b16 %v5977_v41, %v5977_v41  ;;  %v7120_v8 = vunpack.c.h.b16 %v15486_v22  ;;  %vm18501_vm6 = vmmov %vm18499_vm5 }
 0x7e2   : > { %v5895_v13 = vpop.permute.xlu0 %5894  ;;  %v6046_v51 = vsel %vm3136_vm13, %v6045_v18, %v6041_v5  ;;  %v18464_v5 = vld [vmem:[#allocation150_spill] sm:$0xff]  ;;  %v5258_v6 = vpack.c.bf16 %v10124_v46, %v10122_v34  ;;  %v4549_v18 = vsub.f32 %v18465_v28, %v18403_v62  ;;  %vm18504_vm0 = vcmask 458112  }
 0x7e3   : > { %v6050_v26 = vrot.slane %v5895_v13, %v18391_v12  ;;  %6778 = vperm.xlu0 %9692, %v6685_v32   ;;  %v15490_v58 = vpop.permute.xlu1 %6303  ;;  %v4601_v25 = vsub.f32 %v18464_v5, %v15247_v38  ;;  %v7097_v32 = vunpack.c.l.b16 %v15331_v20  ;;  %v4602_v13 = vsub.f32 %v18466_v52, %v15247_v38  ;;  %v18467_v20 = vld [vmem:[#allocation114_spill] sm:$0xff] }
 0x7e4   : > { %7632 = vperm.xlu1 %9691, %v7559_v36   ;;  %v7560_v36 = vunpack.c.h.b16 %v15471_v59  ;;  %v4999_v34 = vmul.f32 1.442695, %v4580_v60  ;;  %v18469_v59 = vld [vmem:[#allocation142_spill] sm:$0xff]  ;;  %v4937_v37 = vmul.f32 1.442695, %v4549_v18  ;;  %v7556_v18 = vunpack.c.h.b16 %v15341_v10 }
 0x7e5   : > { %v6051_v57 = vsel %vm3143_vm14, %v6050_v26, %v6046_v51  ;;  %v10126_v49 = vpop.eup %10125  ;;  %v4997_v26 = vmul.f32 1.442695, %v4579_v33  ;;  %v4550_v51 = vsub.f32 %v18467_v20, %v18403_v62  ;;  %v5041_v46 = vmul.f32 1.442695, %v4601_v25  ;;  %v18470_v20 = vld [vmem:[#allocation136_spill] sm:$0xff] }
 0x7e6   : > { %v15496_v7 = vpop.permute.xlu0 %6246  ;;  %v6056_v39 = vsel %vm3150_vm15, %v6055_v9, %v6051_v57  ;;  %v10128_v9 = vpop.eup %10127  ;;  %v18468_v57 = vld [vmem:[#allocation128_spill] sm:$0xff]  ;;  %v5043_v33 = vmul.f32 1.442695, %v4602_v13  ;;  %v7116_v10 = vunpack.c.h.b16 %v5258_v6 }
 0x7e7   : > { %7178 = vperm.xlu0 %9692, %v7113_v55   ;;  %v6058_v35 = vpack.c.b16 %v6056_v39, %v6056_v39  ;;  %v15505_v15 = vpop.permute.xlu1 %6309  ;;  %v10403_v55 = vld [vmem:[%s10954_s24 + $0x1d0] sm:$0xff]   ;;  %v4571_v41 = vsub.f32 %v18468_v57, %v18403_v62  ;;  %v7115_v39 = vunpack.c.l.b16 %v5258_v6  ;;  %10133 = vpow2.f32 %v4997_v26  ;;  %v10406_v26 = vld [vmem:[%s10954_s24 + $0x198] sm:$0xff]   ;;  %v18471_v57 = vld [vmem:[#allocation322_spill] sm:$0xff] }
 0x7e8   : > { %7196 = vperm.xlu1 %9691, %v7119_v27   ;;  %v15531_v60 = vpack.c.bf16 %v10128_v9, %v10126_v49  ;;  %v4939_v5 = vmul.f32 1.442695, %v4550_v51  ;;  %10135 = vpow2.f32 %v4999_v34  ;;  %v4581_v51 = vsub.f32 %v18470_v20, %v15247_v38  ;;  %v10411_v20 = vld [vmem:[%s10954_s24 + $0x1f0] sm:$0xff]  }
 0x7e9   : > { %6189 = vmatprep.mubr.bf16.mxu1 %v6058_v35  ;;  %v10130_v35 = vpop.eup %10129  ;;  %v4981_v28 = vmul.f32 1.442695, %v4571_v41  ;;  %10137 = vpow2.f32 %v5041_v46  ;;  %v4582_v41 = vsub.f32 %v18471_v57, %v15247_v38  ;;  %v18478_v57 = vld [vmem:[#allocation130_spill] sm:$0xff] }
 0x7ea   : > { %6190 = vmatmul.mubr.bf16.vlgmr.msra.gmra.mrb[0].mxu1 %v6057_v11  ;;  %v15515_v23 = vpop.permute.xlu0 %6252  ;;  %v10404_v11 = vld [vmem:[%s10954_s24 + $0x190] sm:$0xff]   ;;  %10139 = vpow2.f32 %v5043_v33  ;;  %v7561_v13 = vunpack.c.l.b16 %v15531_v60 }
 0x7eb   : > { %7130 = vperm.xlu0 %9692, %v7097_v32   ;;  %9414 = vmatpush3.bf16.msra.mxu1 %v10400_v24  ;;  %v15521_v47 = vpop.permute.xlu1 %6315  ;;  %v4572_v24 = vsub.f32 %v18469_v59, %v18403_v62  ;;  %v10405_v32 = vld [vmem:[%s10954_s24 + $0x1d8] sm:$0xff]   ;;  %10141 = vpow2.f32 %v4937_v37  ;;  %v18473_v59 = vld [vmem:[#allocation151_spill] sm:$0xff]  ;;  %v7540_v37 = vunpack.c.h.b16 %v15374_v17  ;;  %v18476_v17 = vld [vmem:[#allocation117_spill] sm:$0xff] }
 0x7ec   : > { %9415 = vmatprep.subr.bf16.mxu1 %v10401_v19  ;;  %7635 = vperm.xlu1 %9691, %v7560_v36   ;;  %v10132_v19 = vpop.eup %10131  ;;  %10143 = vpow2.f32 %v4939_v5 }
 0x7ed   : > { %v4983_v22 = vmul.f32 1.442695, %v4572_v24  ;;  %v15541_v49 = vpack.c.bf16 %v10132_v19, %v10130_v35  ;;  %10145 = vpow2.f32 %v4981_v28  ;;  %v4603_v24 = vsub.f32 %v18473_v59, %v15247_v38  ;;  %v18474_v35 = vld [vmem:[#allocation111_spill] sm:$0xff] }
 0x7ee   : > { %v15528_v27 = vpop.permute.xlu0 %6258  ;;  %v5001_v28 = vmul.f32 1.442695, %v4581_v51  ;;  %v4573_v59 = vsub.f32 %v18478_v57, %v18403_v62 }
 0x7ef   : > { %7184 = vperm.xlu0 %9692, %v7115_v39   ;;  %9416 = vmatpush3.bf16.msra.mxu1 %v10402_v44  ;;  %v15534_v25 = vpop.permute.xlu1 %6321  ;;  %v10407_v44 = vld [vmem:[%s10954_s24 + $0x1e0] sm:$0xff]   ;;  %10147 = vpow2.f32 %v4983_v22  ;;  %v7121_v34 = vunpack.c.l.b16 %v15541_v49  ;;  %v10409_v39 = vld [vmem:[%s10954_s24 + $0x1e8] sm:$0xff]   ;;  %v5045_v51 = vmul.f32 1.442695, %v4603_v24  ;;  %v7122_v57 = vunpack.c.h.b16 %v15541_v49  ;;  %v18481_v49 = vld [vmem:[#allocation200_spill] sm:$0xff] }
 0x7f0   : > { %9417 = vmatprep.subr.bf16.mxu1 %v10403_v55  ;;  %7199 = vperm.xlu1 %9691, %v7120_v8   ;;  %v10408_v55 = vld [vmem:[%s10954_s24 + $0x1a0] sm:$0xff]   ;;  %v4551_v8 = vsub.f32 %v18474_v35, %v18403_v62  ;;  %v10410_v22 = vld [vmem:[%s10954_s24 + $0x1a8] sm:$0xff]   ;;  %v18479_v35 = vld [vmem:[#allocation144_spill] sm:$0xff]  ;;  %10149 = vpow2.f32 %v5001_v28 }
 0x7f1   : > { %v10134_v6 = vpop.eup %10133 }
 0x7f2   : > { %v15538_v52 = vpop.permute.xlu0 %6264  ;;  %v10136_v33 = vpop.eup %10135 }
 0x7f3   : > { %7623 = vperm.xlu0 %9692, %v7556_v18   ;;  %9418 = vmatpush3.bf16.msra.mxu1 %v10404_v11  ;;  %v15544_v36 = vpop.permute.xlu1 %6327  ;;  %v18475_v11 = vld [vmem:[#allocation173_spill] sm:$0xff]  ;;  %v7562_v18 = vunpack.c.h.b16 %v15531_v60  ;;  %v7100_v60 = vunpack.c.h.b16 %v15353_v21  ;;  %v10412_v21 = vld [vmem:[%s10954_s24 + $0x1b0] sm:$0xff]  }
 0x7f4   : > { %9419 = vmatprep.subr.bf16.mxu1 %v10405_v32  ;;  %7638 = vperm.xlu1 %9691, %v7561_v13   ;;  %v4604_v19 = vsub.f32 %v18475_v11, %v15247_v38  ;;  %v10138_v32 = vpop.eup %10137  ;;  %v4574_v11 = vsub.f32 %v18479_v35, %v18403_v62  ;;  %v10413_v35 = vld [vmem:[%s10954_s24 + $0x1f8] sm:$0xff]  }
 0x7f5   : > { %v10140_v13 = vpop.eup %10139 }
 0x7f6   : > { %v15547_v9 = vpop.permute.xlu0 %6270  ;;  %v15584_v24 = vpack.c.bf16 %v10140_v13, %v10138_v32  ;;  %v18482_v32 = vsub.s32 6, %v18481_v49  ;;  %v18483_v13 = vld [vmem:[#allocation266_spill] sm:$0xff] }
 0x7f7   : > { %7187 = vperm.xlu0 %9692, %v7116_v10   ;;  %9420 = vmatpush3.bf16.msra.mxu1 %v10406_v26  ;;  %v15555_v46 = vpop.permute.xlu1 %6333  ;;  %v4552_v26 = vsub.f32 %v18476_v17, %v18403_v62  ;;  %v5047_v17 = vmul.f32 1.442695, %v4604_v19 }
 0x7f8   : > { %18472 = vst [vmem:[#allocation293_spill] sm:$0xff] %v15555_v46  ;;  %9421 = vmatprep.subr.bf16.mxu1 %v10407_v44  ;;  %7202 = vperm.xlu1 %9691, %v7121_v34   ;;  %v5003_v44 = vmul.f32 1.442695, %v4582_v41  ;;  %v10142_v34 = vpop.eup %10141  ;;  %v4941_v41 = vmul.f32 1.442695, %v4551_v8 }
 0x7f9   : > { %v4985_v8 = vmul.f32 1.442695, %v4573_v59  ;;  %v7563_v59 = vunpack.c.l.b16 %v15584_v24 }
 0x7fa   : > { %v15565_v5 = vpop.permute.xlu0 %6276  ;;  %10151 = vpow2.f32 %v5003_v44 }
 0x7fb   : > { %7575 = vperm.xlu0 %9692, %v7540_v37   ;;  %9422 = vmatpush3.bf16.msra.mxu1 %v10408_v55  ;;  %v15571_v10 = vpop.permute.xlu1 %6339  ;;  %v15577_v55 = vpack.c.bf16 %v10136_v33, %v10134_v6  ;;  %v10144_v37 = vpop.eup %10143  ;;  %v4943_v33 = vmul.f32 1.442695, %v4552_v26  ;;  %10153 = vpow2.f32 %v5045_v51  ;;  %v18485_v26 = vld [vmem:[#allocation113_spill] sm:$0xff] }
 0x7fc   : > { %18477 = vst [vmem:[#allocation305_spill] sm:$0xff] %v15571_v10  ;;  %9423 = vmatprep.subr.bf16.mxu1 %v10409_v39  ;;  %7641 = vperm.xlu1 %9691, %v7562_v18   ;;  %v10146_v10 = vpop.eup %10145  ;;  %v15591_v28 = vpack.c.bf16 %v10144_v37, %v10142_v34  ;;  %v4553_v44 = vsub.f32 %v18485_v26, %v18403_v62  ;;  %10155 = vpow2.f32 %v5047_v17  ;;  %v10414_v34 = vld [vmem:[%s10954_s24 + $0x1b8] sm:$0xff]   ;;  %v18486_v37 = vld [vmem:[#allocation119_spill] sm:$0xff]  ;;  %v18488_v26 = vld [vmem:[#allocation138_spill] sm:$0xff] }
 0x7fd   : > { %v10148_v6 = vpop.eup %10147  ;;  %v7541_v19 = vunpack.c.l.b16 %v15577_v55  ;;  %10157 = vpow2.f32 %v4941_v41  ;;  %v18490_v41 = vld [vmem:[#allocation122_spill] sm:$0xff] }
 0x7fe   : > { %v15581_v39 = vpop.permute.xlu0 %6282  ;;  %v15603_v51 = vpack.c.bf16 %v10148_v6, %v10146_v10  ;;  %10159 = vpow2.f32 %v4943_v33  ;;  %v6344_v10 = vrot.slane %v15496_v7, %v13596_v0  ;;  %v18491_v6 = vld [vmem:[#allocation131_spill] sm:$0xff]  ;;  %v6353_v33 = vrot.slane %v15515_v23, %v13599_v29  ;;  %v18494_v7 = vld [vmem:[#allocation294_spill] sm:$0xff] }
 0x7ff   : > { %7139 = vperm.xlu0 %9692, %v7100_v60   ;;  %9424 = vmatpush3.bf16.msra.mxu1 %v10410_v22  ;;  %v15587_v18 = vpop.permute.xlu1 %6691  ;;  %v15596_v22 = vrot.slane %v18483_v13, %v18482_v32  ;;  %v4987_v60 = vmul.f32 1.442695, %v4574_v11  ;;  %v18487_v32 = vld [vmem:[#allocation115_spill] sm:$0xff]  ;;  %v4583_v11 = vsub.f32 %v18488_v26, %v15247_v38  ;;  %10161 = vpow2.f32 %v4985_v8 }
 0x800   : > { %18480 = vst [vmem:[#allocation296_spill] sm:$0xff] %v15587_v18  ;;  %9425 = vmatprep.subr.bf16.mxu1 %v10411_v20  ;;  %7205 = vperm.xlu1 %9691, %v7122_v57   ;;  %v4554_v57 = vsub.f32 %v18486_v37, %v18403_v62  ;;  %v4575_v37 = vsub.f32 %v18491_v6, %v18403_v62  ;;  %v18492_v18 = vld [vmem:[#allocation325_spill] sm:$0xff]  ;;  %v7123_v13 = vunpack.c.l.b16 %v15603_v51  ;;  %v18495_v6 = vld [vmem:[#allocation152_spill] sm:$0xff] }
 0x801   : > { %18484 = vst [vmem:[#allocation308_spill] sm:$0xff] %v15596_v22  ;;  %v4584_v26 = vsub.f32 %v18492_v18, %v15247_v38  ;;  %10163 = vpow2.f32 %v4987_v60  ;;  %v4605_v49 = vsub.f32 %v18495_v6, %v15247_v38  ;;  %v18496_v18 = vld [vmem:[#allocation175_spill] sm:$0xff]  ;;  %v5005_v22 = vmul.f32 1.442695, %v4583_v11 }
 0x802   : > { %v15600_v20 = vpop.permute.xlu0 %6288  ;;  %v4606_v60 = vsub.f32 %v18496_v18, %v15247_v38  ;;  %v6427_v11 = vrot.slane %v15473_v40, %v13592_v1 }
 0x803   : > { %7578 = vperm.xlu0 %9692, %v7541_v19   ;;  %9426 = vmatpush3.bf16.msra.mxu1 %v10412_v21  ;;  %v15612_v17 = vpop.permute.xlu1 %6697  ;;  %v7101_v21 = vunpack.c.l.b16 %v15591_v28  ;;  %v18493_v19 = vld [vmem:[#allocation317_spill] sm:$0xff]  ;;  %v5007_v46 = vmul.f32 1.442695, %v4584_v26  ;;  %v5049_v26 = vmul.f32 1.442695, %v4605_v49  ;;  %v6437_v49 = vrot.slane %v15490_v58, %v13611_v53 }
 0x804   : > { %18489 = vst [vmem:[#allocation295_spill] sm:$0xff] %v15612_v17  ;;  %9427 = vmatprep.subr.bf16.mxu1 %v10413_v35  ;;  %7644 = vperm.xlu1 %9691, %v7563_v59   ;;  %v4576_v8 = vsub.f32 %v18493_v19, %v18403_v62  ;;  %v4945_v17 = vmul.f32 1.442695, %v4553_v44  ;;  %v6348_v59 = vrot.slane %v18494_v7, %v13592_v1  ;;  %v10150_v19 = vpop.eup %10149  ;;  %v18498_v44 = vld [vmem:[#allocation140_spill] sm:$0xff]  ;;  %v15639_v7 = vmul.f32 1.442695, %v4554_v57 }
 0x805   : > { %v10152_v6 = vpop.eup %10151  ;;  %v18500_v57 = vld [vmem:[#allocation281_spill] sm:$0xff] }
 0x806   : > { %v6295_v35 = vpop.permute.xlu0 %6294  ;;  %10165 = vpow2.f32 %v4945_v17  ;;  %v6358_v50 = vrot.slane %v18500_v57, %v13611_v53  ;;  %v7102_v57 = vunpack.c.h.b16 %v15591_v28  ;;  %v7124_v28 = vunpack.c.h.b16 %v15603_v51 }
 0x807   : > { %7142 = vperm.xlu0 %9692, %v7101_v21   ;;  %9428 = vmatpush3.bf16.msra.mxu1 %v10414_v34  ;;  %v15634_v23 = vpop.permute.xlu1 %6703  ;;  %v6423_v3 = vrot.slane %v6295_v35, %v13596_v0  ;;  %v6349_v21 = vsel %vm18499_vm5, %v6348_v59, %v6344_v10  ;;  %v7542_v34 = vunpack.c.h.b16 %v15577_v55  ;;  %v6363_v35 = vrot.slane %v15528_v27, %v13614_v14  ;;  %v10154_v0 = vpop.eup %10153  ;;  %vm18507_vm5 = vmmov %vm18503_vm1 }
 0x808   : > { %18497 = vst [vmem:[#allocation307_spill] sm:$0xff] %v15634_v23  ;;  %7208 = vperm.xlu1 %9691, %v7123_v13   ;;  %v6354_v18 = vsel %vm3059_vm2, %v6353_v33, %v6349_v21  ;;  %v7564_v55 = vunpack.c.h.b16 %v15584_v24  ;;  %v10156_v10 = vpop.eup %10155  ;;  %v5051_v59 = vmul.f32 1.442695, %v4606_v60  ;;  %10167 = vpow2.f32 %v5005_v22 }
 0x809   : > { %v6428_v40 = vsel %vm18501_vm6, %v6427_v11, %v6423_v3  ;;  %v10158_v27 = vpop.eup %10157  ;;  %v6359_v21 = vsel %vm3066_vm3, %v6358_v50, %v6354_v18  ;;  %10169 = vpow2.f32 %v5007_v46  ;;  %v6373_v3 = vrot.slane %v15538_v52, %v13641_v30  ;;  %v18502_v50 = vld [vmem:[#allocation306_spill] sm:$0xff] }
 0x80a   : > { %v6301_v23 = vpop.permute.xlu0 %6300  ;;  %v10160_v24 = vpop.eup %10159  ;;  %v6364_v22 = vsel %vm3073_vm4, %v6363_v35, %v6359_v21  ;;  %v6368_v11 = vrot.slane %v18502_v50, %v13629_v56  ;;  %v4991_v58 = vmul.f32 1.442695, %v4576_v8  ;;  %10171 = vpow2.f32 %v5049_v26 }
 0x80b   : > { %v6432_v13 = vrot.slane %v6301_v23, %v13599_v29  ;;  %7581 = vperm.xlu0 %9692, %v7542_v34   ;;  %v15653_v33 = vpop.permute.xlu1 %6709  ;;  %v15658_v23 = vpack.c.bf16 %v10152_v6, %v10150_v19  ;;  %v10162_v34 = vpop.eup %10161  ;;  %v15669_v19 = vpack.c.bf16 %v10156_v10, %v10154_v0  ;;  %v4989_v6 = vmul.f32 1.442695, %v4575_v37 }
 0x80c   : > { %7647 = vperm.xlu1 %9691, %v7564_v55   ;;  %v10164_v46 = vpop.eup %10163  ;;  %v15677_v21 = vpack.c.bf16 %v10160_v24, %v10158_v27  ;;  %10173 = vpow2.f32 %v5051_v59  ;;  %v6447_v0 = vrot.slane %v15505_v15, %v13629_v56  ;;  %v6383_v37 = vrot.slane %v15547_v9, %v13664_v2  ;;  %v18505_v59 = vld [vmem:[#allocation328_spill] sm:$0xff]  ;;  %v18506_v15 = vld [vmem:[#allocation145_spill] sm:$0xff] }
 0x80d   : > { %v6433_v17 = vsel %vm3059_vm2, %v6432_v13, %v6428_v40  ;;  %v6369_v13 = vsel %vm18503_vm1, %v6368_v11, %v6364_v22  ;;  %v7543_v40 = vunpack.c.l.b16 %v15658_v23  ;;  %v6378_v10 = vrot.slane %v15381_v16, %v13652_v63  ;;  %vm18509_vm1 = vmmov %vm18504_vm0 }
 0x80e   : > { %v6307_v60 = vpop.permute.xlu0 %6306  ;;  %v6438_v52 = vsel %vm3066_vm3, %v6437_v49, %v6433_v17  ;;  %v6374_v51 = vsel %vm18504_vm0, %v6373_v3, %v6369_v13  ;;  %v7565_v17 = vunpack.c.l.b16 %v15669_v19  ;;  %v15688_v27 = vpack.c.bf16 %v10164_v46, %v10162_v34 }
 0x80f   : > { %v6442_v18 = vrot.slane %v6307_v60, %v13614_v14  ;;  %7145 = vperm.xlu0 %9692, %v7102_v57   ;;  %v15671_v35 = vpop.permute.xlu1 %6715  ;;  %v4586_v57 = vsub.f32 %v18505_v59, %v15247_v38  ;;  %v4591_v24 = vsub.f32 %v18506_v15, %v15247_v38  ;;  %10175 = vpow2.f32 %v15639_v7  ;;  %v18520_v15 = vld [vmem:[#allocation293_spill] sm:$0xff] }
 0x810   : > { %7211 = vperm.xlu1 %9691, %v7124_v28   ;;  %v15698_v16 = vpop.eup %10165  ;;  %10177 = vpow2.f32 %v4989_v6  ;;  %vm18508_vm6 = vcmask 523712   ;;  %v7103_v60 = vunpack.c.l.b16 %v15677_v21  ;;  %v6457_v50 = vrot.slane %v15521_v47, %v13652_v63  ;;  %v18511_v47 = vld [vmem:[#allocation153_spill] sm:$0xff] }
 0x811   : > { %v6443_v55 = vsel %vm3073_vm4, %v6442_v18, %v6438_v52  ;;  %v6379_v22 = vsel %vm18508_vm6, %v6378_v10, %v6374_v51  ;;  %10179 = vpow2.f32 %v4991_v58  ;;  %v6393_v11 = vrot.slane %v15565_v5, %v13670_v45  ;;  %vm18514_vm0 = vmmov %vm18508_vm6 }
 0x812   : > { %v6313_v8 = vpop.permute.xlu0 %6312  ;;  %v6448_v49 = vsel %vm18507_vm5, %v6447_v0, %v6443_v55  ;;  %v10168_v34 = vpop.eup %10167  ;;  %v6384_v7 = vsel %vm3101_vm8, %v6383_v37, %v6379_v22  ;;  %v18510_v28 = vsub.f32 %v18487_v32, %v18403_v62  ;;  %v6388_v6 = vrot.slane %v15399_v54, %v13608_v31  ;;  %v18515_v37 = vld [vmem:[#allocation336_spill] sm:$0xff] }
 0x813   : > { %v6452_v26 = vrot.slane %v6313_v8, %v13641_v30  ;;  %7584 = vperm.xlu0 %9692, %v7543_v40   ;;  %v15695_v9 = vpop.permute.xlu1 %6721  ;;  %v7125_v58 = vunpack.c.l.b16 %v15688_v27  ;;  %v10170_v13 = vpop.eup %10169  ;;  %v4607_v55 = vsub.f32 %v18511_v47, %v15247_v38  ;;  %v18512_v40 = vld [vmem:[#allocation178_spill] sm:$0xff]  ;;  %v18513_v0 = vsub.f32 %v18498_v44, %v15247_v38 }
 0x814   : > { %7650 = vperm.xlu1 %9691, %v7565_v17   ;;  %v4949_v46 = vmul.f32 1.442695, %v18510_v28  ;;  %v4608_v5 = vsub.f32 %v18512_v40, %v15247_v38  ;;  %v4592_v8 = vsub.f32 %v18515_v37, %v15247_v38  ;;  %v6389_v10 = vsel %vm3108_vm9, %v6388_v6, %v6384_v7  ;;  %v10172_v59 = vpop.eup %10171 }
 0x815   : > { %v6453_v3 = vsel %vm18509_vm1, %v6452_v26, %v6448_v49  ;;  %v5009_v32 = vmul.f32 1.442695, %v18513_v0  ;;  %v7544_v17 = vunpack.c.h.b16 %v15658_v23  ;;  %v5011_v49 = vmul.f32 1.442695, %v4586_v57 }
 0x816   : > { %v6319_v18 = vpop.permute.xlu0 %6318  ;;  %v6458_v54 = vsel %vm18514_vm0, %v6457_v50, %v6453_v3  ;;  %v6467_v44 = vrot.slane %v15534_v25, %v13608_v31  ;;  %vm18516_vm5 = vcmask 720512   ;;  %v6403_v3 = vrot.slane %v15581_v39, %v18381_v48  ;;  %v10174_v23 = vpop.eup %10173 }
 0x817   : > { %v6462_v52 = vrot.slane %v6319_v18, %v13664_v2  ;;  %7148 = vperm.xlu0 %9692, %v7103_v60   ;;  %v15722_v51 = vpop.permute.xlu1 %6727  ;;  %v6394_v22 = vsel %vm18516_vm5, %v6393_v11, %v6389_v10  ;;  %10181 = vpow2.f32 %v4949_v46  ;;  %v6398_v50 = vrot.slane %v15418_v43, %v13635_v42  ;;  %vm18518_vm6 = vmmov %vm18516_vm5 }
 0x818   : > { %7214 = vperm.xlu1 %9691, %v7125_v58   ;;  %v7566_v18 = vunpack.c.h.b16 %v15669_v19  ;;  %v5053_v57 = vmul.f32 1.442695, %v4607_v55  ;;  %v5055_v28 = vmul.f32 1.442695, %v4608_v5  ;;  %10183 = vpow2.f32 %v5009_v32 }
 0x819   : > { %v6463_v26 = vsel %vm3101_vm8, %v6462_v52, %v6458_v54  ;;  %v6399_v39 = vsel %vm3122_vm11, %v6398_v50, %v6394_v22  ;;  %v7104_v43 = vunpack.c.h.b16 %v15677_v21  ;;  %v15745_v6 = vpack.c.bf16 %v10170_v13, %v10168_v34  ;;  %v10176_v52 = vpop.eup %10175 }
 0x81a   : > { %v6325_v60 = vpop.permute.xlu0 %6324  ;;  %v6468_v11 = vsel %vm3108_vm9, %v6467_v44, %v6463_v26  ;;  %10185 = vpow2.f32 %v5011_v49  ;;  %v6477_v19 = vrot.slane %v15544_v36, %v13635_v42  ;;  %v6404_v58 = vsel %vm3129_vm12, %v6403_v3, %v6399_v39  ;;  %v10178_v40 = vpop.eup %10177  ;;  %v18521_v49 = vld [vmem:[#allocation444_spill] sm:$0xff]  ;;  %v18522_v44 = vld [vmem:[#allocation283_spill] sm:$0xff] }
 0x81b   : > { %v6472_v7 = vrot.slane %v6325_v60, %v13670_v45  ;;  %7587 = vperm.xlu0 %9692, %v7544_v17   ;;  %v15739_v25 = vpop.permute.xlu1 %6733  ;;  %v6413_v47 = vrot.slane %v15600_v20, %v18391_v12  ;;  %v6408_v5 = vrot.slane %v15433_v61, %v18393_v4  ;;  %v7126_v21 = vunpack.c.h.b16 %v15688_v27  ;;  %v10180_v13 = vpop.eup %10179 }
 0x81c   : > { %18517 = vst [vmem:[#allocation310_spill] sm:$0xff] %v15739_v25  ;;  %7653 = vperm.xlu1 %9691, %v7566_v18   ;;  %v15756_v34 = vpack.c.bf16 %v10174_v23, %v10172_v59  ;;  %v18519_v36 = vsub.f32 %v18490_v41, %v18403_v62  ;;  %v5021_v20 = vmul.f32 1.442695, %v4591_v24  ;;  %10187 = vpow2.f32 %v5053_v57  ;;  %v18525_v18 = vld [vmem:[#allocation305_spill] sm:$0xff] }
 0x81d   : > { %v6473_v46 = vsel %vm18518_vm6, %v6472_v7, %v6468_v11  ;;  %v6409_v37 = vsel %vm3136_vm13, %v6408_v5, %v6404_v58  ;;  %v7545_v10 = vunpack.c.l.b16 %v15745_v6  ;;  %v15771_v26 = vpack.c.bf16 %v10176_v52, %v15698_v16  ;;  %v18523_v16 = vld [vmem:[#allocation308_spill] sm:$0xff] }
 0x81e   : > { %v6331_v55 = vpop.permute.xlu0 %6330  ;;  %v4951_v32 = vmul.f32 1.442695, %v18519_v36  ;;  %v6478_v61 = vsel %vm3122_vm11, %v6477_v19, %v6473_v46  ;;  %v5023_v41 = vmul.f32 1.442695, %v4592_v8  ;;  %10189 = vpow2.f32 %v5055_v28  ;;  %v18524_v7 = vld [vmem:[#allocation164_spill] sm:$0xff]  ;;  %v18526_v19 = vld [vmem:[#allocation367_spill] sm:$0xff] }
 0x81f   : > { %v6482_v0 = vrot.slane %v6331_v55, %v18381_v48  ;;  %7151 = vperm.xlu0 %9692, %v7104_v43   ;;  %v15764_v54 = vpop.permute.xlu1 %6739  ;;  %v6487_v24 = vrot.slane %v18520_v15, %v18393_v4  ;;  %v6414_v17 = vsel %vm3143_vm14, %v6413_v47, %v6409_v37  ;;  %v6418_v22 = vrot.slane %v18522_v44, %v18521_v49  ;;  %v18528_v36 = vld [vmem:[#allocation200_spill] sm:$0xff]  ;;  %v18531_v37 = vld [vmem:[#allocation331_spill] sm:$0xff]  ;;  %v18532_v15 = vld [vmem:[#allocation154_spill] sm:$0xff] }
 0x820   : > { %7217 = vperm.xlu1 %9691, %v7126_v21   ;;  %v7567_v60 = vunpack.c.l.b16 %v15756_v34  ;;  %v15780_v50 = vpack.c.bf16 %v10180_v13, %v10178_v40  ;;  %v4625_v8 = vsub.f32 %v18524_v7, %v18523_v16  ;;  %10191 = vpow2.f32 %v4951_v32  ;;  %v18527_v40 = vld [vmem:[#allocation141_spill] sm:$0xff] }
 0x821   : > { %v6483_v27 = vsel %vm3129_vm12, %v6482_v0, %v6478_v61  ;;  %v6497_v23 = vrot.slane %v18525_v18, %v18521_v49  ;;  %v15789_v11 = vpop.eup %10181  ;;  %10193 = vpow2.f32 %v5021_v20  ;;  %v7105_v46 = vunpack.c.l.b16 %v15771_v26  ;;  %v18530_v20 = vld [vmem:[#allocation266_spill] sm:$0xff]  ;;  %v18534_v18 = vld [vmem:[#allocation116_spill] sm:$0xff] }
 0x822   : > { %v6337_v59 = vpop.permute.xlu0 %6336  ;;  %v6488_v28 = vsel %vm3136_vm13, %v6487_v24, %v6483_v27  ;;  %v6419_v43 = vsel %vm3150_vm15, %v6418_v22, %v6414_v17  ;;  %v10184_v52 = vpop.eup %10183  ;;  %v4626_v58 = vsub.f32 %v18526_v19, %v18523_v16  ;;  %10195 = vpow2.f32 %v5023_v41  ;;  %v18533_v22 = vld [vmem:[#allocation180_spill] sm:$0xff] }
 0x823   : > { %v6492_v3 = vrot.slane %v6337_v59, %v18391_v12  ;;  %7590 = vperm.xlu0 %9692, %v7545_v10   ;;  %v15786_v57 = vpop.permute.xlu1 %6745  ;;  %v4587_v5 = vsub.f32 %v18527_v40, %v15247_v38  ;;  %v7127_v0 = vunpack.c.l.b16 %v15780_v50  ;;  %v18529_v32 = vsub.s32 7, %v18528_v36 }
 0x824   : > { %7656 = vperm.xlu1 %9691, %v7567_v60   ;;  %v10186_v13 = vpop.eup %10185  ;;  %v4588_v27 = vsub.f32 %v18531_v37, %v15247_v38  ;;  %v6499_v41 = vpack.c.b16 %v6419_v43, %v6419_v43  ;;  %v4609_v24 = vsub.f32 %v18532_v15, %v18523_v16  ;;  %v5089_v17 = vmul.f32 1.442695, %v4625_v8 }
 0x825   : > { %v6493_v39 = vsel %vm3143_vm14, %v6492_v3, %v6488_v28  ;;  %v15805_v61 = vrot.slane %v18530_v20, %v18529_v32  ;;  %v7546_v59 = vunpack.c.h.b16 %v15745_v6  ;;  %v4610_v3 = vsub.f32 %v18533_v22, %v18523_v16  ;;  %v18536_v6 = vld [vmem:[#allocation191_spill] sm:$0xff] }
 0x826   : > { %v15796_v47 = vpop.permute.xlu0 %6688  ;;  %v6498_v55 = vsel %vm3150_vm15, %v6497_v23, %v6493_v39  ;;  %v10188_v44 = vpop.eup %10187  ;;  %v5091_v60 = vmul.f32 1.442695, %v4626_v58  ;;  %v4557_v23 = vsub.f32 %v18534_v18, %v18403_v62  ;;  %v5013_v28 = vmul.f32 1.442695, %v4587_v5 }
 0x827   : > { %7154 = vperm.xlu0 %9692, %v7105_v46   ;;  %v6500_v21 = vpack.c.b16 %v6498_v55, %v6498_v55  ;;  %v15809_v10 = vpop.permute.xlu1 %6751  ;;  %v7568_v39 = vunpack.c.h.b16 %v15756_v34  ;;  %v18535_v46 = vld [vmem:[#allocation124_spill] sm:$0xff]  ;;  %v4657_v19 = vsub.f32 %v18536_v6, %v15805_v61  ;;  %v5015_v55 = vmul.f32 1.442695, %v4588_v27  ;;  %v18537_v34 = vld [vmem:[#allocation407_spill] sm:$0xff] }
 0x828   : > { %7220 = vperm.xlu1 %9691, %v7127_v0   ;;  %v10190_v8 = vpop.eup %10189  ;;  %v4558_v43 = vsub.f32 %v18535_v46, %v18403_v62  ;;  %v5057_v58 = vmul.f32 1.442695, %v4609_v24  ;;  %10197 = vpow2.f32 %v5089_v17  ;;  %v7106_v0 = vunpack.c.h.b16 %v15771_v26  ;;  %v18538_v26 = vld [vmem:[#allocation155_spill] sm:$0xff] }
 0x829   : > { %6631 = vmatprep.mubr.bf16.mxu0 %v6500_v21  ;;  %v15828_v21 = vpack.c.bf16 %v10186_v13, %v10184_v52  ;;  %v4658_v36 = vsub.f32 %v18537_v34, %v15805_v61  ;;  %v5059_v32 = vmul.f32 1.442695, %v4610_v3  ;;  %10199 = vpow2.f32 %v5091_v60 }
 0x82a   : > { %6632 = vmatmul.mubr.bf16.vlgmr.msra.gmra.mrb[4].mxu0 %v6499_v41  ;;  %v15816_v7 = vpop.permute.xlu0 %6694  ;;  %v10192_v5 = vpop.eup %10191  ;;  %v4953_v41 = vmul.f32 1.442695, %v4557_v23  ;;  %10201 = vpow2.f32 %v5013_v28  ;;  %v7128_v27 = vunpack.c.h.b16 %v15780_v50  ;;  %v15835_v15 = vpack.c.bf16 %v10190_v8, %v10188_v44  ;;  %v18539_v50 = vld [vmem:[#allocation183_spill] sm:$0xff] }
 0x82b   : > { %7593 = vperm.xlu0 %9692, %v7546_v59   ;;  %v15825_v40 = vpop.permute.xlu1 %6757  ;;  %v10194_v37 = vpop.eup %10193  ;;  %v4611_v52 = vsub.f32 %v18538_v26, %v18523_v16  ;;  %v4955_v13 = vmul.f32 1.442695, %v4558_v43  ;;  %10203 = vpow2.f32 %v5015_v55  ;;  %v5153_v59 = vmul.f32 1.442695, %v4657_v19  ;;  %v18542_v55 = vld [vmem:[#allocation387_spill] sm:$0xff] }
 0x82c   : > { %7659 = vperm.xlu1 %9691, %v7568_v39   ;;  %v10196_v24 = vpop.eup %10195  ;;  %10205 = vpow2.f32 %v5057_v58  ;;  %v7547_v22 = vunpack.c.l.b16 %v15828_v21  ;;  %v15843_v3 = vpack.c.bf16 %v10192_v5, %v15789_v11  ;;  %v4612_v44 = vsub.f32 %v18539_v50, %v18523_v16  ;;  %v18540_v39 = vld [vmem:[#allocation143_spill] sm:$0xff]  ;;  %v18541_v11 = vld [vmem:[#allocation177_spill] sm:$0xff] }
 0x82d   : > { %v5155_v60 = vmul.f32 1.442695, %v4658_v36  ;;  %10207 = vpow2.f32 %v5059_v32  ;;  %v7569_v23 = vunpack.c.l.b16 %v15835_v15  ;;  %v5272_v28 = vpack.c.bf16 %v10196_v24, %v10194_v37  ;;  %v18543_v36 = vld [vmem:[#allocation334_spill] sm:$0xff] }
 0x82e   : > { %v15832_v20 = vpop.permute.xlu0 %6700  ;;  %10209 = vpow2.f32 %v4953_v41  ;;  %v4589_v8 = vsub.f32 %v18540_v39, %v15247_v38  ;;  %v4641_v43 = vsub.f32 %v18541_v11, %v15805_v61  ;;  %v5061_v6 = vmul.f32 1.442695, %v4611_v52 }
 0x82f   : > { %7157 = vperm.xlu0 %9692, %v7106_v0   ;;  %v15839_v17 = vpop.permute.xlu1 %6763  ;;  %10211 = vpow2.f32 %v4955_v13  ;;  %v7107_v19 = vunpack.c.l.b16 %v15843_v3  ;;  %v4642_v58 = vsub.f32 %v18542_v55, %v15805_v61  ;;  %v5063_v0 = vmul.f32 1.442695, %v4612_v44 }
 0x830   : > { %7223 = vperm.xlu1 %9691, %v7128_v27   ;;  %10213 = vpow2.f32 %v5153_v59  ;;  %v4590_v32 = vsub.f32 %v18543_v36, %v15247_v38  ;;  %v7553_v37 = vunpack.c.l.b16 %v5272_v28  ;;  %v18544_v27 = vld [vmem:[#allocation118_spill] sm:$0xff]  ;;  %v5017_v26 = vmul.f32 1.442695, %v4589_v8  ;;  %v18546_v59 = vld [vmem:[#allocation192_spill] sm:$0xff]  ;;  %v18547_v38 = vld [vmem:[#allocation409_spill] sm:$0xff] }
 0x831   : > { %10215 = vpow2.f32 %v5155_v60  ;;  %v4559_v24 = vsub.f32 %v18544_v27, %v18403_v62  ;;  %v5121_v50 = vmul.f32 1.442695, %v4641_v43  ;;  %v7548_v44 = vunpack.c.h.b16 %v15828_v21  ;;  %v18550_v21 = vld [vmem:[#allocation167_spill] sm:$0xff] }
 0x832   : > { %v15847_v18 = vpop.permute.xlu0 %6706  ;;  %v10198_v34 = vpop.eup %10197  ;;  %10217 = vpow2.f32 %v5061_v6  ;;  %v5123_v39 = vmul.f32 1.442695, %v4642_v58  ;;  %v5019_v36 = vmul.f32 1.442695, %v4590_v32  ;;  %v7554_v27 = vunpack.c.h.b16 %v5272_v28 }
 0x833   : > { %7596 = vperm.xlu0 %9692, %v7547_v22   ;;  %v15852_v46 = vpop.permute.xlu1 %6769  ;;  %v10200_v41 = vpop.eup %10199  ;;  %v4659_v22 = vsub.f32 %v18546_v59, %v15805_v61  ;;  %10219 = vpow2.f32 %v5063_v0  ;;  %v4957_v59 = vmul.f32 1.442695, %v4559_v24  ;;  %v7108_v25 = vunpack.c.h.b16 %v15843_v3 }
 0x834   : > { %7662 = vperm.xlu1 %9691, %v7569_v23   ;;  %v10202_v13 = vpop.eup %10201  ;;  %v4660_v23 = vsub.f32 %v18547_v38, %v15805_v61  ;;  %v15876_v43 = vpack.c.bf16 %v10200_v41, %v10198_v34  ;;  %10221 = vpow2.f32 %v5017_v26  ;;  %v18552_v34 = vld [vmem:[#allocation202_spill] sm:$0xff]  ;;  %vm18565_vm1 = vcmask 130112  }
 0x835   : > { %v10204_v60 = vpop.eup %10203  ;;  %v5157_v0 = vmul.f32 1.442695, %v4659_v22  ;;  %10223 = vpow2.f32 %v5121_v50  ;;  %v4630_v32 = vsub.f32 %v18552_v34, %v18523_v16  ;;  %v18559_v34 = vld [vmem:[#allocation438_spill] sm:$0xff]  ;;  %vm18567_vm0 = vmmov %vm18565_vm1  ;;  %vm18571_vm5 = vcmask 392512  }
 0x836   : > { %v15859_v5 = vpop.permute.xlu0 %6712  ;;  %v10206_v8 = vpop.eup %10205  ;;  %18549 = vst [vmem:[#allocation285_spill] sm:$0xff] %v15876_v43  ;;  %v5159_v41 = vmul.f32 1.442695, %v4660_v23  ;;  %10225 = vpow2.f32 %v5123_v39  ;;  %vm18572_vm6 = vcmask 458112  }
 0x837   : > { %7160 = vperm.xlu0 %9692, %v7107_v19   ;;  %v15865_v52 = vpop.permute.xlu1 %6775  ;;  %v18548_v19 = vld [vmem:[#allocation127_spill] sm:$0xff]  ;;  %v10208_v6 = vpop.eup %10207  ;;  %10227 = vpow2.f32 %v5019_v36  ;;  %v5099_v39 = vmul.f32 1.442695, %v4630_v32  ;;  %v6786_v32 = vrot.slane %v15796_v47, %v18559_v34  ;;  %v18562_v47 = vld [vmem:[#allocation412_spill] sm:$0xff] }
 0x838   : > { %18545 = vst [vmem:[#allocation324_spill] sm:$0xff] %v15865_v52  ;;  %7614 = vperm.xlu1 %9691, %v7553_v37   ;;  %v4560_v55 = vsub.f32 %v18548_v19, %v18403_v62  ;;  %v4629_v37 = vsub.f32 %v18550_v21, %v18523_v16  ;;  %v10210_v58 = vpop.eup %10209  ;;  %v15883_v62 = vpack.c.bf16 %v10204_v60, %v10202_v13  ;;  %v7998_v19 = vunpack.c.h.b16 %v15876_v43 }
 0x839   : > { %v10212_v28 = vpop.eup %10211  ;;  %v15890_v22 = vpack.c.bf16 %v10208_v6, %v10206_v8  ;;  %10229 = vpow2.f32 %v4957_v59  ;;  %v18555_v6 = vld [vmem:[#allocation169_spill] sm:$0xff] }
 0x83a   : > { %v15872_v11 = vpop.permute.xlu0 %6718  ;;  %v10214_v24 = vpop.eup %10213  ;;  %v4959_v26 = vmul.f32 1.442695, %v4560_v55  ;;  %v5097_v3 = vmul.f32 1.442695, %v4629_v37  ;;  %10231 = vpow2.f32 %v5157_v0  ;;  %v7549_v60 = vunpack.c.l.b16 %v15883_v62  ;;  %v18556_v37 = vld [vmem:[#allocation372_spill] sm:$0xff] }
 0x83b   : > { %7599 = vperm.xlu0 %9692, %v7548_v44   ;;  %v15880_v38 = vpop.permute.xlu1 %6781  ;;  %18553 = vst [vmem:[#allocation321_spill] sm:$0xff] %v15890_v22  ;;  %v10216_v50 = vpop.eup %10215  ;;  %v15895_v23 = vpack.c.bf16 %v10212_v28, %v10210_v58  ;;  %10233 = vpow2.f32 %v5159_v41  ;;  %v7982_v8 = vunpack.c.h.b16 %v15890_v22  ;;  %v4631_v21 = vsub.f32 %v18555_v6, %v18523_v16  ;;  %v18557_v58 = vld [vmem:[#allocation194_spill] sm:$0xff]  ;;  %v18561_v6 = vld [vmem:[#allocation369_spill] sm:$0xff] }
 0x83c   : > { %18551 = vst [vmem:[#allocation297_spill] sm:$0xff] %v15880_v38  ;;  %7617 = vperm.xlu1 %9691, %v7554_v27   ;;  %10235 = vpow2.f32 %v4959_v26  ;;  %v15900_v36 = vpack.c.bf16 %v10216_v50, %v10214_v24  ;;  %v4632_v59 = vsub.f32 %v18556_v37, %v18523_v16  ;;  %v4661_v0 = vsub.f32 %v18557_v58, %v15805_v61  ;;  %v10415_v24 = vld [vmem:[%s10954_s24 + $0x240] sm:$0xff]   ;;  %v18560_v50 = vld [vmem:[#allocation166_spill] sm:$0xff] }
 0x83d   : > { %10237 = vpow2.f32 %v5097_v3  ;;  %v7109_v41 = vunpack.c.l.b16 %v15895_v23  ;;  %v10416_v26 = vld [vmem:[%s10954_s24 + $0x200] sm:$0xff]   ;;  %v6795_v3 = vrot.slane %v15816_v7, %v13599_v29  ;;  %9435 = vmatprep.subr.bf16.mxu0 %v10415_v24  ;;  %v5101_v37 = vmul.f32 1.442695, %v4631_v21 }
 0x83e   : > { %v15887_v44 = vpop.permute.xlu0 %6724  ;;  %10239 = vpow2.f32 %v5099_v39  ;;  %v8439_v43 = vunpack.c.l.b16 %v15900_v36  ;;  %v15928_v38 = vmul.f32 1.442695, %v4632_v59  ;;  %v5161_v7 = vmul.f32 1.442695, %v4661_v0  ;;  %9436 = vmatpush3.bf16.msra.mxu0 %v10416_v26 }
 0x83f   : > { %7163 = vperm.xlu0 %9692, %v7108_v25   ;;  %v15892_v13 = vpop.permute.xlu1 %7181  ;;  %v10218_v25 = vpop.eup %10217  ;;  %v6869_v21 = vrot.slane %v15764_v54, %v13592_v1  ;;  %v6805_v0 = vrot.slane %v15832_v20, %v13614_v14  ;;  %10241 = vpow2.f32 %v5101_v37  ;;  %v6879_v37 = vrot.slane %v15786_v57, %v13611_v53 }
 0x840   : > { %18554 = vst [vmem:[#allocation287_spill] sm:$0xff] %v15892_v13  ;;  %8065 = vperm.xlu1 %9691, %v7998_v19   ;;  %v10220_v27 = vpop.eup %10219  ;;  %v18563_v13 = vld [vmem:[#allocation296_spill] sm:$0xff]  ;;  %10243 = vpow2.f32 %v5161_v7 }
 0x841   : > { %v10222_v19 = vpop.eup %10221  ;;  %v6790_v22 = vrot.slane %v18563_v13, %v13592_v1 }
 0x842   : > { %v15897_v55 = vpop.permute.xlu0 %6730 }
 0x843   : > { %7602 = vperm.xlu0 %9692, %v7549_v60   ;;  %v15908_v28 = vpop.permute.xlu1 %7133  ;;  %v15926_v60 = vpack.c.bf16 %v10220_v27, %v10218_v25  ;;  %v6791_v52 = vsel %vm18565_vm1, %v6790_v22, %v6786_v32  ;;  %v10417_v25 = vld [vmem:[%s10954_s24 + $0x248] sm:$0xff]   ;;  %vm18575_vm1 = vmmov %vm18571_vm5 }
 0x844   : > { %18558 = vst [vmem:[#allocation298_spill] sm:$0xff] %v15908_v28  ;;  %8017 = vperm.xlu1 %9691, %v7982_v8   ;;  %v10224_v28 = vpop.eup %10223  ;;  %v4662_v8 = vsub.f32 %v18562_v47, %v15805_v61  ;;  %v10418_v27 = vld [vmem:[%s10954_s24 + $0x208] sm:$0xff]   ;;  %v6796_v59 = vsel %vm3059_vm2, %v6795_v3, %v6791_v52  ;;  %9437 = vmatprep.subr.bf16.mxu0 %v10417_v25  ;;  %v10421_v25 = vld [vmem:[%s10954_s24 + $0x210] sm:$0xff]  }
 0x845   : > { %v10226_v39 = vpop.eup %10225  ;;  %9438 = vmatpush3.bf16.msra.mxu0 %v10418_v27  ;;  %v18569_v27 = vld [vmem:[#allocation307_spill] sm:$0xff] }
 0x846   : > { %v6737_v58 = vpop.permute.xlu0 %6736  ;;  %v10228_v13 = vpop.eup %10227  ;;  %v15947_v32 = vpack.c.bf16 %v10226_v39, %v10224_v28  ;;  %v5163_v52 = vmul.f32 1.442695, %v4662_v8  ;;  %v7110_v28 = vunpack.c.h.b16 %v15895_v23  ;;  %v10420_v39 = vld [vmem:[%s10954_s24 + $0x250] sm:$0xff]  }
 0x847   : > { %7166 = vperm.xlu0 %9692, %v7109_v41   ;;  %v15930_v49 = vpop.permute.xlu1 %7620  ;;  %v6865_v47 = vrot.slane %v6737_v58, %v18559_v34  ;;  %v7550_v41 = vunpack.c.h.b16 %v15883_v62  ;;  %v10230_v24 = vpop.eup %10229  ;;  %v10419_v58 = vld [vmem:[%s10954_s24 + $0x2c0] sm:$0xff]   ;;  %v18566_v34 = vld [vmem:[#allocation295_spill] sm:$0xff]  ;;  %v7983_v62 = vunpack.c.l.b16 %v15926_v60  ;;  %v15952_v1 = vpack.c.bf16 %v10228_v13, %v10222_v19  ;;  %9439 = vmatprep.subr.bf16.mxu0 %v10420_v39 }
 0x848   : > { %18564 = vst [vmem:[#allocation309_spill] sm:$0xff] %v15930_v49  ;;  %8504 = vperm.xlu1 %9691, %v8439_v43   ;;  %v10232_v26 = vpop.eup %10231  ;;  %v6800_v22 = vrot.slane %v18566_v34, %v13611_v53  ;;  %9457 = vmatprep.subr.bf16.mxu1 %v10419_v58  ;;  %v6815_v19 = vrot.slane %v15847_v18, %v13641_v30  ;;  %v8423_v23 = vunpack.c.l.b16 %v15947_v32  ;;  %10245 = vpow2.f32 %v5163_v52 }
 0x849   : > { %v10234_v54 = vpop.eup %10233  ;;  %v6870_v20 = vsel %vm18567_vm0, %v6869_v21, %v6865_v47  ;;  %v6810_v21 = vrot.slane %v18569_v27, %v13629_v56  ;;  %9440 = vmatpush3.bf16.msra.mxu0 %v10421_v25  ;;  %10247 = vpow2.f32 %v15928_v38  ;;  %vm18576_vm0 = vcmask 523712   ;;  %v10424_v27 = vld [vmem:[%s10954_s24 + $0x260] sm:$0xff]  }
 0x84a   : > { %v6743_v49 = vpop.permute.xlu0 %6742  ;;  %v6801_v34 = vsel %vm3066_vm3, %v6800_v22, %v6796_v59  ;;  %v15968_v58 = vpack.c.bf16 %v10234_v54, %v10232_v26  ;;  %v7551_v22 = vunpack.c.l.b16 %v15952_v1  ;;  %v10422_v26 = vld [vmem:[%s10954_s24 + $0x258] sm:$0xff]   ;;  %v6889_v54 = vrot.slane %v15809_v10, %v13629_v56  ;;  %v18573_v10 = vld [vmem:[#allocation171_spill] sm:$0xff] }
 0x84b   : > { %v6874_v43 = vrot.slane %v6743_v49, %v13599_v29  ;;  %7605 = vperm.xlu0 %9692, %v7550_v41   ;;  %v15950_v3 = vpop.permute.xlu1 %7136  ;;  %v10236_v49 = vpop.eup %10235  ;;  %v6806_v47 = vsel %vm3073_vm4, %v6805_v0, %v6801_v34  ;;  %v6825_v34 = vrot.slane %v15859_v5, %v13664_v2  ;;  %9441 = vmatprep.subr.bf16.mxu0 %v10422_v26 }
 0x84c   : > { %18568 = vst [vmem:[#allocation340_spill] sm:$0xff] %v15950_v3  ;;  %8020 = vperm.xlu1 %9691, %v7983_v62   ;;  %v10238_v8 = vpop.eup %10237  ;;  %v6811_v62 = vsel %vm18571_vm5, %v6810_v21, %v6806_v47  ;;  %v18574_v47 = vld [vmem:[#allocation375_spill] sm:$0xff]  ;;  %vm18577_vm5 = vmmov %vm18572_vm6 }
 0x84d   : > { %v6875_v41 = vsel %vm3059_vm2, %v6874_v43, %v6870_v20  ;;  %v10240_v57 = vpop.eup %10239  ;;  %v15974_v43 = vpack.c.bf16 %v10236_v49, %v10230_v24  ;;  %v6816_v7 = vsel %vm18572_vm6, %v6815_v19, %v6811_v62  ;;  %v6820_v24 = vrot.slane %v15653_v33, %v13652_v63  ;;  %vm18582_vm6 = vmmov %vm18576_vm0 }
 0x84e   : > { %v6749_v13 = vpop.permute.xlu0 %6748  ;;  %v6880_v18 = vsel %vm3066_vm3, %v6879_v37, %v6875_v41  ;;  %v8441_v49 = vunpack.c.l.b16 %v15968_v58  ;;  %v15989_v39 = vpack.c.bf16 %v10240_v57, %v10238_v8  ;;  %v4633_v37 = vsub.f32 %v18573_v10, %v18523_v16  ;;  %v16003_v21 = vpop.eup %10241 }
 0x84f   : > { %v6884_v59 = vrot.slane %v6749_v13, %v13614_v14  ;;  %7169 = vperm.xlu0 %9692, %v7110_v28   ;;  %v15970_v0 = vpop.permute.xlu1 %7572  ;;  %v10423_v28 = vld [vmem:[%s10954_s24 + $0x218] sm:$0xff]   ;;  %v4634_v5 = vsub.f32 %v18574_v47, %v18523_v16  ;;  %v6821_v13 = vsel %vm18576_vm0, %v6820_v24, %v6816_v7  ;;  %v7111_v25 = vunpack.c.l.b16 %v15974_v43 }
 0x850   : > { %18570 = vst [vmem:[#allocation312_spill] sm:$0xff] %v15970_v0  ;;  %8456 = vperm.xlu1 %9691, %v8423_v23   ;;  %9442 = vmatpush3.bf16.msra.mxu0 %v10423_v28  ;;  %v6826_v38 = vsel %vm3101_vm8, %v6825_v34, %v6821_v13  ;;  %v6835_v23 = vrot.slane %v15872_v11, %v13670_v45  ;;  %v18580_v11 = vld [vmem:[#allocation415_spill] sm:$0xff]  ;;  %v10244_v13 = vpop.eup %10243  ;;  %v7570_v10 = vunpack.c.h.b16 %v15835_v15  ;;  %v18588_v15 = vld [vmem:[#allocation297_spill] sm:$0xff] }
 0x851   : > { %v6885_v20 = vsel %vm3073_vm4, %v6884_v59, %v6880_v18  ;;  %v6899_v59 = vrot.slane %v15825_v40, %v13652_v63  ;;  %v10425_v18 = vld [vmem:[%s10954_s24 + $0x220] sm:$0xff]   ;;  %9443 = vmatprep.subr.bf16.mxu0 %v10424_v27  ;;  %v18579_v40 = vld [vmem:[#allocation196_spill] sm:$0xff]  ;;  %v4664_v34 = vsub.f32 %v18580_v11, %v15805_v61  ;;  %v6845_v27 = vrot.slane %v15887_v44, %v18381_v48  ;;  %v10428_v11 = vld [vmem:[%s10954_s24 + $0x270] sm:$0xff]  }
 0x852   : > { %v6755_v41 = vpop.permute.xlu0 %6754  ;;  %v6890_v33 = vsel %vm18575_vm1, %v6889_v54, %v6885_v20  ;;  %v6830_v20 = vrot.slane %v15671_v35, %v13608_v31  ;;  %v8001_v54 = vunpack.c.l.b16 %v15989_v39  ;;  %v4663_v7 = vsub.f32 %v18579_v40, %v15805_v61 }
 0x853   : > { %v6894_v52 = vrot.slane %v6755_v41, %v13641_v30  ;;  %7608 = vperm.xlu0 %9692, %v7551_v22   ;;  %v15996_v19 = vpop.permute.xlu1 %7626  ;;  %v18578_v22 = vsub.f32 %v18560_v50, %v18523_v16  ;;  %v18581_v50 = vsub.f32 %v18561_v6, %v18523_v16  ;;  %vm18583_vm1 = vcmask 720512  }
 0x854   : > { %8510 = vperm.xlu1 %9691, %v8441_v49   ;;  %9444 = vmatpush3.bf16.msra.mxu0 %v10425_v18  ;;  %v6831_v24 = vsel %vm3108_vm9, %v6830_v20, %v6826_v38  ;;  %v7552_v49 = vunpack.c.h.b16 %v15952_v1  ;;  %v6840_v38 = vrot.slane %v15695_v9, %v13635_v42  ;;  %v8442_v1 = vunpack.c.h.b16 %v15968_v58  ;;  %vm18584_vm0 = vmmov %vm18583_vm1 }
 0x855   : > { %v6895_v8 = vsel %vm18577_vm5, %v6894_v52, %v6890_v33  ;;  %v5093_v62 = vmul.f32 1.442695, %v18578_v22  ;;  %v5095_v41 = vmul.f32 1.442695, %v18581_v50  ;;  %v10426_v33 = vld [vmem:[%s10954_s24 + $0x268] sm:$0xff]   ;;  %v6836_v6 = vsel %vm18583_vm1, %v6835_v23, %v6831_v24 }
 0x856   : > { %v6761_v57 = vpop.permute.xlu0 %6760  ;;  %v6900_v35 = vsel %vm18582_vm6, %v6899_v59, %v6895_v8  ;;  %v10427_v8 = vld [vmem:[%s10954_s24 + $0x228] sm:$0xff]   ;;  %v10246_v59 = vpop.eup %10245  ;;  %9445 = vmatprep.subr.bf16.mxu0 %v10426_v33  ;;  %v5167_v23 = vmul.f32 1.442695, %v4664_v34  ;;  %v6841_v9 = vsel %vm3122_vm11, %v6840_v38, %v6836_v6  ;;  %v7112_v58 = vunpack.c.h.b16 %v15974_v43  ;;  %v10429_v34 = vld [vmem:[%s10954_s24 + $0x230] sm:$0xff]   ;;  %v10430_v33 = vld [vmem:[%s10954_s24 + $0x278] sm:$0xff]  }
 0x857   : > { %v6904_v26 = vrot.slane %v6761_v57, %v13664_v2  ;;  %7172 = vperm.xlu0 %9692, %v7111_v25   ;;  %v16025_v28 = vpop.permute.xlu1 %7190  ;;  %v6909_v25 = vrot.slane %v15839_v17, %v13608_v31  ;;  %10249 = vpow2.f32 %v5093_v62  ;;  %v5165_v17 = vmul.f32 1.442695, %v4663_v7  ;;  %v18587_v6 = vld [vmem:[#allocation310_spill] sm:$0xff] }
 0x858   : > { %8074 = vperm.xlu1 %9691, %v8001_v54   ;;  %10251 = vpow2.f32 %v5095_v41  ;;  %9446 = vmatpush3.bf16.msra.mxu0 %v10427_v8  ;;  %v6919_v62 = vrot.slane %v15852_v46, %v13635_v42  ;;  %v6846_v54 = vsel %vm3129_vm12, %v6845_v27, %v6841_v9  ;;  %v6855_v40 = vrot.slane %v15897_v55, %v18391_v12 }
 0x859   : > { %v6905_v52 = vsel %vm3101_vm8, %v6904_v26, %v6900_v35  ;;  %v10248_v26 = vpop.eup %10247  ;;  %v6850_v50 = vrot.slane %v15722_v51, %v18393_v4  ;;  %v8002_v41 = vunpack.c.h.b16 %v15989_v39  ;;  %v16059_v35 = vpack.c.bf16 %v10246_v59, %v10244_v13  ;;  %9447 = vmatprep.subr.bf16.mxu0 %v10428_v11  ;;  %v10431_v13 = vld [vmem:[%s10954_s24 + $0x238] sm:$0xff]   ;;  %v10432_v11 = vld [vmem:[%s10954_s24 + $0x280] sm:$0xff]  }
 0x85a   : > { %v6767_v57 = vpop.permute.xlu0 %6766  ;;  %v6910_v44 = vsel %vm3108_vm9, %v6909_v25, %v6905_v52  ;;  %v5105_v43 = vmul.f32 1.442695, %v4633_v37  ;;  %v5107_v55 = vmul.f32 1.442695, %v4634_v5  ;;  %10253 = vpow2.f32 %v5165_v17  ;;  %v18585_v37 = vld [vmem:[#allocation324_spill] sm:$0xff] }
 0x85b   : > { %v6914_v18 = vrot.slane %v6767_v57, %v13670_v45  ;;  %7611 = vperm.xlu0 %9692, %v7552_v49   ;;  %v16042_v22 = vpop.permute.xlu1 %7629  ;;  %10255 = vpow2.f32 %v5167_v23  ;;  %v6851_v39 = vsel %vm3136_vm13, %v6850_v50, %v6846_v54  ;;  %v6929_v47 = vrot.slane %v18585_v37, %v18393_v4  ;;  %v18586_v25 = vld [vmem:[#allocation444_spill] sm:$0xff] }
 0x85c   : > { %8513 = vperm.xlu1 %9691, %v8442_v1   ;;  %9448 = vmatpush3.bf16.msra.mxu0 %v10429_v34  ;;  %v6856_v5 = vsel %vm3143_vm14, %v6855_v40, %v6851_v39  ;;  %v6860_v27 = vrot.slane %v18587_v6, %v18586_v25  ;;  %v8443_v8 = vunpack.c.l.b16 %v16059_v35  ;;  %v16083_v59 = vpack.c.bf16 %v10248_v26, %v16003_v21  ;;  %v18590_v26 = vld [vmem:[#allocation179_spill] sm:$0xff]  ;;  %v18591_v34 = vld [vmem:[#allocation389_spill] sm:$0xff] }
 0x85d   : > { %v6915_v20 = vsel %vm18584_vm0, %v6914_v18, %v6910_v44  ;;  %v6939_v38 = vrot.slane %v18588_v15, %v18586_v25  ;;  %9449 = vmatprep.subr.bf16.mxu0 %v10430_v33  ;;  %10257 = vpow2.f32 %v5105_v43  ;;  %v18589_v44 = vld [vmem:[#allocation285_spill] sm:$0xff]  ;;  %v4643_v54 = vsub.f32 %v18590_v26, %v15805_v61  ;;  %v10433_v43 = vld [vmem:[%s10954_s24 + $0x2c8] sm:$0xff]  }
 0x85e   : > { %v6773_v7 = vpop.permute.xlu0 %6772  ;;  %v6920_v51 = vsel %vm3122_vm11, %v6919_v62, %v6915_v20  ;;  %v7997_v62 = vunpack.c.l.b16 %v18589_v44  ;;  %v6861_v21 = vsel %vm3150_vm15, %v6860_v27, %v6856_v5  ;;  %10259 = vpow2.f32 %v5107_v55  ;;  %v18592_v55 = vld [vmem:[#allocation197_spill] sm:$0xff]  ;;  %v18597_v44 = vld [vmem:[#allocation172_spill] sm:$0xff] }
 0x85f   : > { %v6924_v46 = vrot.slane %v6773_v7, %v18381_v48  ;;  %7175 = vperm.xlu0 %9692, %v7112_v58   ;;  %v16067_v24 = vpop.permute.xlu1 %7193  ;;  %v8003_v40 = vunpack.c.l.b16 %v16083_v59  ;;  %v4644_v50 = vsub.f32 %v18591_v34, %v15805_v61  ;;  %v18593_v39 = vld [vmem:[#allocation321_spill] sm:$0xff]  ;;  %v5125_v27 = vmul.f32 1.442695, %v4643_v54 }
 0x860   : > { %8077 = vperm.xlu1 %9691, %v8002_v41   ;;  %9450 = vmatpush3.bf16.msra.mxu0 %v10431_v13  ;;  %v6941_v41 = vpack.c.b16 %v6861_v21, %v6861_v21  ;;  %v18596_v15 = vld [vmem:[#allocation185_spill] sm:$0xff]  ;;  %vm18610_vm5 = vcmask 130112   ;;  %vm18617_vm6 = vcmask 392512   ;;  %vm18623_vm1 = vcmask 458112  }
 0x861   : > { %v6925_v52 = vsel %vm3129_vm12, %v6924_v46, %v6920_v51  ;;  %v10250_v17 = vpop.eup %10249  ;;  %v4665_v51 = vsub.f32 %v18592_v55, %v15805_v61  ;;  %10261 = vpow2.f32 %v5125_v27  ;;  %v18599_v27 = vld [vmem:[#allocation157_spill] sm:$0xff]  ;;  %vm18624_vm0 = vcmask 523712  }
 0x862   : > { %v6779_v49 = vpop.permute.xlu0 %6778  ;;  %v6930_v1 = vsel %vm3136_vm13, %v6929_v47, %v6925_v52  ;;  %v10252_v9 = vpop.eup %10251  ;;  %v7981_v52 = vunpack.c.l.b16 %v18593_v39  ;;  %v18594_v47 = vld [vmem:[#allocation156_spill] sm:$0xff] }
 0x863   : > { %v6934_v57 = vrot.slane %v6779_v49, %v18391_v12  ;;  %7665 = vperm.xlu0 %9692, %v7570_v10   ;;  %v16087_v18 = vpop.permute.xlu1 %7632  ;;  %v16108_v10 = vpack.c.bf16 %v10252_v9, %v10250_v17  ;;  %v4613_v5 = vsub.f32 %v18594_v47, %v18523_v16  ;;  %v18595_v49 = vld [vmem:[#allocation418_spill] sm:$0xff]  ;;  %v5169_v21 = vmul.f32 1.442695, %v4665_v51  ;;  %v10437_v51 = vld [vmem:[%s10954_s24 + $0x2d8] sm:$0xff]  }
 0x864   : > { %8516 = vperm.xlu1 %9691, %v8443_v8   ;;  %v10254_v37 = vpop.eup %10253  ;;  %v4666_v33 = vsub.f32 %v18595_v49, %v15805_v61  ;;  %v10434_v8 = vld [vmem:[%s10954_s24 + $0x288] sm:$0xff]   ;;  %v10438_v49 = vld [vmem:[%s10954_s24 + $0x298] sm:$0xff]  }
 0x865   : > { %v6935_v23 = vsel %vm3143_vm14, %v6934_v57, %v6930_v1  ;;  %v10256_v6 = vpop.eup %10255  ;;  %v8444_v57 = vunpack.c.h.b16 %v16059_v35  ;;  %v5127_v1 = vmul.f32 1.442695, %v4644_v50  ;;  %v7999_v9 = vunpack.c.l.b16 %v16108_v10  ;;  %v18598_v35 = vld [vmem:[#allocation378_spill] sm:$0xff]  ;;  %v10436_v50 = vld [vmem:[%s10954_s24 + $0x290] sm:$0xff]  }
 0x866   : > { %v16093_v20 = vpop.permute.xlu0 %7178  ;;  %v6940_v58 = vsel %vm3150_vm15, %v6939_v38, %v6935_v23  ;;  %v4614_v38 = vsub.f32 %v18596_v15, %v18523_v16  ;;  %v10435_v23 = vld [vmem:[%s10954_s24 + $0x2d0] sm:$0xff]   ;;  %v5065_v26 = vmul.f32 1.442695, %v4613_v5  ;;  %v5171_v54 = vmul.f32 1.442695, %v4666_v33 }
 0x867   : > { %8062 = vperm.xlu0 %9692, %v7997_v62   ;;  %v6942_v7 = vpack.c.b16 %v6940_v58, %v6940_v58  ;;  %v16102_v46 = vpop.permute.xlu1 %7196  ;;  %v4635_v62 = vsub.f32 %v18597_v44, %v18523_v16  ;;  %v4636_v58 = vsub.f32 %v18598_v35, %v18523_v16  ;;  %v16131_v34 = vpack.c.bf16 %v10256_v6, %v10254_v37  ;;  %v10439_v6 = vld [vmem:[%s10954_s24 + $0x2e0] sm:$0xff]   ;;  %v18601_v44 = vld [vmem:[#allocation391_spill] sm:$0xff] }
 0x868   : > { %8080 = vperm.xlu1 %9691, %v8003_v40   ;;  %10263 = vpow2.f32 %v5127_v1 }
 0x869   : > { %7073 = vmatprep.mubr.bf16.mxu1 %v6942_v7  ;;  %v10258_v7 = vpop.eup %10257  ;;  %v5109_v39 = vmul.f32 1.442695, %v4635_v62  ;;  %10265 = vpow2.f32 %v5169_v21  ;;  %v8445_v47 = vunpack.c.l.b16 %v16131_v34  ;;  %v4646_v62 = vsub.f32 %v18601_v44, %v15805_v61  ;;  %v18602_v21 = vld [vmem:[#allocation198_spill] sm:$0xff] }
 0x86a   : > { %7074 = vmatmul.mubr.bf16.vlgmr.msra.gmra.mrb[4].mxu1 %v6941_v41  ;;  %v16114_v13 = vpop.permute.xlu0 %7130  ;;  %v10260_v41 = vpop.eup %10259  ;;  %10267 = vpow2.f32 %v5171_v54  ;;  %v18603_v54 = vld [vmem:[#allocation437_spill] sm:$0xff] }
 0x86b   : > { %8014 = vperm.xlu0 %9692, %v7981_v52   ;;  %9458 = vmatpush3.bf16.msra.mxu1 %v10432_v11  ;;  %v16120_v17 = vpop.permute.xlu1 %7635  ;;  %v8004_v11 = vunpack.c.h.b16 %v16083_v59  ;;  %v8440_v52 = vunpack.c.h.b16 %v15900_v36  ;;  %v5111_v59 = vmul.f32 1.442695, %v4636_v58  ;;  %10269 = vpow2.f32 %v5065_v26  ;;  %v10262_v58 = vpop.eup %10261 }
 0x86c   : > { %9459 = vmatprep.subr.bf16.mxu1 %v10433_v43  ;;  %8519 = vperm.xlu1 %9691, %v8444_v57   ;;  %v5067_v43 = vmul.f32 1.442695, %v4614_v38  ;;  %v16139_v5 = vpack.c.bf16 %v10260_v41, %v10258_v7  ;;  %v4615_v36 = vsub.f32 %v18599_v27, %v18523_v16  ;;  %v8000_v57 = vunpack.c.h.b16 %v16108_v10  ;;  %v10441_v10 = vld [vmem:[%s10954_s24 + $0x2e8] sm:$0xff]   ;;  %v18604_v41 = vld [vmem:[#allocation188_spill] sm:$0xff] }
 0x86d   : > { %v18607_v27 = vld [vmem:[#allocation438_spill] sm:$0xff] }
 0x86e   : > { %v16128_v40 = vpop.permute.xlu0 %7184  ;;  %10271 = vpow2.f32 %v5067_v43  ;;  %v8005_v1 = vunpack.c.l.b16 %v16139_v5  ;;  %v5069_v26 = vmul.f32 1.442695, %v4615_v36  ;;  %v4616_v43 = vsub.f32 %v18604_v41, %v18523_v16 }
 0x86f   : > { %8068 = vperm.xlu0 %9692, %v7999_v9   ;;  %9460 = vmatpush3.bf16.msra.mxu1 %v10434_v8  ;;  %v16134_v55 = vpop.permute.xlu1 %7199  ;;  %10273 = vpow2.f32 %v5109_v39  ;;  %v18600_v8 = vld [vmem:[#allocation181_spill] sm:$0xff]  ;;  %v4667_v9 = vsub.f32 %v18602_v21, %v15805_v61  ;;  %v5131_v21 = vmul.f32 1.442695, %v4646_v62  ;;  %v7758_v62 = vrot.slane %v15996_v19, %v13599_v29 }
 0x870   : > { %9461 = vmatprep.subr.bf16.mxu1 %v10435_v23  ;;  %8083 = vperm.xlu1 %9691, %v8004_v11   ;;  %v4645_v15 = vsub.f32 %v18600_v8, %v15805_v61  ;;  %10275 = vpow2.f32 %v5111_v59  ;;  %v10440_v23 = vld [vmem:[%s10954_s24 + $0x2a0] sm:$0xff]   ;;  %v8424_v11 = vunpack.c.h.b16 %v15947_v32  ;;  %v8446_v32 = vunpack.c.h.b16 %v16131_v34 }
 0x871   : > { %10277 = vpow2.f32 %v5069_v26  ;;  %v7984_v34 = vunpack.c.h.b16 %v15926_v60  ;;  %v5071_v0 = vmul.f32 1.442695, %v4616_v43 }
 0x872   : > { %v7624_v37 = vpop.permute.xlu0 %7623 }
 0x873   : > { %8507 = vperm.xlu0 %9692, %v8440_v52   ;;  %9462 = vmatpush3.bf16.msra.mxu1 %v10436_v50  ;;  %v16142_v33 = vpop.permute.xlu1 %7638  ;;  %v7753_v7 = vrot.slane %v7624_v37, %v18603_v54  ;;  %v10264_v50 = vpop.eup %10263  ;;  %v5129_v52 = vmul.f32 1.442695, %v4645_v15  ;;  %v18608_v37 = vld [vmem:[#allocation309_spill] sm:$0xff]  ;;  %v5173_v15 = vmul.f32 1.442695, %v4667_v9 }
 0x874   : > { %9463 = vmatprep.subr.bf16.mxu1 %v10437_v51  ;;  %8522 = vperm.xlu1 %9691, %v8445_v47   ;;  %v18605_v51 = vld [vmem:[#allocation421_spill] sm:$0xff]  ;;  %v10266_v47 = vpop.eup %10265  ;;  %v7749_v36 = vrot.slane %v18608_v37, %v18607_v27 }
 0x875   : > { %v4668_v39 = vsub.f32 %v18605_v51, %v15805_v61  ;;  %v10268_v8 = vpop.eup %10267  ;;  %v10443_v51 = vld [vmem:[%s10954_s24 + $0x2f0] sm:$0xff]   ;;  %10279 = vpow2.f32 %v5129_v52 }
 0x876   : > { %v16150_v38 = vpop.permute.xlu0 %7187  ;;  %v10270_v3 = vpop.eup %10269  ;;  %10281 = vpow2.f32 %v5131_v21 }
 0x877   : > { %8071 = vperm.xlu0 %9692, %v8000_v57   ;;  %9464 = vmatpush3.bf16.msra.mxu1 %v10438_v49  ;;  %v16158_v35 = vpop.permute.xlu1 %7202  ;;  %v18606_v49 = vld [vmem:[#allocation174_spill] sm:$0xff]  ;;  %10283 = vpow2.f32 %v5173_v15  ;;  %v10446_v15 = vld [vmem:[%s10954_s24 + $0x2b8] sm:$0xff]  }
 0x878   : > { %9465 = vmatprep.subr.bf16.mxu1 %v10439_v6  ;;  %8086 = vperm.xlu1 %9691, %v8005_v1   ;;  %v4637_v6 = vsub.f32 %v18606_v49, %v18523_v16  ;;  %v10442_v57 = vld [vmem:[%s10954_s24 + $0x2a8] sm:$0xff]   ;;  %v18609_v1 = vld [vmem:[#allocation381_spill] sm:$0xff]  ;;  %v7754_v49 = vsel %vm18610_vm5, %v7753_v7, %v7749_v36  ;;  %v8006_v36 = vunpack.c.h.b16 %v16139_v5  ;;  %v7763_v5 = vrot.slane %v16042_v22, %v13611_v53 }
 0x879   : > { %v4638_v44 = vsub.f32 %v18609_v1, %v18523_v16  ;;  %v5175_v1 = vmul.f32 1.442695, %v4668_v39  ;;  %v7759_v19 = vsel %vm3059_vm2, %v7758_v62, %v7754_v49  ;;  %v7768_v22 = vrot.slane %v16087_v18, %v13614_v14  ;;  %v18614_v62 = vld [vmem:[#allocation182_spill] sm:$0xff] }
 0x87a   : > { %v16167_v59 = vpop.permute.xlu0 %7575  ;;  %v5113_v39 = vmul.f32 1.442695, %v4637_v6  ;;  %v7764_v21 = vsel %vm3066_vm3, %v7763_v5, %v7759_v19  ;;  %v18618_v5 = vld [vmem:[#allocation158_spill] sm:$0xff]  ;;  %vm18629_vm5 = vcmask 720512  }
 0x87b   : > { %8459 = vperm.xlu0 %9692, %v8424_v11   ;;  %9466 = vmatpush3.bf16.msra.mxu1 %v10440_v23  ;;  %v16177_v41 = vpop.permute.xlu1 %7641  ;;  %v16182_v23 = vpack.c.bf16 %v10264_v50, %v10262_v58  ;;  %v10272_v11 = vpop.eup %10271  ;;  %v16191_v58 = vpack.c.bf16 %v10268_v8, %v10266_v47  ;;  %v10444_v50 = vld [vmem:[%s10954_s24 + $0x2b0] sm:$0xff]   ;;  %v5115_v8 = vmul.f32 1.442695, %v4638_v44  ;;  %10285 = vpow2.f32 %v5175_v1 }
 0x87c   : > { %9467 = vmatprep.subr.bf16.mxu1 %v10441_v10  ;;  %8525 = vperm.xlu1 %9691, %v8446_v32   ;;  %v10274_v26 = vpop.eup %10273  ;;  %10287 = vpow2.f32 %v5071_v0  ;;  %v7769_v44 = vsel %vm3073_vm4, %v7768_v22, %v7764_v21  ;;  %v7773_v0 = vrot.slane %v16120_v17, %v13629_v56 }
 0x87d   : > { %v9363_v37 = vpop.f32.mrb[0].mxu0  ;;  %v10276_v43 = vpop.eup %10275  ;;  %v8425_v47 = vunpack.c.l.b16 %v16182_v23  ;;  %v8447_v49 = vunpack.c.l.b16 %v16191_v58  ;;  %10289 = vpow2.f32 %v5113_v39  ;;  %v8426_v17 = vunpack.c.h.b16 %v16182_v23 }
 0x87e   : > { %v9364_v9 = vpop.f32.mrb[1].mxu0  ;;  %v16186_v10 = vpop.permute.xlu0 %7139  ;;  %10291 = vpow2.f32 %v5115_v8  ;;  %v7774_v19 = vsel %vm18617_vm6, %v7773_v0, %v7769_v44  ;;  %v18619_v8 = vld [vmem:[#allocation424_spill] sm:$0xff]  ;;  %v8448_v23 = vunpack.c.h.b16 %v16191_v58  ;;  %vm18637_vm6 = vcmask 130112  }
 0x87f   : > { %18611 = vst [vmem:[#allocation327_spill] sm:$0xff] %v16186_v10  ;;  %v16188_v7 = vadd.f32 %v9364_v9, %v9363_v37  ;;  %v9366_v60 = vpop.f32.mrb[2].mxu0  ;;  %8023 = vperm.xlu0 %9692, %v7984_v34   ;;  %9468 = vmatpush3.bf16.msra.mxu1 %v10442_v57  ;;  %v16195_v52 = vpop.permute.xlu1 %7205  ;;  %v10445_v37 = vld [vmem:[%s10954_s24 + $0x2f8] sm:$0xff]   ;;  %v16201_v57 = vpack.c.bf16 %v10272_v11, %v10270_v3 }
 0x880   : > { %v9367_v32 = vpop.f32.mrb[3].mxu0  ;;  %9469 = vmatprep.subr.bf16.mxu1 %v10443_v51  ;;  %8089 = vperm.xlu1 %9691, %v8006_v36   ;;  %v16207_v51 = vpack.c.bf16 %v10276_v43, %v10274_v26  ;;  %v10278_v1 = vpop.eup %10277  ;;  %v4647_v9 = vsub.f32 %v18614_v62, %v15805_v61  ;;  %v18615_v36 = vld [vmem:[#allocation394_spill] sm:$0xff]  ;;  %v4670_v21 = vsub.f32 %v18619_v8, %v15805_v61  ;;  %v18625_v58 = vld [vmem:[#allocation384_spill] sm:$0xff] }
 0x881   : > { %v7985_v3 = vunpack.c.l.b16 %v16201_v57  ;;  %v10280_v26 = vpop.eup %10279  ;;  %v4648_v60 = vsub.f32 %v18615_v36, %v15805_v61  ;;  %v7783_v32 = vrot.slane %v16177_v41, %v13652_v63  ;;  %v18621_v41 = vld [vmem:[#allocation190_spill] sm:$0xff] }
 0x882   : > { %v16203_v6 = vpop.permute.xlu0 %7578  ;;  %v8007_v18 = vunpack.c.l.b16 %v16207_v51  ;;  %v4618_v44 = vsub.f32 %v18621_v41, %v18523_v16  ;;  %v5133_v62 = vmul.f32 1.442695, %v4647_v9  ;;  %v7986_v41 = vunpack.c.h.b16 %v16201_v57 }
 0x883   : > { %18612 = vst [vmem:[#allocation299_spill] sm:$0xff] %v16203_v6  ;;  %8462 = vperm.xlu0 %9692, %v8425_v47   ;;  %9470 = vmatpush3.bf16.msra.mxu1 %v10444_v50  ;;  %v7645_v34 = vpop.permute.xlu1 %7644  ;;  %v18616_v50 = vld [vmem:[#allocation199_spill] sm:$0xff]  ;;  %v4617_v47 = vsub.f32 %v18618_v5, %v18523_v16  ;;  %v5179_v6 = vmul.f32 1.442695, %v4670_v21 }
 0x884   : > { %9471 = vmatprep.subr.bf16.mxu1 %v10445_v37  ;;  %8528 = vperm.xlu1 %9691, %v8447_v49   ;;  %v4669_v43 = vsub.f32 %v18616_v50, %v15805_v61  ;;  %v10282_v37 = vpop.eup %10281  ;;  %v7778_v49 = vrot.slane %v16142_v33, %v13641_v30  ;;  %v5135_v50 = vmul.f32 1.442695, %v4648_v60  ;;  %10293 = vpow2.f32 %v5133_v62 }
 0x885   : > { %v5299_v9 = vpack.c.bf16 %v10282_v37, %v10280_v26  ;;  %v5075_v26 = vmul.f32 1.442695, %v4618_v44 }
 0x886   : > { %v16214_v11 = vpop.permute.xlu0 %7142  ;;  %v5177_v5 = vmul.f32 1.442695, %v4669_v43  ;;  %v7779_v33 = vsel %vm18623_vm1, %v7778_v49, %v7774_v19  ;;  %v8008_v49 = vunpack.c.h.b16 %v16207_v51  ;;  %10295 = vpow2.f32 %v5135_v50  ;;  %v18630_v50 = vld [vmem:[#allocation397_spill] sm:$0xff] }
 0x887   : > { %18613 = vst [vmem:[#allocation323_spill] sm:$0xff] %v16214_v11  ;;  %8026 = vperm.xlu0 %9692, %v7985_v3   ;;  %9472 = vmatpush3.bf16.msra.mxu1 %v10446_v15  ;;  %v16225_v39 = vpop.permute.xlu1 %7208  ;;  %v7788_v15 = vrot.slane %v7645_v34, %v13664_v2  ;;  %v10284_v3 = vpop.eup %10283  ;;  %v7784_v34 = vsel %vm18624_vm0, %v7783_v32, %v7779_v33  ;;  %vm18640_vm1 = vcmask 392512   ;;  %vm18641_vm0 = vcmask 458112  }
 0x888   : > { %8092 = vperm.xlu1 %9691, %v8007_v18   ;;  %v10286_v0 = vpop.eup %10285  ;;  %v18622_v18 = vld [vmem:[#allocation176_spill] sm:$0xff]  ;;  %10297 = vpow2.f32 %v5177_v5  ;;  %v4650_v5 = vsub.f32 %v18630_v50, %v15805_v61 }
 0x889   : > { %v4639_v36 = vsub.f32 %v18622_v18, %v18523_v16  ;;  %v10288_v10 = vpop.eup %10287  ;;  %v7789_v60 = vsel %vm3101_vm8, %v7788_v15, %v7784_v34  ;;  %10299 = vpow2.f32 %v5179_v6 }
 0x88a   : > { %v16238_v22 = vpop.permute.xlu0 %7581  ;;  %v10290_v19 = vpop.eup %10289  ;;  %v5284_v21 = vpack.c.bf16 %v10288_v10, %v10278_v1  ;;  %v18628_v10 = vld [vmem:[#allocation184_spill] sm:$0xff]  ;;  %v7307_v1 = vrot.slane %v16093_v20, %v18607_v27  ;;  %v5139_v50 = vmul.f32 1.442695, %v4650_v5  ;;  %v7326_v5 = vrot.slane %v16025_v28, %v13614_v14 }
 0x88b   : > { %18620 = vst [vmem:[#allocation348_spill] sm:$0xff] %v16238_v22  ;;  %8465 = vperm.xlu0 %9692, %v8426_v17   ;;  %v7648_v8 = vpop.permute.xlu1 %7647  ;;  %v4640_v17 = vsub.f32 %v18625_v58, %v18523_v16  ;;  %v5073_v22 = vmul.f32 1.442695, %v4617_v47  ;;  %v10292_v57 = vpop.eup %10291  ;;  %v5117_v18 = vmul.f32 1.442695, %v4639_v36  ;;  %v8427_v47 = vunpack.c.l.b16 %v5299_v9 }
 0x88c   : > { %v7793_v11 = vrot.slane %v7648_v8, %v13608_v31  ;;  %8531 = vperm.xlu1 %9691, %v8448_v23   ;;  %v5310_v23 = vpack.c.bf16 %v10286_v0, %v10284_v3  ;;  %v16260_v51 = vpack.c.bf16 %v10292_v57, %v10290_v19  ;;  %v7987_v62 = vunpack.c.l.b16 %v5284_v21  ;;  %v18631_v8 = vld [vmem:[#allocation201_spill] sm:$0xff]  ;;  %v18633_v57 = vld [vmem:[#allocation159_spill] sm:$0xff] }
 0x88d   : > { %v5119_v15 = vmul.f32 1.442695, %v4640_v17  ;;  %10301 = vpow2.f32 %v5073_v22  ;;  %v4649_v6 = vsub.f32 %v18628_v10, %v15805_v61  ;;  %v4671_v34 = vsub.f32 %v18631_v8, %v15805_v61 }
 0x88e   : > { %v16252_v43 = vpop.permute.xlu0 %7145  ;;  %v7794_v32 = vsel %vm3108_vm9, %v7793_v11, %v7789_v60  ;;  %v8449_v11 = vunpack.c.l.b16 %v5310_v23  ;;  %10303 = vpow2.f32 %v5075_v26  ;;  %v8009_v36 = vunpack.c.l.b16 %v16260_v51  ;;  %v10294_v17 = vpop.eup %10293  ;;  %v18632_v60 = vld [vmem:[#allocation287_spill] sm:$0xff] }
 0x88f   : > { %18626 = vst [vmem:[#allocation311_spill] sm:$0xff] %v16252_v43  ;;  %8029 = vperm.xlu0 %9692, %v7986_v41   ;;  %v16256_v37 = vpop.permute.xlu1 %7211  ;;  %10305 = vpow2.f32 %v5117_v18  ;;  %v7316_v41 = vrot.slane %v16128_v40, %v13599_v29  ;;  %v7311_v20 = vrot.slane %v18632_v60, %v18603_v54  ;;  %v7321_v19 = vrot.slane %v16150_v38, %v13611_v53  ;;  %v18634_v18 = vld [vmem:[#allocation427_spill] sm:$0xff] }
 0x890   : > { %8095 = vperm.xlu1 %9691, %v8008_v49   ;;  %10307 = vpow2.f32 %v5119_v15  ;;  %v10296_v49 = vpop.eup %10295  ;;  %v4619_v26 = vsub.f32 %v18633_v57, %v18523_v16  ;;  %v8450_v10 = vunpack.c.h.b16 %v5310_v23  ;;  %v5181_v8 = vmul.f32 1.442695, %v4671_v34  ;;  %v18639_v23 = vld [vmem:[#allocation405_spill] sm:$0xff] }
 0x891   : > { %v7331_v28 = vrot.slane %v16067_v24, %v13629_v56 }
 0x892   : > { %v16258_v33 = vpop.permute.xlu0 %7584  ;;  %v10298_v40 = vpop.eup %10297 }
 0x893   : > { %8468 = vperm.xlu0 %9692, %v8427_v47   ;;  %v7651_v3 = vpop.permute.xlu1 %7650  ;;  %v4672_v47 = vsub.f32 %v18634_v18, %v15805_v61  ;;  %v10300_v38 = vpop.eup %10299 }
 0x894   : > { %v7798_v44 = vrot.slane %v7651_v3, %v13670_v45  ;;  %8534 = vperm.xlu1 %9691, %v8449_v11   ;;  %v18636_v11 = vld [vmem:[#allocation193_spill] sm:$0xff] }
 0x895   : > { %v4620_v3 = vsub.f32 %v18636_v11, %v18523_v16  ;;  %v5300_v11 = vpack.c.bf16 %v10296_v49, %v10294_v17 }
 0x896   : > { %v16263_v0 = vpop.permute.xlu0 %7148  ;;  %v7799_v22 = vsel %vm18629_vm5, %v7798_v44, %v7794_v32  ;;  %v8428_v32 = vunpack.c.h.b16 %v5299_v9  ;;  %v5137_v44 = vmul.f32 1.442695, %v4649_v6  ;;  %v18638_v9 = vld [vmem:[#allocation189_spill] sm:$0xff]  ;;  %v7988_v6 = vunpack.c.h.b16 %v5284_v21 }
 0x897   : > { %18627 = vst [vmem:[#allocation350_spill] sm:$0xff] %v16263_v0  ;;  %8032 = vperm.xlu0 %9692, %v7987_v62   ;;  %v16277_v58 = vpop.permute.xlu1 %7214  ;;  %v7312_v62 = vsel %vm18637_vm6, %v7311_v20, %v7307_v1  ;;  %v10302_v18 = vpop.eup %10301  ;;  %v4656_v20 = vsub.f32 %v18639_v23, %v15805_v61  ;;  %v5311_v21 = vpack.c.bf16 %v10300_v38, %v10298_v40  ;;  %v5079_v49 = vmul.f32 1.442695, %v4620_v3 }
 0x898   : > { %8098 = vperm.xlu1 %9691, %v8009_v36   ;;  %v4655_v36 = vsub.f32 %v18638_v9, %v15805_v61  ;;  %v7317_v60 = vsel %vm3059_vm2, %v7316_v41, %v7312_v62  ;;  %v10304_v1 = vpop.eup %10303  ;;  %10309 = vpow2.f32 %v5137_v44  ;;  %v8010_v62 = vunpack.c.h.b16 %v16260_v51 }
 0x899   : > { %v7322_v0 = vsel %vm3066_vm3, %v7321_v19, %v7317_v60  ;;  %v10306_v41 = vpop.eup %10305  ;;  %10311 = vpow2.f32 %v5139_v50  ;;  %v8429_v44 = vunpack.c.l.b16 %v5300_v11  ;;  %v8451_v3 = vunpack.c.l.b16 %v5311_v21  ;;  %v18642_v50 = vld [vmem:[#allocation186_spill] sm:$0xff] }
 0x89a   : > { %v16287_v15 = vpop.permute.xlu0 %7587  ;;  %v10308_v17 = vpop.eup %10307  ;;  %10313 = vpow2.f32 %v5181_v8  ;;  %v4651_v8 = vsub.f32 %v18642_v50, %v15805_v61  ;;  %v7341_v60 = vrot.slane %v16134_v55, %v13652_v63  ;;  %vm18644_vm5 = vcmask 523712  }
 0x89b   : > { %18635 = vst [vmem:[#allocation338_spill] sm:$0xff] %v16287_v15  ;;  %8471 = vperm.xlu0 %9692, %v8428_v32   ;;  %v7654_v57 = vpop.permute.xlu1 %7653  ;;  %v5077_v32 = vmul.f32 1.442695, %v4619_v26  ;;  %v5183_v15 = vmul.f32 1.442695, %v4672_v47  ;;  %v7327_v26 = vsel %vm3073_vm4, %v7326_v5, %v7322_v0  ;;  %v5296_v38 = vpack.c.bf16 %v10308_v17, %v10306_v41  ;;  %v18645_v41 = vld [vmem:[#allocation161_spill] sm:$0xff] }
 0x89c   : > { %v7803_v43 = vrot.slane %v7654_v57, %v13635_v42  ;;  %8537 = vperm.xlu1 %9691, %v8450_v10   ;;  %v5149_v10 = vmul.f32 1.442695, %v4655_v36  ;;  %v7332_v40 = vsel %vm18640_vm1, %v7331_v28, %v7327_v26  ;;  %v7336_v0 = vrot.slane %v16102_v46, %v13641_v30  ;;  %v18643_v46 = vld [vmem:[#allocation400_spill] sm:$0xff] }
 0x89d   : > { %10315 = vpow2.f32 %v5183_v15  ;;  %v8011_v57 = vunpack.c.l.b16 %v5296_v38  ;;  %v7346_v55 = vrot.slane %v16158_v35, %v13664_v2  ;;  %v7356_v17 = vrot.slane %v16225_v39, %v13670_v45 }
 0x89e   : > { %v16301_v34 = vpop.permute.xlu0 %7151  ;;  %v16304_v19 = vsel %vm3122_vm11, %v7803_v43, %v7799_v22  ;;  %v5285_v43 = vpack.c.bf16 %v10304_v1, %v10302_v18  ;;  %v5151_v22 = vmul.f32 1.442695, %v4656_v20  ;;  %10317 = vpow2.f32 %v5077_v32 }
 0x89f   : > { %8035 = vperm.xlu0 %9692, %v7988_v6   ;;  %v16308_v47 = vpop.permute.xlu1 %7217  ;;  %10319 = vpow2.f32 %v5079_v49  ;;  %v7337_v15 = vsel %vm18641_vm0, %v7336_v0, %v7332_v40  ;;  %v4652_v18 = vsub.f32 %v18643_v46, %v15805_v61  ;;  %v7351_v20 = vrot.slane %v16195_v52, %v13608_v31 }
 0x8a0   : > { %8101 = vperm.xlu1 %9691, %v8010_v62   ;;  %10321 = vpow2.f32 %v5149_v10  ;;  %v7989_v24 = vunpack.c.l.b16 %v5285_v43  ;;  %v7342_v23 = vsel %vm18644_vm5, %v7341_v60, %v7337_v15  ;;  %v8430_v32 = vunpack.c.h.b16 %v5300_v11 }
 0x8a1   : > { %10323 = vpow2.f32 %v5151_v22  ;;  %v4621_v62 = vsub.f32 %v18645_v41, %v18523_v16  ;;  %v5141_v26 = vmul.f32 1.442695, %v4651_v8  ;;  %v7361_v28 = vrot.slane %v16256_v37, %v13635_v42 }
 0x8a2   : > { %v16312_v51 = vpop.permute.xlu0 %7590  ;;  %v10310_v1 = vpop.eup %10309  ;;  %v8452_v52 = vunpack.c.h.b16 %v5311_v21  ;;  %v5143_v40 = vmul.f32 1.442695, %v4652_v18  ;;  %v7366_v35 = vrot.slane %v16277_v58, %v18381_v48  ;;  %v7371_v37 = vrot.slane %v16308_v47, %v18393_v4 }
 0x8a3   : > { %8474 = vperm.xlu0 %9692, %v8429_v44   ;;  %v16317_v9 = vpop.permute.xlu1 %7656  ;;  %v10312_v5 = vpop.eup %10311  ;;  %v18646_v44 = vld [vmem:[#allocation195_spill] sm:$0xff]  ;;  %v7990_v21 = vunpack.c.h.b16 %v5285_v43  ;;  %v5081_v8 = vmul.f32 1.442695, %v4621_v62  ;;  %vm18647_vm6 = vcmask 720512   ;;  %10325 = vpow2.f32 %v5141_v26 }
 0x8a4   : > { %8540 = vperm.xlu1 %9691, %v8451_v3   ;;  %v10314_v10 = vpop.eup %10313  ;;  %v4622_v22 = vsub.f32 %v18646_v44, %v18523_v16  ;;  %v7347_v3 = vsel %vm3101_vm8, %v7346_v55, %v7342_v23  ;;  %v5301_v15 = vpack.c.bf16 %v10312_v5, %v10310_v1  ;;  %v8012_v23 = vunpack.c.h.b16 %v5296_v38 }
 0x8a5   : > { %10327 = vpow2.f32 %v5143_v40  ;;  %v18649_v40 = vld [vmem:[#allocation187_spill] sm:$0xff]  ;;  %vm18652_vm1 = vcmask 1041409   ;;  %vm18659_vm0 = vcmask 130112  }
 0x8a6   : > { %v16320_v36 = vpop.permute.xlu0 %7154  ;;  %v8431_v41 = vunpack.c.l.b16 %v5301_v15  ;;  %10329 = vpow2.f32 %v5081_v8  ;;  %vm18662_vm5 = vmmov %vm18659_vm0 }
 0x8a7   : > { %8038 = vperm.xlu0 %9692, %v7989_v24   ;;  %v7221_v6 = vpop.permute.xlu1 %7220  ;;  %v10316_v11 = vpop.eup %10315  ;;  %v7352_v24 = vsel %vm3108_vm9, %v7351_v20, %v7347_v3  ;;  %v4653_v3 = vsub.f32 %v18649_v40, %v15805_v61 }
 0x8a8   : > { %8104 = vperm.xlu1 %9691, %v8011_v57   ;;  %v10318_v0 = vpop.eup %10317  ;;  %v7357_v60 = vsel %vm18647_vm6, %v7356_v17, %v7352_v24  ;;  %v7376_v57 = vrot.slane %v7221_v6, %v18391_v12  ;;  %v16356_v20 = vpack.c.bf16 %v10316_v11, %v10314_v10  ;;  %v18648_v11 = vld [vmem:[#allocation162_spill] sm:$0xff]  ;;  %vm18667_vm6 = vcmask 392512  }
 0x8a9   : > { %v10320_v50 = vpop.eup %10319  ;;  %v7362_v18 = vsel %vm3122_vm11, %v7361_v28, %v7357_v60  ;;  %v4623_v44 = vsub.f32 %v18648_v11, %v18523_v16 }
 0x8aa   : > { %v16337_v49 = vpop.permute.xlu0 %7593  ;;  %v10322_v58 = vpop.eup %10321  ;;  %v7367_v43 = vsel %vm3129_vm12, %v7366_v35, %v7362_v18  ;;  %v5286_v62 = vpack.c.bf16 %v10320_v50, %v10318_v0  ;;  %v8453_v38 = vunpack.c.l.b16 %v16356_v20  ;;  %v18650_v0 = vld [vmem:[#allocation403_spill] sm:$0xff] }
 0x8ab   : > { %8477 = vperm.xlu0 %9692, %v8430_v32   ;;  %v16346_v39 = vpop.permute.xlu1 %7659  ;;  %v10324_v47 = vpop.eup %10323  ;;  %v5083_v32 = vmul.f32 1.442695, %v4622_v22  ;;  %v7372_v5 = vsel %vm3136_vm13, %v7371_v37, %v7367_v43  ;;  %v4654_v24 = vsub.f32 %v18650_v0, %v15805_v61 }
 0x8ac   : > { %8543 = vperm.xlu1 %9691, %v8452_v52   ;;  %v7377_v55 = vsel %vm3143_vm14, %v7376_v57, %v7372_v5  ;;  %v5304_v26 = vpack.c.bf16 %v10324_v47, %v10322_v58  ;;  %v7991_v22 = vunpack.c.l.b16 %v5286_v62  ;;  %v5085_v57 = vmul.f32 1.442695, %v4623_v44 }
 0x8ad   : > { %10331 = vpow2.f32 %v5083_v32  ;;  %v10326_v60 = vpop.eup %10325  ;;  %v8432_v58 = vunpack.c.h.b16 %v5301_v15  ;;  %v5147_v32 = vmul.f32 1.442695, %v4654_v24 }
 0x8ae   : > { %v16353_v46 = vpop.permute.xlu0 %7157  ;;  %v8437_v37 = vunpack.c.l.b16 %v5304_v26  ;;  %v8438_v43 = vunpack.c.h.b16 %v5304_v26  ;;  %10333 = vpow2.f32 %v5085_v57 }
 0x8af   : > { %8041 = vperm.xlu0 %9692, %v7990_v21   ;;  %v7224_v1 = vpop.permute.xlu1 %7223  ;;  %v18651_v21 = vld [vmem:[#allocation365_spill] sm:$0xff]  ;;  %v10328_v18 = vpop.eup %10327 }
 0x8b0   : > { %v7381_v6 = vrot.slane %v7224_v1, %v18586_v25  ;;  %8107 = vperm.xlu1 %9691, %v8012_v23   ;;  %v4624_v50 = vsub.f32 %v18651_v21, %v18523_v16  ;;  %v5145_v23 = vmul.f32 1.442695, %v4653_v3  ;;  %v10330_v5 = vpop.eup %10329 }
 0x8b2   : > { %v16362_v17 = vpop.permute.xlu0 %7596  ;;  %v7382_v10 = vsel %vm3150_vm15, %v7381_v6, %v7377_v55  ;;  %v5087_v1 = vmul.f32 1.442695, %v4624_v50  ;;  %v7992_v6 = vunpack.c.h.b16 %v5286_v62  ;;  %10335 = vpow2.f32 %v5145_v23 }
 0x8b3   : > { %8480 = vperm.xlu0 %9692, %v8431_v41   ;;  %v16366_v28 = vpop.permute.xlu1 %7662  ;;  %v7384_v52 = vpack.c.b16 %v7382_v10, %v7382_v10  ;;  %v5302_v41 = vpack.c.bf16 %v10328_v18, %v10326_v60  ;;  %10337 = vpow2.f32 %v5147_v32 }
 0x8b4   : > { %8546 = vperm.xlu1 %9691, %v8453_v38   ;;  %10339 = vpow2.f32 %v5087_v1 }
 0x8b5   : > { %7515 = vmatprep.mubr.bf16.mxu0 %v7384_v52  ;;  %v8434_v18 = vunpack.c.h.b16 %v5302_v41 }
 0x8b6   : > { %v16372_v35 = vpop.permute.xlu0 %7160 }
 0x8b7   : > { %8044 = vperm.xlu0 %9692, %v7991_v22   ;;  %v16378_v8 = vpop.permute.xlu1 %7614  ;;  %v10332_v55 = vpop.eup %10331  ;;  %v8433_v22 = vunpack.c.l.b16 %v5302_v41 }
 0x8b8   : > { %8498 = vperm.xlu1 %9691, %v8437_v37   ;;  %v5287_v40 = vpack.c.bf16 %v10332_v55, %v10330_v5  ;;  %v10447_v37 = vld [vmem:[%s10954_s24 + $0x340] sm:$0xff]   ;;  %v10334_v50 = vpop.eup %10333  ;;  %v7228_v5 = vrot.slane %v16114_v13, %v18607_v27  ;;  %v7674_v55 = vrot.slane %v16167_v59, %v18603_v54  ;;  %v18657_v13 = vld [vmem:[#allocation348_spill] sm:$0xff] }
 0x8b9   : > { %9479 = vmatprep.subr.bf16.mxu0 %v10447_v37 }
 0x8ba   : > { %v16380_v47 = vpop.permute.xlu0 %7599  ;;  %v7993_v24 = vunpack.c.l.b16 %v5287_v40 }
 0x8bb   : > { %8483 = vperm.xlu0 %9692, %v8432_v58   ;;  %v16382_v61 = vpop.permute.xlu1 %7617 }
 0x8bc   : > { %8501 = vperm.xlu1 %9691, %v8438_v43   ;;  %v10336_v60 = vpop.eup %10335 }
 0x8bd   : > { %v9385_v16 = vpop.f32.mrb[0].mxu1  ;;  %v10338_v58 = vpop.eup %10337 }
 0x8be   : > { %v9386_v38 = vpop.f32.mrb[1].mxu1  ;;  %v16384_v15 = vpop.permute.xlu0 %7163  ;;  %v16406_v1 = vpack.c.bf16 %v10338_v58, %v10336_v60  ;;  %v7689_v58 = vrot.slane %v16258_v33, %v13614_v14  ;;  %v7699_v33 = vrot.slane %v16312_v51, %v13641_v30  ;;  %v7262_v51 = vrot.slane %v16301_v34, %v13652_v63 }
 0x8bf   : > { %v9387_v10 = vadd.f32 %v9386_v38, %v9385_v16  ;;  %v9388_v52 = vpop.f32.mrb[2].mxu1  ;;  %8047 = vperm.xlu0 %9692, %v7992_v6   ;;  %v16386_v26 = vpop.permute.xlu1 %8065  ;;  %v7994_v16 = vunpack.c.h.b16 %v5287_v40  ;;  %v18654_v38 = vld [vmem:[#allocation298_spill] sm:$0xff]  ;;  %v7684_v40 = vrot.slane %v18657_v13, %v13611_v53  ;;  %v7272_v34 = vrot.slane %v16353_v46, %v13608_v31 }
 0x8c0   : > { %v9389_v11 = vpop.f32.mrb[3].mxu1  ;;  %v10340_v23 = vpop.eup %10339  ;;  %v18655_v52 = vld [vmem:[#allocation299_spill] sm:$0xff]  ;;  %v8435_v37 = vunpack.c.l.b16 %v16406_v1 }
 0x8c1   : > { %v8864_v44 = vrot.slane %v9387_v10, 7  ;;  %v16410_v6 = vpack.c.bf16 %v10340_v23, %v10334_v50  ;;  %v7232_v10 = vrot.slane %v18654_v38, %v18603_v54  ;;  %v7679_v11 = vrot.slane %v18655_v52, %v13599_v29  ;;  %v18660_v50 = vld [vmem:[#allocation327_spill] sm:$0xff]  ;;  %v18661_v23 = vld [vmem:[#allocation340_spill] sm:$0xff] }
 0x8c2   : > { %v16388_v3 = vpop.permute.xlu0 %7602  ;;  %v7242_v60 = vrot.slane %v18660_v50, %v13611_v53  ;;  %v18663_v38 = vld [vmem:[#allocation323_spill] sm:$0xff] }
 0x8c3   : > { %v16392_v62 = vsel %vm18652_vm1, %v8864_v44, %v16188_v7  ;;  %8486 = vperm.xlu0 %9692, %v8433_v22   ;;  %v16394_v0 = vpop.permute.xlu1 %8017  ;;  %v10448_v7 = vld [vmem:[%s10954_s24 + $0x3c0] sm:$0xff]   ;;  %v18656_v44 = vld [vmem:[#allocation312_spill] sm:$0xff]  ;;  %v7233_v59 = vsel %vm18659_vm0, %v7232_v10, %v7228_v5  ;;  %v7247_v52 = vrot.slane %v18663_v38, %v13614_v14  ;;  %v18665_v50 = vld [vmem:[#allocation311_spill] sm:$0xff]  ;;  %vm18669_vm0 = vcmask 458112  }
 0x8c4   : > { %18653 = vst [vmem:[#allocation342_spill] sm:$0xff] %v16392_v62  ;;  %9501 = vmatprep.subr.bf16.mxu1 %v10448_v7  ;;  %v7670_v22 = vrot.slane %v18656_v44, %v18607_v27  ;;  %v7237_v7 = vrot.slane %v18661_v23, %v13599_v29  ;;  %v18664_v44 = vld [vmem:[#allocation338_spill] sm:$0xff]  ;;  %v7252_v62 = vrot.slane %v18665_v50, %v13629_v56  ;;  %v8436_v23 = vunpack.c.h.b16 %v16406_v1  ;;  %vm18668_vm1 = vmmov %vm18667_vm6 }
 0x8c5   : > { %v7694_v13 = vrot.slane %v18664_v44, %v13629_v56  ;;  %v18666_v38 = vld [vmem:[#allocation350_spill] sm:$0xff]  ;;  %v7704_v44 = vrot.slane %v16337_v49, %v13652_v63  ;;  %v7709_v1 = vrot.slane %v16362_v17, %v13664_v2  ;;  %v7714_v49 = vrot.slane %v16380_v47, %v13608_v31 }
 0x8c6   : > { %v16397_v21 = vpop.permute.xlu0 %7166  ;;  %v7719_v17 = vrot.slane %v16388_v3, %v13670_v45  ;;  %v7282_v3 = vrot.slane %v16384_v15, %v13635_v42  ;;  %v18674_v15 = vld [vmem:[#allocation256_spill] sm:$0xff] }
 0x8c7   : > { %8050 = vperm.xlu0 %9692, %v7993_v24   ;;  %v16399_v57 = vpop.permute.xlu1 %8504 }
 0x8ca   : > { %v16401_v32 = vpop.permute.xlu0 %7605 }
 0x8cb   : > { %8489 = vperm.xlu0 %9692, %v8434_v18   ;;  %v16404_v43 = vpop.permute.xlu1 %8020  ;;  %v7995_v18 = vunpack.c.l.b16 %v16410_v6  ;;  %v7724_v47 = vrot.slane %v16401_v32, %v13635_v42 }
 0x8ce   : > { %v16414_v41 = vpop.permute.xlu0 %7169 }
 0x8cf   : > { %8053 = vperm.xlu0 %9692, %v7994_v16   ;;  %v16424_v24 = vpop.permute.xlu1 %8456  ;;  %v7675_v16 = vsel %vm18662_vm5, %v7674_v55, %v7670_v22  ;;  %v7238_v55 = vsel %vm3059_vm2, %v7237_v7, %v7233_v59  ;;  %v7267_v59 = vrot.slane %v16320_v36, %v13664_v2  ;;  %vm18670_vm5 = vmmov %vm18669_vm0  ;;  %v7277_v36 = vrot.slane %v16372_v35, %v13670_v45 }
 0x8d0   : > { %18658 = vst [vmem:[#allocation301_spill] sm:$0xff] %v16424_v24  ;;  %v7680_v10 = vsel %vm3059_vm2, %v7679_v11, %v7675_v16  ;;  %v7257_v24 = vrot.slane %v18666_v38, %v13641_v30  ;;  %v7243_v16 = vsel %vm3066_vm3, %v7242_v60, %v7238_v55  ;;  %v7287_v35 = vrot.slane %v16397_v21, %v18381_v48 }
 0x8d1   : > { %v7685_v22 = vsel %vm3066_vm3, %v7684_v40, %v7680_v10  ;;  %v7248_v40 = vsel %vm3073_vm4, %v7247_v52, %v7243_v16  ;;  %v7292_v38 = vrot.slane %v16414_v41, %v18393_v4  ;;  %v7996_v41 = vunpack.c.h.b16 %v16410_v6 }
 0x8d2   : > { %v7609_v5 = vpop.permute.xlu0 %7608  ;;  %v7690_v50 = vsel %vm3073_vm4, %v7689_v58, %v7685_v22  ;;  %v7253_v60 = vsel %vm18668_vm1, %v7252_v62, %v7248_v40 }
 0x8d3   : > { %8492 = vperm.xlu0 %9692, %v8435_v37   ;;  %v16452_v11 = vpop.permute.xlu1 %8510  ;;  %v7695_v37 = vsel %vm18667_vm6, %v7694_v13, %v7690_v50  ;;  %v7258_v52 = vsel %vm18670_vm5, %v7257_v24, %v7253_v60  ;;  %vm18671_vm6 = vcmask 523712  }
 0x8d4   : > { %v7700_v58 = vsel %vm18669_vm0, %v7699_v33, %v7695_v37  ;;  %vm18672_vm1 = vmmov %vm18671_vm6  ;;  %vm18673_vm0 = vcmask 720512  }
 0x8d5   : > { %v7705_v13 = vsel %vm18671_vm6, %v7704_v44, %v7700_v58  ;;  %v7263_v10 = vsel %vm18672_vm1, %v7262_v51, %v7258_v52  ;;  %vm18677_vm5 = vmmov %vm18673_vm0  ;;  %vm18678_vm6 = vcmask 130112  }
 0x8d6   : > { %v7173_v7 = vpop.permute.xlu0 %7172  ;;  %v7710_v46 = vsel %vm3101_vm8, %v7709_v1, %v7705_v13  ;;  %v7268_v24 = vsel %vm3101_vm8, %v7267_v59, %v7263_v10  ;;  %vm18679_vm1 = vmmov %vm18678_vm6 }
 0x8d7   : > { %8056 = vperm.xlu0 %9692, %v7995_v18   ;;  %v16478_v62 = vpop.permute.xlu1 %8074  ;;  %v7729_v18 = vrot.slane %v7609_v5, %v18381_v48  ;;  %v7715_v33 = vsel %vm3108_vm9, %v7714_v49, %v7710_v46  ;;  %v7273_v32 = vsel %vm3108_vm9, %v7272_v34, %v7268_v24  ;;  %v18675_v5 = vld [vmem:[#allocation288_spill] sm:$0xff]  ;;  %v7297_v21 = vrot.slane %v7173_v7, %v18391_v12 }
 0x8d8   : > { %v7720_v22 = vsel %vm18673_vm0, %v7719_v17, %v7715_v33  ;;  %v18676_v16 = vsub.f32 %v18674_v15, %v18675_v5  ;;  %v7278_v51 = vsel %vm18677_vm5, %v7277_v36, %v7273_v32  ;;  %v7813_v7 = vrot.slane %v16346_v39, %v18393_v4  ;;  %v10453_v15 = vld [vmem:[%s10954_s24 + $0x350] sm:$0xff]   ;;  %vm18680_vm0 = vmmov %vm18679_vm1 }
 0x8d9   : > { %v7725_v1 = vsel %vm3122_vm11, %v7724_v47, %v7720_v22  ;;  %v7283_v37 = vsel %vm3122_vm11, %v7282_v3, %v7278_v51  ;;  %v7739_v34 = vrot.slane %v16378_v8, %v18391_v12  ;;  %v8454_v8 = vunpack.c.h.b16 %v16356_v20  ;;  %v10449_v47 = vld [vmem:[%s10954_s24 + $0x300] sm:$0xff]   ;;  %v10455_v51 = vld [vmem:[%s10954_s24 + $0x310] sm:$0xff]  }
 0x8da   : > { %v7612_v55 = vpop.permute.xlu0 %7611  ;;  %v4371_v50 = vmul.f32 1.442695, %v18676_v16  ;;  %v7730_v59 = vsel %vm3129_vm12, %v7729_v18, %v7725_v1  ;;  %v7288_v49 = vsel %vm3129_vm12, %v7287_v35, %v7283_v37  ;;  %v7744_v46 = vrot.slane %v16382_v61, %v18586_v25  ;;  %v10450_v18 = vld [vmem:[%s10954_s24 + $0x348] sm:$0xff]   ;;  %v8888_v22 = vld [vmem:[#allocation2] sm:$0xff] }
 0x8db   : > { %v7734_v44 = vrot.slane %v7612_v55, %v18393_v4  ;;  %8495 = vperm.xlu0 %9692, %v8436_v23   ;;  %v16500_v40 = vpop.permute.xlu1 %8513  ;;  %v7808_v23 = vrot.slane %v16317_v9, %v18381_v48  ;;  %v7293_v17 = vsel %vm3136_vm13, %v7292_v38, %v7288_v49  ;;  %v7818_v9 = vrot.slane %v16366_v28, %v18391_v12  ;;  %v10451_v55 = vld [vmem:[%s10954_s24 + $0x308] sm:$0xff]   ;;  %v10458_v49 = vld [vmem:[%s10954_s24 + $0x3d0] sm:$0xff]  }
 0x8dc   : > { %10341 = vpow2.f32 %v4371_v50  ;;  %v7298_v52 = vsel %vm3143_vm14, %v7297_v21, %v7293_v17  ;;  %v10454_v16 = vld [vmem:[%s10954_s24 + $0x3c8] sm:$0xff]   ;;  %vm18681_vm5 = vcmask 392512  }
 0x8dd   : > { %v7735_v60 = vsel %vm3136_vm13, %v7734_v44, %v7730_v59  ;;  %v7809_v10 = vsel %vm3129_vm12, %v7808_v23, %v16304_v19  ;;  %v10452_v44 = vld [vmem:[%s10954_s24 + $0x380] sm:$0xff]   ;;  %v10456_v37 = vld [vmem:[%s10954_s24 + $0x388] sm:$0xff]   ;;  %v10457_v59 = vld [vmem:[%s10954_s24 + $0x358] sm:$0xff]  }
 0x8de   : > { %v7176_v58 = vpop.permute.xlu0 %7175  ;;  %v7740_v36 = vsel %vm3143_vm14, %v7739_v34, %v7735_v60  ;;  %v7814_v24 = vsel %vm3136_vm13, %v7813_v7, %v7809_v10  ;;  %v8121_v60 = vrot.slane %v16404_v43, %v13599_v29  ;;  %v10459_v34 = vld [vmem:[%s10954_s24 + $0x318] sm:$0xff]   ;;  %v10463_v43 = vld [vmem:[%s10954_s24 + $0x320] sm:$0xff]   ;;  %v8633_v10 = vrot.slane %v16399_v57, %v18607_v27 }
 0x8df   : > { %v7302_v6 = vrot.slane %v7176_v58, %v18586_v25  ;;  %8059 = vperm.xlu0 %9692, %v7996_v41   ;;  %v16518_v13 = vpop.permute.xlu1 %8077  ;;  %v7819_v20 = vsel %vm3143_vm14, %v7818_v9, %v7814_v24  ;;  %v7745_v19 = vsel %vm3150_vm15, %v7744_v46, %v7740_v36  ;;  %v8116_v41 = vrot.slane %v16394_v0, %v18603_v54  ;;  %v10461_v9 = vld [vmem:[%s10954_s24 + $0x360] sm:$0xff]  }
 0x8e0   : > { %v7825_v5 = vpack.c.b16 %v7745_v19, %v7745_v19  ;;  %v8642_v24 = vrot.slane %v16452_v11, %v13599_v29  ;;  %v8647_v57 = vrot.slane %v16500_v40, %v13611_v53  ;;  %v10469_v11 = vld [vmem:[%s10954_s24 + $0x370] sm:$0xff]  }
 0x8e1   : > { %v7303_v39 = vsel %vm3150_vm15, %v7302_v6, %v7298_v52  ;;  %v10460_v6 = vld [vmem:[%s10954_s24 + $0x390] sm:$0xff]   ;;  %v10462_v52 = vld [vmem:[%s10954_s24 + $0x3d8] sm:$0xff]  }
 0x8e2   : > { %v7383_v3 = vpack.c.b16 %v7303_v39, %v7303_v39  ;;  %v7666_v28 = vpop.permute.xlu0 %7665 }
 0x8e3   : > { %v7823_v33 = vrot.slane %v7666_v28, %v18586_v25  ;;  %8549 = vperm.xlu0 %9692, %v8454_v8   ;;  %v16532_v35 = vpop.permute.xlu1 %8516  ;;  %v10464_v8 = vld [vmem:[%s10954_s24 + $0x398] sm:$0xff]   ;;  %v10466_v28 = vld [vmem:[%s10954_s24 + $0x3e0] sm:$0xff]  }
 0x8e4   : > { %7516 = vmatmul.mubr.bf16.vlgmr.msra.gmra.mrb[8].mxu0 %v7383_v3 }
 0x8e5   : > { %v7824_v61 = vsel %vm3150_vm15, %v7823_v33, %v7819_v20  ;;  %9480 = vmatpush3.bf16.msra.mxu0 %v10449_v47  ;;  %v10465_v47 = vld [vmem:[%s10954_s24 + $0x368] sm:$0xff]  }
 0x8e6   : > { %v16537_v32 = vpop.permute.xlu0 %8062  ;;  %v7826_v38 = vpack.c.b16 %v7824_v61, %v7824_v61  ;;  %9481 = vmatprep.subr.bf16.mxu0 %v10450_v18  ;;  %v10342_v1 = vpop.eup %10341  ;;  %v8195_v18 = vrot.slane %v16386_v26, %v18603_v54  ;;  %v10467_v61 = vld [vmem:[%s10954_s24 + $0x328] sm:$0xff]  }
 0x8e7   : > { %8891 = vperm.xlu0 %9692, %v8888_v22   ;;  %v16542_v50 = vpop.permute.xlu1 %8080  ;;  %v8191_v46 = vrot.slane %v16537_v32, %v18607_v27  ;;  %v8652_v32 = vrot.slane %v16532_v35, %v13614_v14  ;;  %v8210_v35 = vrot.slane %v16478_v62, %v13614_v14 }
 0x8e8   : > { %7957 = vmatprep.mubr.bf16.mxu1 %v7826_v38  ;;  %v10470_v38 = vld [vmem:[%s10954_s24 + $0x3e8] sm:$0xff]  }
 0x8e9   : > { %7958 = vmatmul.mubr.bf16.vlgmr.msra.gmra.mrb[8].mxu1 %v7825_v5  ;;  %9482 = vmatpush3.bf16.msra.mxu0 %v10451_v55  ;;  %v10468_v55 = vld [vmem:[%s10954_s24 + $0x3a0] sm:$0xff]  }
 0x8ea   : > { %v8015_v21 = vpop.permute.xlu0 %8014  ;;  %9502 = vmatpush3.bf16.msra.mxu1 %v10452_v44  ;;  %9483 = vmatprep.subr.bf16.mxu0 %v10453_v15  ;;  %v8196_v44 = vsel %vm18680_vm0, %v8195_v18, %v8191_v46 }
 0x8eb   : > { %v8112_v23 = vrot.slane %v8015_v21, %v18607_v27  ;;  %8852 = vperm.xlu0 %9692, %v10342_v1   ;;  %9503 = vmatprep.subr.bf16.mxu1 %v10454_v16  ;;  %v8520_v58 = vpop.permute.xlu1 %8519 }
 0x8ec   : > { %v8657_v40 = vrot.slane %v8520_v58, %v13629_v56  ;;  %v10472_v58 = vld [vmem:[%s10954_s24 + $0x3a8] sm:$0xff]  }
 0x8ed   : > { %v8117_v7 = vsel %vm18678_vm6, %v8116_v41, %v8112_v23  ;;  %9484 = vmatpush3.bf16.msra.mxu0 %v10455_v51  ;;  %v10471_v23 = vld [vmem:[%s10954_s24 + $0x330] sm:$0xff]   ;;  %vm18682_vm6 = vcmask 458112  }
 0x8ee   : > { %v8069_v17 = vpop.permute.xlu0 %8068  ;;  %v16556_v0 = vsel %vm3059_vm2, %v8121_v60, %v8117_v7  ;;  %9504 = vmatpush3.bf16.msra.mxu1 %v10456_v37  ;;  %9485 = vmatprep.subr.bf16.mxu0 %v10457_v59  ;;  %v8215_v37 = vrot.slane %v16518_v13, %v13629_v56  ;;  %v10473_v7 = vld [vmem:[%s10954_s24 + $0x378] sm:$0xff]  }
 0x8ef   : > { %9505 = vmatprep.subr.bf16.mxu1 %v10458_v49  ;;  %v16561_v36 = vpop.permute.xlu1 %8083  ;;  %v8200_v33 = vrot.slane %v8069_v17, %v13599_v29 }
 0x8f1   : > { %9486 = vmatpush3.bf16.msra.mxu0 %v10459_v34  ;;  %v8201_v16 = vsel %vm3059_vm2, %v8200_v33, %v8196_v44  ;;  %v18683_v34 = vld [vmem:[#allocation301_spill] sm:$0xff] }
 0x8f2   : > { %v8508_v39 = vpop.permute.xlu0 %8507  ;;  %9506 = vmatpush3.bf16.msra.mxu1 %v10460_v6  ;;  %9487 = vmatprep.subr.bf16.mxu0 %v10461_v9  ;;  %v8554_v13 = vrot.slane %v18683_v34, %v18607_v27  ;;  %v10474_v9 = vld [vmem:[%s10954_s24 + $0x3f0] sm:$0xff]  }
 0x8f3   : > { %v8637_v3 = vrot.slane %v8508_v39, %v18603_v54  ;;  %9507 = vmatprep.subr.bf16.mxu1 %v10462_v52  ;;  %v8523_v20 = vpop.permute.xlu1 %8522  ;;  %v10476_v27 = vld [vmem:[%s10954_s24 + $0x3b0] sm:$0xff]  }
 0x8f4   : > { %v8662_v51 = vrot.slane %v8523_v20, %v13641_v30 }
 0x8f5   : > { %v8638_v19 = vsel %vm18679_vm1, %v8637_v3, %v8633_v10  ;;  %9488 = vmatpush3.bf16.msra.mxu0 %v10463_v43  ;;  %vm18684_vm1 = vmmov %vm18681_vm5 }
 0x8f6   : > { %v8643_v22 = vsel %vm3059_vm2, %v8642_v24, %v8638_v19  ;;  %v8072_v26 = vpop.permute.xlu0 %8071  ;;  %9508 = vmatpush3.bf16.msra.mxu1 %v10464_v8  ;;  %9489 = vmatprep.subr.bf16.mxu0 %v10465_v47  ;;  %v10475_v47 = vld [vmem:[%s10954_s24 + $0x338] sm:$0xff]  }
 0x8f7   : > { %v8648_v15 = vsel %vm3066_vm3, %v8647_v57, %v8643_v22  ;;  %v8205_v5 = vrot.slane %v8072_v26, %v13611_v53  ;;  %9509 = vmatprep.subr.bf16.mxu1 %v10466_v28  ;;  %v16595_v1 = vpop.permute.xlu1 %8086  ;;  %v10477_v24 = vld [vmem:[%s10954_s24 + $0x3f8] sm:$0xff]  }
 0x8f8   : > { %v8653_v21 = vsel %vm3073_vm4, %v8652_v32, %v8648_v15  ;;  %v18686_v32 = vld [vmem:[#allocation342_spill] sm:$0xff] }
 0x8f9   : > { %v8206_v59 = vsel %vm3066_vm3, %v8205_v5, %v8201_v16  ;;  %v8658_v41 = vsel %vm18681_vm5, %v8657_v40, %v8653_v21  ;;  %9490 = vmatpush3.bf16.msra.mxu0 %v10467_v61  ;;  %vm18685_vm5 = vcmask 523712  }
 0x8fa   : > { %v8211_v62 = vsel %vm3073_vm4, %v8210_v35, %v8206_v59  ;;  %v8663_v49 = vsel %vm18682_vm6, %v8662_v51, %v8658_v41  ;;  %v8460_v60 = vpop.permute.xlu0 %8459  ;;  %9510 = vmatpush3.bf16.msra.mxu1 %v10468_v55  ;;  %9491 = vmatprep.subr.bf16.mxu0 %v10469_v11  ;;  %v10478_v55 = vld [vmem:[%s10954_s24 + $0x3b8] sm:$0xff]   ;;  %vm18687_vm6 = vcmask 1042434   ;;  %s16770_s24 = scalar_lea.hbm %s16856_s8, %s9346_s23 }
 0x8fb   : > { %v16610_v17 = vsel %vm18684_vm1, %v8215_v37, %v8211_v62  ;;  %v8558_v6 = vrot.slane %v8460_v60, %v18603_v54  ;;  %9511 = vmatprep.subr.bf16.mxu1 %v10470_v38  ;;  %v8526_v52 = vpop.permute.xlu1 %8525 }
 0x8fc   : > { %v8667_v43 = vrot.slane %v8526_v52, %v13652_v63 }
 0x8fd   : > { %v8559_v39 = vsel %vm18680_vm0, %v8558_v6, %v8554_v13  ;;  %v9407_v8 = vpop.f32.mrb[4].mxu0  ;;  %9492 = vmatpush3.bf16.msra.mxu0 %v10471_v23 }
 0x8fe   : > { %v9408_v10 = vpop.f32.mrb[5].mxu0  ;;  %v8024_v46 = vpop.permute.xlu0 %8023  ;;  %9512 = vmatpush3.bf16.msra.mxu1 %v10472_v58  ;;  %9493 = vmatprep.subr.bf16.mxu0 %v10473_v7  ;;  %v8668_v3 = vsel %vm18685_vm5, %v8667_v43, %v8663_v49 }
 0x8ff   : > { %v9409_v54 = vadd.f32 %v9408_v10, %v9407_v8  ;;  %v8126_v28 = vrot.slane %v8024_v46, %v13611_v53  ;;  %v9410_v18 = vpop.f32.mrb[6].mxu0  ;;  %9513 = vmatprep.subr.bf16.mxu1 %v10474_v9  ;;  %v8090_v33 = vpop.permute.xlu1 %8089  ;;  %v8220_v46 = vrot.slane %v16542_v50, %v13641_v30 }
 0x900   : > { %v9411_v20 = vpop.f32.mrb[7].mxu0 }
 0x901   : > { %v8866_v57 = vrot.slane %v9409_v54, 6  ;;  %v8127_v19 = vsel %vm3066_vm3, %v8126_v28, %v16556_v0  ;;  %9494 = vmatpush3.bf16.msra.mxu0 %v10475_v47  ;;  %v8225_v28 = vrot.slane %v16561_v36, %v13652_v63  ;;  %v8235_v20 = vrot.slane %v8090_v33, %v13608_v31 }
 0x902   : > { %v8463_v61 = vpop.permute.xlu0 %8462  ;;  %9514 = vmatpush3.bf16.msra.mxu1 %v10476_v27 }
 0x903   : > { %v16626_v22 = vsel %vm18687_vm6, %v8866_v57, %v18686_v32  ;;  %v8563_v26 = vrot.slane %v8463_v61, %v13599_v29  ;;  %9515 = vmatprep.subr.bf16.mxu1 %v10477_v24  ;;  %v8529_v11 = vpop.permute.xlu1 %8528  ;;  %v8230_v57 = vrot.slane %v16595_v1, %v13664_v2 }
 0x904   : > { %v8672_v38 = vrot.slane %v8529_v11, %v13664_v2 }
 0x905   : > { %v8564_v44 = vsel %vm3059_vm2, %v8563_v26, %v8559_v39  ;;  %vm18688_vm2 = vmmov %vm18684_vm1 }
 0x906   : > { %v8027_v40 = vpop.permute.xlu0 %8026  ;;  %9516 = vmatpush3.bf16.msra.mxu1 %v10478_v55  ;;  %v8673_v0 = vsel %vm3101_vm8, %v8672_v38, %v8668_v3  ;;  %vm18691_vm1 = vmmov %vm18685_vm5  ;;  %vm18693_vm5 = vcmask 1043459  }
 0x907   : > { %v8131_v15 = vrot.slane %v8027_v40, %v13614_v14  ;;  %v8093_v5 = vpop.permute.xlu1 %8092  ;;  %vm18694_vm6 = vmmov %vm18688_vm2 }
 0x908   : > { %v8240_v50 = vrot.slane %v8093_v5, %v13670_v45 }
 0x909   : > { %v8132_v35 = vsel %vm3073_vm4, %v8131_v15, %v8127_v19 }
 0x90a   : > { %v8466_v16 = vpop.permute.xlu0 %8465 }
 0x90b   : > { %v8568_v51 = vrot.slane %v8466_v16, %v13611_v53  ;;  %v8532_v21 = vpop.permute.xlu1 %8531 }
 0x90c   : > { %v8677_v29 = vrot.slane %v8532_v21, %v13608_v31 }
 0x90d   : > { %v8569_v37 = vsel %vm3066_vm3, %v8568_v51, %v8564_v44  ;;  %vm18689_vm3 = vcmask 720512  }
 0x90e   : > { %v8030_v59 = vpop.permute.xlu0 %8029  ;;  %v8678_v41 = vsel %vm3108_vm9, %v8677_v29, %v8673_v0  ;;  %vm18692_vm0 = vmmov %vm18689_vm3 }
 0x90f   : > { %v8136_v23 = vrot.slane %v8030_v59, %v13629_v56  ;;  %v8096_v62 = vpop.permute.xlu1 %8095 }
 0x910   : > { %v8245_v61 = vrot.slane %v8096_v62, %v13635_v42 }
 0x911   : > { %v16640_v49 = vsel %vm18688_vm2, %v8136_v23, %v8132_v35 }
 0x912   : > { %v8469_v60 = vpop.permute.xlu0 %8468 }
 0x913   : > { %v8573_v58 = vrot.slane %v8469_v60, %v13614_v14  ;;  %v8535_v7 = vpop.permute.xlu1 %8534 }
 0x914   : > { %v8682_v53 = vrot.slane %v8535_v7, %v13670_v45 }
 0x915   : > { %v16645_v34 = vsel %vm3073_vm4, %v8573_v58, %v8569_v37  ;;  %vm18690_vm4 = vcmask 458112  }
 0x916   : > { %v16647_v13 = vpop.permute.xlu0 %8032  ;;  %v8683_v6 = vsel %vm18689_vm3, %v8682_v53, %v8678_v41  ;;  %v8221_v3 = vsel %vm18690_vm4, %v8220_v46, %v16610_v17  ;;  %vm18695_vm2 = vmmov %vm18690_vm4 }
 0x917   : > { %v8099_v9 = vpop.permute.xlu1 %8098  ;;  %v8226_v24 = vsel %vm18691_vm1, %v8225_v28, %v8221_v3  ;;  %v8141_v28 = vrot.slane %v16647_v13, %v13641_v30  ;;  %vm18696_vm3 = vmmov %vm18695_vm2 }
 0x918   : > { %v8231_v17 = vsel %vm3101_vm8, %v8230_v57, %v8226_v24  ;;  %v8250_v55 = vrot.slane %v8099_v9, %v18381_v48  ;;  %vm18697_vm4 = vmmov %vm18691_vm1 }
 0x919   : > { %v8236_v36 = vsel %vm3108_vm9, %v8235_v20, %v8231_v17 }
 0x91a   : > { %v8472_v52 = vpop.permute.xlu0 %8471  ;;  %v8241_v33 = vsel %vm18692_vm0, %v8240_v50, %v8236_v36 }
 0x91b   : > { %v8538_v43 = vpop.permute.xlu1 %8537  ;;  %v8246_v38 = vsel %vm3122_vm11, %v8245_v61, %v8241_v33 }
 0x91c   : > { %v8687_v39 = vrot.slane %v8538_v43, %v13635_v42  ;;  %v8251_v44 = vsel %vm3129_vm12, %v8250_v55, %v8246_v38 }
 0x91e   : > { %v16651_v8 = vpop.permute.xlu0 %8035  ;;  %v16654_v47 = vsel %vm3122_vm11, %v8687_v39, %v8683_v6  ;;  %v8578_v39 = vrot.slane %v8472_v52, %v13629_v56 }
 0x91f   : > { %v8102_v14 = vpop.permute.xlu1 %8101  ;;  %v8146_v24 = vrot.slane %v16651_v8, %v13652_v63 }
 0x920   : > { %v8255_v26 = vrot.slane %v8102_v14, %v18393_v4  ;;  %v8579_v20 = vsel %vm18694_vm6, %v8578_v39, %v16645_v34 }
 0x922   : > { %v8475_v10 = vpop.permute.xlu0 %8474  ;;  %v8256_v0 = vsel %vm3136_vm13, %v8255_v26, %v8251_v44 }
 0x923   : > { %v16658_v27 = vpop.permute.xlu1 %8540  ;;  %v8583_v46 = vrot.slane %v8475_v10, %v13641_v30 }
 0x925   : > { %v8584_v57 = vsel %vm18695_vm2, %v8583_v46, %v8579_v20  ;;  %v8915_v20 = vld [vmem:[#allocation11] sm:$0xff] }
 0x926   : > { %v16662_v54 = vpop.permute.xlu0 %8038 }
 0x927   : > { %v8105_v18 = vpop.permute.xlu1 %8104  ;;  %v8151_v56 = vrot.slane %v16662_v54, %v13664_v2 }
 0x928   : > { %v8260_v11 = vrot.slane %v8105_v18, %v18391_v12 }
 0x92a   : > { %v8478_v19 = vpop.permute.xlu0 %8477  ;;  %v8261_v5 = vsel %vm3143_vm14, %v8260_v11, %v8256_v0  ;;  %v8692_v0 = vrot.slane %v16658_v27, %v18381_v48 }
 0x92b   : > { %v16674_v32 = vpop.permute.xlu1 %8543  ;;  %v8588_v18 = vrot.slane %v8478_v19, %v13652_v63  ;;  %v8142_v63 = vsel %vm18696_vm3, %v8141_v28, %v16640_v49 }
 0x92d   : > { %v8589_v8 = vsel %vm18697_vm4, %v8588_v18, %v8584_v57 }
 0x92e   : > { %v8042_v1 = vpop.permute.xlu0 %8041 }
 0x92f   : > { %v8108_v40 = vpop.permute.xlu1 %8107  ;;  %v8156_v30 = vrot.slane %v8042_v1, %v13608_v31 }
 0x930   : > { %v8265_v15 = vrot.slane %v8108_v40, %v18586_v25 }
 0x932   : > { %v8481_v35 = vpop.permute.xlu0 %8480  ;;  %v8266_v16 = vsel %vm3150_vm15, %v8265_v15, %v8261_v5 }
 0x933   : > { %v8268_v51 = vpack.c.b16 %v8266_v16, %v8266_v16  ;;  %v8547_v3 = vpop.permute.xlu1 %8546  ;;  %v8697_v16 = vrot.slane %v16674_v32, %v18393_v4 }
 0x935   : > { %8399 = vmatprep.mubr.bf16.mxu0 %v8268_v51 }
 0x936   : > { %v8045_v21 = vpop.permute.xlu0 %8044 }
 0x937   : > { %v8161_v50 = vrot.slane %v8045_v21, %v13670_v45  ;;  %v8499_v19 = vpop.permute.xlu1 %8498 }
 0x938   : > { %v8623_v51 = vrot.slane %v8499_v19, %v18391_v12 }
 0x93a   : > { %v8484_v29 = vpop.permute.xlu0 %8483 }
 0x93b   : > { %v8598_v52 = vrot.slane %v8484_v29, %v13608_v31  ;;  %v8502_v21 = vpop.permute.xlu1 %8501 }
 0x93c   : > { %v8628_v32 = vrot.slane %v8502_v21, %v18586_v25 }
 0x93d   : > { %v9429_v37 = vpop.f32.mrb[4].mxu1 }
 0x93e   : > { %v9430_v59 = vpop.f32.mrb[5].mxu1  ;;  %v8048_v41 = vpop.permute.xlu0 %8047 }
 0x93f   : > { %v9431_v23 = vadd.f32 %v9430_v59, %v9429_v37  ;;  %v9432_v62 = vpop.f32.mrb[6].mxu1  ;;  %v8166_v61 = vrot.slane %v8048_v41, %v13635_v42  ;;  %v8702_v59 = vrot.slane %v8547_v3, %v18391_v12 }
 0x940   : > { %v9433_v60 = vpop.f32.mrb[7].mxu1 }
 0x941   : > { %v8868_v58 = vrot.slane %v9431_v23, 5 }
 0x942   : > { %v8487_v7 = vpop.permute.xlu0 %8486 }
 0x943   : > { %v16688_v53 = vsel %vm18693_vm5, %v8868_v58, %v16626_v22  ;;  %v8593_v22 = vrot.slane %v8481_v35, %v13664_v2  ;;  %v8603_v13 = vrot.slane %v8487_v7, %v13670_v45  ;;  %v8147_v2 = vsel %vm18691_vm1, %v8146_v24, %v8142_v63  ;;  %vm18698_vm5 = vmmov %vm18692_vm0  ;;  %v8919_v63 = vld [vmem:[#allocation11 + $0x20] sm:$0xff] }
 0x944   : > { %v8152_v17 = vsel %vm3101_vm8, %v8151_v56, %v8147_v2  ;;  %v8916_v56 = vld [vmem:[#allocation11 + $0x8] sm:$0xff]  ;;  %v8922_v2 = vld [vmem:[#allocation11 + $0x38] sm:$0xff] }
 0x945   : > { %v8594_v54 = vsel %vm3101_vm8, %v8593_v22, %v8589_v8  ;;  %v8157_v45 = vsel %vm3108_vm9, %v8156_v30, %v8152_v17  ;;  %v9576_v57 = vpack.c.bf16 %v8916_v56, %v8915_v20  ;;  %v8918_v30 = vld [vmem:[#allocation11 + $0x18] sm:$0xff]  ;;  %v8920_v8 = vld [vmem:[#allocation11 + $0x28] sm:$0xff]  ;;  %vm18699_vm8 = vcmask 1046534  }
 0x946   : > { %v8051_v6 = vpop.permute.xlu0 %8050  ;;  %v8599_v55 = vsel %vm3108_vm9, %v8598_v52, %v8594_v54  ;;  %v8162_v1 = vsel %vm18698_vm5, %v8161_v50, %v8157_v45  ;;  %v8917_v52 = vld [vmem:[#allocation11 + $0x10] sm:$0xff]  ;;  %v9582_v50 = vpack.c.bf16 %v8920_v8, %v8919_v63  ;;  %vm18700_vm9 = vcmask 1047559  }
 0x947   : > { %v8171_v49 = vrot.slane %v8051_v6, %v18381_v48  ;;  %v8604_v26 = vsel %vm18692_vm0, %v8603_v13, %v8599_v55  ;;  %v8167_v44 = vsel %vm3122_vm11, %v8166_v61, %v8162_v1  ;;  %v9579_v13 = vpack.c.bf16 %v8918_v30, %v8917_v52  ;;  %v8925_v1 = vld [vmem:[#allocation11 + $0x50] sm:$0xff] }
 0x949   : > { %v8172_v15 = vsel %vm3129_vm12, %v8171_v49, %v8167_v44 }
 0x94a   : > { %v8490_v9 = vpop.permute.xlu0 %8489 }
 0x94b   : > { %v8608_v34 = vrot.slane %v8490_v9, %v13635_v42  ;;  %v8886_v9 = vld [vmem:[%s14355_s25] sm:$0xff] }
 0x94d   : > { %v8609_v42 = vsel %vm3122_vm11, %v8608_v34, %v8604_v26  ;;  %v8921_v34 = vld [vmem:[#allocation11 + $0x30] sm:$0xff] }
 0x94e   : > { %v8054_v43 = vpop.permute.xlu0 %8053  ;;  %v9585_v54 = vpack.c.bf16 %v8922_v2, %v8921_v34 }
 0x94f   : > { %v8176_v33 = vrot.slane %v8054_v43, %v18393_v4  ;;  %v8887_v43 = vld [vmem:[%s14355_s25 + $0x8] sm:$0xff] }
 0x951   : > { %v8177_v29 = vsel %vm3136_vm13, %v8176_v33, %v8172_v15  ;;  %v8923_v33 = vld [vmem:[#allocation11 + $0x40] sm:$0xff] }
 0x952   : > { %v8493_v14 = vpop.permute.xlu0 %8492 }
 0x953   : > { %v8613_v31 = vrot.slane %v8493_v14, %v18381_v48 }
 0x955   : > { %v8614_v40 = vsel %vm3129_vm12, %v8613_v31, %v8609_v42 }
 0x956   : > { %v8057_v10 = vpop.permute.xlu0 %8056 }
 0x957   : > { %v8181_v38 = vrot.slane %v8057_v10, %v18391_v12  ;;  %v10700_v10 = vmov 0.0|0.0  }
 0x958   : > { %9575 = vmatprep.subr.bf16.mxu0 %v10700_v10 }
 0x959   : > { %v8182_v48 = vsel %vm3143_vm14, %v8181_v38, %v8177_v29  ;;  %v8929_v29 = vld [vmem:[#allocation11 + $0x70] sm:$0xff] }
 0x95a   : > { %v8496_v36 = vpop.permute.xlu0 %8495 }
 0x95b   : > { %v8618_v11 = vrot.slane %v8496_v36, %v18393_v4  ;;  %v8693_v4 = vsel %vm3129_vm12, %v8692_v0, %v16654_v47 }
 0x95c   : > { %v8698_v60 = vsel %vm3136_vm13, %v8697_v16, %v8693_v4  ;;  %v8927_v16 = vld [vmem:[#allocation11 + $0x60] sm:$0xff] }
 0x95d   : > { %v8619_v5 = vsel %vm3136_vm13, %v8618_v11, %v8614_v40  ;;  %v8703_v7 = vsel %vm3143_vm14, %v8702_v59, %v8698_v60  ;;  %v8924_v11 = vld [vmem:[#allocation11 + $0x48] sm:$0xff]  ;;  %v8926_v40 = vld [vmem:[#allocation11 + $0x58] sm:$0xff] }
 0x95e   : > { %v8060_v35 = vpop.permute.xlu0 %8059  ;;  %v8624_v27 = vsel %vm3143_vm14, %v8623_v51, %v8619_v5  ;;  %v9588_v44 = vpack.c.bf16 %v8924_v11, %v8923_v33  ;;  %v9591_v5 = vpack.c.bf16 %v8926_v40, %v8925_v1  ;;  %v8928_v51 = vld [vmem:[#allocation11 + $0x68] sm:$0xff] }
 0x95f   : > { %v8186_v37 = vrot.slane %v8060_v35, %v18586_v25  ;;  %v8629_v12 = vsel %vm3150_vm15, %v8628_v32, %v8624_v27  ;;  %v9594_v21 = vpack.c.bf16 %v8928_v51, %v8927_v16 }
 0x960   : > { %v8709_v3 = vpack.c.b16 %v8629_v12, %v8629_v12 }
 0x961   : > { %v8187_v41 = vsel %vm3150_vm15, %v8186_v37, %v8182_v48  ;;  %v8930_v37 = vld [vmem:[#allocation11 + $0x78] sm:$0xff] }
 0x962   : > { %v8267_v23 = vpack.c.b16 %v8187_v41, %v8187_v41  ;;  %v8550_v62 = vpop.permute.xlu0 %8549  ;;  %v9597_v59 = vpack.c.bf16 %v8930_v37, %v8929_v29 }
 0x963   : > { %v8707_v58 = vrot.slane %v8550_v62, %v18586_v25 }
 0x964   : > { %8400 = vmatmul.mubr.bf16.vlgmr.msra.gmra.mrb[12].mxu0 %v8267_v23 }
 0x965   : > { %v8708_v6 = vsel %vm3150_vm15, %v8707_v58, %v8703_v7  ;;  %9577 = vmatpush3.bf16.msra.mxu0 %v9576_v57 }
 0x966   : > { %v8892_v39 = vpop.permute.xlu0 %8891  ;;  %v8710_v14 = vpack.c.b16 %v8708_v6, %v8708_v6  ;;  %9578 = vmatprep.subr.bf16.mxu0 %v10700_v10 }
 0x967   : > { %v8894_v47 = vsub.f32 %v8886_v9, %v8892_v39  ;;  %v8895_v46 = vsub.f32 %v8887_v43, %v8892_v39 }
 0x968   : > { %8841 = vmatprep.mubr.bf16.mxu1 %v8710_v14 }
 0x969   : > { %v8896_v28 = vmul.f32 1.442695, %v8894_v47  ;;  %v8898_v18 = vmul.f32 1.442695, %v8895_v46  ;;  %8842 = vmatmul.mubr.bf16.vlgmr.msra.gmra.mrb[12].mxu1 %v8709_v3  ;;  %9580 = vmatpush3.bf16.msra.mxu0 %v9579_v13 }
 0x96a   : > { %9581 = vmatprep.subr.bf16.mxu0 %v10700_v10  ;;  %v8853_v47 = vpop.permute.xlu0 %8852 }
 0x96b   : > { %10343 = vpow2.f32 %v8896_v28 }
 0x96c   : > { %10345 = vpow2.f32 %v8898_v18 }
 0x96d   : > { %9583 = vmatpush3.bf16.msra.mxu0 %v9582_v50 }
 0x96e   : > { %9584 = vmatprep.subr.bf16.mxu0 %v10700_v10 }
 0x971   : > { %9586 = vmatpush3.bf16.msra.mxu0 %v9585_v54 }
 0x972   : > { %9587 = vmatprep.subr.bf16.mxu0 %v10700_v10 }
 0x975   : > { %v16750_v25 = vpop.eup %10343  ;;  %9589 = vmatpush3.bf16.msra.mxu0 %v9588_v44 }
 0x976   : > { %v16752_v24 = vpop.eup %10345  ;;  %9590 = vmatprep.subr.bf16.mxu0 %v10700_v10 }
 0x977   : > { %v8902_v22 = vadd.f32 %v16752_v24, %v16750_v25 }
 0x979   : > { %8903 = vadd.xlane.f32.xlu1 %v8902_v22  ;;  %9592 = vmatpush3.bf16.msra.mxu0 %v9591_v5 }
 0x97a   : > { %9593 = vmatprep.subr.bf16.mxu0 %v10700_v10 }
 0x97d   : > { %9595 = vmatpush3.bf16.msra.mxu0 %v9594_v21 }
 0x97e   : > { %9596 = vmatprep.subr.bf16.mxu0 %v10700_v10 }
 0x981   : > { %9598 = vmatpush3.bf16.msra.mxu0 %v9597_v59 }
 0x9b7   : > { %v9451_v19 = vpop.f32.mrb[8].mxu0 }
 0x9b8   : > { %v9452_v61 = vpop.f32.mrb[9].mxu0 }
 0x9b9   : > { %v9453_v31 = vadd.f32 %v9452_v61, %v9451_v19  ;;  %v9454_v17 = vpop.f32.mrb[10].mxu0 }
 0x9ba   : > { %v9455_v55 = vpop.f32.mrb[11].mxu0 }
 0x9bb   : > { %v8870_v49 = vrot.slane %v9453_v31, 4 }
 0x9bc   : > { %v9473_v36 = vpop.f32.mrb[8].mxu1 }
 0x9bd   : > { %v8871_v45 = vsel %vm4343_vm7, %v8870_v49, %v16688_v53  ;;  %v9474_v26 = vpop.f32.mrb[9].mxu1  ;;  %vm10701_vm7 = vmmov 0   ;;  %v10702_v53 = vmov 0.0  }
 0x9be   : > { %v9475_v42 = vadd.f32 %v9474_v26, %v9473_v36  ;;  %v9476_v38 = vpop.f32.mrb[10].mxu1  ;;  %9572 = vmatprep.mubr.msk.f32.mxu0 %vm10701_vm7, %v10702_v53 }
 0x9bf   : > { %v9477_v0 = vpop.f32.mrb[11].mxu1 }
 0x9c0   : > { %v8872_v15 = vrot.slane %v9475_v42, 3 }
 0x9c2   : > { %v8873_v35 = vsel %vm4345_vm10, %v8872_v15, %v8871_v45 }
 0xa06   : > { %v8904_v48 = vpop.xlane.xlu1 %8903 }
 0xa07   : > { %10347 = vrcp.f32 %v8904_v48 }
 0xa11   : > { %v10348_v27 = vpop.eup %10347 }
 0xa12   : > { %v8906_v41 = vmul.f32 %v10348_v27, %v8904_v48 }
 0xa14   : > { %v8907_v4 = vsub.f32 2.0, %v8906_v41 }
 0xa16   : > { %v8908_v32 = vmul.f32 %v10348_v27, %v8907_v4 }
 0xa18   : > { %v8909_v23 = vmul.f32 %v16750_v25, %v8908_v32  ;;  %v8910_v62 = vmul.f32 %v16752_v24, %v8908_v32  ;;  %v8855_v25 = vmul.f32 0.0, %v8853_v47 }
 0xa1a   : > { %8911 = vst [vmem:[%s14355_s25] sm:$0xff] %v8909_v23  ;;  %8912 = vst [vmem:[%s14355_s25 + $0x8] sm:$0xff] %v8910_v62 }
 0xa37   : > { %v9495_v60 = vpop.f32.mrb[12].mxu0 }
 0xa38   : > { %v9496_v58 = vpop.f32.mrb[13].mxu0 }
 0xa39   : > { %v9497_v7 = vadd.f32 %v9496_v58, %v9495_v60  ;;  %v9498_v12 = vpop.f32.mrb[14].mxu0 }
 0xa3a   : > { %v9499_v6 = vpop.f32.mrb[15].mxu0 }
 0xa3b   : > { %v8874_v9 = vrot.slane %v9497_v7, 2 }
 0xa3c   : > { %v9517_v43 = vpop.f32.mrb[12].mxu1 }
 0xa3d   : > { %v8875_v39 = vsel %vm18699_vm8, %v8874_v9, %v8873_v35  ;;  %v9518_v14 = vpop.f32.mrb[13].mxu1 }
 0xa3e   : > { %v9519_v46 = vadd.f32 %v9518_v14, %v9517_v43  ;;  %v9520_v3 = vpop.f32.mrb[14].mxu1 }
 0xa3f   : > { %v9521_v28 = vpop.f32.mrb[15].mxu1 }
 0xa40   : > { %v8876_v18 = vrot.slane %v9519_v46, 1 }
 0xa42   : > { %v8877_v24 = vsel %vm18700_vm9, %v8876_v18, %v8875_v39 }
 0xa43   : > { %v8879_v22 = vadd.f32 %v8877_v24, %v8855_v25 }
 0xa45   : > { %v8914_v20 = vmul.f32 %v8908_v32, %v8879_v22 }
 0xa47   : > { %9573 = vmatmul.mubr.f32.vlgmr.msra.gmra.mrb[16].mxu0 %v8914_v20 }
 0xa48   : > { %10580 = shalt.err (!%p10577_p8)
}
 0xa49   : > { %s10581_s22 = scalar_lea.hbm %s16770_s24, 256  ;;  %s10585_s9 = scalar_lea.hbm %s16856_s8, 512 }
 0xa4a   : > { %p10582_p11 = scmp.ne.s32.totalorder %s16770_s24, %s10581_s22  ;;  %p10586_p6 = scmp.lt.u32.totalorder %s16770_s24, %s16856_s8 }
 0xa4b   : > { %p10587_p13 = scmp.lt.u32.totalorder %s10585_s9, %s10581_s22  ;;  %p10589_p5 = scmp.lt.u32.totalorder %s10581_s22, %s16770_s24 }
 0xa4c   : > { %p10583_p12 = pnand %p10582_p11, %p10845_p10 }
 0xa4d   : > { %p10588_p0 = por %p10587_p13, %p10586_p6 }
 0xa4e   : > { %p10584_p3 = pneg %p10583_p12 }
 0xa4f   : > { %p10590_p9 = por %p10589_p5, %p10588_p0 }
 0xa51   : > { %p10591_p1 = pnand %p10590_p9, %p10584_p3 }
 0xa53   : > { %10594 = shalt.err (!%p10591_p1)
}
 0xa54   : > { %9608 = dma.vmem_to_hbm [thread:$0]  (%p10845_p10), %s9043_s0, 256, %s16770_s24, %s9015_s27   ;;  %v9336_v56 = vld [vmem:[%s16854_s6] ss:$0 sm:$0xff] }
 0xa55   : > { %s9339_s16 = sshll.u32 %s10681_s10, 7  ;;  %s396_s13 = scalar_lea.vmem [#allocation12], %s9201_s21 }
 0xa56   : > { %s9028_s14 = sshll.u32 %s396_s13, 4  ;;  %s16799_s22 = scalar_lea.hbm %s16855_s7, %s9339_s16  ;;  %s16801_s14 = int_to_ptr.vmem [resolvable:$true] %s9028_s14 }
 0xa57   : > { %s9010_s0 = scalar_lea.sflag [#allocation8], %s10942_s18  ;;  %s10595_s24 = scalar_lea.vmem %s16801_s14, 128 }
 0xa58   : > { %p10596_p2 = scmp.ne.s32.totalorder %s16801_s14, %s10595_s24  ;;  %s10704_s10 = smov [#allocation12]  }
 0xa59   : > { %s10599_s21 = sshll.u32 %s10704_s10, 4  ;;  %s10600_s21 = int_to_ptr.vmem [resolvable:$false] %s10599_s21 }
 0xa5a   : > { %p10597_p7 = pnand %p10596_p2, %p10845_p10  ;;  %s10601_s27 = scalar_lea.vmem %s10600_s21, 256 }
 0xa5b   : > { %p10602_p8 = scmp.lt.s32.totalorder %s16801_s14, %s10600_s21  ;;  %p10603_p11 = scmp.lt.s32.totalorder %s10601_s27, %s10595_s24 }
 0xa5c   : > { %p10598_p4 = pneg %p10597_p7 }
 0xa5d   : > { %p10604_p12 = por %p10603_p11, %p10602_p8 }
 0xa5f   : > { %p10605_p3 = pnand %p10604_p12, %p10598_p4 }
 0xb1a   : > { %v9004_v52 = vpop.f32.mrb[16].mxu0 }
 0xb1b   : > { %v9005_v10 = vadd.f32 %v9336_v56, %v9004_v52  ;;  %v9574_v57 = vpop.f32.mrb[17].mxu0 }
 0xb1d   : > { %9008 = vst [vmem:[%s396_s13] sm:$0xff] %v9005_v10 }
 0xb1e   : > { %10608 = shalt.err (!%p10605_p3)
}
 0xb1f   : > { %s10609_s18 = scalar_lea.hbm %s16799_s22, 128  ;;  %s10613_s9 = scalar_lea.hbm %s16855_s7, 256 }
 0xb20   : > { %p10610_p6 = scmp.ne.s32.totalorder %s16799_s22, %s10609_s18  ;;  %p10614_p5 = scmp.lt.u32.totalorder %s16799_s22, %s16855_s7 }
 0xb21   : > { %p10615_p9 = scmp.lt.u32.totalorder %s10613_s9, %s10609_s18  ;;  %p10617_p2 = scmp.lt.u32.totalorder %s10609_s18, %s16799_s22 }
 0xb22   : > { %p10611_p13 = pnand %p10610_p6, %p10845_p10 }
 0xb23   : > { %p10616_p1 = por %p10615_p9, %p10614_p5 }
 0xb24   : > { %p10612_p0 = pneg %p10611_p13 }
 0xb25   : > { %p10618_p7 = por %p10617_p2, %p10616_p1 }
 0xb27   : > { %p10619_p4 = pnand %p10618_p7, %p10612_p0 }
 0xb29   : > { %10622 = shalt.err (!%p10619_p4)
}
 0xb2a   : > { %9607 = dma.vmem_to_hbm [thread:$0]  (%p10845_p10), %s16801_s14, 128, %s16799_s22, %s9010_s0  }
 0xb2b PF: > { %s9054_s23 = sand.u32 1, %s10669_s29   ;;  %p18701_p8 = scmp.ne.s32.totalorder %s17193_s15, 0 }
 0xb2c   : > { %p18702_p11 = scmp.ge.s32.totalorder %s10689_s12, 2  ;;  %s9055_s5 = scalar_lea.sflag [#allocation8], %s9054_s23 }
 0xb2e   : > { %p9623_p12 = pnand %p18702_p11, %p18701_p8 }
 0xb30   : > { %10660 = dma.done.wait (!%p9623_p12), %s9055_s5, 128  }
 0xb31   : > { %10662 = vsyncadd (!%p9623_p12), %s9055_s5, 4294967168  ;;  %s9064_s16 = scalar_lea.sflag [#allocation14], %s9054_s23 }
 0xb32   : > { %10664 = dma.done.wait (!%p9623_p12), %s9064_s16, 256  }
 0xb33   : > { %10666 = vsyncadd (!%p9623_p12), %s9064_s16, 4294967040  ;;  %s32_s12 = sadd.s32 1, %s10689_s12   ;;  %s18703_s19 = sld [smem:[#allocation20_spill]] }
 0xb34   : > { %p29_p3 = scmp.ge.s32.totalorder %s32_s12, 4   ;;  %s18704_s9 = sld [smem:[#allocation22_spill]] }
 0xb35   : > { %s18705_s13 = sld [smem:[#allocation21_spill]]  ;;  %s18706_s29 = smov %s10673_s30 }
 0xb36   : > { %s18708_s10 = smov %s10685_s11  ;;  %31 = sbr.rel (!%p29_p3) target bundleno = 14 (0xe), region = 136 }
 0xb39   : > { %s18707_s30 = smov %s18703_s19 }
 0xb3b   : > { %s18709_s11 = smov %s18705_s13 }
 0xb3d   :  { %9069 = vsyncpa [#allocation7], 1 }
 0xb3e   :  { %9071 = vsyncpa [#allocation7 + $0x1], 1 }
 0xb3f   :  { %9072 = vsyncpa [#allocation10], 1 }
 0xb40   :  { %9074 = vsyncpa [#allocation10 + $0x1], 1 }
 0xb41   :  { %9075 = vsyncpa [#allocation8], 1 }
 0xb42   :  { %9077 = vsyncpa [#allocation8 + $0x1], 1 }
 0xb43   :  { %9078 = vsyncpa [#allocation14], 1 }
 0xb44   :  { %9080 = vsyncpa [#allocation14 + $0x1], 1 }

</bundles_post_ra>
